<compile_context>
chip_gen: v7x
topology: tpu7x:2x2x1
jax: 0.10.0
libtpu: 0.0.40
codegen_flags: <defaults>
</compile_context>

<pallas_src>
import functools
import math

import jax
import jax.numpy as jnp
from jax import lax
from jax.experimental import pallas as pl
from jax.experimental.pallas import tpu as pltpu


def _round_up(x, m):
    return ((x + m - 1) // m) * m


def _nbytes(shape, dtype):
    return math.prod(shape) * jnp.dtype(dtype).itemsize


def _const_index(ndim):
    zeros = (0,) * ndim
    return lambda t, _z=zeros: _z


# ---------------------------------------------------------------------------
# Fused kernel: one grid step == one chunk of t_chunk timesteps of ALL layers.
# ---------------------------------------------------------------------------
def _fused_gru_kernel(n_layers, t_chunk, b_pad, h_pad, seq_len, freeze,
                      x_ref, h0_ref, *rest):
    T, Bp, Hp = t_chunk, b_pad, h_pad
    nw = 4 * n_layers
    layer_refs = rest[:nw]
    why_ref, bhy_ref = rest[nw], rest[nw + 1]
    y_ref, hstate_ref = rest[nw + 2], rest[nw + 3]
    a_sc, act_sc = rest[nw + 4], rest[nw + 5]

    t = pl.program_id(0)
    chunk_base = t * T

    # hstate_ref (constant-index output block) is the cross-chunk carry.
    @pl.when(t == 0)
    def _init():
        hstate_ref[...] = h0_ref[...]

    cur_in = x_ref                                     # (T*Bp, Ip) bf16
    for l in range(n_layers):
        wx_ref, whzr_ref, whg_ref, b3_ref = layer_refs[4 * l: 4 * l + 4]

        # Time-parallel input projection for the whole chunk, biases folded in:
        #   a = in @ [Wxz | Wxr | Wxg] + [b_z | b_r | b_g]      (one MXU GEMM)
        a_sc[...] = (jnp.dot(cur_in[...], wx_ref[...],
                             preferred_element_type=jnp.float32)
                     + b3_ref[...])

        whzr = whzr_ref[...]                           # (Hp, 2Hp) bf16, hoisted
        whg = whg_ref[...]                             # (Hp, Hp)  bf16, hoisted

        def step(tt, h, _whzr=whzr, _whg=whg):
            off = pl.multiple_of(tt * Bp, Bp)
            a_t = a_sc[pl.ds(off, Bp), :]              # (Bp, 3Hp) f32
            zr = jax.nn.sigmoid(
                a_t[:, :2 * Hp]
                + jnp.dot(h.astype(jnp.bfloat16), _whzr,
                          preferred_element_type=jnp.float32))
            z = zr[:, :Hp]
            r = zr[:, Hp:]
            g = jnp.tanh(
                a_t[:, 2 * Hp:]
                + jnp.dot((r * h).astype(jnp.bfloat16), _whg,
                          preferred_element_type=jnp.float32))
            h_new = g + z * (h - g)                    # == z*h + (1-z)*g
            if freeze:
                # Padded tail timesteps keep the carry frozen at step S-1.
                valid = (chunk_base + tt) < seq_len
                h_new = jnp.where(valid, h_new, h)
            # Per-step store in the dtype the next layer / output GEMM needs.
            act_sc[pl.ds(off, Bp), :] = h_new.astype(jnp.bfloat16)
            return h_new

        h_last = lax.fori_loop(0, T, step, hstate_ref[l], unroll=(T <= 16))
        hstate_ref[l] = h_last
        cur_in = act_sc                                # next layer's input

    # Fused output projection for the whole chunk: one (T*Bp, Hp)x(Hp, Op) GEMM,
    # one lane-dense (Op = multiple of 128) store.
    y = (jnp.dot(act_sc[...], why_ref[...], preferred_element_type=jnp.float32)
         + bhy_ref[...])
    y_ref[...] = y.astype(y_ref.dtype)


# ---------------------------------------------------------------------------
# Wrapper: PyTorch (B,S,I)/(B,L,H) conventions in/out.
# ---------------------------------------------------------------------------
def multilayer_gru_forward(x, hidden_state, params, *, t_chunk=32):
    layers = params["layers"]
    why, bhy = params["why"], params["bhy"]
    n_layers = len(layers)
    h_dim, out_dim = why.shape
    B, S, in_dim = x.shape

    if hidden_state is None:
        hidden_state = jnp.zeros((B, n_layers, h_dim), jnp.float32)

    # ---- lane / sublane padding -------------------------------------------
    Hp = _round_up(h_dim, 128)
    Op = _round_up(out_dim, 128)
    Ip = _round_up(in_dim, 128)
    Bp = _round_up(B, 16)                       # bf16 sublane tile

    t_chunk = max(8, min(int(t_chunk), _round_up(S, 8)))
    S_pad = _round_up(S, t_chunk)
    n_chunks = S_pad // t_chunk
    freeze = S_pad != S                         # padded timesteps present?

    # ---- activations: time-major, padded, flattened to (S_pad*Bp, Ip) ------
    x_tm = jnp.transpose(x, (1, 0, 2))                                  # (S,B,I)
    x_tm = jnp.pad(x_tm, ((0, S_pad - S), (0, Bp - B), (0, Ip - in_dim)))
    x_flat = x_tm.reshape(S_pad * Bp, Ip).astype(jnp.bfloat16)

    h0 = jnp.transpose(hidden_state, (1, 0, 2)).astype(jnp.float32)     # (L,B,H)
    h0 = jnp.pad(h0, ((0, 0), (0, Bp - B), (0, Hp - h_dim)))

    # ---- weights: gate-fused, per-gate lane-padded, bf16 (biases f32) ------
    def padw(w, r, c):
        return jnp.pad(w, ((0, r - w.shape[0]), (0, c - w.shape[1])))

    def padb(b, c):
        b = b.reshape(1, -1)
        return jnp.pad(b, ((0, 0), (0, c - b.shape[1])))

    flat_weights = []
    lin_p = Ip
    for lp in layers:
        wx3 = jnp.concatenate([padw(lp["w_xz"], lin_p, Hp),
                               padw(lp["w_xr"], lin_p, Hp),
                               padw(lp["w_xg"], lin_p, Hp)],
                              axis=1).astype(jnp.bfloat16)              # (in_p, 3Hp)
        whzr = jnp.concatenate([padw(lp["w_hz"], Hp, Hp),
                                padw(lp["w_hr"], Hp, Hp)],
                               axis=1).astype(jnp.bfloat16)             # (Hp, 2Hp)
        whg = padw(lp["w_hg"], Hp, Hp).astype(jnp.bfloat16)             # (Hp, Hp)
        b3 = jnp.concatenate([padb(lp["b_hz"], Hp),
                              padb(lp["b_hr"], Hp),
                              padb(lp["b_hg"], Hp)],
                             axis=1).astype(jnp.float32)                # (1, 3Hp)
        flat_weights += [wx3, whzr, whg, b3]
        lin_p = Hp
    why_p = padw(why, Hp, Op).astype(jnp.bfloat16)
    bhy_p = padb(bhy, Op).astype(jnp.float32)

    # ---- explicit VMEM budget (keeps v5e 16MiB / v7x 64MiB configs honest) --
    blk_bytes = (_nbytes((t_chunk * Bp, Ip), jnp.bfloat16)
                 + _nbytes((t_chunk * Bp, Op), x.dtype))
    resident_bytes = (2 * _nbytes((n_layers, Bp, Hp), jnp.float32)
                      + sum(_nbytes(w.shape, w.dtype) for w in flat_weights)
                      + _nbytes(why_p.shape, why_p.dtype)
                      + _nbytes(bhy_p.shape, bhy_p.dtype))
    scratch_bytes = (_nbytes((t_chunk * Bp, 3 * Hp), jnp.float32)
                     + _nbytes((t_chunk * Bp, Hp), jnp.bfloat16))
    budget = 2 * blk_bytes + 2 * resident_bytes + scratch_bytes
    vmem_limit = int(min(100 * (1 << 20), max(32 * (1 << 20), 2 * budget)))

    # ---- specs & call -------------------------------------------------------
    in_specs = ([pl.BlockSpec((t_chunk * Bp, Ip), lambda t: (t, 0)),
                 pl.BlockSpec((n_layers, Bp, Hp), _const_index(3))]
                + [pl.BlockSpec(w.shape, _const_index(w.ndim))
                   for w in flat_weights]
                + [pl.BlockSpec(why_p.shape, _const_index(2)),
                   pl.BlockSpec(bhy_p.shape, _const_index(2))])
    out_specs = [pl.BlockSpec((t_chunk * Bp, Op), lambda t: (t, 0)),
                 pl.BlockSpec((n_layers, Bp, Hp), _const_index(3))]
    out_shape = [jax.ShapeDtypeStruct((S_pad * Bp, Op), x.dtype),
                 jax.ShapeDtypeStruct((n_layers, Bp, Hp), jnp.float32)]

    kernel = functools.partial(_fused_gru_kernel, n_layers, t_chunk, Bp, Hp,
                               S, freeze)
    y_flat, h_last = pl.pallas_call(
        kernel,
        out_shape=out_shape,
        grid_spec=pltpu.PrefetchScalarGridSpec(
            num_scalar_prefetch=0,
            grid=(n_chunks,),
            in_specs=in_specs,
            out_specs=out_specs,
            scratch_shapes=[
                pltpu.VMEM((t_chunk * Bp, 3 * Hp), jnp.float32),   # staged a
                pltpu.VMEM((t_chunk * Bp, Hp), jnp.bfloat16),      # inter-layer h
            ],
        ),
        compiler_params=pltpu.CompilerParams(
            dimension_semantics=("arbitrary",),     # time recurrence is serial
            vmem_limit_bytes=vmem_limit),
    )(x_flat, h0, *flat_weights, why_p, bhy_p)

    # ---- strip padding, back to torch conventions ---------------------------
    y = y_flat.reshape(S_pad, Bp, Op)[:S, :B, :out_dim]
    y = jnp.transpose(y, (1, 0, 2))                                     # (B,S,O)
    h_final = jnp.transpose(h_last[:, :B, :h_dim], (1, 0, 2))
    return y, h_final.astype(hidden_state.dtype)


# ---------------------------------------------------------------------------
# Deterministic parameter init (per-gate, torch-equivalent semantics:
#   w_x* Linear without bias, w_h* Linear with bias, hy Linear with bias).
# Weights are stored as (in_features, out_features), i.e. x @ W.
# ---------------------------------------------------------------------------
def init_params(key, in_dim, h_dim, out_dim, n_layers, scale=0.1):
    layers = []
    lin = in_dim
    for _ in range(n_layers):
        keys = jax.random.split(key, 10)
        key = keys[0]
        kxz, kxr, kxg, khz, khr, khg, kbz, kbr, kbg = keys[1:]
        layers.append(dict(
            w_xz=scale * jax.random.normal(kxz, (lin, h_dim), jnp.float32),
            w_xr=scale * jax.random.normal(kxr, (lin, h_dim), jnp.float32),
            w_xg=scale * jax.random.normal(kxg, (lin, h_dim), jnp.float32),
            w_hz=scale * jax.random.normal(khz, (h_dim, h_dim), jnp.float32),
            w_hr=scale * jax.random.normal(khr, (h_dim, h_dim), jnp.float32),
            w_hg=scale * jax.random.normal(khg, (h_dim, h_dim), jnp.float32),
            b_hz=scale * jax.random.normal(kbz, (h_dim,), jnp.float32),
            b_hr=scale * jax.random.normal(kbr, (h_dim,), jnp.float32),
            b_hg=scale * jax.random.normal(kbg, (h_dim,), jnp.float32),
        ))
        lin = h_dim
    key, k1, k2 = jax.random.split(key, 3)
    why = scale * jax.random.normal(k1, (h_dim, out_dim), jnp.float32)
    bhy = scale * jax.random.normal(k2, (out_dim,), jnp.float32)
    return dict(layers=layers, why=why, bhy=bhy)


# ---------------------------------------------------------------------------
# Pure-JAX f32 reference (mirrors the PyTorch forward) for correctness check.
# ---------------------------------------------------------------------------
def reference_forward(x, hidden_state, params):
    layers = params["layers"]
    why, bhy = params["why"], params["bhy"]
    n_layers = len(layers)
    B, S, _ = x.shape
    h = [hidden_state[:, l, :].astype(jnp.float32) for l in range(n_layers)]
    outs = []
    for t in range(S):
        cur = x[:, t, :].astype(jnp.float32)
        for l in range(n_layers):
            lp = layers[l]
            z = jax.nn.sigmoid(cur @ lp["w_xz"] + h[l] @ lp["w_hz"] + lp["b_hz"])
            r = jax.nn.sigmoid(cur @ lp["w_xr"] + h[l] @ lp["w_hr"] + lp["b_hr"])
            g = jnp.tanh(cur @ lp["w_xg"] + (r * h[l]) @ lp["w_hg"] + lp["b_hg"])
            h[l] = z * h[l] + (1.0 - z) * g
            cur = h[l]
        outs.append(cur @ why + bhy)
    return jnp.stack(outs, axis=1), jnp.stack(h, axis=1)


if __name__ == "__main__":
    in_dim, h_dim, out_dim, n_layers = 16, 32, 16, 2

    root = jax.random.PRNGKey(0)
    k_x, k_h, k_p = jax.random.split(root, 3)
    params = init_params(k_p, in_dim, h_dim, out_dim, n_layers)

    # Config 1: S divides the chunk (no time padding).
    B, S = 2, 16
    x = jax.random.normal(k_x, (B, S, in_dim), jnp.float32)
    h0 = 0.5 * jax.random.normal(k_h, (B, n_layers, h_dim), jnp.float32)
    out, h_final = multilayer_gru_forward(x, h0, params)
    out, h_final = jax.block_until_ready((out, h_final))
    ref_out, ref_h = reference_forward(x, h0, params)
    assert out.shape == (B, S, out_dim) and h_final.shape == (B, n_layers, h_dim)
    assert jnp.allclose(out, ref_out, atol=2e-2, rtol=2e-2), \
        float(jnp.max(jnp.abs(out - ref_out)))
    assert jnp.allclose(h_final, ref_h, atol=2e-2, rtol=2e-2), \
        float(jnp.max(jnp.abs(h_final - ref_h)))

    # Config 2: S not a multiple of the chunk (exercises the padded/freeze path)
    # and a batch that needs sublane padding.
    B2, S2 = 3, 10
    k_x2, k_h2 = jax.random.split(k_x)
    x2 = jax.random.normal(k_x2, (B2, S2, in_dim), jnp.float32)
    h02 = 0.5 * jax.random.normal(k_h2, (B2, n_layers, h_dim), jnp.float32)
    out2, h2 = multilayer_gru_forward(x2, h02, params, t_chunk=8)
    out2, h2 = jax.block_until_ready((out2, h2))
    ref2, refh2 = reference_forward(x2, h02, params)
    assert out2.shape == (B2, S2, out_dim) and h2.shape == (B2, n_layers, h_dim)
    assert jnp.allclose(out2, ref2, atol=2e-2, rtol=2e-2), \
        float(jnp.max(jnp.abs(out2 - ref2)))
    assert jnp.allclose(h2, refh2, atol=2e-2, rtol=2e-2), \
        float(jnp.max(jnp.abs(h2 - refh2)))

    print("KERNEL_OK")
</pallas_src>

<mosaic_0001>
module attributes {stable_mosaic.version = 11 : i64} {
  func.func @_fused_gru_kernel(%arg0: i32, %arg1: memref<256x128xbf16, #tpu.memory_space<vmem>>, %arg2: memref<2x16x128xf32, #tpu.memory_space<vmem>>, %arg3: memref<128x384xbf16, #tpu.memory_space<vmem>>, %arg4: memref<128x256xbf16, #tpu.memory_space<vmem>>, %arg5: memref<128x128xbf16, #tpu.memory_space<vmem>>, %arg6: memref<1x384xf32, #tpu.memory_space<vmem>>, %arg7: memref<128x384xbf16, #tpu.memory_space<vmem>>, %arg8: memref<128x256xbf16, #tpu.memory_space<vmem>>, %arg9: memref<128x128xbf16, #tpu.memory_space<vmem>>, %arg10: memref<1x384xf32, #tpu.memory_space<vmem>>, %arg11: memref<128x128xbf16, #tpu.memory_space<vmem>>, %arg12: memref<1x128xf32, #tpu.memory_space<vmem>>, %arg13: memref<256x128xf32, #tpu.memory_space<vmem>>, %arg14: memref<2x16x128xf32, #tpu.memory_space<vmem>>, %arg15: memref<256x384xf32, #tpu.memory_space<vmem>>, %arg16: memref<256x128xbf16, #tpu.memory_space<vmem>>) attributes {dimension_semantics = [#tpu.dimension_semantics<arbitrary>], iteration_bounds = array<i64: 1>, scalar_prefetch = 0 : i64, scratch_operands = 2 : i64, tpu.core_type = #tpu.core_type<tc>, window_params = [{transform_indices = @transform_0, window_bounds = array<i64: 256, 128>}, {pipeline_mode = #tpu.pipeline_mode<synchronous>, transform_indices = @transform_1, window_bounds = array<i64: 2, 16, 128>}, {pipeline_mode = #tpu.pipeline_mode<synchronous>, transform_indices = @transform_2, window_bounds = array<i64: 128, 384>}, {pipeline_mode = #tpu.pipeline_mode<synchronous>, transform_indices = @transform_3, window_bounds = array<i64: 128, 256>}, {pipeline_mode = #tpu.pipeline_mode<synchronous>, transform_indices = @transform_4, window_bounds = array<i64: 128, 128>}, {pipeline_mode = #tpu.pipeline_mode<synchronous>, transform_indices = @transform_5, window_bounds = array<i64: 1, 384>}, {pipeline_mode = #tpu.pipeline_mode<synchronous>, transform_indices = @transform_6, window_bounds = array<i64: 128, 384>}, {pipeline_mode = #tpu.pipeline_mode<synchronous>, transform_indices = @transform_7, window_bounds = array<i64: 128, 256>}, {pipeline_mode = #tpu.pipeline_mode<synchronous>, transform_indices = @transform_8, window_bounds = array<i64: 128, 128>}, {pipeline_mode = #tpu.pipeline_mode<synchronous>, transform_indices = @transform_9, window_bounds = array<i64: 1, 384>}, {pipeline_mode = #tpu.pipeline_mode<synchronous>, transform_indices = @transform_10, window_bounds = array<i64: 128, 128>}, {pipeline_mode = #tpu.pipeline_mode<synchronous>, transform_indices = @transform_11, window_bounds = array<i64: 1, 128>}, {transform_indices = @transform_12, window_bounds = array<i64: 256, 128>}, {pipeline_mode = #tpu.pipeline_mode<synchronous>, transform_indices = @transform_13, window_bounds = array<i64: 2, 16, 128>}]} {
    %c0_i32 = arith.constant 0 : i32
    %0 = arith.cmpi eq, %arg0, %c0_i32 : i32
    %1 = arith.extui %0 : i1 to i32
    %c0_i32_0 = arith.constant 0 : i32
    %2 = arith.cmpi ne, %1, %c0_i32_0 : i32
    scf.if %2 {
      %c0_255 = arith.constant 0 : index
      %c0_256 = arith.constant 0 : index
      %c0_257 = arith.constant 0 : index
      %902 = vector.load %arg2[%c0_255, %c0_256, %c0_257] : memref<2x16x128xf32, #tpu.memory_space<vmem>>, vector<2x16x128xf32>
      %c0_258 = arith.constant 0 : index
      %c0_259 = arith.constant 0 : index
      %c0_260 = arith.constant 0 : index
      %903 = vector.load %arg14[%c0_258, %c0_259, %c0_260] : memref<2x16x128xf32, #tpu.memory_space<vmem>>, vector<2x16x128xf32>
      tpu.vector_store %arg14[%c0_258, %c0_259, %c0_260], %902 {strides = array<i32>} : memref<2x16x128xf32, #tpu.memory_space<vmem>>, vector<2x16x128xf32>,
    } else {
    }
    %c0 = arith.constant 0 : index
    %c0_1 = arith.constant 0 : index
    %3 = vector.load %arg1[%c0, %c0_1] : memref<256x128xbf16, #tpu.memory_space<vmem>>, vector<256x128xbf16>
    %c0_2 = arith.constant 0 : index
    %c0_3 = arith.constant 0 : index
    %4 = vector.load %arg3[%c0_2, %c0_3] : memref<128x384xbf16, #tpu.memory_space<vmem>>, vector<128x384xbf16>
    %cst = arith.constant dense<0.000000e+00> : vector<256x384xf32>
    %5 = tpu.matmul %3, %4, %cst {dimension_numbers = #tpu.dot_dimension_numbers<[1], [0], [0], [1], [0, 0, 1, 1], [], []>} : vector<256x128xbf16>, vector<128x384xbf16>, vector<256x384xf32> -> vector<256x384xf32>
    %c0_4 = arith.constant 0 : index
    %c0_5 = arith.constant 0 : index
    %6 = vector.load %arg6[%c0_4, %c0_5] : memref<1x384xf32, #tpu.memory_space<vmem>>, vector<1x384xf32>
    %7 = vector.broadcast %6 : vector<1x384xf32> to vector<256x384xf32>
    %8 = arith.addf %5, %7 : vector<256x384xf32>
    %c0_6 = arith.constant 0 : index
    %c0_7 = arith.constant 0 : index
    %9 = vector.load %arg15[%c0_6, %c0_7] : memref<256x384xf32, #tpu.memory_space<vmem>>, vector<256x384xf32>
    tpu.vector_store %arg15[%c0_6, %c0_7], %8 {strides = array<i32>} : memref<256x384xf32, #tpu.memory_space<vmem>>, vector<256x384xf32>,
    %c0_8 = arith.constant 0 : index
    %c0_9 = arith.constant 0 : index
    %10 = vector.load %arg4[%c0_8, %c0_9] : memref<128x256xbf16, #tpu.memory_space<vmem>>, vector<128x256xbf16>
    %c0_10 = arith.constant 0 : index
    %c0_11 = arith.constant 0 : index
    %11 = vector.load %arg5[%c0_10, %c0_11] : memref<128x128xbf16, #tpu.memory_space<vmem>>, vector<128x128xbf16>
    %c0_12 = arith.constant 0 : index
    %c0_13 = arith.constant 0 : index
    %c0_14 = arith.constant 0 : index
    %12 = vector.load %arg14[%c0_12, %c0_13, %c0_14] : memref<2x16x128xf32, #tpu.memory_space<vmem>>, vector<1x16x128xf32>
    %13 = vector.shape_cast %12 : vector<1x16x128xf32> to vector<16x128xf32>
    %c0_i32_15 = arith.constant 0 : i32
    %c16_i32 = arith.constant 16 : i32
    %14 = arith.muli %c0_i32_15, %c16_i32 : i32
    %15 = tpu.assume_multiple %14, 16 : i32
    %16 = arith.index_cast %15 : i32 to index
    %c0_16 = arith.constant 0 : index
    %17 = vector.load %arg15[%16, %c0_16] : memref<256x384xf32, #tpu.memory_space<vmem>>, vector<16x384xf32>
    %18 = vector.extract_strided_slice %17 {offsets = [0, 0], sizes = [16, 256], strides = [1, 1]} : vector<16x384xf32> to vector<16x256xf32>
    %19 = arith.truncf %13 : vector<16x128xf32> to vector<16x128xbf16>
    %cst_17 = arith.constant dense<0.000000e+00> : vector<16x256xf32>
    %20 = tpu.matmul %19, %10, %cst_17 {dimension_numbers = #tpu.dot_dimension_numbers<[1], [0], [0], [1], [0, 0, 1, 1], [], []>} : vector<16x128xbf16>, vector<128x256xbf16>, vector<16x256xf32> -> vector<16x256xf32>
    %21 = arith.addf %18, %20 : vector<16x256xf32>
    %22 = arith.negf %21 : vector<16x256xf32>
    %23 = math.exp %22 : vector<16x256xf32>
    %cst_18 = arith.constant 1.000000e+00 : f32
    %24 = vector.broadcast %cst_18 : f32 to vector<16x256xf32>
    %25 = arith.addf %24, %23 : vector<16x256xf32>
    %26 = arith.divf %24, %25 : vector<16x256xf32>
    %27 = vector.extract_strided_slice %26 {offsets = [0, 0], sizes = [16, 128], strides = [1, 1]} : vector<16x256xf32> to vector<16x128xf32>
    %28 = vector.extract_strided_slice %26 {offsets = [0, 128], sizes = [16, 128], strides = [1, 1]} : vector<16x256xf32> to vector<16x128xf32>
    %29 = vector.extract_strided_slice %17 {offsets = [0, 256], sizes = [16, 128], strides = [1, 1]} : vector<16x384xf32> to vector<16x128xf32>
    %30 = arith.mulf %28, %13 : vector<16x128xf32>
    %31 = arith.truncf %30 : vector<16x128xf32> to vector<16x128xbf16>
    %cst_19 = arith.constant dense<0.000000e+00> : vector<16x128xf32>
    %32 = tpu.matmul %31, %11, %cst_19 {dimension_numbers = #tpu.dot_dimension_numbers<[1], [0], [0], [1], [0, 0, 1, 1], [], []>} : vector<16x128xbf16>, vector<128x128xbf16>, vector<16x128xf32> -> vector<16x128xf32>
    %33 = arith.addf %29, %32 : vector<16x128xf32>
    %34 = math.tanh %33 : vector<16x128xf32>
    %35 = arith.subf %13, %34 : vector<16x128xf32>
    %36 = arith.mulf %27, %35 : vector<16x128xf32>
    %37 = arith.addf %34, %36 : vector<16x128xf32>
    %38 = arith.truncf %37 : vector<16x128xf32> to vector<16x128xbf16>
    %39 = arith.index_cast %15 : i32 to index
    %c0_20 = arith.constant 0 : index
    %40 = vector.load %arg16[%39, %c0_20] : memref<256x128xbf16, #tpu.memory_space<vmem>>, vector<16x128xbf16>
    tpu.vector_store %arg16[%39, %c0_20], %38 {strides = array<i32>} : memref<256x128xbf16, #tpu.memory_space<vmem>>, vector<16x128xbf16>,
    %c1_i32 = arith.constant 1 : i32
    %c16_i32_21 = arith.constant 16 : i32
    %41 = arith.muli %c1_i32, %c16_i32_21 : i32
    %42 = tpu.assume_multiple %41, 16 : i32
    %43 = arith.index_cast %42 : i32 to index
    %c0_22 = arith.constant 0 : index
    %44 = vector.load %arg15[%43, %c0_22] : memref<256x384xf32, #tpu.memory_space<vmem>>, vector<16x384xf32>
    %45 = vector.extract_strided_slice %44 {offsets = [0, 0], sizes = [16, 256], strides = [1, 1]} : vector<16x384xf32> to vector<16x256xf32>
    %46 = arith.truncf %37 : vector<16x128xf32> to vector<16x128xbf16>
    %cst_23 = arith.constant dense<0.000000e+00> : vector<16x256xf32>
    %47 = tpu.matmul %46, %10, %cst_23 {dimension_numbers = #tpu.dot_dimension_numbers<[1], [0], [0], [1], [0, 0, 1, 1], [], []>} : vector<16x128xbf16>, vector<128x256xbf16>, vector<16x256xf32> -> vector<16x256xf32>
    %48 = arith.addf %45, %47 : vector<16x256xf32>
    %49 = arith.negf %48 : vector<16x256xf32>
    %50 = math.exp %49 : vector<16x256xf32>
    %cst_24 = arith.constant 1.000000e+00 : f32
    %51 = vector.broadcast %cst_24 : f32 to vector<16x256xf32>
    %52 = arith.addf %51, %50 : vector<16x256xf32>
    %53 = arith.divf %51, %52 : vector<16x256xf32>
    %54 = vector.extract_strided_slice %53 {offsets = [0, 0], sizes = [16, 128], strides = [1, 1]} : vector<16x256xf32> to vector<16x128xf32>
    %55 = vector.extract_strided_slice %53 {offsets = [0, 128], sizes = [16, 128], strides = [1, 1]} : vector<16x256xf32> to vector<16x128xf32>
    %56 = vector.extract_strided_slice %44 {offsets = [0, 256], sizes = [16, 128], strides = [1, 1]} : vector<16x384xf32> to vector<16x128xf32>
    %57 = arith.mulf %55, %37 : vector<16x128xf32>
    %58 = arith.truncf %57 : vector<16x128xf32> to vector<16x128xbf16>
    %cst_25 = arith.constant dense<0.000000e+00> : vector<16x128xf32>
    %59 = tpu.matmul %58, %11, %cst_25 {dimension_numbers = #tpu.dot_dimension_numbers<[1], [0], [0], [1], [0, 0, 1, 1], [], []>} : vector<16x128xbf16>, vector<128x128xbf16>, vector<16x128xf32> -> vector<16x128xf32>
    %60 = arith.addf %56, %59 : vector<16x128xf32>
    %61 = math.tanh %60 : vector<16x128xf32>
    %62 = arith.subf %37, %61 : vector<16x128xf32>
    %63 = arith.mulf %54, %62 : vector<16x128xf32>
    %64 = arith.addf %61, %63 : vector<16x128xf32>
    %65 = arith.truncf %64 : vector<16x128xf32> to vector<16x128xbf16>
    %66 = arith.index_cast %42 : i32 to index
    %c0_26 = arith.constant 0 : index
    %67 = vector.load %arg16[%66, %c0_26] : memref<256x128xbf16, #tpu.memory_space<vmem>>, vector<16x128xbf16>
    tpu.vector_store %arg16[%66, %c0_26], %65 {strides = array<i32>} : memref<256x128xbf16, #tpu.memory_space<vmem>>, vector<16x128xbf16>,
    %c2_i32 = arith.constant 2 : i32
    %c16_i32_27 = arith.constant 16 : i32
    %68 = arith.muli %c2_i32, %c16_i32_27 : i32
    %69 = tpu.assume_multiple %68, 16 : i32
    %70 = arith.index_cast %69 : i32 to index
    %c0_28 = arith.constant 0 : index
    %71 = vector.load %arg15[%70, %c0_28] : memref<256x384xf32, #tpu.memory_space<vmem>>, vector<16x384xf32>
    %72 = vector.extract_strided_slice %71 {offsets = [0, 0], sizes = [16, 256], strides = [1, 1]} : vector<16x384xf32> to vector<16x256xf32>
    %73 = arith.truncf %64 : vector<16x128xf32> to vector<16x128xbf16>
    %cst_29 = arith.constant dense<0.000000e+00> : vector<16x256xf32>
    %74 = tpu.matmul %73, %10, %cst_29 {dimension_numbers = #tpu.dot_dimension_numbers<[1], [0], [0], [1], [0, 0, 1, 1], [], []>} : vector<16x128xbf16>, vector<128x256xbf16>, vector<16x256xf32> -> vector<16x256xf32>
    %75 = arith.addf %72, %74 : vector<16x256xf32>
    %76 = arith.negf %75 : vector<16x256xf32>
    %77 = math.exp %76 : vector<16x256xf32>
    %cst_30 = arith.constant 1.000000e+00 : f32
    %78 = vector.broadcast %cst_30 : f32 to vector<16x256xf32>
    %79 = arith.addf %78, %77 : vector<16x256xf32>
    %80 = arith.divf %78, %79 : vector<16x256xf32>
    %81 = vector.extract_strided_slice %80 {offsets = [0, 0], sizes = [16, 128], strides = [1, 1]} : vector<16x256xf32> to vector<16x128xf32>
    %82 = vector.extract_strided_slice %80 {offsets = [0, 128], sizes = [16, 128], strides = [1, 1]} : vector<16x256xf32> to vector<16x128xf32>
    %83 = vector.extract_strided_slice %71 {offsets = [0, 256], sizes = [16, 128], strides = [1, 1]} : vector<16x384xf32> to vector<16x128xf32>
    %84 = arith.mulf %82, %64 : vector<16x128xf32>
    %85 = arith.truncf %84 : vector<16x128xf32> to vector<16x128xbf16>
    %cst_31 = arith.constant dense<0.000000e+00> : vector<16x128xf32>
    %86 = tpu.matmul %85, %11, %cst_31 {dimension_numbers = #tpu.dot_dimension_numbers<[1], [0], [0], [1], [0, 0, 1, 1], [], []>} : vector<16x128xbf16>, vector<128x128xbf16>, vector<16x128xf32> -> vector<16x128xf32>
    %87 = arith.addf %83, %86 : vector<16x128xf32>
    %88 = math.tanh %87 : vector<16x128xf32>
    %89 = arith.subf %64, %88 : vector<16x128xf32>
    %90 = arith.mulf %81, %89 : vector<16x128xf32>
    %91 = arith.addf %88, %90 : vector<16x128xf32>
    %92 = arith.truncf %91 : vector<16x128xf32> to vector<16x128xbf16>
    %93 = arith.index_cast %69 : i32 to index
    %c0_32 = arith.constant 0 : index
    %94 = vector.load %arg16[%93, %c0_32] : memref<256x128xbf16, #tpu.memory_space<vmem>>, vector<16x128xbf16>
    tpu.vector_store %arg16[%93, %c0_32], %92 {strides = array<i32>} : memref<256x128xbf16, #tpu.memory_space<vmem>>, vector<16x128xbf16>,
    %c3_i32 = arith.constant 3 : i32
    %c16_i32_33 = arith.constant 16 : i32
    %95 = arith.muli %c3_i32, %c16_i32_33 : i32
    %96 = tpu.assume_multiple %95, 16 : i32
    %97 = arith.index_cast %96 : i32 to index
    %c0_34 = arith.constant 0 : index
    %98 = vector.load %arg15[%97, %c0_34] : memref<256x384xf32, #tpu.memory_space<vmem>>, vector<16x384xf32>
    %99 = vector.extract_strided_slice %98 {offsets = [0, 0], sizes = [16, 256], strides = [1, 1]} : vector<16x384xf32> to vector<16x256xf32>
    %100 = arith.truncf %91 : vector<16x128xf32> to vector<16x128xbf16>
    %cst_35 = arith.constant dense<0.000000e+00> : vector<16x256xf32>
    %101 = tpu.matmul %100, %10, %cst_35 {dimension_numbers = #tpu.dot_dimension_numbers<[1], [0], [0], [1], [0, 0, 1, 1], [], []>} : vector<16x128xbf16>, vector<128x256xbf16>, vector<16x256xf32> -> vector<16x256xf32>
    %102 = arith.addf %99, %101 : vector<16x256xf32>
    %103 = arith.negf %102 : vector<16x256xf32>
    %104 = math.exp %103 : vector<16x256xf32>
    %cst_36 = arith.constant 1.000000e+00 : f32
    %105 = vector.broadcast %cst_36 : f32 to vector<16x256xf32>
    %106 = arith.addf %105, %104 : vector<16x256xf32>
    %107 = arith.divf %105, %106 : vector<16x256xf32>
    %108 = vector.extract_strided_slice %107 {offsets = [0, 0], sizes = [16, 128], strides = [1, 1]} : vector<16x256xf32> to vector<16x128xf32>
    %109 = vector.extract_strided_slice %107 {offsets = [0, 128], sizes = [16, 128], strides = [1, 1]} : vector<16x256xf32> to vector<16x128xf32>
    %110 = vector.extract_strided_slice %98 {offsets = [0, 256], sizes = [16, 128], strides = [1, 1]} : vector<16x384xf32> to vector<16x128xf32>
    %111 = arith.mulf %109, %91 : vector<16x128xf32>
    %112 = arith.truncf %111 : vector<16x128xf32> to vector<16x128xbf16>
    %cst_37 = arith.constant dense<0.000000e+00> : vector<16x128xf32>
    %113 = tpu.matmul %112, %11, %cst_37 {dimension_numbers = #tpu.dot_dimension_numbers<[1], [0], [0], [1], [0, 0, 1, 1], [], []>} : vector<16x128xbf16>, vector<128x128xbf16>, vector<16x128xf32> -> vector<16x128xf32>
    %114 = arith.addf %110, %113 : vector<16x128xf32>
    %115 = math.tanh %114 : vector<16x128xf32>
    %116 = arith.subf %91, %115 : vector<16x128xf32>
    %117 = arith.mulf %108, %116 : vector<16x128xf32>
    %118 = arith.addf %115, %117 : vector<16x128xf32>
    %119 = arith.truncf %118 : vector<16x128xf32> to vector<16x128xbf16>
    %120 = arith.index_cast %96 : i32 to index
    %c0_38 = arith.constant 0 : index
    %121 = vector.load %arg16[%120, %c0_38] : memref<256x128xbf16, #tpu.memory_space<vmem>>, vector<16x128xbf16>
    tpu.vector_store %arg16[%120, %c0_38], %119 {strides = array<i32>} : memref<256x128xbf16, #tpu.memory_space<vmem>>, vector<16x128xbf16>,
    %c4_i32 = arith.constant 4 : i32
    %c16_i32_39 = arith.constant 16 : i32
    %122 = arith.muli %c4_i32, %c16_i32_39 : i32
    %123 = tpu.assume_multiple %122, 16 : i32
    %124 = arith.index_cast %123 : i32 to index
    %c0_40 = arith.constant 0 : index
    %125 = vector.load %arg15[%124, %c0_40] : memref<256x384xf32, #tpu.memory_space<vmem>>, vector<16x384xf32>
    %126 = vector.extract_strided_slice %125 {offsets = [0, 0], sizes = [16, 256], strides = [1, 1]} : vector<16x384xf32> to vector<16x256xf32>
    %127 = arith.truncf %118 : vector<16x128xf32> to vector<16x128xbf16>
    %cst_41 = arith.constant dense<0.000000e+00> : vector<16x256xf32>
    %128 = tpu.matmul %127, %10, %cst_41 {dimension_numbers = #tpu.dot_dimension_numbers<[1], [0], [0], [1], [0, 0, 1, 1], [], []>} : vector<16x128xbf16>, vector<128x256xbf16>, vector<16x256xf32> -> vector<16x256xf32>
    %129 = arith.addf %126, %128 : vector<16x256xf32>
    %130 = arith.negf %129 : vector<16x256xf32>
    %131 = math.exp %130 : vector<16x256xf32>
    %cst_42 = arith.constant 1.000000e+00 : f32
    %132 = vector.broadcast %cst_42 : f32 to vector<16x256xf32>
    %133 = arith.addf %132, %131 : vector<16x256xf32>
    %134 = arith.divf %132, %133 : vector<16x256xf32>
    %135 = vector.extract_strided_slice %134 {offsets = [0, 0], sizes = [16, 128], strides = [1, 1]} : vector<16x256xf32> to vector<16x128xf32>
    %136 = vector.extract_strided_slice %134 {offsets = [0, 128], sizes = [16, 128], strides = [1, 1]} : vector<16x256xf32> to vector<16x128xf32>
    %137 = vector.extract_strided_slice %125 {offsets = [0, 256], sizes = [16, 128], strides = [1, 1]} : vector<16x384xf32> to vector<16x128xf32>
    %138 = arith.mulf %136, %118 : vector<16x128xf32>
    %139 = arith.truncf %138 : vector<16x128xf32> to vector<16x128xbf16>
    %cst_43 = arith.constant dense<0.000000e+00> : vector<16x128xf32>
    %140 = tpu.matmul %139, %11, %cst_43 {dimension_numbers = #tpu.dot_dimension_numbers<[1], [0], [0], [1], [0, 0, 1, 1], [], []>} : vector<16x128xbf16>, vector<128x128xbf16>, vector<16x128xf32> -> vector<16x128xf32>
    %141 = arith.addf %137, %140 : vector<16x128xf32>
    %142 = math.tanh %141 : vector<16x128xf32>
    %143 = arith.subf %118, %142 : vector<16x128xf32>
    %144 = arith.mulf %135, %143 : vector<16x128xf32>
    %145 = arith.addf %142, %144 : vector<16x128xf32>
    %146 = arith.truncf %145 : vector<16x128xf32> to vector<16x128xbf16>
    %147 = arith.index_cast %123 : i32 to index
    %c0_44 = arith.constant 0 : index
    %148 = vector.load %arg16[%147, %c0_44] : memref<256x128xbf16, #tpu.memory_space<vmem>>, vector<16x128xbf16>
    tpu.vector_store %arg16[%147, %c0_44], %146 {strides = array<i32>} : memref<256x128xbf16, #tpu.memory_space<vmem>>, vector<16x128xbf16>,
    %c5_i32 = arith.constant 5 : i32
    %c16_i32_45 = arith.constant 16 : i32
    %149 = arith.muli %c5_i32, %c16_i32_45 : i32
    %150 = tpu.assume_multiple %149, 16 : i32
    %151 = arith.index_cast %150 : i32 to index
    %c0_46 = arith.constant 0 : index
    %152 = vector.load %arg15[%151, %c0_46] : memref<256x384xf32, #tpu.memory_space<vmem>>, vector<16x384xf32>
    %153 = vector.extract_strided_slice %152 {offsets = [0, 0], sizes = [16, 256], strides = [1, 1]} : vector<16x384xf32> to vector<16x256xf32>
    %154 = arith.truncf %145 : vector<16x128xf32> to vector<16x128xbf16>
    %cst_47 = arith.constant dense<0.000000e+00> : vector<16x256xf32>
    %155 = tpu.matmul %154, %10, %cst_47 {dimension_numbers = #tpu.dot_dimension_numbers<[1], [0], [0], [1], [0, 0, 1, 1], [], []>} : vector<16x128xbf16>, vector<128x256xbf16>, vector<16x256xf32> -> vector<16x256xf32>
    %156 = arith.addf %153, %155 : vector<16x256xf32>
    %157 = arith.negf %156 : vector<16x256xf32>
    %158 = math.exp %157 : vector<16x256xf32>
    %cst_48 = arith.constant 1.000000e+00 : f32
    %159 = vector.broadcast %cst_48 : f32 to vector<16x256xf32>
    %160 = arith.addf %159, %158 : vector<16x256xf32>
    %161 = arith.divf %159, %160 : vector<16x256xf32>
    %162 = vector.extract_strided_slice %161 {offsets = [0, 0], sizes = [16, 128], strides = [1, 1]} : vector<16x256xf32> to vector<16x128xf32>
    %163 = vector.extract_strided_slice %161 {offsets = [0, 128], sizes = [16, 128], strides = [1, 1]} : vector<16x256xf32> to vector<16x128xf32>
    %164 = vector.extract_strided_slice %152 {offsets = [0, 256], sizes = [16, 128], strides = [1, 1]} : vector<16x384xf32> to vector<16x128xf32>
    %165 = arith.mulf %163, %145 : vector<16x128xf32>
    %166 = arith.truncf %165 : vector<16x128xf32> to vector<16x128xbf16>
    %cst_49 = arith.constant dense<0.000000e+00> : vector<16x128xf32>
    %167 = tpu.matmul %166, %11, %cst_49 {dimension_numbers = #tpu.dot_dimension_numbers<[1], [0], [0], [1], [0, 0, 1, 1], [], []>} : vector<16x128xbf16>, vector<128x128xbf16>, vector<16x128xf32> -> vector<16x128xf32>
    %168 = arith.addf %164, %167 : vector<16x128xf32>
    %169 = math.tanh %168 : vector<16x128xf32>
    %170 = arith.subf %145, %169 : vector<16x128xf32>
    %171 = arith.mulf %162, %170 : vector<16x128xf32>
    %172 = arith.addf %169, %171 : vector<16x128xf32>
    %173 = arith.truncf %172 : vector<16x128xf32> to vector<16x128xbf16>
    %174 = arith.index_cast %150 : i32 to index
    %c0_50 = arith.constant 0 : index
    %175 = vector.load %arg16[%174, %c0_50] : memref<256x128xbf16, #tpu.memory_space<vmem>>, vector<16x128xbf16>
    tpu.vector_store %arg16[%174, %c0_50], %173 {strides = array<i32>} : memref<256x128xbf16, #tpu.memory_space<vmem>>, vector<16x128xbf16>,
    %c6_i32 = arith.constant 6 : i32
    %c16_i32_51 = arith.constant 16 : i32
    %176 = arith.muli %c6_i32, %c16_i32_51 : i32
    %177 = tpu.assume_multiple %176, 16 : i32
    %178 = arith.index_cast %177 : i32 to index
    %c0_52 = arith.constant 0 : index
    %179 = vector.load %arg15[%178, %c0_52] : memref<256x384xf32, #tpu.memory_space<vmem>>, vector<16x384xf32>
    %180 = vector.extract_strided_slice %179 {offsets = [0, 0], sizes = [16, 256], strides = [1, 1]} : vector<16x384xf32> to vector<16x256xf32>
    %181 = arith.truncf %172 : vector<16x128xf32> to vector<16x128xbf16>
    %cst_53 = arith.constant dense<0.000000e+00> : vector<16x256xf32>
    %182 = tpu.matmul %181, %10, %cst_53 {dimension_numbers = #tpu.dot_dimension_numbers<[1], [0], [0], [1], [0, 0, 1, 1], [], []>} : vector<16x128xbf16>, vector<128x256xbf16>, vector<16x256xf32> -> vector<16x256xf32>
    %183 = arith.addf %180, %182 : vector<16x256xf32>
    %184 = arith.negf %183 : vector<16x256xf32>
    %185 = math.exp %184 : vector<16x256xf32>
    %cst_54 = arith.constant 1.000000e+00 : f32
    %186 = vector.broadcast %cst_54 : f32 to vector<16x256xf32>
    %187 = arith.addf %186, %185 : vector<16x256xf32>
    %188 = arith.divf %186, %187 : vector<16x256xf32>
    %189 = vector.extract_strided_slice %188 {offsets = [0, 0], sizes = [16, 128], strides = [1, 1]} : vector<16x256xf32> to vector<16x128xf32>
    %190 = vector.extract_strided_slice %188 {offsets = [0, 128], sizes = [16, 128], strides = [1, 1]} : vector<16x256xf32> to vector<16x128xf32>
    %191 = vector.extract_strided_slice %179 {offsets = [0, 256], sizes = [16, 128], strides = [1, 1]} : vector<16x384xf32> to vector<16x128xf32>
    %192 = arith.mulf %190, %172 : vector<16x128xf32>
    %193 = arith.truncf %192 : vector<16x128xf32> to vector<16x128xbf16>
    %cst_55 = arith.constant dense<0.000000e+00> : vector<16x128xf32>
    %194 = tpu.matmul %193, %11, %cst_55 {dimension_numbers = #tpu.dot_dimension_numbers<[1], [0], [0], [1], [0, 0, 1, 1], [], []>} : vector<16x128xbf16>, vector<128x128xbf16>, vector<16x128xf32> -> vector<16x128xf32>
    %195 = arith.addf %191, %194 : vector<16x128xf32>
    %196 = math.tanh %195 : vector<16x128xf32>
    %197 = arith.subf %172, %196 : vector<16x128xf32>
    %198 = arith.mulf %189, %197 : vector<16x128xf32>
    %199 = arith.addf %196, %198 : vector<16x128xf32>
    %200 = arith.truncf %199 : vector<16x128xf32> to vector<16x128xbf16>
    %201 = arith.index_cast %177 : i32 to index
    %c0_56 = arith.constant 0 : index
    %202 = vector.load %arg16[%201, %c0_56] : memref<256x128xbf16, #tpu.memory_space<vmem>>, vector<16x128xbf16>
    tpu.vector_store %arg16[%201, %c0_56], %200 {strides = array<i32>} : memref<256x128xbf16, #tpu.memory_space<vmem>>, vector<16x128xbf16>,
    %c7_i32 = arith.constant 7 : i32
    %c16_i32_57 = arith.constant 16 : i32
    %203 = arith.muli %c7_i32, %c16_i32_57 : i32
    %204 = tpu.assume_multiple %203, 16 : i32
    %205 = arith.index_cast %204 : i32 to index
    %c0_58 = arith.constant 0 : index
    %206 = vector.load %arg15[%205, %c0_58] : memref<256x384xf32, #tpu.memory_space<vmem>>, vector<16x384xf32>
    %207 = vector.extract_strided_slice %206 {offsets = [0, 0], sizes = [16, 256], strides = [1, 1]} : vector<16x384xf32> to vector<16x256xf32>
    %208 = arith.truncf %199 : vector<16x128xf32> to vector<16x128xbf16>
    %cst_59 = arith.constant dense<0.000000e+00> : vector<16x256xf32>
    %209 = tpu.matmul %208, %10, %cst_59 {dimension_numbers = #tpu.dot_dimension_numbers<[1], [0], [0], [1], [0, 0, 1, 1], [], []>} : vector<16x128xbf16>, vector<128x256xbf16>, vector<16x256xf32> -> vector<16x256xf32>
    %210 = arith.addf %207, %209 : vector<16x256xf32>
    %211 = arith.negf %210 : vector<16x256xf32>
    %212 = math.exp %211 : vector<16x256xf32>
    %cst_60 = arith.constant 1.000000e+00 : f32
    %213 = vector.broadcast %cst_60 : f32 to vector<16x256xf32>
    %214 = arith.addf %213, %212 : vector<16x256xf32>
    %215 = arith.divf %213, %214 : vector<16x256xf32>
    %216 = vector.extract_strided_slice %215 {offsets = [0, 0], sizes = [16, 128], strides = [1, 1]} : vector<16x256xf32> to vector<16x128xf32>
    %217 = vector.extract_strided_slice %215 {offsets = [0, 128], sizes = [16, 128], strides = [1, 1]} : vector<16x256xf32> to vector<16x128xf32>
    %218 = vector.extract_strided_slice %206 {offsets = [0, 256], sizes = [16, 128], strides = [1, 1]} : vector<16x384xf32> to vector<16x128xf32>
    %219 = arith.mulf %217, %199 : vector<16x128xf32>
    %220 = arith.truncf %219 : vector<16x128xf32> to vector<16x128xbf16>
    %cst_61 = arith.constant dense<0.000000e+00> : vector<16x128xf32>
    %221 = tpu.matmul %220, %11, %cst_61 {dimension_numbers = #tpu.dot_dimension_numbers<[1], [0], [0], [1], [0, 0, 1, 1], [], []>} : vector<16x128xbf16>, vector<128x128xbf16>, vector<16x128xf32> -> vector<16x128xf32>
    %222 = arith.addf %218, %221 : vector<16x128xf32>
    %223 = math.tanh %222 : vector<16x128xf32>
    %224 = arith.subf %199, %223 : vector<16x128xf32>
    %225 = arith.mulf %216, %224 : vector<16x128xf32>
    %226 = arith.addf %223, %225 : vector<16x128xf32>
    %227 = arith.truncf %226 : vector<16x128xf32> to vector<16x128xbf16>
    %228 = arith.index_cast %204 : i32 to index
    %c0_62 = arith.constant 0 : index
    %229 = vector.load %arg16[%228, %c0_62] : memref<256x128xbf16, #tpu.memory_space<vmem>>, vector<16x128xbf16>
    tpu.vector_store %arg16[%228, %c0_62], %227 {strides = array<i32>} : memref<256x128xbf16, #tpu.memory_space<vmem>>, vector<16x128xbf16>,
    %c8_i32 = arith.constant 8 : i32
    %c16_i32_63 = arith.constant 16 : i32
    %230 = arith.muli %c8_i32, %c16_i32_63 : i32
    %231 = tpu.assume_multiple %230, 16 : i32
    %232 = arith.index_cast %231 : i32 to index
    %c0_64 = arith.constant 0 : index
    %233 = vector.load %arg15[%232, %c0_64] : memref<256x384xf32, #tpu.memory_space<vmem>>, vector<16x384xf32>
    %234 = vector.extract_strided_slice %233 {offsets = [0, 0], sizes = [16, 256], strides = [1, 1]} : vector<16x384xf32> to vector<16x256xf32>
    %235 = arith.truncf %226 : vector<16x128xf32> to vector<16x128xbf16>
    %cst_65 = arith.constant dense<0.000000e+00> : vector<16x256xf32>
    %236 = tpu.matmul %235, %10, %cst_65 {dimension_numbers = #tpu.dot_dimension_numbers<[1], [0], [0], [1], [0, 0, 1, 1], [], []>} : vector<16x128xbf16>, vector<128x256xbf16>, vector<16x256xf32> -> vector<16x256xf32>
    %237 = arith.addf %234, %236 : vector<16x256xf32>
    %238 = arith.negf %237 : vector<16x256xf32>
    %239 = math.exp %238 : vector<16x256xf32>
    %cst_66 = arith.constant 1.000000e+00 : f32
    %240 = vector.broadcast %cst_66 : f32 to vector<16x256xf32>
    %241 = arith.addf %240, %239 : vector<16x256xf32>
    %242 = arith.divf %240, %241 : vector<16x256xf32>
    %243 = vector.extract_strided_slice %242 {offsets = [0, 0], sizes = [16, 128], strides = [1, 1]} : vector<16x256xf32> to vector<16x128xf32>
    %244 = vector.extract_strided_slice %242 {offsets = [0, 128], sizes = [16, 128], strides = [1, 1]} : vector<16x256xf32> to vector<16x128xf32>
    %245 = vector.extract_strided_slice %233 {offsets = [0, 256], sizes = [16, 128], strides = [1, 1]} : vector<16x384xf32> to vector<16x128xf32>
    %246 = arith.mulf %244, %226 : vector<16x128xf32>
    %247 = arith.truncf %246 : vector<16x128xf32> to vector<16x128xbf16>
    %cst_67 = arith.constant dense<0.000000e+00> : vector<16x128xf32>
    %248 = tpu.matmul %247, %11, %cst_67 {dimension_numbers = #tpu.dot_dimension_numbers<[1], [0], [0], [1], [0, 0, 1, 1], [], []>} : vector<16x128xbf16>, vector<128x128xbf16>, vector<16x128xf32> -> vector<16x128xf32>
    %249 = arith.addf %245, %248 : vector<16x128xf32>
    %250 = math.tanh %249 : vector<16x128xf32>
    %251 = arith.subf %226, %250 : vector<16x128xf32>
    %252 = arith.mulf %243, %251 : vector<16x128xf32>
    %253 = arith.addf %250, %252 : vector<16x128xf32>
    %254 = arith.truncf %253 : vector<16x128xf32> to vector<16x128xbf16>
    %255 = arith.index_cast %231 : i32 to index
    %c0_68 = arith.constant 0 : index
    %256 = vector.load %arg16[%255, %c0_68] : memref<256x128xbf16, #tpu.memory_space<vmem>>, vector<16x128xbf16>
    tpu.vector_store %arg16[%255, %c0_68], %254 {strides = array<i32>} : memref<256x128xbf16, #tpu.memory_space<vmem>>, vector<16x128xbf16>,
    %c9_i32 = arith.constant 9 : i32
    %c16_i32_69 = arith.constant 16 : i32
    %257 = arith.muli %c9_i32, %c16_i32_69 : i32
    %258 = tpu.assume_multiple %257, 16 : i32
    %259 = arith.index_cast %258 : i32 to index
    %c0_70 = arith.constant 0 : index
    %260 = vector.load %arg15[%259, %c0_70] : memref<256x384xf32, #tpu.memory_space<vmem>>, vector<16x384xf32>
    %261 = vector.extract_strided_slice %260 {offsets = [0, 0], sizes = [16, 256], strides = [1, 1]} : vector<16x384xf32> to vector<16x256xf32>
    %262 = arith.truncf %253 : vector<16x128xf32> to vector<16x128xbf16>
    %cst_71 = arith.constant dense<0.000000e+00> : vector<16x256xf32>
    %263 = tpu.matmul %262, %10, %cst_71 {dimension_numbers = #tpu.dot_dimension_numbers<[1], [0], [0], [1], [0, 0, 1, 1], [], []>} : vector<16x128xbf16>, vector<128x256xbf16>, vector<16x256xf32> -> vector<16x256xf32>
    %264 = arith.addf %261, %263 : vector<16x256xf32>
    %265 = arith.negf %264 : vector<16x256xf32>
    %266 = math.exp %265 : vector<16x256xf32>
    %cst_72 = arith.constant 1.000000e+00 : f32
    %267 = vector.broadcast %cst_72 : f32 to vector<16x256xf32>
    %268 = arith.addf %267, %266 : vector<16x256xf32>
    %269 = arith.divf %267, %268 : vector<16x256xf32>
    %270 = vector.extract_strided_slice %269 {offsets = [0, 0], sizes = [16, 128], strides = [1, 1]} : vector<16x256xf32> to vector<16x128xf32>
    %271 = vector.extract_strided_slice %269 {offsets = [0, 128], sizes = [16, 128], strides = [1, 1]} : vector<16x256xf32> to vector<16x128xf32>
    %272 = vector.extract_strided_slice %260 {offsets = [0, 256], sizes = [16, 128], strides = [1, 1]} : vector<16x384xf32> to vector<16x128xf32>
    %273 = arith.mulf %271, %253 : vector<16x128xf32>
    %274 = arith.truncf %273 : vector<16x128xf32> to vector<16x128xbf16>
    %cst_73 = arith.constant dense<0.000000e+00> : vector<16x128xf32>
    %275 = tpu.matmul %274, %11, %cst_73 {dimension_numbers = #tpu.dot_dimension_numbers<[1], [0], [0], [1], [0, 0, 1, 1], [], []>} : vector<16x128xbf16>, vector<128x128xbf16>, vector<16x128xf32> -> vector<16x128xf32>
    %276 = arith.addf %272, %275 : vector<16x128xf32>
    %277 = math.tanh %276 : vector<16x128xf32>
    %278 = arith.subf %253, %277 : vector<16x128xf32>
    %279 = arith.mulf %270, %278 : vector<16x128xf32>
    %280 = arith.addf %277, %279 : vector<16x128xf32>
    %281 = arith.truncf %280 : vector<16x128xf32> to vector<16x128xbf16>
    %282 = arith.index_cast %258 : i32 to index
    %c0_74 = arith.constant 0 : index
    %283 = vector.load %arg16[%282, %c0_74] : memref<256x128xbf16, #tpu.memory_space<vmem>>, vector<16x128xbf16>
    tpu.vector_store %arg16[%282, %c0_74], %281 {strides = array<i32>} : memref<256x128xbf16, #tpu.memory_space<vmem>>, vector<16x128xbf16>,
    %c10_i32 = arith.constant 10 : i32
    %c16_i32_75 = arith.constant 16 : i32
    %284 = arith.muli %c10_i32, %c16_i32_75 : i32
    %285 = tpu.assume_multiple %284, 16 : i32
    %286 = arith.index_cast %285 : i32 to index
    %c0_76 = arith.constant 0 : index
    %287 = vector.load %arg15[%286, %c0_76] : memref<256x384xf32, #tpu.memory_space<vmem>>, vector<16x384xf32>
    %288 = vector.extract_strided_slice %287 {offsets = [0, 0], sizes = [16, 256], strides = [1, 1]} : vector<16x384xf32> to vector<16x256xf32>
    %289 = arith.truncf %280 : vector<16x128xf32> to vector<16x128xbf16>
    %cst_77 = arith.constant dense<0.000000e+00> : vector<16x256xf32>
    %290 = tpu.matmul %289, %10, %cst_77 {dimension_numbers = #tpu.dot_dimension_numbers<[1], [0], [0], [1], [0, 0, 1, 1], [], []>} : vector<16x128xbf16>, vector<128x256xbf16>, vector<16x256xf32> -> vector<16x256xf32>
    %291 = arith.addf %288, %290 : vector<16x256xf32>
    %292 = arith.negf %291 : vector<16x256xf32>
    %293 = math.exp %292 : vector<16x256xf32>
    %cst_78 = arith.constant 1.000000e+00 : f32
    %294 = vector.broadcast %cst_78 : f32 to vector<16x256xf32>
    %295 = arith.addf %294, %293 : vector<16x256xf32>
    %296 = arith.divf %294, %295 : vector<16x256xf32>
    %297 = vector.extract_strided_slice %296 {offsets = [0, 0], sizes = [16, 128], strides = [1, 1]} : vector<16x256xf32> to vector<16x128xf32>
    %298 = vector.extract_strided_slice %296 {offsets = [0, 128], sizes = [16, 128], strides = [1, 1]} : vector<16x256xf32> to vector<16x128xf32>
    %299 = vector.extract_strided_slice %287 {offsets = [0, 256], sizes = [16, 128], strides = [1, 1]} : vector<16x384xf32> to vector<16x128xf32>
    %300 = arith.mulf %298, %280 : vector<16x128xf32>
    %301 = arith.truncf %300 : vector<16x128xf32> to vector<16x128xbf16>
    %cst_79 = arith.constant dense<0.000000e+00> : vector<16x128xf32>
    %302 = tpu.matmul %301, %11, %cst_79 {dimension_numbers = #tpu.dot_dimension_numbers<[1], [0], [0], [1], [0, 0, 1, 1], [], []>} : vector<16x128xbf16>, vector<128x128xbf16>, vector<16x128xf32> -> vector<16x128xf32>
    %303 = arith.addf %299, %302 : vector<16x128xf32>
    %304 = math.tanh %303 : vector<16x128xf32>
    %305 = arith.subf %280, %304 : vector<16x128xf32>
    %306 = arith.mulf %297, %305 : vector<16x128xf32>
    %307 = arith.addf %304, %306 : vector<16x128xf32>
    %308 = arith.truncf %307 : vector<16x128xf32> to vector<16x128xbf16>
    %309 = arith.index_cast %285 : i32 to index
    %c0_80 = arith.constant 0 : index
    %310 = vector.load %arg16[%309, %c0_80] : memref<256x128xbf16, #tpu.memory_space<vmem>>, vector<16x128xbf16>
    tpu.vector_store %arg16[%309, %c0_80], %308 {strides = array<i32>} : memref<256x128xbf16, #tpu.memory_space<vmem>>, vector<16x128xbf16>,
    %c11_i32 = arith.constant 11 : i32
    %c16_i32_81 = arith.constant 16 : i32
    %311 = arith.muli %c11_i32, %c16_i32_81 : i32
    %312 = tpu.assume_multiple %311, 16 : i32
    %313 = arith.index_cast %312 : i32 to index
    %c0_82 = arith.constant 0 : index
    %314 = vector.load %arg15[%313, %c0_82] : memref<256x384xf32, #tpu.memory_space<vmem>>, vector<16x384xf32>
    %315 = vector.extract_strided_slice %314 {offsets = [0, 0], sizes = [16, 256], strides = [1, 1]} : vector<16x384xf32> to vector<16x256xf32>
    %316 = arith.truncf %307 : vector<16x128xf32> to vector<16x128xbf16>
    %cst_83 = arith.constant dense<0.000000e+00> : vector<16x256xf32>
    %317 = tpu.matmul %316, %10, %cst_83 {dimension_numbers = #tpu.dot_dimension_numbers<[1], [0], [0], [1], [0, 0, 1, 1], [], []>} : vector<16x128xbf16>, vector<128x256xbf16>, vector<16x256xf32> -> vector<16x256xf32>
    %318 = arith.addf %315, %317 : vector<16x256xf32>
    %319 = arith.negf %318 : vector<16x256xf32>
    %320 = math.exp %319 : vector<16x256xf32>
    %cst_84 = arith.constant 1.000000e+00 : f32
    %321 = vector.broadcast %cst_84 : f32 to vector<16x256xf32>
    %322 = arith.addf %321, %320 : vector<16x256xf32>
    %323 = arith.divf %321, %322 : vector<16x256xf32>
    %324 = vector.extract_strided_slice %323 {offsets = [0, 0], sizes = [16, 128], strides = [1, 1]} : vector<16x256xf32> to vector<16x128xf32>
    %325 = vector.extract_strided_slice %323 {offsets = [0, 128], sizes = [16, 128], strides = [1, 1]} : vector<16x256xf32> to vector<16x128xf32>
    %326 = vector.extract_strided_slice %314 {offsets = [0, 256], sizes = [16, 128], strides = [1, 1]} : vector<16x384xf32> to vector<16x128xf32>
    %327 = arith.mulf %325, %307 : vector<16x128xf32>
    %328 = arith.truncf %327 : vector<16x128xf32> to vector<16x128xbf16>
    %cst_85 = arith.constant dense<0.000000e+00> : vector<16x128xf32>
    %329 = tpu.matmul %328, %11, %cst_85 {dimension_numbers = #tpu.dot_dimension_numbers<[1], [0], [0], [1], [0, 0, 1, 1], [], []>} : vector<16x128xbf16>, vector<128x128xbf16>, vector<16x128xf32> -> vector<16x128xf32>
    %330 = arith.addf %326, %329 : vector<16x128xf32>
    %331 = math.tanh %330 : vector<16x128xf32>
    %332 = arith.subf %307, %331 : vector<16x128xf32>
    %333 = arith.mulf %324, %332 : vector<16x128xf32>
    %334 = arith.addf %331, %333 : vector<16x128xf32>
    %335 = arith.truncf %334 : vector<16x128xf32> to vector<16x128xbf16>
    %336 = arith.index_cast %312 : i32 to index
    %c0_86 = arith.constant 0 : index
    %337 = vector.load %arg16[%336, %c0_86] : memref<256x128xbf16, #tpu.memory_space<vmem>>, vector<16x128xbf16>
    tpu.vector_store %arg16[%336, %c0_86], %335 {strides = array<i32>} : memref<256x128xbf16, #tpu.memory_space<vmem>>, vector<16x128xbf16>,
    %c12_i32 = arith.constant 12 : i32
    %c16_i32_87 = arith.constant 16 : i32
    %338 = arith.muli %c12_i32, %c16_i32_87 : i32
    %339 = tpu.assume_multiple %338, 16 : i32
    %340 = arith.index_cast %339 : i32 to index
    %c0_88 = arith.constant 0 : index
    %341 = vector.load %arg15[%340, %c0_88] : memref<256x384xf32, #tpu.memory_space<vmem>>, vector<16x384xf32>
    %342 = vector.extract_strided_slice %341 {offsets = [0, 0], sizes = [16, 256], strides = [1, 1]} : vector<16x384xf32> to vector<16x256xf32>
    %343 = arith.truncf %334 : vector<16x128xf32> to vector<16x128xbf16>
    %cst_89 = arith.constant dense<0.000000e+00> : vector<16x256xf32>
    %344 = tpu.matmul %343, %10, %cst_89 {dimension_numbers = #tpu.dot_dimension_numbers<[1], [0], [0], [1], [0, 0, 1, 1], [], []>} : vector<16x128xbf16>, vector<128x256xbf16>, vector<16x256xf32> -> vector<16x256xf32>
    %345 = arith.addf %342, %344 : vector<16x256xf32>
    %346 = arith.negf %345 : vector<16x256xf32>
    %347 = math.exp %346 : vector<16x256xf32>
    %cst_90 = arith.constant 1.000000e+00 : f32
    %348 = vector.broadcast %cst_90 : f32 to vector<16x256xf32>
    %349 = arith.addf %348, %347 : vector<16x256xf32>
    %350 = arith.divf %348, %349 : vector<16x256xf32>
    %351 = vector.extract_strided_slice %350 {offsets = [0, 0], sizes = [16, 128], strides = [1, 1]} : vector<16x256xf32> to vector<16x128xf32>
    %352 = vector.extract_strided_slice %350 {offsets = [0, 128], sizes = [16, 128], strides = [1, 1]} : vector<16x256xf32> to vector<16x128xf32>
    %353 = vector.extract_strided_slice %341 {offsets = [0, 256], sizes = [16, 128], strides = [1, 1]} : vector<16x384xf32> to vector<16x128xf32>
    %354 = arith.mulf %352, %334 : vector<16x128xf32>
    %355 = arith.truncf %354 : vector<16x128xf32> to vector<16x128xbf16>
    %cst_91 = arith.constant dense<0.000000e+00> : vector<16x128xf32>
    %356 = tpu.matmul %355, %11, %cst_91 {dimension_numbers = #tpu.dot_dimension_numbers<[1], [0], [0], [1], [0, 0, 1, 1], [], []>} : vector<16x128xbf16>, vector<128x128xbf16>, vector<16x128xf32> -> vector<16x128xf32>
    %357 = arith.addf %353, %356 : vector<16x128xf32>
    %358 = math.tanh %357 : vector<16x128xf32>
    %359 = arith.subf %334, %358 : vector<16x128xf32>
    %360 = arith.mulf %351, %359 : vector<16x128xf32>
    %361 = arith.addf %358, %360 : vector<16x128xf32>
    %362 = arith.truncf %361 : vector<16x128xf32> to vector<16x128xbf16>
    %363 = arith.index_cast %339 : i32 to index
    %c0_92 = arith.constant 0 : index
    %364 = vector.load %arg16[%363, %c0_92] : memref<256x128xbf16, #tpu.memory_space<vmem>>, vector<16x128xbf16>
    tpu.vector_store %arg16[%363, %c0_92], %362 {strides = array<i32>} : memref<256x128xbf16, #tpu.memory_space<vmem>>, vector<16x128xbf16>,
    %c13_i32 = arith.constant 13 : i32
    %c16_i32_93 = arith.constant 16 : i32
    %365 = arith.muli %c13_i32, %c16_i32_93 : i32
    %366 = tpu.assume_multiple %365, 16 : i32
    %367 = arith.index_cast %366 : i32 to index
    %c0_94 = arith.constant 0 : index
    %368 = vector.load %arg15[%367, %c0_94] : memref<256x384xf32, #tpu.memory_space<vmem>>, vector<16x384xf32>
    %369 = vector.extract_strided_slice %368 {offsets = [0, 0], sizes = [16, 256], strides = [1, 1]} : vector<16x384xf32> to vector<16x256xf32>
    %370 = arith.truncf %361 : vector<16x128xf32> to vector<16x128xbf16>
    %cst_95 = arith.constant dense<0.000000e+00> : vector<16x256xf32>
    %371 = tpu.matmul %370, %10, %cst_95 {dimension_numbers = #tpu.dot_dimension_numbers<[1], [0], [0], [1], [0, 0, 1, 1], [], []>} : vector<16x128xbf16>, vector<128x256xbf16>, vector<16x256xf32> -> vector<16x256xf32>
    %372 = arith.addf %369, %371 : vector<16x256xf32>
    %373 = arith.negf %372 : vector<16x256xf32>
    %374 = math.exp %373 : vector<16x256xf32>
    %cst_96 = arith.constant 1.000000e+00 : f32
    %375 = vector.broadcast %cst_96 : f32 to vector<16x256xf32>
    %376 = arith.addf %375, %374 : vector<16x256xf32>
    %377 = arith.divf %375, %376 : vector<16x256xf32>
    %378 = vector.extract_strided_slice %377 {offsets = [0, 0], sizes = [16, 128], strides = [1, 1]} : vector<16x256xf32> to vector<16x128xf32>
    %379 = vector.extract_strided_slice %377 {offsets = [0, 128], sizes = [16, 128], strides = [1, 1]} : vector<16x256xf32> to vector<16x128xf32>
    %380 = vector.extract_strided_slice %368 {offsets = [0, 256], sizes = [16, 128], strides = [1, 1]} : vector<16x384xf32> to vector<16x128xf32>
    %381 = arith.mulf %379, %361 : vector<16x128xf32>
    %382 = arith.truncf %381 : vector<16x128xf32> to vector<16x128xbf16>
    %cst_97 = arith.constant dense<0.000000e+00> : vector<16x128xf32>
    %383 = tpu.matmul %382, %11, %cst_97 {dimension_numbers = #tpu.dot_dimension_numbers<[1], [0], [0], [1], [0, 0, 1, 1], [], []>} : vector<16x128xbf16>, vector<128x128xbf16>, vector<16x128xf32> -> vector<16x128xf32>
    %384 = arith.addf %380, %383 : vector<16x128xf32>
    %385 = math.tanh %384 : vector<16x128xf32>
    %386 = arith.subf %361, %385 : vector<16x128xf32>
    %387 = arith.mulf %378, %386 : vector<16x128xf32>
    %388 = arith.addf %385, %387 : vector<16x128xf32>
    %389 = arith.truncf %388 : vector<16x128xf32> to vector<16x128xbf16>
    %390 = arith.index_cast %366 : i32 to index
    %c0_98 = arith.constant 0 : index
    %391 = vector.load %arg16[%390, %c0_98] : memref<256x128xbf16, #tpu.memory_space<vmem>>, vector<16x128xbf16>
    tpu.vector_store %arg16[%390, %c0_98], %389 {strides = array<i32>} : memref<256x128xbf16, #tpu.memory_space<vmem>>, vector<16x128xbf16>,
    %c14_i32 = arith.constant 14 : i32
    %c16_i32_99 = arith.constant 16 : i32
    %392 = arith.muli %c14_i32, %c16_i32_99 : i32
    %393 = tpu.assume_multiple %392, 16 : i32
    %394 = arith.index_cast %393 : i32 to index
    %c0_100 = arith.constant 0 : index
    %395 = vector.load %arg15[%394, %c0_100] : memref<256x384xf32, #tpu.memory_space<vmem>>, vector<16x384xf32>
    %396 = vector.extract_strided_slice %395 {offsets = [0, 0], sizes = [16, 256], strides = [1, 1]} : vector<16x384xf32> to vector<16x256xf32>
    %397 = arith.truncf %388 : vector<16x128xf32> to vector<16x128xbf16>
    %cst_101 = arith.constant dense<0.000000e+00> : vector<16x256xf32>
    %398 = tpu.matmul %397, %10, %cst_101 {dimension_numbers = #tpu.dot_dimension_numbers<[1], [0], [0], [1], [0, 0, 1, 1], [], []>} : vector<16x128xbf16>, vector<128x256xbf16>, vector<16x256xf32> -> vector<16x256xf32>
    %399 = arith.addf %396, %398 : vector<16x256xf32>
    %400 = arith.negf %399 : vector<16x256xf32>
    %401 = math.exp %400 : vector<16x256xf32>
    %cst_102 = arith.constant 1.000000e+00 : f32
    %402 = vector.broadcast %cst_102 : f32 to vector<16x256xf32>
    %403 = arith.addf %402, %401 : vector<16x256xf32>
    %404 = arith.divf %402, %403 : vector<16x256xf32>
    %405 = vector.extract_strided_slice %404 {offsets = [0, 0], sizes = [16, 128], strides = [1, 1]} : vector<16x256xf32> to vector<16x128xf32>
    %406 = vector.extract_strided_slice %404 {offsets = [0, 128], sizes = [16, 128], strides = [1, 1]} : vector<16x256xf32> to vector<16x128xf32>
    %407 = vector.extract_strided_slice %395 {offsets = [0, 256], sizes = [16, 128], strides = [1, 1]} : vector<16x384xf32> to vector<16x128xf32>
    %408 = arith.mulf %406, %388 : vector<16x128xf32>
    %409 = arith.truncf %408 : vector<16x128xf32> to vector<16x128xbf16>
    %cst_103 = arith.constant dense<0.000000e+00> : vector<16x128xf32>
    %410 = tpu.matmul %409, %11, %cst_103 {dimension_numbers = #tpu.dot_dimension_numbers<[1], [0], [0], [1], [0, 0, 1, 1], [], []>} : vector<16x128xbf16>, vector<128x128xbf16>, vector<16x128xf32> -> vector<16x128xf32>
    %411 = arith.addf %407, %410 : vector<16x128xf32>
    %412 = math.tanh %411 : vector<16x128xf32>
    %413 = arith.subf %388, %412 : vector<16x128xf32>
    %414 = arith.mulf %405, %413 : vector<16x128xf32>
    %415 = arith.addf %412, %414 : vector<16x128xf32>
    %416 = arith.truncf %415 : vector<16x128xf32> to vector<16x128xbf16>
    %417 = arith.index_cast %393 : i32 to index
    %c0_104 = arith.constant 0 : index
    %418 = vector.load %arg16[%417, %c0_104] : memref<256x128xbf16, #tpu.memory_space<vmem>>, vector<16x128xbf16>
    tpu.vector_store %arg16[%417, %c0_104], %416 {strides = array<i32>} : memref<256x128xbf16, #tpu.memory_space<vmem>>, vector<16x128xbf16>,
    %c15_i32 = arith.constant 15 : i32
    %c16_i32_105 = arith.constant 16 : i32
    %419 = arith.muli %c15_i32, %c16_i32_105 : i32
    %420 = tpu.assume_multiple %419, 16 : i32
    %421 = arith.index_cast %420 : i32 to index
    %c0_106 = arith.constant 0 : index
    %422 = vector.load %arg15[%421, %c0_106] : memref<256x384xf32, #tpu.memory_space<vmem>>, vector<16x384xf32>
    %423 = vector.extract_strided_slice %422 {offsets = [0, 0], sizes = [16, 256], strides = [1, 1]} : vector<16x384xf32> to vector<16x256xf32>
    %424 = arith.truncf %415 : vector<16x128xf32> to vector<16x128xbf16>
    %cst_107 = arith.constant dense<0.000000e+00> : vector<16x256xf32>
    %425 = tpu.matmul %424, %10, %cst_107 {dimension_numbers = #tpu.dot_dimension_numbers<[1], [0], [0], [1], [0, 0, 1, 1], [], []>} : vector<16x128xbf16>, vector<128x256xbf16>, vector<16x256xf32> -> vector<16x256xf32>
    %426 = arith.addf %423, %425 : vector<16x256xf32>
    %427 = arith.negf %426 : vector<16x256xf32>
    %428 = math.exp %427 : vector<16x256xf32>
    %cst_108 = arith.constant 1.000000e+00 : f32
    %429 = vector.broadcast %cst_108 : f32 to vector<16x256xf32>
    %430 = arith.addf %429, %428 : vector<16x256xf32>
    %431 = arith.divf %429, %430 : vector<16x256xf32>
    %432 = vector.extract_strided_slice %431 {offsets = [0, 0], sizes = [16, 128], strides = [1, 1]} : vector<16x256xf32> to vector<16x128xf32>
    %433 = vector.extract_strided_slice %431 {offsets = [0, 128], sizes = [16, 128], strides = [1, 1]} : vector<16x256xf32> to vector<16x128xf32>
    %434 = vector.extract_strided_slice %422 {offsets = [0, 256], sizes = [16, 128], strides = [1, 1]} : vector<16x384xf32> to vector<16x128xf32>
    %435 = arith.mulf %433, %415 : vector<16x128xf32>
    %436 = arith.truncf %435 : vector<16x128xf32> to vector<16x128xbf16>
    %cst_109 = arith.constant dense<0.000000e+00> : vector<16x128xf32>
    %437 = tpu.matmul %436, %11, %cst_109 {dimension_numbers = #tpu.dot_dimension_numbers<[1], [0], [0], [1], [0, 0, 1, 1], [], []>} : vector<16x128xbf16>, vector<128x128xbf16>, vector<16x128xf32> -> vector<16x128xf32>
    %438 = arith.addf %434, %437 : vector<16x128xf32>
    %439 = math.tanh %438 : vector<16x128xf32>
    %440 = arith.subf %415, %439 : vector<16x128xf32>
    %441 = arith.mulf %432, %440 : vector<16x128xf32>
    %442 = arith.addf %439, %441 : vector<16x128xf32>
    %443 = arith.truncf %442 : vector<16x128xf32> to vector<16x128xbf16>
    %444 = arith.index_cast %420 : i32 to index
    %c0_110 = arith.constant 0 : index
    %445 = vector.load %arg16[%444, %c0_110] : memref<256x128xbf16, #tpu.memory_space<vmem>>, vector<16x128xbf16>
    tpu.vector_store %arg16[%444, %c0_110], %443 {strides = array<i32>} : memref<256x128xbf16, #tpu.memory_space<vmem>>, vector<16x128xbf16>,
    %c16_i32_111 = arith.constant 16 : i32
    %c0_112 = arith.constant 0 : index
    %c0_113 = arith.constant 0 : index
    %c0_114 = arith.constant 0 : index
    %446 = vector.load %arg14[%c0_112, %c0_113, %c0_114] : memref<2x16x128xf32, #tpu.memory_space<vmem>>, vector<1x16x128xf32>
    %447 = vector.shape_cast %446 : vector<1x16x128xf32> to vector<16x128xf32>
    %448 = vector.shape_cast %442 : vector<16x128xf32> to vector<1x16x128xf32>
    tpu.vector_store %arg14[%c0_112, %c0_113, %c0_114], %448 {strides = array<i32>} : memref<2x16x128xf32, #tpu.memory_space<vmem>>, vector<1x16x128xf32>,
    %c0_115 = arith.constant 0 : index
    %c0_116 = arith.constant 0 : index
    %449 = vector.load %arg16[%c0_115, %c0_116] : memref<256x128xbf16, #tpu.memory_space<vmem>>, vector<256x128xbf16>
    %c0_117 = arith.constant 0 : index
    %c0_118 = arith.constant 0 : index
    %450 = vector.load %arg7[%c0_117, %c0_118] : memref<128x384xbf16, #tpu.memory_space<vmem>>, vector<128x384xbf16>
    %cst_119 = arith.constant dense<0.000000e+00> : vector<256x384xf32>
    %451 = tpu.matmul %449, %450, %cst_119 {dimension_numbers = #tpu.dot_dimension_numbers<[1], [0], [0], [1], [0, 0, 1, 1], [], []>} : vector<256x128xbf16>, vector<128x384xbf16>, vector<256x384xf32> -> vector<256x384xf32>
    %c0_120 = arith.constant 0 : index
    %c0_121 = arith.constant 0 : index
    %452 = vector.load %arg10[%c0_120, %c0_121] : memref<1x384xf32, #tpu.memory_space<vmem>>, vector<1x384xf32>
    %453 = vector.broadcast %452 : vector<1x384xf32> to vector<256x384xf32>
    %454 = arith.addf %451, %453 : vector<256x384xf32>
    %c0_122 = arith.constant 0 : index
    %c0_123 = arith.constant 0 : index
    %455 = vector.load %arg15[%c0_122, %c0_123] : memref<256x384xf32, #tpu.memory_space<vmem>>, vector<256x384xf32>
    tpu.vector_store %arg15[%c0_122, %c0_123], %454 {strides = array<i32>} : memref<256x384xf32, #tpu.memory_space<vmem>>, vector<256x384xf32>,
    %c0_124 = arith.constant 0 : index
    %c0_125 = arith.constant 0 : index
    %456 = vector.load %arg8[%c0_124, %c0_125] : memref<128x256xbf16, #tpu.memory_space<vmem>>, vector<128x256xbf16>
    %c0_126 = arith.constant 0 : index
    %c0_127 = arith.constant 0 : index
    %457 = vector.load %arg9[%c0_126, %c0_127] : memref<128x128xbf16, #tpu.memory_space<vmem>>, vector<128x128xbf16>
    %c1 = arith.constant 1 : index
    %c0_128 = arith.constant 0 : index
    %c0_129 = arith.constant 0 : index
    %458 = vector.load %arg14[%c1, %c0_128, %c0_129] : memref<2x16x128xf32, #tpu.memory_space<vmem>>, vector<1x16x128xf32>
    %459 = vector.shape_cast %458 : vector<1x16x128xf32> to vector<16x128xf32>
    %c0_i32_130 = arith.constant 0 : i32
    %c16_i32_131 = arith.constant 16 : i32
    %460 = arith.muli %c0_i32_130, %c16_i32_131 : i32
    %461 = tpu.assume_multiple %460, 16 : i32
    %462 = arith.index_cast %461 : i32 to index
    %c0_132 = arith.constant 0 : index
    %463 = vector.load %arg15[%462, %c0_132] : memref<256x384xf32, #tpu.memory_space<vmem>>, vector<16x384xf32>
    %464 = vector.extract_strided_slice %463 {offsets = [0, 0], sizes = [16, 256], strides = [1, 1]} : vector<16x384xf32> to vector<16x256xf32>
    %465 = arith.truncf %459 : vector<16x128xf32> to vector<16x128xbf16>
    %cst_133 = arith.constant dense<0.000000e+00> : vector<16x256xf32>
    %466 = tpu.matmul %465, %456, %cst_133 {dimension_numbers = #tpu.dot_dimension_numbers<[1], [0], [0], [1], [0, 0, 1, 1], [], []>} : vector<16x128xbf16>, vector<128x256xbf16>, vector<16x256xf32> -> vector<16x256xf32>
    %467 = arith.addf %464, %466 : vector<16x256xf32>
    %468 = arith.negf %467 : vector<16x256xf32>
    %469 = math.exp %468 : vector<16x256xf32>
    %cst_134 = arith.constant 1.000000e+00 : f32
    %470 = vector.broadcast %cst_134 : f32 to vector<16x256xf32>
    %471 = arith.addf %470, %469 : vector<16x256xf32>
    %472 = arith.divf %470, %471 : vector<16x256xf32>
    %473 = vector.extract_strided_slice %472 {offsets = [0, 0], sizes = [16, 128], strides = [1, 1]} : vector<16x256xf32> to vector<16x128xf32>
    %474 = vector.extract_strided_slice %472 {offsets = [0, 128], sizes = [16, 128], strides = [1, 1]} : vector<16x256xf32> to vector<16x128xf32>
    %475 = vector.extract_strided_slice %463 {offsets = [0, 256], sizes = [16, 128], strides = [1, 1]} : vector<16x384xf32> to vector<16x128xf32>
    %476 = arith.mulf %474, %459 : vector<16x128xf32>
    %477 = arith.truncf %476 : vector<16x128xf32> to vector<16x128xbf16>
    %cst_135 = arith.constant dense<0.000000e+00> : vector<16x128xf32>
    %478 = tpu.matmul %477, %457, %cst_135 {dimension_numbers = #tpu.dot_dimension_numbers<[1], [0], [0], [1], [0, 0, 1, 1], [], []>} : vector<16x128xbf16>, vector<128x128xbf16>, vector<16x128xf32> -> vector<16x128xf32>
    %479 = arith.addf %475, %478 : vector<16x128xf32>
    %480 = math.tanh %479 : vector<16x128xf32>
    %481 = arith.subf %459, %480 : vector<16x128xf32>
    %482 = arith.mulf %473, %481 : vector<16x128xf32>
    %483 = arith.addf %480, %482 : vector<16x128xf32>
    %484 = arith.truncf %483 : vector<16x128xf32> to vector<16x128xbf16>
    %485 = arith.index_cast %461 : i32 to index
    %c0_136 = arith.constant 0 : index
    %486 = vector.load %arg16[%485, %c0_136] : memref<256x128xbf16, #tpu.memory_space<vmem>>, vector<16x128xbf16>
    tpu.vector_store %arg16[%485, %c0_136], %484 {strides = array<i32>} : memref<256x128xbf16, #tpu.memory_space<vmem>>, vector<16x128xbf16>,
    %c1_i32_137 = arith.constant 1 : i32
    %c16_i32_138 = arith.constant 16 : i32
    %487 = arith.muli %c1_i32_137, %c16_i32_138 : i32
    %488 = tpu.assume_multiple %487, 16 : i32
    %489 = arith.index_cast %488 : i32 to index
    %c0_139 = arith.constant 0 : index
    %490 = vector.load %arg15[%489, %c0_139] : memref<256x384xf32, #tpu.memory_space<vmem>>, vector<16x384xf32>
    %491 = vector.extract_strided_slice %490 {offsets = [0, 0], sizes = [16, 256], strides = [1, 1]} : vector<16x384xf32> to vector<16x256xf32>
    %492 = arith.truncf %483 : vector<16x128xf32> to vector<16x128xbf16>
    %cst_140 = arith.constant dense<0.000000e+00> : vector<16x256xf32>
    %493 = tpu.matmul %492, %456, %cst_140 {dimension_numbers = #tpu.dot_dimension_numbers<[1], [0], [0], [1], [0, 0, 1, 1], [], []>} : vector<16x128xbf16>, vector<128x256xbf16>, vector<16x256xf32> -> vector<16x256xf32>
    %494 = arith.addf %491, %493 : vector<16x256xf32>
    %495 = arith.negf %494 : vector<16x256xf32>
    %496 = math.exp %495 : vector<16x256xf32>
    %cst_141 = arith.constant 1.000000e+00 : f32
    %497 = vector.broadcast %cst_141 : f32 to vector<16x256xf32>
    %498 = arith.addf %497, %496 : vector<16x256xf32>
    %499 = arith.divf %497, %498 : vector<16x256xf32>
    %500 = vector.extract_strided_slice %499 {offsets = [0, 0], sizes = [16, 128], strides = [1, 1]} : vector<16x256xf32> to vector<16x128xf32>
    %501 = vector.extract_strided_slice %499 {offsets = [0, 128], sizes = [16, 128], strides = [1, 1]} : vector<16x256xf32> to vector<16x128xf32>
    %502 = vector.extract_strided_slice %490 {offsets = [0, 256], sizes = [16, 128], strides = [1, 1]} : vector<16x384xf32> to vector<16x128xf32>
    %503 = arith.mulf %501, %483 : vector<16x128xf32>
    %504 = arith.truncf %503 : vector<16x128xf32> to vector<16x128xbf16>
    %cst_142 = arith.constant dense<0.000000e+00> : vector<16x128xf32>
    %505 = tpu.matmul %504, %457, %cst_142 {dimension_numbers = #tpu.dot_dimension_numbers<[1], [0], [0], [1], [0, 0, 1, 1], [], []>} : vector<16x128xbf16>, vector<128x128xbf16>, vector<16x128xf32> -> vector<16x128xf32>
    %506 = arith.addf %502, %505 : vector<16x128xf32>
    %507 = math.tanh %506 : vector<16x128xf32>
    %508 = arith.subf %483, %507 : vector<16x128xf32>
    %509 = arith.mulf %500, %508 : vector<16x128xf32>
    %510 = arith.addf %507, %509 : vector<16x128xf32>
    %511 = arith.truncf %510 : vector<16x128xf32> to vector<16x128xbf16>
    %512 = arith.index_cast %488 : i32 to index
    %c0_143 = arith.constant 0 : index
    %513 = vector.load %arg16[%512, %c0_143] : memref<256x128xbf16, #tpu.memory_space<vmem>>, vector<16x128xbf16>
    tpu.vector_store %arg16[%512, %c0_143], %511 {strides = array<i32>} : memref<256x128xbf16, #tpu.memory_space<vmem>>, vector<16x128xbf16>,
    %c2_i32_144 = arith.constant 2 : i32
    %c16_i32_145 = arith.constant 16 : i32
    %514 = arith.muli %c2_i32_144, %c16_i32_145 : i32
    %515 = tpu.assume_multiple %514, 16 : i32
    %516 = arith.index_cast %515 : i32 to index
    %c0_146 = arith.constant 0 : index
    %517 = vector.load %arg15[%516, %c0_146] : memref<256x384xf32, #tpu.memory_space<vmem>>, vector<16x384xf32>
    %518 = vector.extract_strided_slice %517 {offsets = [0, 0], sizes = [16, 256], strides = [1, 1]} : vector<16x384xf32> to vector<16x256xf32>
    %519 = arith.truncf %510 : vector<16x128xf32> to vector<16x128xbf16>
    %cst_147 = arith.constant dense<0.000000e+00> : vector<16x256xf32>
    %520 = tpu.matmul %519, %456, %cst_147 {dimension_numbers = #tpu.dot_dimension_numbers<[1], [0], [0], [1], [0, 0, 1, 1], [], []>} : vector<16x128xbf16>, vector<128x256xbf16>, vector<16x256xf32> -> vector<16x256xf32>
    %521 = arith.addf %518, %520 : vector<16x256xf32>
    %522 = arith.negf %521 : vector<16x256xf32>
    %523 = math.exp %522 : vector<16x256xf32>
    %cst_148 = arith.constant 1.000000e+00 : f32
    %524 = vector.broadcast %cst_148 : f32 to vector<16x256xf32>
    %525 = arith.addf %524, %523 : vector<16x256xf32>
    %526 = arith.divf %524, %525 : vector<16x256xf32>
    %527 = vector.extract_strided_slice %526 {offsets = [0, 0], sizes = [16, 128], strides = [1, 1]} : vector<16x256xf32> to vector<16x128xf32>
    %528 = vector.extract_strided_slice %526 {offsets = [0, 128], sizes = [16, 128], strides = [1, 1]} : vector<16x256xf32> to vector<16x128xf32>
    %529 = vector.extract_strided_slice %517 {offsets = [0, 256], sizes = [16, 128], strides = [1, 1]} : vector<16x384xf32> to vector<16x128xf32>
    %530 = arith.mulf %528, %510 : vector<16x128xf32>
    %531 = arith.truncf %530 : vector<16x128xf32> to vector<16x128xbf16>
    %cst_149 = arith.constant dense<0.000000e+00> : vector<16x128xf32>
    %532 = tpu.matmul %531, %457, %cst_149 {dimension_numbers = #tpu.dot_dimension_numbers<[1], [0], [0], [1], [0, 0, 1, 1], [], []>} : vector<16x128xbf16>, vector<128x128xbf16>, vector<16x128xf32> -> vector<16x128xf32>
    %533 = arith.addf %529, %532 : vector<16x128xf32>
    %534 = math.tanh %533 : vector<16x128xf32>
    %535 = arith.subf %510, %534 : vector<16x128xf32>
    %536 = arith.mulf %527, %535 : vector<16x128xf32>
    %537 = arith.addf %534, %536 : vector<16x128xf32>
    %538 = arith.truncf %537 : vector<16x128xf32> to vector<16x128xbf16>
    %539 = arith.index_cast %515 : i32 to index
    %c0_150 = arith.constant 0 : index
    %540 = vector.load %arg16[%539, %c0_150] : memref<256x128xbf16, #tpu.memory_space<vmem>>, vector<16x128xbf16>
    tpu.vector_store %arg16[%539, %c0_150], %538 {strides = array<i32>} : memref<256x128xbf16, #tpu.memory_space<vmem>>, vector<16x128xbf16>,
    %c3_i32_151 = arith.constant 3 : i32
    %c16_i32_152 = arith.constant 16 : i32
    %541 = arith.muli %c3_i32_151, %c16_i32_152 : i32
    %542 = tpu.assume_multiple %541, 16 : i32
    %543 = arith.index_cast %542 : i32 to index
    %c0_153 = arith.constant 0 : index
    %544 = vector.load %arg15[%543, %c0_153] : memref<256x384xf32, #tpu.memory_space<vmem>>, vector<16x384xf32>
    %545 = vector.extract_strided_slice %544 {offsets = [0, 0], sizes = [16, 256], strides = [1, 1]} : vector<16x384xf32> to vector<16x256xf32>
    %546 = arith.truncf %537 : vector<16x128xf32> to vector<16x128xbf16>
    %cst_154 = arith.constant dense<0.000000e+00> : vector<16x256xf32>
    %547 = tpu.matmul %546, %456, %cst_154 {dimension_numbers = #tpu.dot_dimension_numbers<[1], [0], [0], [1], [0, 0, 1, 1], [], []>} : vector<16x128xbf16>, vector<128x256xbf16>, vector<16x256xf32> -> vector<16x256xf32>
    %548 = arith.addf %545, %547 : vector<16x256xf32>
    %549 = arith.negf %548 : vector<16x256xf32>
    %550 = math.exp %549 : vector<16x256xf32>
    %cst_155 = arith.constant 1.000000e+00 : f32
    %551 = vector.broadcast %cst_155 : f32 to vector<16x256xf32>
    %552 = arith.addf %551, %550 : vector<16x256xf32>
    %553 = arith.divf %551, %552 : vector<16x256xf32>
    %554 = vector.extract_strided_slice %553 {offsets = [0, 0], sizes = [16, 128], strides = [1, 1]} : vector<16x256xf32> to vector<16x128xf32>
    %555 = vector.extract_strided_slice %553 {offsets = [0, 128], sizes = [16, 128], strides = [1, 1]} : vector<16x256xf32> to vector<16x128xf32>
    %556 = vector.extract_strided_slice %544 {offsets = [0, 256], sizes = [16, 128], strides = [1, 1]} : vector<16x384xf32> to vector<16x128xf32>
    %557 = arith.mulf %555, %537 : vector<16x128xf32>
    %558 = arith.truncf %557 : vector<16x128xf32> to vector<16x128xbf16>
    %cst_156 = arith.constant dense<0.000000e+00> : vector<16x128xf32>
    %559 = tpu.matmul %558, %457, %cst_156 {dimension_numbers = #tpu.dot_dimension_numbers<[1], [0], [0], [1], [0, 0, 1, 1], [], []>} : vector<16x128xbf16>, vector<128x128xbf16>, vector<16x128xf32> -> vector<16x128xf32>
    %560 = arith.addf %556, %559 : vector<16x128xf32>
    %561 = math.tanh %560 : vector<16x128xf32>
    %562 = arith.subf %537, %561 : vector<16x128xf32>
    %563 = arith.mulf %554, %562 : vector<16x128xf32>
    %564 = arith.addf %561, %563 : vector<16x128xf32>
    %565 = arith.truncf %564 : vector<16x128xf32> to vector<16x128xbf16>
    %566 = arith.index_cast %542 : i32 to index
    %c0_157 = arith.constant 0 : index
    %567 = vector.load %arg16[%566, %c0_157] : memref<256x128xbf16, #tpu.memory_space<vmem>>, vector<16x128xbf16>
    tpu.vector_store %arg16[%566, %c0_157], %565 {strides = array<i32>} : memref<256x128xbf16, #tpu.memory_space<vmem>>, vector<16x128xbf16>,
    %c4_i32_158 = arith.constant 4 : i32
    %c16_i32_159 = arith.constant 16 : i32
    %568 = arith.muli %c4_i32_158, %c16_i32_159 : i32
    %569 = tpu.assume_multiple %568, 16 : i32
    %570 = arith.index_cast %569 : i32 to index
    %c0_160 = arith.constant 0 : index
    %571 = vector.load %arg15[%570, %c0_160] : memref<256x384xf32, #tpu.memory_space<vmem>>, vector<16x384xf32>
    %572 = vector.extract_strided_slice %571 {offsets = [0, 0], sizes = [16, 256], strides = [1, 1]} : vector<16x384xf32> to vector<16x256xf32>
    %573 = arith.truncf %564 : vector<16x128xf32> to vector<16x128xbf16>
    %cst_161 = arith.constant dense<0.000000e+00> : vector<16x256xf32>
    %574 = tpu.matmul %573, %456, %cst_161 {dimension_numbers = #tpu.dot_dimension_numbers<[1], [0], [0], [1], [0, 0, 1, 1], [], []>} : vector<16x128xbf16>, vector<128x256xbf16>, vector<16x256xf32> -> vector<16x256xf32>
    %575 = arith.addf %572, %574 : vector<16x256xf32>
    %576 = arith.negf %575 : vector<16x256xf32>
    %577 = math.exp %576 : vector<16x256xf32>
    %cst_162 = arith.constant 1.000000e+00 : f32
    %578 = vector.broadcast %cst_162 : f32 to vector<16x256xf32>
    %579 = arith.addf %578, %577 : vector<16x256xf32>
    %580 = arith.divf %578, %579 : vector<16x256xf32>
    %581 = vector.extract_strided_slice %580 {offsets = [0, 0], sizes = [16, 128], strides = [1, 1]} : vector<16x256xf32> to vector<16x128xf32>
    %582 = vector.extract_strided_slice %580 {offsets = [0, 128], sizes = [16, 128], strides = [1, 1]} : vector<16x256xf32> to vector<16x128xf32>
    %583 = vector.extract_strided_slice %571 {offsets = [0, 256], sizes = [16, 128], strides = [1, 1]} : vector<16x384xf32> to vector<16x128xf32>
    %584 = arith.mulf %582, %564 : vector<16x128xf32>
    %585 = arith.truncf %584 : vector<16x128xf32> to vector<16x128xbf16>
    %cst_163 = arith.constant dense<0.000000e+00> : vector<16x128xf32>
    %586 = tpu.matmul %585, %457, %cst_163 {dimension_numbers = #tpu.dot_dimension_numbers<[1], [0], [0], [1], [0, 0, 1, 1], [], []>} : vector<16x128xbf16>, vector<128x128xbf16>, vector<16x128xf32> -> vector<16x128xf32>
    %587 = arith.addf %583, %586 : vector<16x128xf32>
    %588 = math.tanh %587 : vector<16x128xf32>
    %589 = arith.subf %564, %588 : vector<16x128xf32>
    %590 = arith.mulf %581, %589 : vector<16x128xf32>
    %591 = arith.addf %588, %590 : vector<16x128xf32>
    %592 = arith.truncf %591 : vector<16x128xf32> to vector<16x128xbf16>
    %593 = arith.index_cast %569 : i32 to index
    %c0_164 = arith.constant 0 : index
    %594 = vector.load %arg16[%593, %c0_164] : memref<256x128xbf16, #tpu.memory_space<vmem>>, vector<16x128xbf16>
    tpu.vector_store %arg16[%593, %c0_164], %592 {strides = array<i32>} : memref<256x128xbf16, #tpu.memory_space<vmem>>, vector<16x128xbf16>,
    %c5_i32_165 = arith.constant 5 : i32
    %c16_i32_166 = arith.constant 16 : i32
    %595 = arith.muli %c5_i32_165, %c16_i32_166 : i32
    %596 = tpu.assume_multiple %595, 16 : i32
    %597 = arith.index_cast %596 : i32 to index
    %c0_167 = arith.constant 0 : index
    %598 = vector.load %arg15[%597, %c0_167] : memref<256x384xf32, #tpu.memory_space<vmem>>, vector<16x384xf32>
    %599 = vector.extract_strided_slice %598 {offsets = [0, 0], sizes = [16, 256], strides = [1, 1]} : vector<16x384xf32> to vector<16x256xf32>
    %600 = arith.truncf %591 : vector<16x128xf32> to vector<16x128xbf16>
    %cst_168 = arith.constant dense<0.000000e+00> : vector<16x256xf32>
    %601 = tpu.matmul %600, %456, %cst_168 {dimension_numbers = #tpu.dot_dimension_numbers<[1], [0], [0], [1], [0, 0, 1, 1], [], []>} : vector<16x128xbf16>, vector<128x256xbf16>, vector<16x256xf32> -> vector<16x256xf32>
    %602 = arith.addf %599, %601 : vector<16x256xf32>
    %603 = arith.negf %602 : vector<16x256xf32>
    %604 = math.exp %603 : vector<16x256xf32>
    %cst_169 = arith.constant 1.000000e+00 : f32
    %605 = vector.broadcast %cst_169 : f32 to vector<16x256xf32>
    %606 = arith.addf %605, %604 : vector<16x256xf32>
    %607 = arith.divf %605, %606 : vector<16x256xf32>
    %608 = vector.extract_strided_slice %607 {offsets = [0, 0], sizes = [16, 128], strides = [1, 1]} : vector<16x256xf32> to vector<16x128xf32>
    %609 = vector.extract_strided_slice %607 {offsets = [0, 128], sizes = [16, 128], strides = [1, 1]} : vector<16x256xf32> to vector<16x128xf32>
    %610 = vector.extract_strided_slice %598 {offsets = [0, 256], sizes = [16, 128], strides = [1, 1]} : vector<16x384xf32> to vector<16x128xf32>
    %611 = arith.mulf %609, %591 : vector<16x128xf32>
    %612 = arith.truncf %611 : vector<16x128xf32> to vector<16x128xbf16>
    %cst_170 = arith.constant dense<0.000000e+00> : vector<16x128xf32>
    %613 = tpu.matmul %612, %457, %cst_170 {dimension_numbers = #tpu.dot_dimension_numbers<[1], [0], [0], [1], [0, 0, 1, 1], [], []>} : vector<16x128xbf16>, vector<128x128xbf16>, vector<16x128xf32> -> vector<16x128xf32>
    %614 = arith.addf %610, %613 : vector<16x128xf32>
    %615 = math.tanh %614 : vector<16x128xf32>
    %616 = arith.subf %591, %615 : vector<16x128xf32>
    %617 = arith.mulf %608, %616 : vector<16x128xf32>
    %618 = arith.addf %615, %617 : vector<16x128xf32>
    %619 = arith.truncf %618 : vector<16x128xf32> to vector<16x128xbf16>
    %620 = arith.index_cast %596 : i32 to index
    %c0_171 = arith.constant 0 : index
    %621 = vector.load %arg16[%620, %c0_171] : memref<256x128xbf16, #tpu.memory_space<vmem>>, vector<16x128xbf16>
    tpu.vector_store %arg16[%620, %c0_171], %619 {strides = array<i32>} : memref<256x128xbf16, #tpu.memory_space<vmem>>, vector<16x128xbf16>,
    %c6_i32_172 = arith.constant 6 : i32
    %c16_i32_173 = arith.constant 16 : i32
    %622 = arith.muli %c6_i32_172, %c16_i32_173 : i32
    %623 = tpu.assume_multiple %622, 16 : i32
    %624 = arith.index_cast %623 : i32 to index
    %c0_174 = arith.constant 0 : index
    %625 = vector.load %arg15[%624, %c0_174] : memref<256x384xf32, #tpu.memory_space<vmem>>, vector<16x384xf32>
    %626 = vector.extract_strided_slice %625 {offsets = [0, 0], sizes = [16, 256], strides = [1, 1]} : vector<16x384xf32> to vector<16x256xf32>
    %627 = arith.truncf %618 : vector<16x128xf32> to vector<16x128xbf16>
    %cst_175 = arith.constant dense<0.000000e+00> : vector<16x256xf32>
    %628 = tpu.matmul %627, %456, %cst_175 {dimension_numbers = #tpu.dot_dimension_numbers<[1], [0], [0], [1], [0, 0, 1, 1], [], []>} : vector<16x128xbf16>, vector<128x256xbf16>, vector<16x256xf32> -> vector<16x256xf32>
    %629 = arith.addf %626, %628 : vector<16x256xf32>
    %630 = arith.negf %629 : vector<16x256xf32>
    %631 = math.exp %630 : vector<16x256xf32>
    %cst_176 = arith.constant 1.000000e+00 : f32
    %632 = vector.broadcast %cst_176 : f32 to vector<16x256xf32>
    %633 = arith.addf %632, %631 : vector<16x256xf32>
    %634 = arith.divf %632, %633 : vector<16x256xf32>
    %635 = vector.extract_strided_slice %634 {offsets = [0, 0], sizes = [16, 128], strides = [1, 1]} : vector<16x256xf32> to vector<16x128xf32>
    %636 = vector.extract_strided_slice %634 {offsets = [0, 128], sizes = [16, 128], strides = [1, 1]} : vector<16x256xf32> to vector<16x128xf32>
    %637 = vector.extract_strided_slice %625 {offsets = [0, 256], sizes = [16, 128], strides = [1, 1]} : vector<16x384xf32> to vector<16x128xf32>
    %638 = arith.mulf %636, %618 : vector<16x128xf32>
    %639 = arith.truncf %638 : vector<16x128xf32> to vector<16x128xbf16>
    %cst_177 = arith.constant dense<0.000000e+00> : vector<16x128xf32>
    %640 = tpu.matmul %639, %457, %cst_177 {dimension_numbers = #tpu.dot_dimension_numbers<[1], [0], [0], [1], [0, 0, 1, 1], [], []>} : vector<16x128xbf16>, vector<128x128xbf16>, vector<16x128xf32> -> vector<16x128xf32>
    %641 = arith.addf %637, %640 : vector<16x128xf32>
    %642 = math.tanh %641 : vector<16x128xf32>
    %643 = arith.subf %618, %642 : vector<16x128xf32>
    %644 = arith.mulf %635, %643 : vector<16x128xf32>
    %645 = arith.addf %642, %644 : vector<16x128xf32>
    %646 = arith.truncf %645 : vector<16x128xf32> to vector<16x128xbf16>
    %647 = arith.index_cast %623 : i32 to index
    %c0_178 = arith.constant 0 : index
    %648 = vector.load %arg16[%647, %c0_178] : memref<256x128xbf16, #tpu.memory_space<vmem>>, vector<16x128xbf16>
    tpu.vector_store %arg16[%647, %c0_178], %646 {strides = array<i32>} : memref<256x128xbf16, #tpu.memory_space<vmem>>, vector<16x128xbf16>,
    %c7_i32_179 = arith.constant 7 : i32
    %c16_i32_180 = arith.constant 16 : i32
    %649 = arith.muli %c7_i32_179, %c16_i32_180 : i32
    %650 = tpu.assume_multiple %649, 16 : i32
    %651 = arith.index_cast %650 : i32 to index
    %c0_181 = arith.constant 0 : index
    %652 = vector.load %arg15[%651, %c0_181] : memref<256x384xf32, #tpu.memory_space<vmem>>, vector<16x384xf32>
    %653 = vector.extract_strided_slice %652 {offsets = [0, 0], sizes = [16, 256], strides = [1, 1]} : vector<16x384xf32> to vector<16x256xf32>
    %654 = arith.truncf %645 : vector<16x128xf32> to vector<16x128xbf16>
    %cst_182 = arith.constant dense<0.000000e+00> : vector<16x256xf32>
    %655 = tpu.matmul %654, %456, %cst_182 {dimension_numbers = #tpu.dot_dimension_numbers<[1], [0], [0], [1], [0, 0, 1, 1], [], []>} : vector<16x128xbf16>, vector<128x256xbf16>, vector<16x256xf32> -> vector<16x256xf32>
    %656 = arith.addf %653, %655 : vector<16x256xf32>
    %657 = arith.negf %656 : vector<16x256xf32>
    %658 = math.exp %657 : vector<16x256xf32>
    %cst_183 = arith.constant 1.000000e+00 : f32
    %659 = vector.broadcast %cst_183 : f32 to vector<16x256xf32>
    %660 = arith.addf %659, %658 : vector<16x256xf32>
    %661 = arith.divf %659, %660 : vector<16x256xf32>
    %662 = vector.extract_strided_slice %661 {offsets = [0, 0], sizes = [16, 128], strides = [1, 1]} : vector<16x256xf32> to vector<16x128xf32>
    %663 = vector.extract_strided_slice %661 {offsets = [0, 128], sizes = [16, 128], strides = [1, 1]} : vector<16x256xf32> to vector<16x128xf32>
    %664 = vector.extract_strided_slice %652 {offsets = [0, 256], sizes = [16, 128], strides = [1, 1]} : vector<16x384xf32> to vector<16x128xf32>
    %665 = arith.mulf %663, %645 : vector<16x128xf32>
    %666 = arith.truncf %665 : vector<16x128xf32> to vector<16x128xbf16>
    %cst_184 = arith.constant dense<0.000000e+00> : vector<16x128xf32>
    %667 = tpu.matmul %666, %457, %cst_184 {dimension_numbers = #tpu.dot_dimension_numbers<[1], [0], [0], [1], [0, 0, 1, 1], [], []>} : vector<16x128xbf16>, vector<128x128xbf16>, vector<16x128xf32> -> vector<16x128xf32>
    %668 = arith.addf %664, %667 : vector<16x128xf32>
    %669 = math.tanh %668 : vector<16x128xf32>
    %670 = arith.subf %645, %669 : vector<16x128xf32>
    %671 = arith.mulf %662, %670 : vector<16x128xf32>
    %672 = arith.addf %669, %671 : vector<16x128xf32>
    %673 = arith.truncf %672 : vector<16x128xf32> to vector<16x128xbf16>
    %674 = arith.index_cast %650 : i32 to index
    %c0_185 = arith.constant 0 : index
    %675 = vector.load %arg16[%674, %c0_185] : memref<256x128xbf16, #tpu.memory_space<vmem>>, vector<16x128xbf16>
    tpu.vector_store %arg16[%674, %c0_185], %673 {strides = array<i32>} : memref<256x128xbf16, #tpu.memory_space<vmem>>, vector<16x128xbf16>,
    %c8_i32_186 = arith.constant 8 : i32
    %c16_i32_187 = arith.constant 16 : i32
    %676 = arith.muli %c8_i32_186, %c16_i32_187 : i32
    %677 = tpu.assume_multiple %676, 16 : i32
    %678 = arith.index_cast %677 : i32 to index
    %c0_188 = arith.constant 0 : index
    %679 = vector.load %arg15[%678, %c0_188] : memref<256x384xf32, #tpu.memory_space<vmem>>, vector<16x384xf32>
    %680 = vector.extract_strided_slice %679 {offsets = [0, 0], sizes = [16, 256], strides = [1, 1]} : vector<16x384xf32> to vector<16x256xf32>
    %681 = arith.truncf %672 : vector<16x128xf32> to vector<16x128xbf16>
    %cst_189 = arith.constant dense<0.000000e+00> : vector<16x256xf32>
    %682 = tpu.matmul %681, %456, %cst_189 {dimension_numbers = #tpu.dot_dimension_numbers<[1], [0], [0], [1], [0, 0, 1, 1], [], []>} : vector<16x128xbf16>, vector<128x256xbf16>, vector<16x256xf32> -> vector<16x256xf32>
    %683 = arith.addf %680, %682 : vector<16x256xf32>
    %684 = arith.negf %683 : vector<16x256xf32>
    %685 = math.exp %684 : vector<16x256xf32>
    %cst_190 = arith.constant 1.000000e+00 : f32
    %686 = vector.broadcast %cst_190 : f32 to vector<16x256xf32>
    %687 = arith.addf %686, %685 : vector<16x256xf32>
    %688 = arith.divf %686, %687 : vector<16x256xf32>
    %689 = vector.extract_strided_slice %688 {offsets = [0, 0], sizes = [16, 128], strides = [1, 1]} : vector<16x256xf32> to vector<16x128xf32>
    %690 = vector.extract_strided_slice %688 {offsets = [0, 128], sizes = [16, 128], strides = [1, 1]} : vector<16x256xf32> to vector<16x128xf32>
    %691 = vector.extract_strided_slice %679 {offsets = [0, 256], sizes = [16, 128], strides = [1, 1]} : vector<16x384xf32> to vector<16x128xf32>
    %692 = arith.mulf %690, %672 : vector<16x128xf32>
    %693 = arith.truncf %692 : vector<16x128xf32> to vector<16x128xbf16>
    %cst_191 = arith.constant dense<0.000000e+00> : vector<16x128xf32>
    %694 = tpu.matmul %693, %457, %cst_191 {dimension_numbers = #tpu.dot_dimension_numbers<[1], [0], [0], [1], [0, 0, 1, 1], [], []>} : vector<16x128xbf16>, vector<128x128xbf16>, vector<16x128xf32> -> vector<16x128xf32>
    %695 = arith.addf %691, %694 : vector<16x128xf32>
    %696 = math.tanh %695 : vector<16x128xf32>
    %697 = arith.subf %672, %696 : vector<16x128xf32>
    %698 = arith.mulf %689, %697 : vector<16x128xf32>
    %699 = arith.addf %696, %698 : vector<16x128xf32>
    %700 = arith.truncf %699 : vector<16x128xf32> to vector<16x128xbf16>
    %701 = arith.index_cast %677 : i32 to index
    %c0_192 = arith.constant 0 : index
    %702 = vector.load %arg16[%701, %c0_192] : memref<256x128xbf16, #tpu.memory_space<vmem>>, vector<16x128xbf16>
    tpu.vector_store %arg16[%701, %c0_192], %700 {strides = array<i32>} : memref<256x128xbf16, #tpu.memory_space<vmem>>, vector<16x128xbf16>,
    %c9_i32_193 = arith.constant 9 : i32
    %c16_i32_194 = arith.constant 16 : i32
    %703 = arith.muli %c9_i32_193, %c16_i32_194 : i32
    %704 = tpu.assume_multiple %703, 16 : i32
    %705 = arith.index_cast %704 : i32 to index
    %c0_195 = arith.constant 0 : index
    %706 = vector.load %arg15[%705, %c0_195] : memref<256x384xf32, #tpu.memory_space<vmem>>, vector<16x384xf32>
    %707 = vector.extract_strided_slice %706 {offsets = [0, 0], sizes = [16, 256], strides = [1, 1]} : vector<16x384xf32> to vector<16x256xf32>
    %708 = arith.truncf %699 : vector<16x128xf32> to vector<16x128xbf16>
    %cst_196 = arith.constant dense<0.000000e+00> : vector<16x256xf32>
    %709 = tpu.matmul %708, %456, %cst_196 {dimension_numbers = #tpu.dot_dimension_numbers<[1], [0], [0], [1], [0, 0, 1, 1], [], []>} : vector<16x128xbf16>, vector<128x256xbf16>, vector<16x256xf32> -> vector<16x256xf32>
    %710 = arith.addf %707, %709 : vector<16x256xf32>
    %711 = arith.negf %710 : vector<16x256xf32>
    %712 = math.exp %711 : vector<16x256xf32>
    %cst_197 = arith.constant 1.000000e+00 : f32
    %713 = vector.broadcast %cst_197 : f32 to vector<16x256xf32>
    %714 = arith.addf %713, %712 : vector<16x256xf32>
    %715 = arith.divf %713, %714 : vector<16x256xf32>
    %716 = vector.extract_strided_slice %715 {offsets = [0, 0], sizes = [16, 128], strides = [1, 1]} : vector<16x256xf32> to vector<16x128xf32>
    %717 = vector.extract_strided_slice %715 {offsets = [0, 128], sizes = [16, 128], strides = [1, 1]} : vector<16x256xf32> to vector<16x128xf32>
    %718 = vector.extract_strided_slice %706 {offsets = [0, 256], sizes = [16, 128], strides = [1, 1]} : vector<16x384xf32> to vector<16x128xf32>
    %719 = arith.mulf %717, %699 : vector<16x128xf32>
    %720 = arith.truncf %719 : vector<16x128xf32> to vector<16x128xbf16>
    %cst_198 = arith.constant dense<0.000000e+00> : vector<16x128xf32>
    %721 = tpu.matmul %720, %457, %cst_198 {dimension_numbers = #tpu.dot_dimension_numbers<[1], [0], [0], [1], [0, 0, 1, 1], [], []>} : vector<16x128xbf16>, vector<128x128xbf16>, vector<16x128xf32> -> vector<16x128xf32>
    %722 = arith.addf %718, %721 : vector<16x128xf32>
    %723 = math.tanh %722 : vector<16x128xf32>
    %724 = arith.subf %699, %723 : vector<16x128xf32>
    %725 = arith.mulf %716, %724 : vector<16x128xf32>
    %726 = arith.addf %723, %725 : vector<16x128xf32>
    %727 = arith.truncf %726 : vector<16x128xf32> to vector<16x128xbf16>
    %728 = arith.index_cast %704 : i32 to index
    %c0_199 = arith.constant 0 : index
    %729 = vector.load %arg16[%728, %c0_199] : memref<256x128xbf16, #tpu.memory_space<vmem>>, vector<16x128xbf16>
    tpu.vector_store %arg16[%728, %c0_199], %727 {strides = array<i32>} : memref<256x128xbf16, #tpu.memory_space<vmem>>, vector<16x128xbf16>,
    %c10_i32_200 = arith.constant 10 : i32
    %c16_i32_201 = arith.constant 16 : i32
    %730 = arith.muli %c10_i32_200, %c16_i32_201 : i32
    %731 = tpu.assume_multiple %730, 16 : i32
    %732 = arith.index_cast %731 : i32 to index
    %c0_202 = arith.constant 0 : index
    %733 = vector.load %arg15[%732, %c0_202] : memref<256x384xf32, #tpu.memory_space<vmem>>, vector<16x384xf32>
    %734 = vector.extract_strided_slice %733 {offsets = [0, 0], sizes = [16, 256], strides = [1, 1]} : vector<16x384xf32> to vector<16x256xf32>
    %735 = arith.truncf %726 : vector<16x128xf32> to vector<16x128xbf16>
    %cst_203 = arith.constant dense<0.000000e+00> : vector<16x256xf32>
    %736 = tpu.matmul %735, %456, %cst_203 {dimension_numbers = #tpu.dot_dimension_numbers<[1], [0], [0], [1], [0, 0, 1, 1], [], []>} : vector<16x128xbf16>, vector<128x256xbf16>, vector<16x256xf32> -> vector<16x256xf32>
    %737 = arith.addf %734, %736 : vector<16x256xf32>
    %738 = arith.negf %737 : vector<16x256xf32>
    %739 = math.exp %738 : vector<16x256xf32>
    %cst_204 = arith.constant 1.000000e+00 : f32
    %740 = vector.broadcast %cst_204 : f32 to vector<16x256xf32>
    %741 = arith.addf %740, %739 : vector<16x256xf32>
    %742 = arith.divf %740, %741 : vector<16x256xf32>
    %743 = vector.extract_strided_slice %742 {offsets = [0, 0], sizes = [16, 128], strides = [1, 1]} : vector<16x256xf32> to vector<16x128xf32>
    %744 = vector.extract_strided_slice %742 {offsets = [0, 128], sizes = [16, 128], strides = [1, 1]} : vector<16x256xf32> to vector<16x128xf32>
    %745 = vector.extract_strided_slice %733 {offsets = [0, 256], sizes = [16, 128], strides = [1, 1]} : vector<16x384xf32> to vector<16x128xf32>
    %746 = arith.mulf %744, %726 : vector<16x128xf32>
    %747 = arith.truncf %746 : vector<16x128xf32> to vector<16x128xbf16>
    %cst_205 = arith.constant dense<0.000000e+00> : vector<16x128xf32>
    %748 = tpu.matmul %747, %457, %cst_205 {dimension_numbers = #tpu.dot_dimension_numbers<[1], [0], [0], [1], [0, 0, 1, 1], [], []>} : vector<16x128xbf16>, vector<128x128xbf16>, vector<16x128xf32> -> vector<16x128xf32>
    %749 = arith.addf %745, %748 : vector<16x128xf32>
    %750 = math.tanh %749 : vector<16x128xf32>
    %751 = arith.subf %726, %750 : vector<16x128xf32>
    %752 = arith.mulf %743, %751 : vector<16x128xf32>
    %753 = arith.addf %750, %752 : vector<16x128xf32>
    %754 = arith.truncf %753 : vector<16x128xf32> to vector<16x128xbf16>
    %755 = arith.index_cast %731 : i32 to index
    %c0_206 = arith.constant 0 : index
    %756 = vector.load %arg16[%755, %c0_206] : memref<256x128xbf16, #tpu.memory_space<vmem>>, vector<16x128xbf16>
    tpu.vector_store %arg16[%755, %c0_206], %754 {strides = array<i32>} : memref<256x128xbf16, #tpu.memory_space<vmem>>, vector<16x128xbf16>,
    %c11_i32_207 = arith.constant 11 : i32
    %c16_i32_208 = arith.constant 16 : i32
    %757 = arith.muli %c11_i32_207, %c16_i32_208 : i32
    %758 = tpu.assume_multiple %757, 16 : i32
    %759 = arith.index_cast %758 : i32 to index
    %c0_209 = arith.constant 0 : index
    %760 = vector.load %arg15[%759, %c0_209] : memref<256x384xf32, #tpu.memory_space<vmem>>, vector<16x384xf32>
    %761 = vector.extract_strided_slice %760 {offsets = [0, 0], sizes = [16, 256], strides = [1, 1]} : vector<16x384xf32> to vector<16x256xf32>
    %762 = arith.truncf %753 : vector<16x128xf32> to vector<16x128xbf16>
    %cst_210 = arith.constant dense<0.000000e+00> : vector<16x256xf32>
    %763 = tpu.matmul %762, %456, %cst_210 {dimension_numbers = #tpu.dot_dimension_numbers<[1], [0], [0], [1], [0, 0, 1, 1], [], []>} : vector<16x128xbf16>, vector<128x256xbf16>, vector<16x256xf32> -> vector<16x256xf32>
    %764 = arith.addf %761, %763 : vector<16x256xf32>
    %765 = arith.negf %764 : vector<16x256xf32>
    %766 = math.exp %765 : vector<16x256xf32>
    %cst_211 = arith.constant 1.000000e+00 : f32
    %767 = vector.broadcast %cst_211 : f32 to vector<16x256xf32>
    %768 = arith.addf %767, %766 : vector<16x256xf32>
    %769 = arith.divf %767, %768 : vector<16x256xf32>
    %770 = vector.extract_strided_slice %769 {offsets = [0, 0], sizes = [16, 128], strides = [1, 1]} : vector<16x256xf32> to vector<16x128xf32>
    %771 = vector.extract_strided_slice %769 {offsets = [0, 128], sizes = [16, 128], strides = [1, 1]} : vector<16x256xf32> to vector<16x128xf32>
    %772 = vector.extract_strided_slice %760 {offsets = [0, 256], sizes = [16, 128], strides = [1, 1]} : vector<16x384xf32> to vector<16x128xf32>
    %773 = arith.mulf %771, %753 : vector<16x128xf32>
    %774 = arith.truncf %773 : vector<16x128xf32> to vector<16x128xbf16>
    %cst_212 = arith.constant dense<0.000000e+00> : vector<16x128xf32>
    %775 = tpu.matmul %774, %457, %cst_212 {dimension_numbers = #tpu.dot_dimension_numbers<[1], [0], [0], [1], [0, 0, 1, 1], [], []>} : vector<16x128xbf16>, vector<128x128xbf16>, vector<16x128xf32> -> vector<16x128xf32>
    %776 = arith.addf %772, %775 : vector<16x128xf32>
    %777 = math.tanh %776 : vector<16x128xf32>
    %778 = arith.subf %753, %777 : vector<16x128xf32>
    %779 = arith.mulf %770, %778 : vector<16x128xf32>
    %780 = arith.addf %777, %779 : vector<16x128xf32>
    %781 = arith.truncf %780 : vector<16x128xf32> to vector<16x128xbf16>
    %782 = arith.index_cast %758 : i32 to index
    %c0_213 = arith.constant 0 : index
    %783 = vector.load %arg16[%782, %c0_213] : memref<256x128xbf16, #tpu.memory_space<vmem>>, vector<16x128xbf16>
    tpu.vector_store %arg16[%782, %c0_213], %781 {strides = array<i32>} : memref<256x128xbf16, #tpu.memory_space<vmem>>, vector<16x128xbf16>,
    %c12_i32_214 = arith.constant 12 : i32
    %c16_i32_215 = arith.constant 16 : i32
    %784 = arith.muli %c12_i32_214, %c16_i32_215 : i32
    %785 = tpu.assume_multiple %784, 16 : i32
    %786 = arith.index_cast %785 : i32 to index
    %c0_216 = arith.constant 0 : index
    %787 = vector.load %arg15[%786, %c0_216] : memref<256x384xf32, #tpu.memory_space<vmem>>, vector<16x384xf32>
    %788 = vector.extract_strided_slice %787 {offsets = [0, 0], sizes = [16, 256], strides = [1, 1]} : vector<16x384xf32> to vector<16x256xf32>
    %789 = arith.truncf %780 : vector<16x128xf32> to vector<16x128xbf16>
    %cst_217 = arith.constant dense<0.000000e+00> : vector<16x256xf32>
    %790 = tpu.matmul %789, %456, %cst_217 {dimension_numbers = #tpu.dot_dimension_numbers<[1], [0], [0], [1], [0, 0, 1, 1], [], []>} : vector<16x128xbf16>, vector<128x256xbf16>, vector<16x256xf32> -> vector<16x256xf32>
    %791 = arith.addf %788, %790 : vector<16x256xf32>
    %792 = arith.negf %791 : vector<16x256xf32>
    %793 = math.exp %792 : vector<16x256xf32>
    %cst_218 = arith.constant 1.000000e+00 : f32
    %794 = vector.broadcast %cst_218 : f32 to vector<16x256xf32>
    %795 = arith.addf %794, %793 : vector<16x256xf32>
    %796 = arith.divf %794, %795 : vector<16x256xf32>
    %797 = vector.extract_strided_slice %796 {offsets = [0, 0], sizes = [16, 128], strides = [1, 1]} : vector<16x256xf32> to vector<16x128xf32>
    %798 = vector.extract_strided_slice %796 {offsets = [0, 128], sizes = [16, 128], strides = [1, 1]} : vector<16x256xf32> to vector<16x128xf32>
    %799 = vector.extract_strided_slice %787 {offsets = [0, 256], sizes = [16, 128], strides = [1, 1]} : vector<16x384xf32> to vector<16x128xf32>
    %800 = arith.mulf %798, %780 : vector<16x128xf32>
    %801 = arith.truncf %800 : vector<16x128xf32> to vector<16x128xbf16>
    %cst_219 = arith.constant dense<0.000000e+00> : vector<16x128xf32>
    %802 = tpu.matmul %801, %457, %cst_219 {dimension_numbers = #tpu.dot_dimension_numbers<[1], [0], [0], [1], [0, 0, 1, 1], [], []>} : vector<16x128xbf16>, vector<128x128xbf16>, vector<16x128xf32> -> vector<16x128xf32>
    %803 = arith.addf %799, %802 : vector<16x128xf32>
    %804 = math.tanh %803 : vector<16x128xf32>
    %805 = arith.subf %780, %804 : vector<16x128xf32>
    %806 = arith.mulf %797, %805 : vector<16x128xf32>
    %807 = arith.addf %804, %806 : vector<16x128xf32>
    %808 = arith.truncf %807 : vector<16x128xf32> to vector<16x128xbf16>
    %809 = arith.index_cast %785 : i32 to index
    %c0_220 = arith.constant 0 : index
    %810 = vector.load %arg16[%809, %c0_220] : memref<256x128xbf16, #tpu.memory_space<vmem>>, vector<16x128xbf16>
    tpu.vector_store %arg16[%809, %c0_220], %808 {strides = array<i32>} : memref<256x128xbf16, #tpu.memory_space<vmem>>, vector<16x128xbf16>,
    %c13_i32_221 = arith.constant 13 : i32
    %c16_i32_222 = arith.constant 16 : i32
    %811 = arith.muli %c13_i32_221, %c16_i32_222 : i32
    %812 = tpu.assume_multiple %811, 16 : i32
    %813 = arith.index_cast %812 : i32 to index
    %c0_223 = arith.constant 0 : index
    %814 = vector.load %arg15[%813, %c0_223] : memref<256x384xf32, #tpu.memory_space<vmem>>, vector<16x384xf32>
    %815 = vector.extract_strided_slice %814 {offsets = [0, 0], sizes = [16, 256], strides = [1, 1]} : vector<16x384xf32> to vector<16x256xf32>
    %816 = arith.truncf %807 : vector<16x128xf32> to vector<16x128xbf16>
    %cst_224 = arith.constant dense<0.000000e+00> : vector<16x256xf32>
    %817 = tpu.matmul %816, %456, %cst_224 {dimension_numbers = #tpu.dot_dimension_numbers<[1], [0], [0], [1], [0, 0, 1, 1], [], []>} : vector<16x128xbf16>, vector<128x256xbf16>, vector<16x256xf32> -> vector<16x256xf32>
    %818 = arith.addf %815, %817 : vector<16x256xf32>
    %819 = arith.negf %818 : vector<16x256xf32>
    %820 = math.exp %819 : vector<16x256xf32>
    %cst_225 = arith.constant 1.000000e+00 : f32
    %821 = vector.broadcast %cst_225 : f32 to vector<16x256xf32>
    %822 = arith.addf %821, %820 : vector<16x256xf32>
    %823 = arith.divf %821, %822 : vector<16x256xf32>
    %824 = vector.extract_strided_slice %823 {offsets = [0, 0], sizes = [16, 128], strides = [1, 1]} : vector<16x256xf32> to vector<16x128xf32>
    %825 = vector.extract_strided_slice %823 {offsets = [0, 128], sizes = [16, 128], strides = [1, 1]} : vector<16x256xf32> to vector<16x128xf32>
    %826 = vector.extract_strided_slice %814 {offsets = [0, 256], sizes = [16, 128], strides = [1, 1]} : vector<16x384xf32> to vector<16x128xf32>
    %827 = arith.mulf %825, %807 : vector<16x128xf32>
    %828 = arith.truncf %827 : vector<16x128xf32> to vector<16x128xbf16>
    %cst_226 = arith.constant dense<0.000000e+00> : vector<16x128xf32>
    %829 = tpu.matmul %828, %457, %cst_226 {dimension_numbers = #tpu.dot_dimension_numbers<[1], [0], [0], [1], [0, 0, 1, 1], [], []>} : vector<16x128xbf16>, vector<128x128xbf16>, vector<16x128xf32> -> vector<16x128xf32>
    %830 = arith.addf %826, %829 : vector<16x128xf32>
    %831 = math.tanh %830 : vector<16x128xf32>
    %832 = arith.subf %807, %831 : vector<16x128xf32>
    %833 = arith.mulf %824, %832 : vector<16x128xf32>
    %834 = arith.addf %831, %833 : vector<16x128xf32>
    %835 = arith.truncf %834 : vector<16x128xf32> to vector<16x128xbf16>
    %836 = arith.index_cast %812 : i32 to index
    %c0_227 = arith.constant 0 : index
    %837 = vector.load %arg16[%836, %c0_227] : memref<256x128xbf16, #tpu.memory_space<vmem>>, vector<16x128xbf16>
    tpu.vector_store %arg16[%836, %c0_227], %835 {strides = array<i32>} : memref<256x128xbf16, #tpu.memory_space<vmem>>, vector<16x128xbf16>,
    %c14_i32_228 = arith.constant 14 : i32
    %c16_i32_229 = arith.constant 16 : i32
    %838 = arith.muli %c14_i32_228, %c16_i32_229 : i32
    %839 = tpu.assume_multiple %838, 16 : i32
    %840 = arith.index_cast %839 : i32 to index
    %c0_230 = arith.constant 0 : index
    %841 = vector.load %arg15[%840, %c0_230] : memref<256x384xf32, #tpu.memory_space<vmem>>, vector<16x384xf32>
    %842 = vector.extract_strided_slice %841 {offsets = [0, 0], sizes = [16, 256], strides = [1, 1]} : vector<16x384xf32> to vector<16x256xf32>
    %843 = arith.truncf %834 : vector<16x128xf32> to vector<16x128xbf16>
    %cst_231 = arith.constant dense<0.000000e+00> : vector<16x256xf32>
    %844 = tpu.matmul %843, %456, %cst_231 {dimension_numbers = #tpu.dot_dimension_numbers<[1], [0], [0], [1], [0, 0, 1, 1], [], []>} : vector<16x128xbf16>, vector<128x256xbf16>, vector<16x256xf32> -> vector<16x256xf32>
    %845 = arith.addf %842, %844 : vector<16x256xf32>
    %846 = arith.negf %845 : vector<16x256xf32>
    %847 = math.exp %846 : vector<16x256xf32>
    %cst_232 = arith.constant 1.000000e+00 : f32
    %848 = vector.broadcast %cst_232 : f32 to vector<16x256xf32>
    %849 = arith.addf %848, %847 : vector<16x256xf32>
    %850 = arith.divf %848, %849 : vector<16x256xf32>
    %851 = vector.extract_strided_slice %850 {offsets = [0, 0], sizes = [16, 128], strides = [1, 1]} : vector<16x256xf32> to vector<16x128xf32>
    %852 = vector.extract_strided_slice %850 {offsets = [0, 128], sizes = [16, 128], strides = [1, 1]} : vector<16x256xf32> to vector<16x128xf32>
    %853 = vector.extract_strided_slice %841 {offsets = [0, 256], sizes = [16, 128], strides = [1, 1]} : vector<16x384xf32> to vector<16x128xf32>
    %854 = arith.mulf %852, %834 : vector<16x128xf32>
    %855 = arith.truncf %854 : vector<16x128xf32> to vector<16x128xbf16>
    %cst_233 = arith.constant dense<0.000000e+00> : vector<16x128xf32>
    %856 = tpu.matmul %855, %457, %cst_233 {dimension_numbers = #tpu.dot_dimension_numbers<[1], [0], [0], [1], [0, 0, 1, 1], [], []>} : vector<16x128xbf16>, vector<128x128xbf16>, vector<16x128xf32> -> vector<16x128xf32>
    %857 = arith.addf %853, %856 : vector<16x128xf32>
    %858 = math.tanh %857 : vector<16x128xf32>
    %859 = arith.subf %834, %858 : vector<16x128xf32>
    %860 = arith.mulf %851, %859 : vector<16x128xf32>
    %861 = arith.addf %858, %860 : vector<16x128xf32>
    %862 = arith.truncf %861 : vector<16x128xf32> to vector<16x128xbf16>
    %863 = arith.index_cast %839 : i32 to index
    %c0_234 = arith.constant 0 : index
    %864 = vector.load %arg16[%863, %c0_234] : memref<256x128xbf16, #tpu.memory_space<vmem>>, vector<16x128xbf16>
    tpu.vector_store %arg16[%863, %c0_234], %862 {strides = array<i32>} : memref<256x128xbf16, #tpu.memory_space<vmem>>, vector<16x128xbf16>,
    %c15_i32_235 = arith.constant 15 : i32
    %c16_i32_236 = arith.constant 16 : i32
    %865 = arith.muli %c15_i32_235, %c16_i32_236 : i32
    %866 = tpu.assume_multiple %865, 16 : i32
    %867 = arith.index_cast %866 : i32 to index
    %c0_237 = arith.constant 0 : index
    %868 = vector.load %arg15[%867, %c0_237] : memref<256x384xf32, #tpu.memory_space<vmem>>, vector<16x384xf32>
    %869 = vector.extract_strided_slice %868 {offsets = [0, 0], sizes = [16, 256], strides = [1, 1]} : vector<16x384xf32> to vector<16x256xf32>
    %870 = arith.truncf %861 : vector<16x128xf32> to vector<16x128xbf16>
    %cst_238 = arith.constant dense<0.000000e+00> : vector<16x256xf32>
    %871 = tpu.matmul %870, %456, %cst_238 {dimension_numbers = #tpu.dot_dimension_numbers<[1], [0], [0], [1], [0, 0, 1, 1], [], []>} : vector<16x128xbf16>, vector<128x256xbf16>, vector<16x256xf32> -> vector<16x256xf32>
    %872 = arith.addf %869, %871 : vector<16x256xf32>
    %873 = arith.negf %872 : vector<16x256xf32>
    %874 = math.exp %873 : vector<16x256xf32>
    %cst_239 = arith.constant 1.000000e+00 : f32
    %875 = vector.broadcast %cst_239 : f32 to vector<16x256xf32>
    %876 = arith.addf %875, %874 : vector<16x256xf32>
    %877 = arith.divf %875, %876 : vector<16x256xf32>
    %878 = vector.extract_strided_slice %877 {offsets = [0, 0], sizes = [16, 128], strides = [1, 1]} : vector<16x256xf32> to vector<16x128xf32>
    %879 = vector.extract_strided_slice %877 {offsets = [0, 128], sizes = [16, 128], strides = [1, 1]} : vector<16x256xf32> to vector<16x128xf32>
    %880 = vector.extract_strided_slice %868 {offsets = [0, 256], sizes = [16, 128], strides = [1, 1]} : vector<16x384xf32> to vector<16x128xf32>
    %881 = arith.mulf %879, %861 : vector<16x128xf32>
    %882 = arith.truncf %881 : vector<16x128xf32> to vector<16x128xbf16>
    %cst_240 = arith.constant dense<0.000000e+00> : vector<16x128xf32>
    %883 = tpu.matmul %882, %457, %cst_240 {dimension_numbers = #tpu.dot_dimension_numbers<[1], [0], [0], [1], [0, 0, 1, 1], [], []>} : vector<16x128xbf16>, vector<128x128xbf16>, vector<16x128xf32> -> vector<16x128xf32>
    %884 = arith.addf %880, %883 : vector<16x128xf32>
    %885 = math.tanh %884 : vector<16x128xf32>
    %886 = arith.subf %861, %885 : vector<16x128xf32>
    %887 = arith.mulf %878, %886 : vector<16x128xf32>
    %888 = arith.addf %885, %887 : vector<16x128xf32>
    %889 = arith.truncf %888 : vector<16x128xf32> to vector<16x128xbf16>
    %890 = arith.index_cast %866 : i32 to index
    %c0_241 = arith.constant 0 : index
    %891 = vector.load %arg16[%890, %c0_241] : memref<256x128xbf16, #tpu.memory_space<vmem>>, vector<16x128xbf16>
    tpu.vector_store %arg16[%890, %c0_241], %889 {strides = array<i32>} : memref<256x128xbf16, #tpu.memory_space<vmem>>, vector<16x128xbf16>,
    %c16_i32_242 = arith.constant 16 : i32
    %c1_243 = arith.constant 1 : index
    %c0_244 = arith.constant 0 : index
    %c0_245 = arith.constant 0 : index
    %892 = vector.load %arg14[%c1_243, %c0_244, %c0_245] : memref<2x16x128xf32, #tpu.memory_space<vmem>>, vector<1x16x128xf32>
    %893 = vector.shape_cast %892 : vector<1x16x128xf32> to vector<16x128xf32>
    %894 = vector.shape_cast %888 : vector<16x128xf32> to vector<1x16x128xf32>
    tpu.vector_store %arg14[%c1_243, %c0_244, %c0_245], %894 {strides = array<i32>} : memref<2x16x128xf32, #tpu.memory_space<vmem>>, vector<1x16x128xf32>,
    %c0_246 = arith.constant 0 : index
    %c0_247 = arith.constant 0 : index
    %895 = vector.load %arg16[%c0_246, %c0_247] : memref<256x128xbf16, #tpu.memory_space<vmem>>, vector<256x128xbf16>
    %c0_248 = arith.constant 0 : index
    %c0_249 = arith.constant 0 : index
    %896 = vector.load %arg11[%c0_248, %c0_249] : memref<128x128xbf16, #tpu.memory_space<vmem>>, vector<128x128xbf16>
    %cst_250 = arith.constant dense<0.000000e+00> : vector<256x128xf32>
    %897 = tpu.matmul %895, %896, %cst_250 {dimension_numbers = #tpu.dot_dimension_numbers<[1], [0], [0], [1], [0, 0, 1, 1], [], []>} : vector<256x128xbf16>, vector<128x128xbf16>, vector<256x128xf32> -> vector<256x128xf32>
    %c0_251 = arith.constant 0 : index
    %c0_252 = arith.constant 0 : index
    %898 = vector.load %arg12[%c0_251, %c0_252] : memref<1x128xf32, #tpu.memory_space<vmem>>, vector<1x128xf32>
    %899 = vector.broadcast %898 : vector<1x128xf32> to vector<256x128xf32>
    %900 = arith.addf %897, %899 : vector<256x128xf32>
    %c0_253 = arith.constant 0 : index
    %c0_254 = arith.constant 0 : index
    %901 = vector.load %arg13[%c0_253, %c0_254] : memref<256x128xf32, #tpu.memory_space<vmem>>, vector<256x128xf32>
    tpu.vector_store %arg13[%c0_253, %c0_254], %900 {strides = array<i32>} : memref<256x128xf32, #tpu.memory_space<vmem>>, vector<256x128xf32>,
    return
  }
  func.func @transform_0(%arg0: i32) -> (i32, i32) {
    %c0_i32 = arith.constant 0 : i32
    %c0_i32_0 = arith.constant 0 : i32
    return %arg0, %c0_i32 : i32, i32
  }
  func.func @transform_1(%arg0: i32) -> (i32, i32, i32) {
    %c0_i32 = arith.constant 0 : i32
    %c0_i32_0 = arith.constant 0 : i32
    %c0_i32_1 = arith.constant 0 : i32
    %c0_i32_2 = arith.constant 0 : i32
    return %c0_i32, %c0_i32_0, %c0_i32_1 : i32, i32, i32
  }
  func.func @transform_2(%arg0: i32) -> (i32, i32) {
    %c0_i32 = arith.constant 0 : i32
    %c0_i32_0 = arith.constant 0 : i32
    %c0_i32_1 = arith.constant 0 : i32
    return %c0_i32, %c0_i32_0 : i32, i32
  }
  func.func @transform_3(%arg0: i32) -> (i32, i32) {
    %c0_i32 = arith.constant 0 : i32
    %c0_i32_0 = arith.constant 0 : i32
    %c0_i32_1 = arith.constant 0 : i32
    return %c0_i32, %c0_i32_0 : i32, i32
  }
  func.func @transform_4(%arg0: i32) -> (i32, i32) {
    %c0_i32 = arith.constant 0 : i32
    %c0_i32_0 = arith.constant 0 : i32
    %c0_i32_1 = arith.constant 0 : i32
    return %c0_i32, %c0_i32_0 : i32, i32
  }
  func.func @transform_5(%arg0: i32) -> (i32, i32) {
    %c0_i32 = arith.constant 0 : i32
    %c0_i32_0 = arith.constant 0 : i32
    %c0_i32_1 = arith.constant 0 : i32
    return %c0_i32, %c0_i32_0 : i32, i32
  }
  func.func @transform_6(%arg0: i32) -> (i32, i32) {
    %c0_i32 = arith.constant 0 : i32
    %c0_i32_0 = arith.constant 0 : i32
    %c0_i32_1 = arith.constant 0 : i32
    return %c0_i32, %c0_i32_0 : i32, i32
  }
  func.func @transform_7(%arg0: i32) -> (i32, i32) {
    %c0_i32 = arith.constant 0 : i32
    %c0_i32_0 = arith.constant 0 : i32
    %c0_i32_1 = arith.constant 0 : i32
    return %c0_i32, %c0_i32_0 : i32, i32
  }
  func.func @transform_8(%arg0: i32) -> (i32, i32) {
    %c0_i32 = arith.constant 0 : i32
    %c0_i32_0 = arith.constant 0 : i32
    %c0_i32_1 = arith.constant 0 : i32
    return %c0_i32, %c0_i32_0 : i32, i32
  }
  func.func @transform_9(%arg0: i32) -> (i32, i32) {
    %c0_i32 = arith.constant 0 : i32
    %c0_i32_0 = arith.constant 0 : i32
    %c0_i32_1 = arith.constant 0 : i32
    return %c0_i32, %c0_i32_0 : i32, i32
  }
  func.func @transform_10(%arg0: i32) -> (i32, i32) {
    %c0_i32 = arith.constant 0 : i32
    %c0_i32_0 = arith.constant 0 : i32
    %c0_i32_1 = arith.constant 0 : i32
    return %c0_i32, %c0_i32_0 : i32, i32
  }
  func.func @transform_11(%arg0: i32) -> (i32, i32) {
    %c0_i32 = arith.constant 0 : i32
    %c0_i32_0 = arith.constant 0 : i32
    %c0_i32_1 = arith.constant 0 : i32
    return %c0_i32, %c0_i32_0 : i32, i32
  }
  func.func @transform_12(%arg0: i32) -> (i32, i32) {
    %c0_i32 = arith.constant 0 : i32
    %c0_i32_0 = arith.constant 0 : i32
    return %arg0, %c0_i32 : i32, i32
  }
  func.func @transform_13(%arg0: i32) -> (i32, i32, i32) {
    %c0_i32 = arith.constant 0 : i32
    %c0_i32_0 = arith.constant 0 : i32
    %c0_i32_1 = arith.constant 0 : i32
    %c0_i32_2 = arith.constant 0 : i32
    return %c0_i32, %c0_i32_0, %c0_i32_1 : i32, i32, i32
  }
}

</mosaic_0001>

<bundles_post_ra>
// kernel: tpu_custom_call.1
= control target key start
LH: loop header
LB: loop body
LE: loop exit
PB: predicated region body
PF: predicated region fallthrough
CT: control target
= control target key end

     0   :  { %19 = vsyncpa [#allocation5], 0  ;;  %s12090_s0 = inlined_call_operand.hbm [shape: bf16[256,128], index: 0, kind: input, shape index: {}]   ;;  %s12091_s1 = inlined_call_operand.hbm [shape: f32[2,16,128], index: 1, kind: input, shape index: {}]   ;;  %s12092_s2 = inlined_call_operand.hbm [shape: bf16[128,384], index: 2, kind: input, shape index: {}]   ;;  %s12093_s3 = inlined_call_operand.hbm [shape: bf16[128,256], index: 3, kind: input, shape index: {}]   ;;  %s12094_s4 = inlined_call_operand.hbm [shape: bf16[128,128], index: 4, kind: input, shape index: {}]   ;;  %s12095_s5 = inlined_call_operand.vmem [shape: f32[1,384], index: 5, kind: input, shape index: {}]   ;;  %s12096_s6 = inlined_call_operand.hbm [shape: bf16[128,384], index: 6, kind: input, shape index: {}]   ;;  %s12097_s7 = inlined_call_operand.hbm [shape: bf16[128,256], index: 7, kind: input, shape index: {}]   ;;  %s12098_s8 = inlined_call_operand.hbm [shape: bf16[128,128], index: 8, kind: input, shape index: {}]   ;;  %s12099_s9 = inlined_call_operand.vmem [shape: f32[1,384], index: 9, kind: input, shape index: {}]   ;;  %s12100_s10 = inlined_call_operand.hbm [shape: bf16[128,128], index: 10, kind: input, shape index: {}]   ;;  %s12101_s11 = inlined_call_operand.vmem [shape: f32[1,128], index: 11, kind: input, shape index: {}]   ;;  %s12102_s12 = inlined_call_operand.hbm [shape: f32[256,128], index: 12, kind: output, shape index: {0}]   ;;  %s12103_s13 = inlined_call_operand.hbm [shape: f32[2,16,128], index: 13, kind: output, shape index: {1}]  }
   0x1   :  { %20 = vsyncpa [#allocation8], 0 }
   0x2   :  { %21 = vsyncpa [#allocation11], 0 }
   0x3   :  { %22 = vsyncpa [#allocation14], 0 }
   0x4   :  { %23 = vsyncpa [#allocation17], 0 }
   0x5   :  { %24 = vsyncpa [#allocation6], 0 }
   0x6   :  { %25 = vsyncpa [#allocation21], 0  ;;  %s9395_s25 = smov [#allocation7]   ;;  %s9139_s29 = scalar_lea.hbm %s12091_s1, 512 }
   0x7   :  { %s43_s26 = sshll.u32 %s9395_s25, 4  ;;  %p9140_p0 = scmp.ne.s32.totalorder %s12091_s1, %s9139_s29  ;;  %s44_s26 = int_to_ptr.vmem [resolvable:$true] %s43_s26 }
   0x8   :  { %p9143_p1 = scmp.lt.u32.totalorder %s9139_s29, %s12091_s1 }
   0xa   :  { %p9145_p2 = pnand %p9143_p1, %p9140_p0 }
   0xc   :  { %9148 = shalt.err (!%p9145_p2)
}
   0xd   :  { %s9149_s17 = scalar_lea.vmem %s44_s26, 512  ;;  %p9154_p4 = scmp.lt.s32.totalorder %s44_s26, %s44_s26 }
   0xe   :  { %p9150_p3 = scmp.ne.s32.totalorder %s44_s26, %s9149_s17  ;;  %p9155_p5 = scmp.lt.s32.totalorder %s9149_s17, %s9149_s17 }
  0x10   :  { %p9156_p6 = por %p9155_p5, %p9154_p4 }
  0x12   :  { %p9157_p7 = pnand %p9156_p6, %p9150_p3 }
  0x14   :  { %9160 = shalt.err (!%p9157_p7)
}
  0x15   :  { %s9396_s18 = smov 128   ;;  %s9397_s19 = smov 8  }
  0x16   :  { %49 = dma.hbm_to_vmem [thread:$0]  %s12091_s1, 512, %s44_s26, [#allocation8], %s9396_s18, %s9396_s18, %s9397_s19  }
  0x17   :  { %s9398_s22 = smov [#allocation10]   ;;  %s9161_s27 = scalar_lea.hbm %s12093_s3, 2048 }
  0x18   :  { %s67_s23 = sshll.u32 %s9398_s22, 4  ;;  %p9162_p8 = scmp.ne.s32.totalorder %s12093_s3, %s9161_s27  ;;  %s68_s23 = int_to_ptr.vmem [resolvable:$true] %s67_s23 }
  0x19   :  { %p9165_p9 = scmp.lt.u32.totalorder %s9161_s27, %s12093_s3 }
  0x1b   :  { %p9167_p10 = pnand %p9165_p9, %p9162_p8 }
  0x1d   :  { %9170 = shalt.err (!%p9167_p10)
}
  0x1e   :  { %s9171_s15 = scalar_lea.vmem %s68_s23, 2048  ;;  %p9176_p12 = scmp.lt.s32.totalorder %s68_s23, %s68_s23 }
  0x1f   :  { %p9172_p11 = scmp.ne.s32.totalorder %s68_s23, %s9171_s15  ;;  %p9177_p13 = scmp.lt.s32.totalorder %s9171_s15, %s9171_s15 }
  0x21   :  { %p9178_p0 = por %p9177_p13, %p9176_p12 }
  0x23   :  { %p9179_p1 = pnand %p9178_p0, %p9172_p11 }
  0x25   :  { %9182 = shalt.err (!%p9179_p1)
}
  0x26   :  { %73 = dma.hbm_to_vmem [thread:$0]  %s12093_s3, 2048, %s68_s23, [#allocation11], %s9396_s18, %s9396_s18, %s9397_s19  }
  0x27   :  { %s9399_s16 = smov [#allocation13]   ;;  %s9183_s22 = scalar_lea.hbm %s12096_s6, 3072 }
  0x28   :  { %s93_s17 = sshll.u32 %s9399_s16, 4  ;;  %p9184_p2 = scmp.ne.s32.totalorder %s12096_s6, %s9183_s22  ;;  %s94_s17 = int_to_ptr.vmem [resolvable:$true] %s93_s17 }
  0x29   :  { %p9187_p3 = scmp.lt.u32.totalorder %s9183_s22, %s12096_s6 }
  0x2b   :  { %p9189_p4 = pnand %p9187_p3, %p9184_p2 }
  0x2d   :  { %9192 = shalt.err (!%p9189_p4)
}
  0x2e   :  { %s9193_s29 = scalar_lea.vmem %s94_s17, 3072  ;;  %p9198_p6 = scmp.lt.s32.totalorder %s94_s17, %s94_s17 }
  0x2f   :  { %p9194_p5 = scmp.ne.s32.totalorder %s94_s17, %s9193_s29  ;;  %p9199_p7 = scmp.lt.s32.totalorder %s9193_s29, %s9193_s29 }
  0x31   :  { %p9200_p8 = por %p9199_p7, %p9198_p6 }
  0x33   :  { %p9201_p9 = pnand %p9200_p8, %p9194_p5 }
  0x35   :  { %9204 = shalt.err (!%p9201_p9)
}
  0x36   :  { %s9400_s3 = smov 192   ;;  %s9401_s23 = smov 12  }
  0x37   :  { %99 = dma.hbm_to_vmem [thread:$0]  %s12096_s6, 3072, %s94_s17, [#allocation14], %s9400_s3, %s9400_s3, %s9401_s23  }
  0x38   :  { %s9402_s15 = smov [#allocation16]   ;;  %s9403_s26 = smov [#allocation4]  }
  0x39   :  { %s117_s1 = sshll.u32 %s9402_s15, 4  ;;  %s31_s16 = sshll.u32 %s9403_s26, 4  ;;  %s118_s1 = int_to_ptr.vmem [resolvable:$true] %s117_s1  ;;  %s32_s16 = int_to_ptr.vmem [resolvable:$true] %s31_s16 }
  0x3a   :  { %s9205_s22 = scalar_lea.hbm %s12098_s8, 1024 }
  0x3b   :  { %p9206_p10 = scmp.ne.s32.totalorder %s12098_s8, %s9205_s22  ;;  %p9209_p11 = scmp.lt.u32.totalorder %s9205_s22, %s12098_s8 }
  0x3d   :  { %p9211_p12 = pnand %p9209_p11, %p9206_p10 }
  0x3f   :  { %9214 = shalt.err (!%p9211_p12)
}
  0x40   :  { %s9215_s6 = scalar_lea.vmem %s118_s1, 1024  ;;  %p9220_p0 = scmp.lt.s32.totalorder %s118_s1, %s118_s1 }
  0x41   :  { %p9216_p13 = scmp.ne.s32.totalorder %s118_s1, %s9215_s6  ;;  %p9221_p1 = scmp.lt.s32.totalorder %s9215_s6, %s9215_s6 }
  0x43   :  { %p9222_p2 = por %p9221_p1, %p9220_p0 }
  0x45   :  { %p9223_p3 = pnand %p9222_p2, %p9216_p13 }
  0x47   :  { %9226 = shalt.err (!%p9223_p3)
}
  0x48   :  { %s9404_s17 = smov 64   ;;  %s9405_s29 = smov 4  }
  0x49   :  { %123 = dma.hbm_to_vmem [thread:$0]  %s12098_s8, 1024, %s118_s1, [#allocation17], %s9404_s17, %s9404_s17, %s9405_s29  }
  0x4a   :  { %s9227_s20 = scalar_lea.hbm %s12090_s0, 2048 }
  0x4b   :  { %p9228_p4 = scmp.ne.s32.totalorder %s12090_s0, %s9227_s20  ;;  %p9231_p5 = scmp.lt.u32.totalorder %s9227_s20, %s12090_s0 }
  0x4d   :  { %p9233_p6 = pnand %p9231_p5, %p9228_p4 }
  0x4f   :  { %9236 = shalt.err (!%p9233_p6)
}
  0x50   :  { %s9237_s27 = scalar_lea.vmem %s32_s16, 2048  ;;  %p9242_p8 = scmp.lt.s32.totalorder %s32_s16, %s32_s16 }
  0x51   :  { %p9238_p7 = scmp.ne.s32.totalorder %s32_s16, %s9237_s27  ;;  %p9243_p9 = scmp.lt.s32.totalorder %s9237_s27, %s9237_s27 }
  0x53   :  { %p9244_p10 = por %p9243_p9, %p9242_p8 }
  0x55   :  { %p9245_p11 = pnand %p9244_p10, %p9238_p7 }
  0x57   :  { %9248 = shalt.err (!%p9245_p11)
}
  0x58   :  { %37 = dma.hbm_to_vmem [thread:$0]  %s12090_s0, 2048, %s32_s16, [#allocation5], %s9404_s17, %s9404_s17, %s9405_s29  }
  0x59   :  { %s9406_s28 = smov [#allocation9]   ;;  %s9407_s30 = smov [#allocation12]  }
  0x5a   :  { %s55_s6 = sshll.u32 %s9406_s28, 4  ;;  %s79_s14 = sshll.u32 %s9407_s30, 4  ;;  %s56_s6 = int_to_ptr.vmem [resolvable:$true] %s55_s6  ;;  %s80_s14 = int_to_ptr.vmem [resolvable:$true] %s79_s14 }
  0x5b   :  { %s9249_s20 = scalar_lea.hbm %s12092_s2, 3072 }
  0x5c   :  { %p9250_p12 = scmp.ne.s32.totalorder %s12092_s2, %s9249_s20  ;;  %p9253_p13 = scmp.lt.u32.totalorder %s9249_s20, %s12092_s2 }
  0x5e   :  { %p9255_p0 = pnand %p9253_p13, %p9250_p12 }
  0x60   :  { %9258 = shalt.err (!%p9255_p0)
}
  0x61   :  { %s9259_s0 = scalar_lea.vmem %s56_s6, 3072  ;;  %p9264_p2 = scmp.lt.s32.totalorder %s56_s6, %s56_s6 }
  0x62   :  { %p9260_p1 = scmp.ne.s32.totalorder %s56_s6, %s9259_s0  ;;  %p9265_p3 = scmp.lt.s32.totalorder %s9259_s0, %s9259_s0 }
  0x64   :  { %p9266_p4 = por %p9265_p3, %p9264_p2 }
  0x66   :  { %p9267_p5 = pnand %p9266_p4, %p9260_p1 }
  0x68   :  { %9270 = shalt.err (!%p9267_p5)
}
  0x69   :  { %61 = dma.hbm_to_vmem [thread:$0]  %s12092_s2, 3072, %s56_s6, [#allocation8], %s9400_s3, %s9400_s3, %s9401_s23  }
  0x6a   :  { %s9271_s28 = scalar_lea.hbm %s12094_s4, 1024 }
  0x6b   :  { %p9272_p6 = scmp.ne.s32.totalorder %s12094_s4, %s9271_s28  ;;  %p9275_p7 = scmp.lt.u32.totalorder %s9271_s28, %s12094_s4 }
  0x6d   :  { %p9277_p8 = pnand %p9275_p7, %p9272_p6 }
  0x6f   :  { %9280 = shalt.err (!%p9277_p8)
}
  0x70   :  { %s9281_s21 = scalar_lea.vmem %s80_s14, 1024  ;;  %p9286_p10 = scmp.lt.s32.totalorder %s80_s14, %s80_s14 }
  0x71   :  { %p9282_p9 = scmp.ne.s32.totalorder %s80_s14, %s9281_s21  ;;  %p9287_p11 = scmp.lt.s32.totalorder %s9281_s21, %s9281_s21 }
  0x73   :  { %p9288_p12 = por %p9287_p11, %p9286_p10 }
  0x75   :  { %p9289_p13 = pnand %p9288_p12, %p9282_p9 }
  0x77   :  { %9292 = shalt.err (!%p9289_p13)
}
  0x78   :  { %85 = dma.hbm_to_vmem [thread:$0]  %s12094_s4, 1024, %s80_s14, [#allocation11], %s9404_s17, %s9404_s17, %s9405_s29  }
  0x79   :  { %s9408_s23 = smov [#allocation15]   ;;  %s9409_s22 = smov [#allocation18]  }
  0x7a   :  { %s105_s6 = sshll.u32 %s9408_s23, 4  ;;  %s131_s24 = sshll.u32 %s9409_s22, 4  ;;  %s106_s6 = int_to_ptr.vmem [resolvable:$true] %s105_s6  ;;  %s132_s24 = int_to_ptr.vmem [resolvable:$true] %s131_s24 }
  0x7b   :  { %s9293_s16 = scalar_lea.hbm %s12097_s7, 2048 }
  0x7c   :  { %p9294_p0 = scmp.ne.s32.totalorder %s12097_s7, %s9293_s16  ;;  %p9297_p1 = scmp.lt.u32.totalorder %s9293_s16, %s12097_s7 }
  0x7e   :  { %p9299_p2 = pnand %p9297_p1, %p9294_p0 }
  0x80   :  { %9302 = shalt.err (!%p9299_p2)
}
  0x81   :  { %s9303_s4 = scalar_lea.vmem %s106_s6, 2048  ;;  %p9308_p4 = scmp.lt.s32.totalorder %s106_s6, %s106_s6 }
  0x82   :  { %p9304_p3 = scmp.ne.s32.totalorder %s106_s6, %s9303_s4  ;;  %p9309_p5 = scmp.lt.s32.totalorder %s9303_s4, %s9303_s4 }
  0x84   :  { %p9310_p6 = por %p9309_p5, %p9308_p4 }
  0x86   :  { %p9311_p7 = pnand %p9310_p6, %p9304_p3 }
  0x88   :  { %9314 = shalt.err (!%p9311_p7)
}
  0x89   :  { %111 = dma.hbm_to_vmem [thread:$0]  %s12097_s7, 2048, %s106_s6, [#allocation14], %s9396_s18, %s9396_s18, %s9397_s19  }
  0x8a   :  { %s9315_s20 = scalar_lea.hbm %s12100_s10, 1024 }
  0x8b   :  { %p9316_p8 = scmp.ne.s32.totalorder %s12100_s10, %s9315_s20  ;;  %p9319_p9 = scmp.lt.u32.totalorder %s9315_s20, %s12100_s10 }
  0x8d   :  { %p9321_p10 = pnand %p9319_p9, %p9316_p8 }
  0x8f   :  { %9324 = shalt.err (!%p9321_p10)
}
  0x90   :  { %s9325_s22 = scalar_lea.vmem %s132_s24, 1024  ;;  %p9330_p12 = scmp.lt.s32.totalorder %s132_s24, %s132_s24 }
  0x91   :  { %p9326_p11 = scmp.ne.s32.totalorder %s132_s24, %s9325_s22  ;;  %p9331_p13 = scmp.lt.s32.totalorder %s9325_s22, %s9325_s22 }
  0x93   :  { %p9332_p0 = por %p9331_p13, %p9330_p12 }
  0x95   :  { %p9333_p1 = pnand %p9332_p0, %p9326_p11 }
  0x97   :  { %9336 = shalt.err (!%p9333_p1)
}
  0x98   :  { %137 = dma.hbm_to_vmem [thread:$0]  %s12100_s10, 1024, %s132_s24, [#allocation17], %s9404_s17, %s9404_s17, %s9405_s29  }
  0x99   :  { %9381 = dma.done.wait [#allocation5], 2048  }
  0x9a   :  { %9382 = vsyncadd [#allocation5], 4294965248 }
  0x9b   :  { %9383 = dma.done.wait [#allocation8], 3584  }
  0x9c   :  { %9384 = vsyncadd [#allocation8], 4294963712 }
  0x9d   :  { %9385 = dma.done.wait [#allocation11], 3072  }
  0x9e   :  { %9386 = vsyncadd [#allocation11], 4294964224 }
  0x9f   :  { %9387 = dma.done.wait [#allocation14], 5120  }
  0xa0   :  { %9388 = vsyncadd [#allocation14], 4294962176 }
  0xa1   :  { %9389 = dma.done.wait [#allocation17], 2048  }
  0xa2   :  { %9390 = vsyncadd [#allocation17], 4294965248  ;;  %v12105_v0 = vmov 0   ;;  %v8245_v1 = vld [vmem:[#allocation9 + $0x4] ss:$12 sps:$4 sm:$0xff]   ;;  %v9633_v22 = vld [vmem:[#allocation4 + $0x58] sm:$0xff]  }
  0xa3   :  { %517 = vmatprep.mubr.bf16.mxu0 %v12105_v0  ;;  %627 = vmatprep.mubr.bf16.mxu1 %v12105_v0  ;;  %v8247_v2 = vld [vmem:[#allocation9] ss:$12 sps:$4 sm:$0xff]   ;;  %v8248_v3 = vld [vmem:[#allocation9 + $0x1c] ss:$12 sps:$4 sm:$0xff]   ;;  %v8250_v4 = vld [vmem:[#allocation9 + $0x18] ss:$12 sps:$4 sm:$0xff]  }
  0xa4   :  { %485 = vmatprep.subr.bf16.mxu0 %v8245_v1  ;;  %7953 = vmatprep.subr.bf16.mxu1 %v8245_v1  ;;  %v8251_v5 = vld [vmem:[#allocation9 + $0x34] ss:$12 sps:$4 sm:$0xff]   ;;  %v8253_v6 = vld [vmem:[#allocation9 + $0x30] ss:$12 sps:$4 sm:$0xff]   ;;  %v8254_v7 = vld [vmem:[#allocation9 + $0x4c] ss:$12 sps:$4 sm:$0xff]  }
  0xa5   :  { %486 = vmatpush1.bf16.msra.mxu0 %v8247_v2  ;;  %7961 = vmatpush1.bf16.msra.mxu1 %v8247_v2  ;;  %v8256_v8 = vld [vmem:[#allocation9 + $0x48] ss:$12 sps:$4 sm:$0xff]   ;;  %v8257_v9 = vld [vmem:[#allocation9 + $0x64] ss:$12 sps:$4 sm:$0xff]   ;;  %v8259_v10 = vld [vmem:[#allocation9 + $0x60] ss:$12 sps:$4 sm:$0xff]  }
  0xa6   :  { %487 = vmatprep.subr.bf16.mxu0 %v8248_v3  ;;  %7954 = vmatprep.subr.bf16.mxu1 %v8248_v3  ;;  %v8260_v11 = vld [vmem:[#allocation9 + $0x7c] ss:$12 sps:$4 sm:$0xff]   ;;  %v8262_v12 = vld [vmem:[#allocation9 + $0x78] ss:$12 sps:$4 sm:$0xff]   ;;  %v8263_v13 = vld [vmem:[#allocation9 + $0x94] ss:$12 sps:$4 sm:$0xff]  }
  0xa7   :  { %v8265_v14 = vld [vmem:[#allocation9 + $0x90] ss:$12 sps:$4 sm:$0xff]   ;;  %v8266_v15 = vld [vmem:[#allocation9 + $0xac] ss:$12 sps:$4 sm:$0xff]   ;;  %v8268_v16 = vld [vmem:[#allocation9 + $0xa8] ss:$12 sps:$4 sm:$0xff]  }
  0xa8   :  { %v9622_v17 = vld [vmem:[#allocation10 + $0x4] ss:$8 sps:$4 sm:$0xff]   ;;  %v9626_v19 = vld [vmem:[#allocation10] ss:$8 sps:$4 sm:$0xff]   ;;  %v9629_v20 = vld [vmem:[#allocation10 + $0x14] ss:$8 sps:$4 sm:$0xff]  }
  0xa9   :  { %488 = vmatpush1.bf16.msra.mxu0 %v8250_v4  ;;  %7962 = vmatpush1.bf16.msra.mxu1 %v8250_v4  ;;  %v9624_v18 = vld [vmem:[#allocation4] sm:$0xff]   ;;  %v9631_v21 = vld [vmem:[#allocation10 + $0x10] ss:$8 sps:$4 sm:$0xff]   ;;  %v8305_v23 = vld [vmem:[#allocation9 + $0x8] ss:$12 sps:$4 sm:$0xff]   ;;  %v12107_v51 = vmov 0.0  }
  0xaa   :  { %489 = vmatprep.subr.bf16.mxu0 %v8251_v5  ;;  %7955 = vmatprep.subr.bf16.mxu1 %v8251_v5  ;;  %v8306_v24 = vld [vmem:[#allocation9 + $0x20] ss:$12 sps:$4 sm:$0xff]   ;;  %v9648_v28 = vld [vmem:[#allocation10 + $0x34] ss:$8 sps:$4 sm:$0xff]   ;;  %v8308_v30 = vld [vmem:[#allocation9 + $0x38] ss:$12 sps:$4 sm:$0xff]  }
  0xab   :  { %v9639_v25 = vld [vmem:[#allocation10 + $0x24] ss:$8 sps:$4 sm:$0xff]   ;;  %v9645_v27 = vld [vmem:[#allocation10 + $0x20] ss:$8 sps:$4 sm:$0xff]   ;;  %v9654_v31 = vld [vmem:[#allocation10 + $0x30] ss:$8 sps:$4 sm:$0xff]  }
  0xac   :  { %v9642_v26 = vld [vmem:[#allocation4 + $0x8] sm:$0xff]   ;;  %v9651_v29 = vld [vmem:[#allocation4 + $0x60] sm:$0xff]   ;;  %v8310_v32 = vld [vmem:[#allocation9 + $0x50] ss:$12 sps:$4 sm:$0xff]   ;;  %vm9412_vm0 = vmmov 0  }
  0xad   :  { %490 = vmatpush1.bf16.msra.mxu0 %v8253_v6  ;;  %7963 = vmatpush1.bf16.msra.mxu1 %v8253_v6  ;;  %v9659_v33 = vld [vmem:[#allocation10 + $0x44] ss:$8 sps:$4 sm:$0xff]   ;;  %v8277_v34 = vld [vmem:[#allocation4 + $0x10] sm:$0xff]   ;;  %v9663_v35 = vld [vmem:[#allocation10 + $0x40] ss:$8 sps:$4 sm:$0xff]  }
  0xae   :  { %491 = vmatprep.subr.bf16.mxu0 %v8254_v7  ;;  %7956 = vmatprep.subr.bf16.mxu1 %v8254_v7  ;;  %v9666_v36 = vld [vmem:[#allocation10 + $0x54] ss:$8 sps:$4 sm:$0xff]   ;;  %v9669_v37 = vld [vmem:[#allocation4 + $0x68] sm:$0xff]   ;;  %v9671_v38 = vld [vmem:[#allocation10 + $0x50] ss:$8 sps:$4 sm:$0xff]  }
  0xaf   :  { %v8311_v39 = vld [vmem:[#allocation9 + $0x68] ss:$12 sps:$4 sm:$0xff]   ;;  %v9673_v40 = vld [vmem:[#allocation10 + $0x64] ss:$8 sps:$4 sm:$0xff]   ;;  %v8281_v42 = vld [vmem:[#allocation4 + $0x18] sm:$0xff]  }
  0xb0   :  { %v8313_v41 = vld [vmem:[#allocation9 + $0x80] ss:$12 sps:$4 sm:$0xff]   ;;  %v9682_v44 = vld [vmem:[#allocation10 + $0x74] ss:$8 sps:$4 sm:$0xff]   ;;  %v8315_v46 = vld [vmem:[#allocation9 + $0x98] ss:$12 sps:$4 sm:$0xff]  }
  0xb1   :  { %492 = vmatpush1.bf16.msra.mxu0 %v8256_v8  ;;  %7964 = vmatpush1.bf16.msra.mxu1 %v8256_v8  ;;  %v9679_v43 = vld [vmem:[#allocation10 + $0x60] ss:$8 sps:$4 sm:$0xff]   ;;  %v9684_v45 = vld [vmem:[#allocation4 + $0x70] sm:$0xff]   ;;  %v9695_v50 = vld [vmem:[#allocation4 + $0x78] sm:$0xff]  }
  0xb2   :  { %493 = vmatprep.subr.bf16.mxu0 %v8257_v9  ;;  %7957 = vmatprep.subr.bf16.mxu1 %v8257_v9  ;;  %v9688_v47 = vld [vmem:[#allocation10 + $0x70] ss:$8 sps:$4 sm:$0xff]   ;;  %v8282_v49 = vld [vmem:[#allocation4 + $0x20] sm:$0xff]   ;;  %v8286_v52 = vld [vmem:[#allocation4 + $0x28] sm:$0xff]  }
  0xb3   :  { %v8316_v48 = vld [vmem:[#allocation9 + $0xb0] ss:$12 sps:$4 sm:$0xff]   ;;  %v9703_v53 = vld [vmem:[#allocation12] sm:$0xff]   ;;  %v9706_v54 = vld [vmem:[#allocation12 + $0x8] sm:$0xff]  }
  0xb4   :  { %v8290_v55 = vld [vmem:[#allocation4 + $0x30] sm:$0xff]   ;;  %v9717_v57 = vld [vmem:[#allocation12 + $0x18] sm:$0xff]   ;;  %v8295_v59 = vld [vmem:[#allocation4 + $0x40] sm:$0xff]  }
  0xb5   :  { %494 = vmatpush1.bf16.msra.mxu0 %v8259_v10  ;;  %7965 = vmatpush1.bf16.msra.mxu1 %v8259_v10  ;;  %v9712_v56 = vld [vmem:[#allocation12 + $0x10] sm:$0xff]   ;;  %v8293_v58 = vld [vmem:[#allocation4 + $0x38] sm:$0xff]   ;;  %v8299_v60 = vld [vmem:[#allocation4 + $0x48] sm:$0xff]  }
  0xb6   :  { %495 = vmatprep.subr.bf16.mxu0 %v8260_v11  ;;  %7958 = vmatprep.subr.bf16.mxu1 %v8260_v11  ;;  %v8303_v61 = vld [vmem:[#allocation4 + $0x50] sm:$0xff]   ;;  %v9726_v62 = vld [vmem:[#allocation7] sm:$0xff]  ;;  %v9728_v63 = vld [vmem:[#allocation7 + $0x8] sm:$0xff] }
  0xb7   :  { %v978_v1 = vpack.c.bf16 %v9728_v63, %v9726_v62  ;;  %v9754_v2 = vld [vmem:[#allocation12 + $0x20] sm:$0xff]   ;;  %v9757_v3 = vld [vmem:[#allocation12 + $0x28] sm:$0xff]   ;;  %v9763_v4 = vld [vmem:[#allocation12 + $0x30] sm:$0xff]  }
  0xb8   :  { %v9767_v5 = vld [vmem:[#allocation12 + $0x38] sm:$0xff]  }
  0xb9   :  { %496 = vmatpush1.bf16.msra.mxu0 %v8262_v12  ;;  %7966 = vmatpush1.bf16.msra.mxu1 %v8262_v12 }
  0xba   :  { %497 = vmatprep.subr.bf16.mxu0 %v8263_v13  ;;  %7959 = vmatprep.subr.bf16.mxu1 %v8263_v13 }
  0xbd   :  { %498 = vmatpush1.bf16.msra.mxu0 %v8265_v14  ;;  %7967 = vmatpush1.bf16.msra.mxu1 %v8265_v14 }
  0xbe   :  { %499 = vmatprep.subr.bf16.mxu0 %v8266_v15  ;;  %7960 = vmatprep.subr.bf16.mxu1 %v8266_v15 }
  0xc1   :  { %500 = vmatpush1.bf16.msra.mxu0 %v8268_v16  ;;  %7968 = vmatpush1.bf16.msra.mxu1 %v8268_v16 }
  0xc2   :  { %1059 = vmatprep.subr.bf16.mxu0 %v9622_v17  ;;  %7169 = vmatprep.subr.bf16.mxu1 %v8305_v23 }
  0xc4   :  { %518 = vmatmul.mubr.bf16.vlgmr.msra.gmra.mrb[0].mxu0 %v9624_v18  ;;  %628 = vmatmul.mubr.bf16.vlgmr.msra.gmra.mrb[0].mxu1 %v9633_v22 }
  0xc5   :  { %1060 = vmatpush1.bf16.msra.mxu0 %v9626_v19  ;;  %527 = vmatprep.mubr.bf16.mxu0 %v12105_v0 }
  0xc6   :  { %1061 = vmatprep.subr.bf16.mxu0 %v9629_v20  ;;  %637 = vmatprep.mubr.bf16.mxu1 %v12105_v0 }
  0xc7   :  { %7170 = vmatpush3.bf16.msra.mxu1 %v8305_v23 }
  0xc8   :  { %7171 = vmatprep.subr.bf16.mxu1 %v8306_v24 }
  0xc9   :  { %1062 = vmatpush1.bf16.msra.mxu0 %v9631_v21 }
  0xca   :  { %1063 = vmatprep.subr.bf16.mxu0 %v9639_v25 }
  0xcb   :  { %7172 = vmatpush3.bf16.msra.mxu1 %v8306_v24 }
  0xcc   :  { %528 = vmatmul.mubr.bf16.gmra.mrb[4].mxu0 %v9642_v26  ;;  %638 = vmatmul.mubr.bf16.gmra.mrb[4].mxu1 %v9651_v29 }
  0xcd   :  { %537 = vmatprep.mubr.bf16.mxu0 %v12105_v0  ;;  %1064 = vmatpush1.bf16.msra.mxu0 %v9645_v27 }
  0xce   :  { %1065 = vmatprep.subr.bf16.mxu0 %v9648_v28  ;;  %7173 = vmatprep.subr.bf16.mxu1 %v8308_v30 }
  0xcf   :  { %647 = vmatprep.mubr.bf16.mxu1 %v12105_v0  ;;  %7174 = vmatpush3.bf16.msra.mxu1 %v8308_v30 }
  0xd0   :  { %7175 = vmatprep.subr.bf16.mxu1 %v8310_v32 }
  0xd1   :  { %1066 = vmatpush1.bf16.msra.mxu0 %v9654_v31 }
  0xd2   :  { %1067 = vmatprep.subr.bf16.mxu0 %v9659_v33 }
  0xd3   :  { %7176 = vmatpush3.bf16.msra.mxu1 %v8310_v32 }
  0xd4   :  { %538 = vmatmul.mubr.bf16.gmra.mrb[8].mxu0 %v8277_v34  ;;  %648 = vmatmul.mubr.bf16.gmra.mrb[8].mxu1 %v9669_v37 }
  0xd5   :  { %547 = vmatprep.mubr.bf16.mxu0 %v12105_v0  ;;  %1068 = vmatpush1.bf16.msra.mxu0 %v9663_v35 }
  0xd6   :  { %1069 = vmatprep.subr.bf16.mxu0 %v9666_v36  ;;  %7177 = vmatprep.subr.bf16.mxu1 %v8311_v39 }
  0xd7   :  { %657 = vmatprep.mubr.bf16.mxu1 %v12105_v0  ;;  %7178 = vmatpush3.bf16.msra.mxu1 %v8311_v39 }
  0xd8   :  { %7179 = vmatprep.subr.bf16.mxu1 %v8313_v41 }
  0xd9   :  { %1070 = vmatpush1.bf16.msra.mxu0 %v9671_v38 }
  0xda   :  { %1071 = vmatprep.subr.bf16.mxu0 %v9673_v40 }
  0xdb   :  { %7180 = vmatpush3.bf16.msra.mxu1 %v8313_v41 }
  0xdc   :  { %548 = vmatmul.mubr.bf16.gmra.mrb[12].mxu0 %v8281_v42  ;;  %658 = vmatmul.mubr.bf16.gmra.mrb[12].mxu1 %v9684_v45 }
  0xdd   :  { %557 = vmatprep.mubr.bf16.mxu0 %v12105_v0  ;;  %1072 = vmatpush1.bf16.msra.mxu0 %v9679_v43 }
  0xde   :  { %1073 = vmatprep.subr.bf16.mxu0 %v9682_v44  ;;  %667 = vmatprep.mubr.bf16.mxu1 %v12105_v0 }
  0xdf   :  { %7181 = vmatprep.subr.bf16.mxu1 %v8315_v46 }
  0xe0   :  { %7182 = vmatpush3.bf16.msra.mxu1 %v8315_v46 }
  0xe1   :  { %1074 = vmatpush1.bf16.msra.mxu0 %v9688_v47  ;;  %7183 = vmatprep.subr.bf16.mxu1 %v8316_v48 }
  0xe2   :  { %1243 = vmatprep.subr.bf16.mxu0 %v9622_v17 }
  0xe4   :  { %558 = vmatmul.mubr.bf16.gmra.mrb[16].mxu0 %v8282_v49  ;;  %7184 = vmatpush3.bf16.msra.mxu1 %v8316_v48 }
  0xe5   :  { %567 = vmatprep.mubr.bf16.mxu0 %v12105_v0  ;;  %7217 = vmatprep.subr.bf16.mxu1 %v12107_v51 }
  0xe6   :  { %668 = vmatmul.mubr.bf16.gmra.mrb[16].mxu1 %v9695_v50 }
  0xe7   :  { %7185 = vmatprep.mubr.bf16.mxu1 %v9624_v18 }
  0xec   :  { %568 = vmatmul.mubr.bf16.gmra.mrb[20].mxu0 %v8286_v52 }
  0xed   :  { %577 = vmatprep.mubr.bf16.mxu0 %v12105_v0 }
  0xee   :  { %7186 = vmatmul.mubr.bf16.vlgmr.msra.gmra.mrb[20].mxu1 %v9642_v26  ;;  %v246_v26 = vlaneseq }
  0xef   :  { %7218 = vmatpush3.bf16.msra.mxu1 %v9703_v53  ;;  %7189 = vmatprep.mubr.bf16.mxu1 %v8277_v34 }
  0xf0   :  { %7219 = vmatprep.subr.bf16.mxu1 %v12107_v51  ;;  %v9804_v30 = vshrl.u32 %v246_v26, 7 }
  0xf2   :  { %12129 = vst [vmem:[#allocation45_spill] sm:$0xff] %v9804_v30 }
  0xf3   :  { %7220 = vmatpush3.bf16.msra.mxu1 %v9706_v54 }
  0xf4   :  { %578 = vmatmul.mubr.bf16.gmra.mrb[24].mxu0 %v8290_v55  ;;  %7221 = vmatprep.subr.bf16.mxu1 %v12107_v51 }
  0xf5   :  { %587 = vmatprep.mubr.bf16.mxu0 %v12105_v0 }
  0xf6   :  { %7190 = vmatmul.mubr.bf16.gmra.mrb[24].mxu1 %v8281_v42  ;;  %v9818_v42 = vld [vmem:[%s12095_s5] sm:$0x7] }
  0xf7   :  { %7193 = vmatprep.mubr.bf16.mxu1 %v8282_v49  ;;  %7222 = vmatpush3.bf16.msra.mxu1 %v9712_v56 }
  0xf8   :  { %7223 = vmatprep.subr.bf16.mxu1 %v12107_v51 }
  0xfb   :  { %7224 = vmatpush3.bf16.msra.mxu1 %v9717_v57 }
  0xfc   :  { %588 = vmatmul.mubr.bf16.gmra.mrb[28].mxu0 %v8293_v58  ;;  %7225 = vmatprep.subr.bf16.mxu1 %v12107_v51 }
  0xfd   :  { %597 = vmatprep.mubr.bf16.mxu0 %v12105_v0 }
  0xfe   :  { %7194 = vmatmul.mubr.bf16.gmra.mrb[28].mxu1 %v8286_v52 }
  0xff   :  { %7197 = vmatprep.mubr.bf16.mxu1 %v8290_v55  ;;  %7226 = vmatpush3.bf16.msra.mxu1 %v9754_v2 }
 0x100   :  { %7227 = vmatprep.subr.bf16.mxu1 %v12107_v51 }
 0x103   :  { %7228 = vmatpush3.bf16.msra.mxu1 %v9757_v3 }
 0x104   :  { %598 = vmatmul.mubr.bf16.gmra.mrb[32].mxu0 %v8295_v59  ;;  %7229 = vmatprep.subr.bf16.mxu1 %v12107_v51 }
 0x105   :  { %607 = vmatprep.mubr.bf16.mxu0 %v12105_v0 }
 0x106   :  { %7198 = vmatmul.mubr.bf16.gmra.mrb[32].mxu1 %v8293_v58 }
 0x107   :  { %7201 = vmatprep.mubr.bf16.mxu1 %v8295_v59  ;;  %7230 = vmatpush3.bf16.msra.mxu1 %v9763_v4 }
 0x108   :  { %7231 = vmatprep.subr.bf16.mxu1 %v12107_v51 }
 0x10b   :  { %7232 = vmatpush3.bf16.msra.mxu1 %v9767_v5 }
 0x10c   :  { %608 = vmatmul.mubr.bf16.gmra.mrb[36].mxu0 %v8299_v60  ;;  %7237 = vmatprep.subr.bf16.mxu1 %v12107_v51 }
 0x10d   :  { %617 = vmatprep.mubr.bf16.mxu0 %v12105_v0 }
 0x10e   :  { %7202 = vmatmul.mubr.bf16.gmra.mrb[36].mxu1 %v8299_v60 }
 0x10f   :  { %7205 = vmatprep.mubr.bf16.mxu1 %v8303_v61 }
 0x114   :  { %618 = vmatmul.mubr.bf16.gmra.mrb[40].mxu0 %v8303_v61 }
 0x115   :  { %1091 = vmatprep.mubr.bf16.mxu0 %v12105_v0 }
 0x116   :  { %7206 = vmatmul.mubr.bf16.gmra.mrb[40].mxu1 %v9633_v22 }
 0x117   :  { %7209 = vmatprep.mubr.bf16.mxu1 %v9651_v29 }
 0x11c   :  { %1092 = vmatmul.mubr.bf16.vlgmr.msra.gmra.mrb[0].mxu0 %v978_v1 }
 0x11d   :  { %1244 = vmatpush1.bf16.msra.mxu0 %v9626_v19  ;;  %1275 = vmatprep.mubr.bf16.mxu0 %v12105_v0 }
 0x11e   :  { %7210 = vmatmul.mubr.bf16.gmra.mrb[44].mxu1 %v9669_v37  ;;  %1245 = vmatprep.subr.bf16.mxu0 %v9629_v20  ;;  %v12104_v37 = vsub.s32 2, %v9804_v30 }
 0x11f   :  { %7213 = vmatprep.mubr.bf16.mxu1 %v9684_v45 }
 0x120   :  { %v9823_v45 = vrot.slane %v9818_v42, %v12104_v37 }
 0x121   :  { %1246 = vmatpush1.bf16.msra.mxu0 %v9631_v21 }
 0x122   :  { %1247 = vmatprep.subr.bf16.mxu0 %v9639_v25 }
 0x125   :  { %1248 = vmatpush1.bf16.msra.mxu0 %v9645_v27 }
 0x126   :  { %7214 = vmatmul.mubr.bf16.gmra.mrb[48].mxu1 %v9695_v50  ;;  %1249 = vmatprep.subr.bf16.mxu0 %v9648_v28 }
 0x127   :  { %7233 = vmatprep.mubr.msk.bf16.mxu1 %vm9412_vm0, %v12107_v51 }
 0x129   :  { %1250 = vmatpush1.bf16.msra.mxu0 %v9654_v31 }
 0x12a   :  { %1251 = vmatprep.subr.bf16.mxu0 %v9659_v33 }
 0x12d   :  { %1252 = vmatpush1.bf16.msra.mxu0 %v9663_v35 }
 0x12e   :  { %1253 = vmatprep.subr.bf16.mxu0 %v9666_v36 }
 0x131   :  { %1254 = vmatpush1.bf16.msra.mxu0 %v9671_v38 }
 0x132   :  { %1255 = vmatprep.subr.bf16.mxu0 %v9673_v40 }
 0x135   :  { %1256 = vmatpush1.bf16.msra.mxu0 %v9679_v43 }
 0x136   :  { %1257 = vmatprep.subr.bf16.mxu0 %v9682_v44 }
 0x139   :  { %1258 = vmatpush1.bf16.msra.mxu0 %v9688_v47 }
 0x13a   :  { %1380 = vmatprep.subr.bf16.mxu0 %v9622_v17 }
 0x197   :  { %v9772_v6 = vpop.f32.mrb[0].mxu1 }
 0x198   :  { %12113 = vst [vmem:[#allocation29_spill] sm:$0xff] %v9772_v6  ;;  %v9774_v7 = vpop.f32.mrb[1].mxu1 }
 0x199   :  { %12114 = vst [vmem:[#allocation30_spill] sm:$0xff] %v9774_v7  ;;  %v9776_v8 = vpop.f32.mrb[2].mxu1 }
 0x19a   :  { %12115 = vst [vmem:[#allocation31_spill] sm:$0xff] %v9776_v8  ;;  %v9778_v9 = vpop.f32.mrb[3].mxu1 }
 0x19b   :  { %12116 = vst [vmem:[#allocation32_spill] sm:$0xff] %v9778_v9 }
 0x19f   :  { %v9780_v10 = vpop.f32.mrb[4].mxu1 }
 0x1a0   :  { %12117 = vst [vmem:[#allocation33_spill] sm:$0xff] %v9780_v10  ;;  %v9782_v11 = vpop.f32.mrb[5].mxu1 }
 0x1a1   :  { %12118 = vst [vmem:[#allocation34_spill] sm:$0xff] %v9782_v11  ;;  %v9784_v12 = vpop.f32.mrb[6].mxu1 }
 0x1a2   :  { %12119 = vst [vmem:[#allocation35_spill] sm:$0xff] %v9784_v12  ;;  %v9786_v13 = vpop.f32.mrb[7].mxu1 }
 0x1a3   :  { %12120 = vst [vmem:[#allocation36_spill] sm:$0xff] %v9786_v13 }
 0x1a7   :  { %v9788_v14 = vpop.f32.mrb[8].mxu1 }
 0x1a8   :  { %12121 = vst [vmem:[#allocation37_spill] sm:$0xff] %v9788_v14  ;;  %v9790_v15 = vpop.f32.mrb[9].mxu1 }
 0x1a9   :  { %12122 = vst [vmem:[#allocation38_spill] sm:$0xff] %v9790_v15  ;;  %v9792_v16 = vpop.f32.mrb[10].mxu1  ;;  %v12109_v15 = vsub.s32 1, %v9804_v30 }
 0x1aa   :  { %12123 = vst [vmem:[#allocation39_spill] sm:$0xff] %v9792_v16  ;;  %v9794_v18 = vpop.f32.mrb[11].mxu1 }
 0x1ab   :  { %12124 = vst [vmem:[#allocation40_spill] sm:$0xff] %v9794_v18 }
 0x1af   :  { %v9796_v22 = vpop.f32.mrb[12].mxu1 }
 0x1b0   :  { %12125 = vst [vmem:[#allocation41_spill] sm:$0xff] %v9796_v22  ;;  %v9798_v23 = vpop.f32.mrb[13].mxu1 }
 0x1b1   :  { %12126 = vst [vmem:[#allocation42_spill] sm:$0xff] %v9798_v23  ;;  %v9800_v24 = vpop.f32.mrb[14].mxu1 }
 0x1b2   :  { %12127 = vst [vmem:[#allocation43_spill] sm:$0xff] %v9800_v24  ;;  %v9802_v29 = vpop.f32.mrb[15].mxu1 }
 0x1b3   :  { %12128 = vst [vmem:[#allocation44_spill] sm:$0xff] %v9802_v29 }
 0x1b9   :  { %v9806_v32 = vpop.f32.mrb[16].mxu1 }
 0x1ba   :  { %12130 = vst [vmem:[#allocation46_spill] sm:$0xff] %v9806_v32  ;;  %v9808_v34 = vpop.f32.mrb[17].mxu1 }
 0x1bb   :  { %12131 = vst [vmem:[#allocation47_spill] sm:$0xff] %v9808_v34  ;;  %v9811_v39 = vpop.f32.mrb[18].mxu1 }
 0x1bc   :  { %12132 = vst [vmem:[#allocation48_spill] sm:$0xff] %v9811_v39  ;;  %v9813_v41 = vpop.f32.mrb[19].mxu1 }
 0x1bd   :  { %12133 = vst [vmem:[#allocation49_spill] sm:$0xff] %v9813_v41 }
 0x1c1   :  { %v7187_v46 = vpop.f32.mrb[20].mxu1 }
 0x1c2   :  { %v9826_v48 = vadd.f32 %v7187_v46, %v9823_v45  ;;  %v9828_v49 = vpop.f32.mrb[21].mxu1 }
 0x1c3   :  { %v7188_v50 = vpop.f32.mrb[22].mxu1 }
 0x1c4   :  { %v9831_v52 = vadd.f32 %v7188_v50, %v9823_v45  ;;  %v9833_v55 = vpop.f32.mrb[23].mxu1 }
 0x1c9   :  { %v7191_v58 = vpop.f32.mrb[24].mxu1 }
 0x1ca   :  { %v9836_v59 = vadd.f32 %v7191_v58, %v9823_v45  ;;  %v728_v60 = vpop.f32.mrb[25].mxu1 }
 0x1cb   :  { %v9839_v61 = vadd.f32 %v728_v60, %v9823_v45  ;;  %v7192_v1 = vpop.f32.mrb[26].mxu1 }
 0x1cc   :  { %v9842_v26 = vadd.f32 %v7192_v1, %v9823_v45  ;;  %v731_v46 = vpop.f32.mrb[27].mxu1 }
 0x1cd   :  { %v9845_v37 = vadd.f32 %v731_v46, %v9823_v45 }
 0x1d1   :  { %v7195_v50 = vpop.f32.mrb[28].mxu1 }
 0x1d2   :  { %v9848_v0 = vadd.f32 %v7195_v50, %v9823_v45  ;;  %v744_v51 = vpop.f32.mrb[29].mxu1 }
 0x1d3   :  { %v9851_v58 = vadd.f32 %v744_v51, %v9823_v45  ;;  %v7196_v41 = vpop.f32.mrb[30].mxu1 }
 0x1d4   :  { %v9854_v60 = vadd.f32 %v7196_v41, %v9823_v45  ;;  %v747_v39 = vpop.f32.mrb[31].mxu1 }
 0x1d5   :  { %v9857_v1 = vadd.f32 %v747_v39, %v9823_v45 }
 0x1d9   :  { %v7199_v34 = vpop.f32.mrb[32].mxu1 }
 0x1da   :  { %v9860_v46 = vadd.f32 %v7199_v34, %v9823_v45  ;;  %v760_v32 = vpop.f32.mrb[33].mxu1 }
 0x1db   :  { %v9863_v50 = vadd.f32 %v760_v32, %v9823_v45  ;;  %v7200_v29 = vpop.f32.mrb[34].mxu1 }
 0x1dc   :  { %v9866_v51 = vadd.f32 %v7200_v29, %v9823_v45  ;;  %v763_v24 = vpop.f32.mrb[35].mxu1 }
 0x1dd   :  { %v9869_v41 = vadd.f32 %v763_v24, %v9823_v45 }
 0x1e1   :  { %v7203_v23 = vpop.f32.mrb[36].mxu1 }
 0x1e2   :  { %v9872_v39 = vadd.f32 %v7203_v23, %v9823_v45  ;;  %v776_v22 = vpop.f32.mrb[37].mxu1 }
 0x1e3   :  { %v9875_v34 = vadd.f32 %v776_v22, %v9823_v45  ;;  %v7204_v18 = vpop.f32.mrb[38].mxu1 }
 0x1e4   :  { %12134 = vst [vmem:[#allocation50_spill] sm:$0xff] %v9872_v39  ;;  %v9878_v32 = vadd.f32 %v7204_v18, %v9823_v45  ;;  %v779_v16 = vpop.f32.mrb[39].mxu1 }
 0x1e5   :  { %v9881_v29 = vadd.f32 %v779_v16, %v9823_v45  ;;  %v9896_v16 = vrot.slane %v9818_v42, %v12109_v15 }
 0x1e6   :  { %12135 = vst [vmem:[#allocation51_spill] sm:$0xff] %v9878_v32 }
 0x1e7   :  { %12136 = vst [vmem:[#allocation52_spill] sm:$0xff] %v9881_v29 }
 0x1e9   :  { %v7207_v24 = vpop.f32.mrb[40].mxu1 }
 0x1ea   :  { %v9885_v14 = vadd.f32 %v7207_v24, %v9823_v45  ;;  %v792_v23 = vpop.f32.mrb[41].mxu1 }
 0x1eb   :  { %v9888_v13 = vadd.f32 %v792_v23, %v9823_v45  ;;  %v7208_v22 = vpop.f32.mrb[42].mxu1 }
 0x1ec   :  { %12137 = vst [vmem:[#allocation53_spill] sm:$0xff] %v9885_v14  ;;  %v9891_v12 = vadd.f32 %v7208_v22, %v9823_v45  ;;  %v795_v18 = vpop.f32.mrb[43].mxu1 }
 0x1ed   :  { %12138 = vst [vmem:[#allocation54_spill] sm:$0xff] %v9888_v13  ;;  %v9899_v11 = vadd.f32 %v795_v18, %v9823_v45 }
 0x1ee   :  { %12139 = vst [vmem:[#allocation55_spill] sm:$0xff] %v9891_v12 }
 0x1ef   :  { %12140 = vst [vmem:[#allocation56_spill] sm:$0xff] %v9899_v11  ;;  %v1093_v10 = vpop.f32.mrb[0].mxu0 }
 0x1f0   :  { %v1095_v24 = vpop.f32.mrb[1].mxu0 }
 0x1f1   :  { %v7970_v14 = vadd.f32 %v1095_v24, %v9896_v16  ;;  %v1097_v9 = vpop.f32.mrb[2].mxu0  ;;  %v7211_v23 = vpop.f32.mrb[44].mxu1 }
 0x1f2   :  { %v1099_v8 = vpop.f32.mrb[3].mxu0  ;;  %v9903_v7 = vadd.f32 %v7211_v23, %v9823_v45  ;;  %v808_v22 = vpop.f32.mrb[45].mxu1 }
 0x1f3   :  { %v6617_v12 = vmul.f32 -1.442695, %v7970_v14  ;;  %v7972_v6 = vadd.f32 %v1099_v8, %v9896_v16  ;;  %v9907_v15 = vadd.f32 %v808_v22, %v9823_v45  ;;  %v7212_v13 = vpop.f32.mrb[46].mxu1 }
 0x1f4   :  { %12141 = vst [vmem:[#allocation57_spill] sm:$0xff] %v9903_v7  ;;  %v9910_v18 = vadd.f32 %v7212_v13, %v9823_v45  ;;  %v811_v11 = vpop.f32.mrb[47].mxu1 }
 0x1f5   :  { %12142 = vst [vmem:[#allocation58_spill] sm:$0xff] %v9907_v15  ;;  %8397 = vpow2.f32 %v6617_v12  ;;  %v6619_v24 = vmul.f32 -1.442695, %v7972_v6  ;;  %v9913_v32 = vadd.f32 %v811_v11, %v9823_v45 }
 0x1f6   :  { %12143 = vst [vmem:[#allocation59_spill] sm:$0xff] %v9910_v18 }
 0x1f7   :  { %12144 = vst [vmem:[#allocation60_spill] sm:$0xff] %v9913_v32  ;;  %8399 = vpow2.f32 %v6619_v24 }
 0x1f9   :  { %v7215_v23 = vpop.f32.mrb[48].mxu1 }
 0x1fa   :  { %v9916_v7 = vadd.f32 %v7215_v23, %v9823_v45  ;;  %v824_v14 = vpop.f32.mrb[49].mxu1 }
 0x1fb   :  { %v9919_v8 = vadd.f32 %v824_v14, %v9823_v45  ;;  %v7216_v22 = vpop.f32.mrb[50].mxu1 }
 0x1fc   :  { %12145 = vst [vmem:[#allocation61_spill] sm:$0xff] %v9916_v7  ;;  %v9922_v15 = vadd.f32 %v7216_v22, %v9823_v45  ;;  %v827_v13 = vpop.f32.mrb[51].mxu1  ;;  %v12149_v22 = vmov 0.0  }
 0x1fd   :  { %12146 = vst [vmem:[#allocation62_spill] sm:$0xff] %v9919_v8  ;;  %v9925_v12 = vadd.f32 %v827_v13, %v9823_v45 }
 0x1fe   :  { %12147 = vst [vmem:[#allocation63_spill] sm:$0xff] %v9922_v15 }
 0x1ff   :  { %12148 = vst [vmem:[#allocation64_spill] sm:$0xff] %v9925_v12  ;;  %v8398_v6 = vpop.eup %8397 }
 0x200   :  { %v1119_v11 = vadd.f32 1.0, %v8398_v6 }
 0x201   :  { %v8400_v18 = vpop.eup %8399 }
 0x202   :  { %8401 = vrcp.f32 %v1119_v11  ;;  %v1121_v24 = vadd.f32 1.0, %v8400_v18 }
 0x204   :  { %8403 = vrcp.f32 %v1121_v24  ;;  %v713_v24 = vadd.f32 %v9828_v49, %v9823_v45 }
 0x20c   :  { %v8402_v23 = vpop.eup %8401 }
 0x20d   :  { %v1130_v32 = vmul.f32 %v8402_v23, %v9726_v62 }
 0x20e   :  { %v8404_v7 = vpop.eup %8403 }
 0x20f   :  { %v1131_v14 = vmul.f32 %v8404_v7, %v9728_v63  ;;  %v12112_v7 = vsub.s32 0, %v9804_v30  ;;  %v716_v30 = vadd.f32 %v9833_v55, %v9823_v45 }
 0x211   :  { %v1132_v8 = vpack.c.bf16 %v1131_v14, %v1130_v32  ;;  %v9951_v32 = vrot.slane %v9818_v42, %v12112_v7 }
 0x213   :  { %7234 = vmatmul.mubr.bf16.vlgmr.msra.gmra.mrb[52].mxu1 %v1132_v8  ;;  %v7969_v18 = vadd.f32 %v1093_v10, %v9951_v32  ;;  %v7971_v8 = vadd.f32 %v1097_v9, %v9951_v32 }
 0x214   :  { %7238 = vmatpush3.bf16.msra.mxu1 %v9703_v53  ;;  %7253 = vmatprep.mubr.msk.bf16.mxu1 %vm9412_vm0, %v12149_v22 }
 0x215   :  { %7239 = vmatprep.subr.bf16.mxu1 %v12149_v22  ;;  %v6616_v13 = vmul.f32 -1.442695, %v7969_v18  ;;  %v6618_v6 = vmul.f32 -1.442695, %v7971_v8 }
 0x217   :  { %8405 = vpow2.f32 %v6616_v13 }
 0x218   :  { %7240 = vmatpush3.bf16.msra.mxu1 %v9706_v54  ;;  %8407 = vpow2.f32 %v6618_v6 }
 0x219   :  { %7241 = vmatprep.subr.bf16.mxu1 %v12149_v22 }
 0x21c   :  { %7242 = vmatpush3.bf16.msra.mxu1 %v9712_v56 }
 0x21d   :  { %7243 = vmatprep.subr.bf16.mxu1 %v12149_v22 }
 0x220   :  { %7244 = vmatpush3.bf16.msra.mxu1 %v9717_v57 }
 0x221   :  { %7245 = vmatprep.subr.bf16.mxu1 %v12149_v22  ;;  %v8406_v11 = vpop.eup %8405 }
 0x222   :  { %v8408_v23 = vpop.eup %8407  ;;  %v1118_v14 = vadd.f32 1.0, %v8406_v11 }
 0x223   :  { %v1120_v10 = vadd.f32 1.0, %v8408_v23 }
 0x224   :  { %7246 = vmatpush3.bf16.msra.mxu1 %v9754_v2 }
 0x225   :  { %7247 = vmatprep.subr.bf16.mxu1 %v12149_v22 }
 0x228   :  { %7248 = vmatpush3.bf16.msra.mxu1 %v9757_v3 }
 0x229   :  { %7249 = vmatprep.subr.bf16.mxu1 %v12149_v22 }
 0x22c   :  { %7250 = vmatpush3.bf16.msra.mxu1 %v9763_v4 }
 0x22d   :  { %7251 = vmatprep.subr.bf16.mxu1 %v12149_v22 }
 0x230   :  { %7252 = vmatpush3.bf16.msra.mxu1 %v9767_v5 }
 0x231   :  { %7257 = vmatprep.subr.bf16.mxu1 %v12149_v22 }
 0x2e6   :  { %v1215_v15 = vpop.f32.mrb[52].mxu1 }
 0x2e7   :  { %v1222_v42 = vadd.f32 %v1215_v15, %v713_v24  ;;  %v7235_v7 = vpop.f32.mrb[53].mxu1 }
 0x2e8   :  { %v1218_v12 = vpop.f32.mrb[54].mxu1 }
 0x2e9   :  { %8409 = vtanh.f32 %v1222_v42  ;;  %v1223_v9 = vadd.f32 %v1218_v12, %v716_v30  ;;  %v7236_v18 = vpop.f32.mrb[55].mxu1  ;;  %v12150_v12 = vmov 0  }
 0x2ea   :  { %8411 = vrcp.f32 %v1118_v14 }
 0x2eb   :  { %8413 = vtanh.f32 %v1223_v9 }
 0x2ec   :  { %8415 = vrcp.f32 %v1120_v10 }
 0x2f3   :  { %v8410_v8 = vpop.eup %8409 }
 0x2f4   :  { %v8412_v13 = vpop.eup %8411  ;;  %v1226_v49 = vsub.f32 %v9726_v62, %v8410_v8 }
 0x2f5   :  { %v8414_v6 = vpop.eup %8413 }
 0x2f6   :  { %v1227_v11 = vsub.f32 %v9728_v63, %v8414_v6  ;;  %v1228_v39 = vmul.f32 %v8412_v13, %v1226_v49  ;;  %v8416_v29 = vpop.eup %8415 }
 0x2f8   :  { %v1229_v45 = vmul.f32 %v8416_v29, %v1227_v11  ;;  %v9961_v15 = vadd.f32 %v8410_v8, %v1228_v39 }
 0x2fa   :  { %v9963_v55 = vadd.f32 %v8414_v6, %v1229_v45 }
 0x2fc   :  { %v9967_v30 = vpack.c.bf16 %v9963_v55, %v9961_v15 }
 0x2fe   :  { %1276 = vmatmul.mubr.bf16.vlgmr.msra.gmra.mrb[4].mxu0 %v9967_v30 }
 0x2ff   :  { %1381 = vmatpush1.bf16.msra.mxu0 %v9626_v19  ;;  %1412 = vmatprep.mubr.bf16.mxu0 %v12150_v12 }
 0x300   :  { %1382 = vmatprep.subr.bf16.mxu0 %v9629_v20 }
 0x303   :  { %1383 = vmatpush1.bf16.msra.mxu0 %v9631_v21 }
 0x304   :  { %1384 = vmatprep.subr.bf16.mxu0 %v9639_v25 }
 0x307   :  { %1385 = vmatpush1.bf16.msra.mxu0 %v9645_v27 }
 0x308   :  { %1386 = vmatprep.subr.bf16.mxu0 %v9648_v28 }
 0x30b   :  { %1387 = vmatpush1.bf16.msra.mxu0 %v9654_v31 }
 0x30c   :  { %1388 = vmatprep.subr.bf16.mxu0 %v9659_v33 }
 0x30f   :  { %1389 = vmatpush1.bf16.msra.mxu0 %v9663_v35 }
 0x310   :  { %1390 = vmatprep.subr.bf16.mxu0 %v9666_v36 }
 0x313   :  { %1391 = vmatpush1.bf16.msra.mxu0 %v9671_v38 }
 0x314   :  { %1392 = vmatprep.subr.bf16.mxu0 %v9673_v40 }
 0x317   :  { %1393 = vmatpush1.bf16.msra.mxu0 %v9679_v43 }
 0x318   :  { %1394 = vmatprep.subr.bf16.mxu0 %v9682_v44 }
 0x31b   :  { %1395 = vmatpush1.bf16.msra.mxu0 %v9688_v47 }
 0x31c   :  { %1517 = vmatprep.subr.bf16.mxu0 %v9622_v17 }
 0x3d1   :  { %v1277_v19 = vpop.f32.mrb[4].mxu0 }
 0x3d2   :  { %v1279_v20 = vpop.f32.mrb[5].mxu0  ;;  %v7973_v9 = vadd.f32 %v1277_v19, %v9951_v32 }
 0x3d3   :  { %v7974_v21 = vadd.f32 %v1279_v20, %v9896_v16  ;;  %v1281_v25 = vpop.f32.mrb[6].mxu0 }
 0x3d4   :  { %v1283_v27 = vpop.f32.mrb[7].mxu0  ;;  %v7975_v18 = vadd.f32 %v1281_v25, %v9951_v32  ;;  %v6628_v8 = vmul.f32 -1.442695, %v7973_v9  ;;  %v10037_v9 = vld [vmem:[#allocation10 + $0x20] ss:$8 sps:$4 sm:$0xff]  }
 0x3d5   :  { %v6629_v28 = vmul.f32 -1.442695, %v7974_v21  ;;  %v7976_v62 = vadd.f32 %v1283_v27, %v9896_v16 }
 0x3d6   :  { %v6630_v13 = vmul.f32 -1.442695, %v7975_v18  ;;  %v10040_v18 = vld [vmem:[#allocation10 + $0x34] ss:$8 sps:$4 sm:$0xff]  }
 0x3d7   :  { %8417 = vpow2.f32 %v6629_v28  ;;  %v6631_v63 = vmul.f32 -1.442695, %v7976_v62 }
 0x3d9   :  { %8419 = vpow2.f32 %v6631_v63 }
 0x3e1   :  { %v8418_v39 = vpop.eup %8417 }
 0x3e2   :  { %v1303_v29 = vadd.f32 1.0, %v8418_v39 }
 0x3e3   :  { %v8420_v7 = vpop.eup %8419 }
 0x3e4   :  { %8421 = vrcp.f32 %v1303_v29  ;;  %v1305_v24 = vadd.f32 1.0, %v8420_v7 }
 0x3e6   :  { %8423 = vrcp.f32 %v1305_v24 }
 0x3e7   :  { %8425 = vpow2.f32 %v6628_v8  ;;  %v10052_v8 = vld [vmem:[#allocation10 + $0x4] ss:$8 sps:$4 sm:$0xff]  }
 0x3e8   :  { %8427 = vpow2.f32 %v6630_v13 }
 0x3ee   :  { %v8422_v23 = vpop.eup %8421 }
 0x3ef   :  { %v1314_v14 = vmul.f32 %v8422_v23, %v9961_v15 }
 0x3f0   :  { %v8424_v17 = vpop.eup %8423 }
 0x3f1   :  { %v1315_v42 = vmul.f32 %v8424_v17, %v9963_v55  ;;  %v8426_v49 = vpop.eup %8425 }
 0x3f2   :  { %v8428_v6 = vpop.eup %8427  ;;  %v1302_v11 = vadd.f32 1.0, %v8426_v49 }
 0x3f3   :  { %v1316_v10 = vpack.c.bf16 %v1315_v42, %v1314_v14  ;;  %v1304_v28 = vadd.f32 1.0, %v8428_v6  ;;  %v10024_v42 = vld [vmem:[#allocation10] ss:$8 sps:$4 sm:$0xff]  }
 0x3f5   :  { %7254 = vmatmul.mubr.bf16.vlgmr.msra.gmra.mrb[56].mxu1 %v1316_v10  ;;  %v10034_v10 = vld [vmem:[#allocation10 + $0x24] ss:$8 sps:$4 sm:$0xff]  }
 0x3f6   :  { %7258 = vmatpush3.bf16.msra.mxu1 %v9703_v53  ;;  %7273 = vmatprep.mubr.msk.bf16.mxu1 %vm9412_vm0, %v12149_v22 }
 0x3f7   :  { %7259 = vmatprep.subr.bf16.mxu1 %v12149_v22 }
 0x3fa   :  { %7260 = vmatpush3.bf16.msra.mxu1 %v9706_v54 }
 0x3fb   :  { %7261 = vmatprep.subr.bf16.mxu1 %v12149_v22 }
 0x3fe   :  { %7262 = vmatpush3.bf16.msra.mxu1 %v9712_v56 }
 0x3ff   :  { %7263 = vmatprep.subr.bf16.mxu1 %v12149_v22 }
 0x402   :  { %7264 = vmatpush3.bf16.msra.mxu1 %v9717_v57 }
 0x403   :  { %7265 = vmatprep.subr.bf16.mxu1 %v12149_v22 }
 0x406   :  { %7266 = vmatpush3.bf16.msra.mxu1 %v9754_v2 }
 0x407   :  { %7267 = vmatprep.subr.bf16.mxu1 %v12149_v22 }
 0x40a   :  { %7268 = vmatpush3.bf16.msra.mxu1 %v9757_v3 }
 0x40b   :  { %7269 = vmatprep.subr.bf16.mxu1 %v12149_v22 }
 0x40e   :  { %7270 = vmatpush3.bf16.msra.mxu1 %v9763_v4 }
 0x40f   :  { %7271 = vmatprep.subr.bf16.mxu1 %v12149_v22 }
 0x412   :  { %7272 = vmatpush3.bf16.msra.mxu1 %v9767_v5 }
 0x413   :  { %7277 = vmatprep.subr.bf16.mxu1 %v12149_v22 }
 0x4c8   :  { %v1351_v45 = vpop.f32.mrb[56].mxu1 }
 0x4c9   :  { %v1358_v20 = vadd.f32 %v1351_v45, %v9826_v48  ;;  %v7255_v21 = vpop.f32.mrb[57].mxu1 }
 0x4ca   :  { %v1354_v27 = vpop.f32.mrb[58].mxu1 }
 0x4cb   :  { %8429 = vtanh.f32 %v1358_v20  ;;  %v1359_v62 = vadd.f32 %v1354_v27, %v9831_v52  ;;  %v7256_v63 = vpop.f32.mrb[59].mxu1 }
 0x4cc   :  { %8431 = vrcp.f32 %v1302_v11 }
 0x4cd   :  { %8433 = vtanh.f32 %v1359_v62 }
 0x4ce   :  { %8435 = vrcp.f32 %v1304_v28 }
 0x4d5   :  { %v8430_v19 = vpop.eup %8429 }
 0x4d6   :  { %v8432_v25 = vpop.eup %8431  ;;  %v1362_v39 = vsub.f32 %v9961_v15, %v8430_v19  ;;  %v10028_v15 = vld [vmem:[#allocation10 + $0x14] ss:$8 sps:$4 sm:$0xff]  }
 0x4d7   :  { %v8434_v29 = vpop.eup %8433 }
 0x4d8   :  { %v1363_v7 = vsub.f32 %v9963_v55, %v8434_v29  ;;  %v1364_v24 = vmul.f32 %v8432_v25, %v1362_v39  ;;  %v8436_v23 = vpop.eup %8435  ;;  %v10031_v55 = vld [vmem:[#allocation10 + $0x10] ss:$8 sps:$4 sm:$0xff]  }
 0x4da   :  { %v1365_v48 = vmul.f32 %v8436_v23, %v1363_v7  ;;  %v10015_v17 = vadd.f32 %v8430_v19, %v1364_v24 }
 0x4dc   :  { %v10017_v14 = vadd.f32 %v8434_v29, %v1365_v48 }
 0x4de   :  { %v10021_v52 = vpack.c.bf16 %v10017_v14, %v10015_v17 }
 0x4e0   :  { %1413 = vmatmul.mubr.bf16.vlgmr.msra.gmra.mrb[8].mxu0 %v10021_v52 }
 0x4e1   :  { %1518 = vmatpush1.bf16.msra.mxu0 %v10024_v42  ;;  %1549 = vmatprep.mubr.bf16.mxu0 %v12150_v12 }
 0x4e2   :  { %1519 = vmatprep.subr.bf16.mxu0 %v10028_v15 }
 0x4e5   :  { %1520 = vmatpush1.bf16.msra.mxu0 %v10031_v55 }
 0x4e6   :  { %1521 = vmatprep.subr.bf16.mxu0 %v10034_v10 }
 0x4e9   :  { %1522 = vmatpush1.bf16.msra.mxu0 %v10037_v9 }
 0x4ea   :  { %1523 = vmatprep.subr.bf16.mxu0 %v10040_v18 }
 0x4ed   :  { %1524 = vmatpush1.bf16.msra.mxu0 %v9654_v31 }
 0x4ee   :  { %1525 = vmatprep.subr.bf16.mxu0 %v9659_v33 }
 0x4f1   :  { %1526 = vmatpush1.bf16.msra.mxu0 %v9663_v35 }
 0x4f2   :  { %1527 = vmatprep.subr.bf16.mxu0 %v9666_v36 }
 0x4f5   :  { %1528 = vmatpush1.bf16.msra.mxu0 %v9671_v38 }
 0x4f6   :  { %1529 = vmatprep.subr.bf16.mxu0 %v9673_v40 }
 0x4f9   :  { %1530 = vmatpush1.bf16.msra.mxu0 %v9679_v43 }
 0x4fa   :  { %1531 = vmatprep.subr.bf16.mxu0 %v9682_v44 }
 0x4fd   :  { %1532 = vmatpush1.bf16.msra.mxu0 %v9688_v47 }
 0x4fe   :  { %1654 = vmatprep.subr.bf16.mxu0 %v10052_v8 }
 0x5b3   :  { %v1414_v31 = vpop.f32.mrb[8].mxu0 }
 0x5b4   :  { %v1416_v33 = vpop.f32.mrb[9].mxu0  ;;  %v7977_v28 = vadd.f32 %v1414_v31, %v9951_v32 }
 0x5b5   :  { %v7978_v35 = vadd.f32 %v1416_v33, %v9896_v16  ;;  %v1418_v13 = vpop.f32.mrb[10].mxu0 }
 0x5b6   :  { %v1420_v36 = vpop.f32.mrb[11].mxu0  ;;  %v7979_v62 = vadd.f32 %v1418_v13, %v9951_v32  ;;  %v6632_v63 = vmul.f32 -1.442695, %v7977_v28  ;;  %v10120_v28 = vld [vmem:[#allocation10 + $0x74] ss:$8 sps:$4 sm:$0xff]  }
 0x5b7   :  { %v6633_v49 = vmul.f32 -1.442695, %v7978_v35  ;;  %v7980_v38 = vadd.f32 %v1420_v36, %v9896_v16 }
 0x5b8   :  { %v6634_v19 = vmul.f32 -1.442695, %v7979_v62  ;;  %v10123_v62 = vld [vmem:[#allocation10 + $0x70] ss:$8 sps:$4 sm:$0xff]  }
 0x5b9   :  { %8437 = vpow2.f32 %v6633_v49  ;;  %v6635_v40 = vmul.f32 -1.442695, %v7980_v38 }
 0x5bb   :  { %8439 = vpow2.f32 %v6635_v40 }
 0x5c3   :  { %v8438_v43 = vpop.eup %8437 }
 0x5c4   :  { %v1440_v44 = vadd.f32 1.0, %v8438_v43 }
 0x5c5   :  { %v8440_v6 = vpop.eup %8439 }
 0x5c6   :  { %8441 = vrcp.f32 %v1440_v44  ;;  %v1442_v47 = vadd.f32 1.0, %v8440_v6 }
 0x5c8   :  { %8443 = vrcp.f32 %v1442_v47 }
 0x5c9   :  { %8445 = vpow2.f32 %v6632_v63 }
 0x5ca   :  { %8447 = vpow2.f32 %v6634_v19 }
 0x5d0   :  { %v8442_v11 = vpop.eup %8441 }
 0x5d1   :  { %v1451_v20 = vmul.f32 %v8442_v11, %v10015_v17  ;;  %v10105_v11 = vld [vmem:[#allocation10 + $0x40] ss:$8 sps:$4 sm:$0xff]  }
 0x5d2   :  { %v8444_v45 = vpop.eup %8443 }
 0x5d3   :  { %v1452_v21 = vmul.f32 %v8444_v45, %v10017_v14  ;;  %v8446_v25 = vpop.eup %8445  ;;  %v10108_v45 = vld [vmem:[#allocation10 + $0x54] ss:$8 sps:$4 sm:$0xff]  }
 0x5d4   :  { %v8448_v39 = vpop.eup %8447  ;;  %v1439_v29 = vadd.f32 1.0, %v8446_v25 }
 0x5d5   :  { %v1453_v27 = vpack.c.bf16 %v1452_v21, %v1451_v20  ;;  %v1441_v33 = vadd.f32 1.0, %v8448_v39  ;;  %v10111_v20 = vld [vmem:[#allocation10 + $0x50] ss:$8 sps:$4 sm:$0xff]   ;;  %v10114_v21 = vld [vmem:[#allocation10 + $0x64] ss:$8 sps:$4 sm:$0xff]  }
 0x5d7   :  { %7274 = vmatmul.mubr.bf16.vlgmr.msra.gmra.mrb[60].mxu1 %v1453_v27  ;;  %v10117_v27 = vld [vmem:[#allocation10 + $0x60] ss:$8 sps:$4 sm:$0xff]  }
 0x5d8   :  { %7278 = vmatpush3.bf16.msra.mxu1 %v9703_v53  ;;  %7293 = vmatprep.mubr.msk.bf16.mxu1 %vm9412_vm0, %v12149_v22 }
 0x5d9   :  { %7279 = vmatprep.subr.bf16.mxu1 %v12149_v22 }
 0x5dc   :  { %7280 = vmatpush3.bf16.msra.mxu1 %v9706_v54 }
 0x5dd   :  { %7281 = vmatprep.subr.bf16.mxu1 %v12149_v22 }
 0x5e0   :  { %7282 = vmatpush3.bf16.msra.mxu1 %v9712_v56 }
 0x5e1   :  { %7283 = vmatprep.subr.bf16.mxu1 %v12149_v22 }
 0x5e4   :  { %7284 = vmatpush3.bf16.msra.mxu1 %v9717_v57 }
 0x5e5   :  { %7285 = vmatprep.subr.bf16.mxu1 %v12149_v22 }
 0x5e8   :  { %7286 = vmatpush3.bf16.msra.mxu1 %v9754_v2 }
 0x5e9   :  { %7287 = vmatprep.subr.bf16.mxu1 %v12149_v22 }
 0x5ec   :  { %7288 = vmatpush3.bf16.msra.mxu1 %v9757_v3 }
 0x5ed   :  { %7289 = vmatprep.subr.bf16.mxu1 %v12149_v22 }
 0x5f0   :  { %7290 = vmatpush3.bf16.msra.mxu1 %v9763_v4 }
 0x5f1   :  { %7291 = vmatprep.subr.bf16.mxu1 %v12149_v22 }
 0x5f4   :  { %7292 = vmatpush3.bf16.msra.mxu1 %v9767_v5 }
 0x5f5   :  { %7297 = vmatprep.subr.bf16.mxu1 %v12149_v22 }
 0x6aa   :  { %v1488_v7 = vpop.f32.mrb[60].mxu1 }
 0x6ab   :  { %v1495_v24 = vadd.f32 %v1488_v7, %v9839_v61  ;;  %v7275_v23 = vpop.f32.mrb[61].mxu1 }
 0x6ac   :  { %v1491_v48 = vpop.f32.mrb[62].mxu1 }
 0x6ad   :  { %8449 = vtanh.f32 %v1495_v24  ;;  %v1496_v35 = vadd.f32 %v1491_v48, %v9845_v37  ;;  %v7276_v36 = vpop.f32.mrb[63].mxu1 }
 0x6ae   :  { %8451 = vrcp.f32 %v1439_v29 }
 0x6af   :  { %8453 = vtanh.f32 %v1496_v35 }
 0x6b0   :  { %8455 = vrcp.f32 %v1441_v33 }
 0x6b7   :  { %v8450_v31 = vpop.eup %8449 }
 0x6b8   :  { %v8452_v13 = vpop.eup %8451  ;;  %v1499_v49 = vsub.f32 %v10015_v17, %v8450_v31  ;;  %v10099_v17 = vld [vmem:[#allocation10 + $0x30] ss:$8 sps:$4 sm:$0xff]  }
 0x6b9   :  { %v8454_v38 = vpop.eup %8453 }
 0x6ba   :  { %v1500_v40 = vsub.f32 %v10017_v14, %v8454_v38  ;;  %v1501_v43 = vmul.f32 %v8452_v13, %v1499_v49  ;;  %v8456_v44 = vpop.eup %8455  ;;  %v10102_v14 = vld [vmem:[#allocation10 + $0x44] ss:$8 sps:$4 sm:$0xff]  }
 0x6bc   :  { %v1502_v61 = vmul.f32 %v8456_v44, %v1500_v40  ;;  %v10083_v6 = vadd.f32 %v8450_v31, %v1501_v43 }
 0x6be   :  { %v10085_v47 = vadd.f32 %v8454_v38, %v1502_v61 }
 0x6c0   :  { %v10089_v37 = vpack.c.bf16 %v10085_v47, %v10083_v6 }
 0x6c2   :  { %1550 = vmatmul.mubr.bf16.vlgmr.msra.gmra.mrb[12].mxu0 %v10089_v37 }
 0x6c3   :  { %1655 = vmatpush1.bf16.msra.mxu0 %v10024_v42  ;;  %1686 = vmatprep.mubr.bf16.mxu0 %v12150_v12 }
 0x6c4   :  { %1656 = vmatprep.subr.bf16.mxu0 %v10028_v15 }
 0x6c7   :  { %1657 = vmatpush1.bf16.msra.mxu0 %v10031_v55 }
 0x6c8   :  { %1658 = vmatprep.subr.bf16.mxu0 %v10034_v10 }
 0x6cb   :  { %1659 = vmatpush1.bf16.msra.mxu0 %v10037_v9 }
 0x6cc   :  { %1660 = vmatprep.subr.bf16.mxu0 %v10040_v18 }
 0x6cf   :  { %1661 = vmatpush1.bf16.msra.mxu0 %v10099_v17 }
 0x6d0   :  { %1662 = vmatprep.subr.bf16.mxu0 %v10102_v14 }
 0x6d3   :  { %1663 = vmatpush1.bf16.msra.mxu0 %v10105_v11 }
 0x6d4   :  { %1664 = vmatprep.subr.bf16.mxu0 %v10108_v45 }
 0x6d7   :  { %1665 = vmatpush1.bf16.msra.mxu0 %v10111_v20 }
 0x6d8   :  { %1666 = vmatprep.subr.bf16.mxu0 %v10114_v21 }
 0x6db   :  { %1667 = vmatpush1.bf16.msra.mxu0 %v10117_v27 }
 0x6dc   :  { %1668 = vmatprep.subr.bf16.mxu0 %v10120_v28 }
 0x6df   :  { %1669 = vmatpush1.bf16.msra.mxu0 %v10123_v62 }
 0x6e0   :  { %1791 = vmatprep.subr.bf16.mxu0 %v10052_v8 }
 0x795   :  { %v1551_v63 = vpop.f32.mrb[12].mxu0 }
 0x796   :  { %v1553_v19 = vpop.f32.mrb[13].mxu0 }
 0x797   :  { %v7982_v25 = vadd.f32 %v1553_v19, %v9896_v16  ;;  %v1555_v39 = vpop.f32.mrb[14].mxu0 }
 0x798   :  { %v1557_v29 = vpop.f32.mrb[15].mxu0 }
 0x799   :  { %v6637_v7 = vmul.f32 -1.442695, %v7982_v25  ;;  %v7984_v24 = vadd.f32 %v1557_v29, %v9896_v16 }
 0x79b   :  { %8457 = vpow2.f32 %v6637_v7  ;;  %v6639_v23 = vmul.f32 -1.442695, %v7984_v24 }
 0x79d   :  { %8459 = vpow2.f32 %v6639_v23 }
 0x7a5   :  { %v8458_v48 = vpop.eup %8457 }
 0x7a6   :  { %v1577_v33 = vadd.f32 1.0, %v8458_v48 }
 0x7a7   :  { %v8460_v35 = vpop.eup %8459 }
 0x7a8   :  { %8461 = vrcp.f32 %v1577_v33  ;;  %v1579_v36 = vadd.f32 1.0, %v8460_v35 }
 0x7aa   :  { %8463 = vrcp.f32 %v1579_v36 }
 0x7b2   :  { %v8462_v31 = vpop.eup %8461 }
 0x7b3   :  { %v1588_v49 = vmul.f32 %v8462_v31, %v10083_v6 }
 0x7b4   :  { %v8464_v13 = vpop.eup %8463 }
 0x7b5   :  { %v1589_v38 = vmul.f32 %v8464_v13, %v10085_v47 }
 0x7b7   :  { %v1590_v40 = vpack.c.bf16 %v1589_v38, %v1588_v49 }
 0x7b9   :  { %7294 = vmatmul.mubr.bf16.vlgmr.msra.gmra.mrb[64].mxu1 %v1590_v40 }
 0x7ba   :  { %7298 = vmatpush3.bf16.msra.mxu1 %v9703_v53  ;;  %7313 = vmatprep.mubr.msk.bf16.mxu1 %vm9412_vm0, %v12149_v22  ;;  %v7981_v53 = vadd.f32 %v1551_v63, %v9951_v32 }
 0x7bb   :  { %7299 = vmatprep.subr.bf16.mxu1 %v12149_v22 }
 0x7be   :  { %7300 = vmatpush3.bf16.msra.mxu1 %v9706_v54  ;;  %v7983_v54 = vadd.f32 %v1555_v39, %v9951_v32 }
 0x7bf   :  { %7301 = vmatprep.subr.bf16.mxu1 %v12149_v22 }
 0x7c2   :  { %7302 = vmatpush3.bf16.msra.mxu1 %v9712_v56  ;;  %v6636_v56 = vmul.f32 -1.442695, %v7981_v53 }
 0x7c3   :  { %7303 = vmatprep.subr.bf16.mxu1 %v12149_v22 }
 0x7c4   :  { %8465 = vpow2.f32 %v6636_v56 }
 0x7c6   :  { %7304 = vmatpush3.bf16.msra.mxu1 %v9717_v57  ;;  %v6638_v57 = vmul.f32 -1.442695, %v7983_v54 }
 0x7c7   :  { %7305 = vmatprep.subr.bf16.mxu1 %v12149_v22 }
 0x7c8   :  { %8467 = vpow2.f32 %v6638_v57 }
 0x7ca   :  { %7306 = vmatpush3.bf16.msra.mxu1 %v9754_v2 }
 0x7cb   :  { %7307 = vmatprep.subr.bf16.mxu1 %v12149_v22 }
 0x7ce   :  { %7308 = vmatpush3.bf16.msra.mxu1 %v9757_v3  ;;  %v8466_v43 = vpop.eup %8465 }
 0x7cf   :  { %7309 = vmatprep.subr.bf16.mxu1 %v12149_v22  ;;  %v1576_v61 = vadd.f32 1.0, %v8466_v43 }
 0x7d2   :  { %7310 = vmatpush3.bf16.msra.mxu1 %v9763_v4  ;;  %v8468_v44 = vpop.eup %8467 }
 0x7d3   :  { %7311 = vmatprep.subr.bf16.mxu1 %v12149_v22  ;;  %v1578_v24 = vadd.f32 1.0, %v8468_v44 }
 0x7d6   :  { %7312 = vmatpush3.bf16.msra.mxu1 %v9767_v5 }
 0x7d7   :  { %7317 = vmatprep.subr.bf16.mxu1 %v12149_v22 }
 0x88c   :  { %v1625_v19 = vpop.f32.mrb[64].mxu1 }
 0x88d   :  { %v1632_v25 = vadd.f32 %v1625_v19, %v9836_v59  ;;  %v7295_v29 = vpop.f32.mrb[65].mxu1 }
 0x88e   :  { %v1628_v7 = vpop.f32.mrb[66].mxu1 }
 0x88f   :  { %8469 = vtanh.f32 %v1632_v25  ;;  %v1633_v23 = vadd.f32 %v1628_v7, %v9842_v26  ;;  %v7296_v48 = vpop.f32.mrb[67].mxu1 }
 0x890   :  { %8471 = vrcp.f32 %v1576_v61 }
 0x891   :  { %8473 = vtanh.f32 %v1633_v23 }
 0x892   :  { %8475 = vrcp.f32 %v1578_v24 }
 0x899   :  { %v8470_v63 = vpop.eup %8469 }
 0x89a   :  { %v8472_v39 = vpop.eup %8471  ;;  %v1636_v33 = vsub.f32 %v10083_v6, %v8470_v63 }
 0x89b   :  { %v8474_v35 = vpop.eup %8473 }
 0x89c   :  { %v1637_v36 = vsub.f32 %v10085_v47, %v8474_v35  ;;  %v1638_v31 = vmul.f32 %v8472_v39, %v1636_v33  ;;  %v8476_v13 = vpop.eup %8475  ;;  %v10191_v39 = vld [vmem:[#allocation12 + $0x8] sm:$0xff]   ;;  %v10195_v33 = vld [vmem:[#allocation12 + $0x10] sm:$0xff]  }
 0x89e   :  { %v1639_v59 = vmul.f32 %v8476_v13, %v1637_v36  ;;  %v10155_v49 = vadd.f32 %v8470_v63, %v1638_v31  ;;  %v10185_v63 = vld [vmem:[#allocation12] sm:$0xff]  }
 0x8a0   :  { %v10157_v38 = vadd.f32 %v8474_v35, %v1639_v59  ;;  %v10199_v35 = vld [vmem:[#allocation12 + $0x18] sm:$0xff]  }
 0x8a2   :  { %v10161_v26 = vpack.c.bf16 %v10157_v38, %v10155_v49 }
 0x8a4   :  { %1687 = vmatmul.mubr.bf16.vlgmr.msra.gmra.mrb[16].mxu0 %v10161_v26 }
 0x8a5   :  { %1792 = vmatpush1.bf16.msra.mxu0 %v10024_v42  ;;  %1823 = vmatprep.mubr.bf16.mxu0 %v12150_v12 }
 0x8a6   :  { %1793 = vmatprep.subr.bf16.mxu0 %v10028_v15 }
 0x8a9   :  { %1794 = vmatpush1.bf16.msra.mxu0 %v10031_v55 }
 0x8aa   :  { %1795 = vmatprep.subr.bf16.mxu0 %v10034_v10 }
 0x8ad   :  { %1796 = vmatpush1.bf16.msra.mxu0 %v10037_v9 }
 0x8ae   :  { %1797 = vmatprep.subr.bf16.mxu0 %v10040_v18 }
 0x8b1   :  { %1798 = vmatpush1.bf16.msra.mxu0 %v10099_v17 }
 0x8b2   :  { %1799 = vmatprep.subr.bf16.mxu0 %v10102_v14 }
 0x8b5   :  { %1800 = vmatpush1.bf16.msra.mxu0 %v10105_v11 }
 0x8b6   :  { %1801 = vmatprep.subr.bf16.mxu0 %v10108_v45 }
 0x8b9   :  { %1802 = vmatpush1.bf16.msra.mxu0 %v10111_v20 }
 0x8ba   :  { %1803 = vmatprep.subr.bf16.mxu0 %v10114_v21 }
 0x8bd   :  { %1804 = vmatpush1.bf16.msra.mxu0 %v10117_v27 }
 0x8be   :  { %1805 = vmatprep.subr.bf16.mxu0 %v10120_v28 }
 0x8c1   :  { %1806 = vmatpush1.bf16.msra.mxu0 %v10123_v62 }
 0x8c2   :  { %1928 = vmatprep.subr.bf16.mxu0 %v10052_v8 }
 0x977   :  { %v1688_v6 = vpop.f32.mrb[16].mxu0 }
 0x978   :  { %v1690_v47 = vpop.f32.mrb[17].mxu0  ;;  %v7985_v36 = vadd.f32 %v1688_v6, %v9951_v32 }
 0x979   :  { %v7986_v40 = vadd.f32 %v1690_v47, %v9896_v16  ;;  %v1692_v53 = vpop.f32.mrb[18].mxu0 }
 0x97a   :  { %v1694_v54 = vpop.f32.mrb[19].mxu0  ;;  %v7987_v31 = vadd.f32 %v1692_v53, %v9951_v32  ;;  %v6640_v13 = vmul.f32 -1.442695, %v7985_v36 }
 0x97b   :  { %v6641_v56 = vmul.f32 -1.442695, %v7986_v40  ;;  %v7988_v57 = vadd.f32 %v1694_v54, %v9896_v16 }
 0x97d   :  { %8477 = vpow2.f32 %v6641_v56  ;;  %v6643_v43 = vmul.f32 -1.442695, %v7988_v57 }
 0x97f   :  { %8479 = vpow2.f32 %v6643_v43 }
 0x987   :  { %v8478_v44 = vpop.eup %8477 }
 0x988   :  { %v1714_v61 = vadd.f32 1.0, %v8478_v44 }
 0x989   :  { %v8480_v19 = vpop.eup %8479 }
 0x98a   :  { %8481 = vrcp.f32 %v1714_v61  ;;  %v1716_v25 = vadd.f32 1.0, %v8480_v19 }
 0x98c   :  { %8483 = vrcp.f32 %v1716_v25 }
 0x98d   :  { %8485 = vpow2.f32 %v6640_v13 }
 0x994   :  { %v8482_v29 = vpop.eup %8481 }
 0x995   :  { %v1725_v24 = vmul.f32 %v8482_v29, %v10155_v49 }
 0x996   :  { %v8484_v7 = vpop.eup %8483 }
 0x997   :  { %v1726_v23 = vmul.f32 %v8484_v7, %v10157_v38  ;;  %v8486_v59 = vpop.eup %8485 }
 0x998   :  { %v1713_v47 = vadd.f32 1.0, %v8486_v59 }
 0x999   :  { %v1727_v48 = vpack.c.bf16 %v1726_v23, %v1725_v24 }
 0x99b   :  { %7314 = vmatmul.mubr.bf16.vlgmr.msra.gmra.mrb[68].mxu1 %v1727_v48 }
 0x99c   :  { %7318 = vmatpush3.bf16.msra.mxu1 %v10185_v63  ;;  %7333 = vmatprep.mubr.msk.bf16.mxu1 %vm9412_vm0, %v12149_v22 }
 0x99d   :  { %7319 = vmatprep.subr.bf16.mxu1 %v12149_v22 }
 0x9a0   :  { %7320 = vmatpush3.bf16.msra.mxu1 %v10191_v39 }
 0x9a1   :  { %7321 = vmatprep.subr.bf16.mxu1 %v12149_v22 }
 0x9a4   :  { %7322 = vmatpush3.bf16.msra.mxu1 %v10195_v33 }
 0x9a5   :  { %7323 = vmatprep.subr.bf16.mxu1 %v12149_v22 }
 0x9a8   :  { %7324 = vmatpush3.bf16.msra.mxu1 %v10199_v35 }
 0x9a9   :  { %7325 = vmatprep.subr.bf16.mxu1 %v12149_v22 }
 0x9ac   :  { %7326 = vmatpush3.bf16.msra.mxu1 %v9754_v2  ;;  %v6642_v2 = vmul.f32 -1.442695, %v7987_v31 }
 0x9ad   :  { %7327 = vmatprep.subr.bf16.mxu1 %v12149_v22 }
 0x9ae   :  { %8487 = vpow2.f32 %v6642_v2 }
 0x9b0   :  { %7328 = vmatpush3.bf16.msra.mxu1 %v9757_v3 }
 0x9b1   :  { %7329 = vmatprep.subr.bf16.mxu1 %v12149_v22 }
 0x9b4   :  { %7330 = vmatpush3.bf16.msra.mxu1 %v9763_v4 }
 0x9b5   :  { %7331 = vmatprep.subr.bf16.mxu1 %v12149_v22 }
 0x9b8   :  { %7332 = vmatpush3.bf16.msra.mxu1 %v9767_v5  ;;  %v8488_v3 = vpop.eup %8487 }
 0x9b9   :  { %7337 = vmatprep.subr.bf16.mxu1 %v12149_v22  ;;  %v1715_v57 = vadd.f32 1.0, %v8488_v3 }
 0xa6e   :  { %v1762_v40 = vpop.f32.mrb[68].mxu1 }
 0xa6f   :  { %v1769_v4 = vadd.f32 %v1762_v40, %v9851_v58  ;;  %v7315_v54 = vpop.f32.mrb[69].mxu1 }
 0xa70   :  { %v1765_v56 = vpop.f32.mrb[70].mxu1 }
 0xa71   :  { %8489 = vtanh.f32 %v1769_v4  ;;  %v1770_v5 = vadd.f32 %v1765_v56, %v9857_v1  ;;  %v7316_v43 = vpop.f32.mrb[71].mxu1 }
 0xa72   :  { %8491 = vrcp.f32 %v1713_v47  ;;  %v10257_v43 = vld [vmem:[#allocation12 + $0x20] sm:$0xff]  }
 0xa73   :  { %8493 = vtanh.f32 %v1770_v5 }
 0xa74   :  { %8495 = vrcp.f32 %v1715_v57 }
 0xa7b   :  { %v8490_v6 = vpop.eup %8489 }
 0xa7c   :  { %v8492_v53 = vpop.eup %8491  ;;  %v1773_v44 = vsub.f32 %v10155_v49, %v8490_v6 }
 0xa7d   :  { %v8494_v61 = vpop.eup %8493 }
 0xa7e   :  { %v1774_v19 = vsub.f32 %v10157_v38, %v8494_v61  ;;  %v1775_v25 = vmul.f32 %v8492_v53, %v1773_v44  ;;  %v8496_v29 = vpop.eup %8495  ;;  %v10265_v53 = vld [vmem:[#allocation12 + $0x30] sm:$0xff]   ;;  %v10269_v44 = vld [vmem:[#allocation12 + $0x38] sm:$0xff]  }
 0xa80   :  { %v1776_v58 = vmul.f32 %v8496_v29, %v1774_v19  ;;  %v10217_v7 = vadd.f32 %v8490_v6, %v1775_v25  ;;  %v10261_v6 = vld [vmem:[#allocation12 + $0x28] sm:$0xff]  }
 0xa82   :  { %v10219_v24 = vadd.f32 %v8494_v61, %v1776_v58 }
 0xa84   :  { %v10223_v1 = vpack.c.bf16 %v10219_v24, %v10217_v7 }
 0xa86   :  { %1824 = vmatmul.mubr.bf16.vlgmr.msra.gmra.mrb[20].mxu0 %v10223_v1 }
 0xa87   :  { %1929 = vmatpush1.bf16.msra.mxu0 %v10024_v42  ;;  %1960 = vmatprep.mubr.bf16.mxu0 %v12150_v12 }
 0xa88   :  { %1930 = vmatprep.subr.bf16.mxu0 %v10028_v15 }
 0xa8b   :  { %1931 = vmatpush1.bf16.msra.mxu0 %v10031_v55 }
 0xa8c   :  { %1932 = vmatprep.subr.bf16.mxu0 %v10034_v10 }
 0xa8f   :  { %1933 = vmatpush1.bf16.msra.mxu0 %v10037_v9 }
 0xa90   :  { %1934 = vmatprep.subr.bf16.mxu0 %v10040_v18 }
 0xa93   :  { %1935 = vmatpush1.bf16.msra.mxu0 %v10099_v17 }
 0xa94   :  { %1936 = vmatprep.subr.bf16.mxu0 %v10102_v14 }
 0xa97   :  { %1937 = vmatpush1.bf16.msra.mxu0 %v10105_v11 }
 0xa98   :  { %1938 = vmatprep.subr.bf16.mxu0 %v10108_v45 }
 0xa9b   :  { %1939 = vmatpush1.bf16.msra.mxu0 %v10111_v20 }
 0xa9c   :  { %1940 = vmatprep.subr.bf16.mxu0 %v10114_v21 }
 0xa9f   :  { %1941 = vmatpush1.bf16.msra.mxu0 %v10117_v27 }
 0xaa0   :  { %1942 = vmatprep.subr.bf16.mxu0 %v10120_v28 }
 0xaa3   :  { %1943 = vmatpush1.bf16.msra.mxu0 %v10123_v62 }
 0xaa4   :  { %2065 = vmatprep.subr.bf16.mxu0 %v10052_v8 }
 0xb59   :  { %v1825_v49 = vpop.f32.mrb[20].mxu0 }
 0xb5a   :  { %v1827_v38 = vpop.f32.mrb[21].mxu0  ;;  %v7989_v61 = vadd.f32 %v1825_v49, %v9951_v32 }
 0xb5b   :  { %v7990_v23 = vadd.f32 %v1827_v38, %v9896_v16  ;;  %v1829_v48 = vpop.f32.mrb[22].mxu0 }
 0xb5c   :  { %v1831_v36 = vpop.f32.mrb[23].mxu0  ;;  %v7991_v19 = vadd.f32 %v1829_v48, %v9951_v32  ;;  %v6644_v25 = vmul.f32 -1.442695, %v7989_v61 }
 0xb5d   :  { %v6645_v31 = vmul.f32 -1.442695, %v7990_v23  ;;  %v7992_v13 = vadd.f32 %v1831_v36, %v9896_v16 }
 0xb5e   :  { %v6646_v29 = vmul.f32 -1.442695, %v7991_v19 }
 0xb5f   :  { %8497 = vpow2.f32 %v6645_v31  ;;  %v6647_v2 = vmul.f32 -1.442695, %v7992_v13 }
 0xb61   :  { %8499 = vpow2.f32 %v6647_v2 }
 0xb69   :  { %v8498_v59 = vpop.eup %8497 }
 0xb6a   :  { %v1851_v3 = vadd.f32 1.0, %v8498_v59 }
 0xb6b   :  { %v8500_v47 = vpop.eup %8499 }
 0xb6c   :  { %8501 = vrcp.f32 %v1851_v3  ;;  %v1853_v40 = vadd.f32 1.0, %v8500_v47 }
 0xb6e   :  { %8503 = vrcp.f32 %v1853_v40 }
 0xb6f   :  { %8505 = vpow2.f32 %v6644_v25 }
 0xb70   :  { %8507 = vpow2.f32 %v6646_v29 }
 0xb76   :  { %v8502_v4 = vpop.eup %8501 }
 0xb77   :  { %v1862_v56 = vmul.f32 %v8502_v4, %v10217_v7 }
 0xb78   :  { %v8504_v54 = vpop.eup %8503 }
 0xb79   :  { %v1863_v57 = vmul.f32 %v8504_v54, %v10219_v24  ;;  %v8506_v58 = vpop.eup %8505 }
 0xb7a   :  { %v8508_v38 = vpop.eup %8507  ;;  %v1850_v23 = vadd.f32 1.0, %v8506_v58 }
 0xb7b   :  { %v1864_v5 = vpack.c.bf16 %v1863_v57, %v1862_v56  ;;  %v1852_v59 = vadd.f32 1.0, %v8508_v38 }
 0xb7d   :  { %7334 = vmatmul.mubr.bf16.vlgmr.msra.gmra.mrb[72].mxu1 %v1864_v5 }
 0xb7e   :  { %7338 = vmatpush3.bf16.msra.mxu1 %v10185_v63  ;;  %7353 = vmatprep.mubr.msk.bf16.mxu1 %vm9412_vm0, %v12149_v22 }
 0xb7f   :  { %7339 = vmatprep.subr.bf16.mxu1 %v12149_v22 }
 0xb82   :  { %7340 = vmatpush3.bf16.msra.mxu1 %v10191_v39 }
 0xb83   :  { %7341 = vmatprep.subr.bf16.mxu1 %v12149_v22 }
 0xb86   :  { %7342 = vmatpush3.bf16.msra.mxu1 %v10195_v33 }
 0xb87   :  { %7343 = vmatprep.subr.bf16.mxu1 %v12149_v22 }
 0xb8a   :  { %7344 = vmatpush3.bf16.msra.mxu1 %v10199_v35 }
 0xb8b   :  { %7345 = vmatprep.subr.bf16.mxu1 %v12149_v22 }
 0xb8e   :  { %7346 = vmatpush3.bf16.msra.mxu1 %v10257_v43 }
 0xb8f   :  { %7347 = vmatprep.subr.bf16.mxu1 %v12149_v22 }
 0xb92   :  { %7348 = vmatpush3.bf16.msra.mxu1 %v10261_v6 }
 0xb93   :  { %7349 = vmatprep.subr.bf16.mxu1 %v12149_v22 }
 0xb96   :  { %7350 = vmatpush3.bf16.msra.mxu1 %v10265_v53 }
 0xb97   :  { %7351 = vmatprep.subr.bf16.mxu1 %v12149_v22 }
 0xb9a   :  { %7352 = vmatpush3.bf16.msra.mxu1 %v10269_v44 }
 0xb9b   :  { %7357 = vmatprep.subr.bf16.mxu1 %v12149_v22 }
 0xc50   :  { %v1899_v36 = vpop.f32.mrb[72].mxu1 }
 0xc51   :  { %v1906_v31 = vadd.f32 %v1899_v36, %v9848_v0  ;;  %v7335_v13 = vpop.f32.mrb[73].mxu1 }
 0xc52   :  { %v1902_v2 = vpop.f32.mrb[74].mxu1 }
 0xc53   :  { %8509 = vtanh.f32 %v1906_v31  ;;  %v1907_v3 = vadd.f32 %v1902_v2, %v9854_v60  ;;  %v7336_v47 = vpop.f32.mrb[75].mxu1 }
 0xc54   :  { %8511 = vrcp.f32 %v1850_v23 }
 0xc55   :  { %8513 = vtanh.f32 %v1907_v3 }
 0xc56   :  { %8515 = vrcp.f32 %v1852_v59 }
 0xc5d   :  { %v8510_v49 = vpop.eup %8509 }
 0xc5e   :  { %v8512_v48 = vpop.eup %8511  ;;  %v1910_v40 = vsub.f32 %v10217_v7, %v8510_v49 }
 0xc5f   :  { %v8514_v4 = vpop.eup %8513 }
 0xc60   :  { %v1911_v54 = vsub.f32 %v10219_v24, %v8514_v4  ;;  %v1912_v56 = vmul.f32 %v8512_v48, %v1910_v40  ;;  %v8516_v57 = vpop.eup %8515 }
 0xc62   :  { %v1913_v0 = vmul.f32 %v8516_v57, %v1911_v54  ;;  %v10279_v5 = vadd.f32 %v8510_v49, %v1912_v56 }
 0xc64   :  { %v10281_v61 = vadd.f32 %v8514_v4, %v1913_v0 }
 0xc66   :  { %v10285_v60 = vpack.c.bf16 %v10281_v61, %v10279_v5 }
 0xc68   :  { %1961 = vmatmul.mubr.bf16.vlgmr.msra.gmra.mrb[24].mxu0 %v10285_v60 }
 0xc69   :  { %2066 = vmatpush1.bf16.msra.mxu0 %v10024_v42  ;;  %2097 = vmatprep.mubr.bf16.mxu0 %v12150_v12 }
 0xc6a   :  { %2067 = vmatprep.subr.bf16.mxu0 %v10028_v15 }
 0xc6d   :  { %2068 = vmatpush1.bf16.msra.mxu0 %v10031_v55 }
 0xc6e   :  { %2069 = vmatprep.subr.bf16.mxu0 %v10034_v10 }
 0xc71   :  { %2070 = vmatpush1.bf16.msra.mxu0 %v10037_v9 }
 0xc72   :  { %2071 = vmatprep.subr.bf16.mxu0 %v10040_v18 }
 0xc75   :  { %2072 = vmatpush1.bf16.msra.mxu0 %v10099_v17 }
 0xc76   :  { %2073 = vmatprep.subr.bf16.mxu0 %v10102_v14 }
 0xc79   :  { %2074 = vmatpush1.bf16.msra.mxu0 %v10105_v11 }
 0xc7a   :  { %2075 = vmatprep.subr.bf16.mxu0 %v10108_v45 }
 0xc7d   :  { %2076 = vmatpush1.bf16.msra.mxu0 %v10111_v20 }
 0xc7e   :  { %2077 = vmatprep.subr.bf16.mxu0 %v10114_v21 }
 0xc81   :  { %2078 = vmatpush1.bf16.msra.mxu0 %v10117_v27 }
 0xc82   :  { %2079 = vmatprep.subr.bf16.mxu0 %v10120_v28 }
 0xc85   :  { %2080 = vmatpush1.bf16.msra.mxu0 %v10123_v62 }
 0xc86   :  { %2202 = vmatprep.subr.bf16.mxu0 %v10052_v8 }
 0xd3b   :  { %v1962_v7 = vpop.f32.mrb[24].mxu0 }
 0xd3c   :  { %v1964_v24 = vpop.f32.mrb[25].mxu0  ;;  %v7993_v40 = vadd.f32 %v1962_v7, %v9951_v32 }
 0xd3d   :  { %v7994_v19 = vadd.f32 %v1964_v24, %v9896_v16  ;;  %v1966_v25 = vpop.f32.mrb[26].mxu0 }
 0xd3e   :  { %v1968_v29 = vpop.f32.mrb[27].mxu0  ;;  %v7995_v4 = vadd.f32 %v1966_v25, %v9951_v32  ;;  %v6648_v54 = vmul.f32 -1.442695, %v7993_v40 }
 0xd3f   :  { %v6649_v58 = vmul.f32 -1.442695, %v7994_v19  ;;  %v7996_v38 = vadd.f32 %v1968_v29, %v9896_v16 }
 0xd40   :  { %v6650_v56 = vmul.f32 -1.442695, %v7995_v4 }
 0xd41   :  { %8517 = vpow2.f32 %v6649_v58  ;;  %v6651_v23 = vmul.f32 -1.442695, %v7996_v38 }
 0xd43   :  { %8519 = vpow2.f32 %v6651_v23 }
 0xd4b   :  { %v8518_v36 = vpop.eup %8517 }
 0xd4c   :  { %v1988_v31 = vadd.f32 1.0, %v8518_v36 }
 0xd4d   :  { %v8520_v13 = vpop.eup %8519 }
 0xd4e   :  { %8521 = vrcp.f32 %v1988_v31  ;;  %v1990_v2 = vadd.f32 1.0, %v8520_v13 }
 0xd50   :  { %8523 = vrcp.f32 %v1990_v2 }
 0xd51   :  { %8525 = vpow2.f32 %v6648_v54 }
 0xd52   :  { %8527 = vpow2.f32 %v6650_v56 }
 0xd58   :  { %v8522_v59 = vpop.eup %8521 }
 0xd59   :  { %v1999_v47 = vmul.f32 %v8522_v59, %v10279_v5 }
 0xd5a   :  { %v8524_v3 = vpop.eup %8523 }
 0xd5b   :  { %v2000_v49 = vmul.f32 %v8524_v3, %v10281_v61  ;;  %v8526_v57 = vpop.eup %8525 }
 0xd5c   :  { %v8528_v0 = vpop.eup %8527  ;;  %v1987_v24 = vadd.f32 1.0, %v8526_v57 }
 0xd5d   :  { %v2001_v48 = vpack.c.bf16 %v2000_v49, %v1999_v47  ;;  %v1989_v23 = vadd.f32 1.0, %v8528_v0 }
 0xd5f   :  { %7354 = vmatmul.mubr.bf16.vlgmr.msra.gmra.mrb[76].mxu1 %v2001_v48 }
 0xd60   :  { %7358 = vmatpush3.bf16.msra.mxu1 %v10185_v63  ;;  %7373 = vmatprep.mubr.msk.bf16.mxu1 %vm9412_vm0, %v12149_v22 }
 0xd61   :  { %7359 = vmatprep.subr.bf16.mxu1 %v12149_v22 }
 0xd64   :  { %7360 = vmatpush3.bf16.msra.mxu1 %v10191_v39 }
 0xd65   :  { %7361 = vmatprep.subr.bf16.mxu1 %v12149_v22 }
 0xd68   :  { %7362 = vmatpush3.bf16.msra.mxu1 %v10195_v33 }
 0xd69   :  { %7363 = vmatprep.subr.bf16.mxu1 %v12149_v22 }
 0xd6c   :  { %7364 = vmatpush3.bf16.msra.mxu1 %v10199_v35 }
 0xd6d   :  { %7365 = vmatprep.subr.bf16.mxu1 %v12149_v22 }
 0xd70   :  { %7366 = vmatpush3.bf16.msra.mxu1 %v10257_v43 }
 0xd71   :  { %7367 = vmatprep.subr.bf16.mxu1 %v12149_v22 }
 0xd74   :  { %7368 = vmatpush3.bf16.msra.mxu1 %v10261_v6 }
 0xd75   :  { %7369 = vmatprep.subr.bf16.mxu1 %v12149_v22 }
 0xd78   :  { %7370 = vmatpush3.bf16.msra.mxu1 %v10265_v53 }
 0xd79   :  { %7371 = vmatprep.subr.bf16.mxu1 %v12149_v22 }
 0xd7c   :  { %7372 = vmatpush3.bf16.msra.mxu1 %v10269_v44 }
 0xd7d   :  { %7377 = vmatprep.subr.bf16.mxu1 %v12149_v22 }
 0xe32   :  { %v2036_v19 = vpop.f32.mrb[76].mxu1 }
 0xe33   :  { %v2043_v29 = vadd.f32 %v2036_v19, %v9863_v50  ;;  %v7355_v58 = vpop.f32.mrb[77].mxu1 }
 0xe34   :  { %v2039_v38 = vpop.f32.mrb[78].mxu1 }
 0xe35   :  { %8529 = vtanh.f32 %v2043_v29  ;;  %v2044_v36 = vadd.f32 %v2039_v38, %v9869_v41  ;;  %v7356_v31 = vpop.f32.mrb[79].mxu1 }
 0xe36   :  { %8531 = vrcp.f32 %v1987_v24 }
 0xe37   :  { %8533 = vtanh.f32 %v2044_v36 }
 0xe38   :  { %8535 = vrcp.f32 %v1989_v23 }
 0xe3f   :  { %v8530_v7 = vpop.eup %8529 }
 0xe40   :  { %v8532_v25 = vpop.eup %8531  ;;  %v2047_v13 = vsub.f32 %v10279_v5, %v8530_v7 }
 0xe41   :  { %v8534_v2 = vpop.eup %8533 }
 0xe42   :  { %v2048_v59 = vsub.f32 %v10281_v61, %v8534_v2  ;;  %v2049_v3 = vmul.f32 %v8532_v25, %v2047_v13  ;;  %v8536_v47 = vpop.eup %8535 }
 0xe44   :  { %v2050_v50 = vmul.f32 %v8536_v47, %v2048_v59  ;;  %v10333_v49 = vadd.f32 %v8530_v7, %v2049_v3 }
 0xe46   :  { %v10335_v48 = vadd.f32 %v8534_v2, %v2050_v50 }
 0xe48   :  { %v10339_v41 = vpack.c.bf16 %v10335_v48, %v10333_v49 }
 0xe4a   :  { %2098 = vmatmul.mubr.bf16.vlgmr.msra.gmra.mrb[28].mxu0 %v10339_v41 }
 0xe4b   :  { %2203 = vmatpush1.bf16.msra.mxu0 %v10024_v42  ;;  %2234 = vmatprep.mubr.bf16.mxu0 %v12150_v12 }
 0xe4c   :  { %2204 = vmatprep.subr.bf16.mxu0 %v10028_v15 }
 0xe4f   :  { %2205 = vmatpush1.bf16.msra.mxu0 %v10031_v55 }
 0xe50   :  { %2206 = vmatprep.subr.bf16.mxu0 %v10034_v10 }
 0xe53   :  { %2207 = vmatpush1.bf16.msra.mxu0 %v10037_v9 }
 0xe54   :  { %2208 = vmatprep.subr.bf16.mxu0 %v10040_v18 }
 0xe57   :  { %2209 = vmatpush1.bf16.msra.mxu0 %v10099_v17 }
 0xe58   :  { %2210 = vmatprep.subr.bf16.mxu0 %v10102_v14 }
 0xe5b   :  { %2211 = vmatpush1.bf16.msra.mxu0 %v10105_v11 }
 0xe5c   :  { %2212 = vmatprep.subr.bf16.mxu0 %v10108_v45 }
 0xe5f   :  { %2213 = vmatpush1.bf16.msra.mxu0 %v10111_v20 }
 0xe60   :  { %2214 = vmatprep.subr.bf16.mxu0 %v10114_v21 }
 0xe63   :  { %2215 = vmatpush1.bf16.msra.mxu0 %v10117_v27 }
 0xe64   :  { %2216 = vmatprep.subr.bf16.mxu0 %v10120_v28 }
 0xe67   :  { %2217 = vmatpush1.bf16.msra.mxu0 %v10123_v62 }
 0xe68   :  { %2339 = vmatprep.subr.bf16.mxu0 %v10052_v8 }
 0xf1d   :  { %v2099_v42 = vpop.f32.mrb[28].mxu0 }
 0xf1e   :  { %v2101_v15 = vpop.f32.mrb[29].mxu0  ;;  %v7997_v29 = vadd.f32 %v2099_v42, %v9951_v32 }
 0xf1f   :  { %v7998_v55 = vadd.f32 %v2101_v15, %v9896_v16  ;;  %v2103_v10 = vpop.f32.mrb[30].mxu0 }
 0xf20   :  { %v2105_v9 = vpop.f32.mrb[31].mxu0  ;;  %v7999_v58 = vadd.f32 %v2103_v10, %v9951_v32  ;;  %v6652_v38 = vmul.f32 -1.442695, %v7997_v29 }
 0xf21   :  { %v6653_v18 = vmul.f32 -1.442695, %v7998_v55  ;;  %v8000_v5 = vadd.f32 %v2105_v9, %v9896_v16 }
 0xf22   :  { %v6654_v23 = vmul.f32 -1.442695, %v7999_v58 }
 0xf23   :  { %8537 = vpow2.f32 %v6653_v18  ;;  %v6655_v61 = vmul.f32 -1.442695, %v8000_v5 }
 0xf25   :  { %8539 = vpow2.f32 %v6655_v61 }
 0xf2d   :  { %v8538_v40 = vpop.eup %8537 }
 0xf2e   :  { %v2125_v4 = vadd.f32 1.0, %v8538_v40 }
 0xf2f   :  { %v8540_v54 = vpop.eup %8539 }
 0xf30   :  { %8541 = vrcp.f32 %v2125_v4  ;;  %v2127_v56 = vadd.f32 1.0, %v8540_v54  ;;  %v10396_v4 = vld [vmem:[#allocation10] ss:$8 sps:$4 sm:$0xff]   ;;  %v10406_v54 = vld [vmem:[#allocation10 + $0x24] ss:$8 sps:$4 sm:$0xff]  }
 0xf32   :  { %8543 = vrcp.f32 %v2127_v56  ;;  %v10409_v56 = vld [vmem:[#allocation10 + $0x20] ss:$8 sps:$4 sm:$0xff]  }
 0xf33   :  { %8545 = vpow2.f32 %v6652_v38 }
 0xf34   :  { %8547 = vpow2.f32 %v6654_v23 }
 0xf3a   :  { %v8542_v57 = vpop.eup %8541 }
 0xf3b   :  { %v2136_v0 = vmul.f32 %v8542_v57, %v10333_v49  ;;  %v10412_v57 = vld [vmem:[#allocation10 + $0x34] ss:$8 sps:$4 sm:$0xff]  }
 0xf3c   :  { %v8544_v8 = vpop.eup %8543 }
 0xf3d   :  { %v2137_v24 = vmul.f32 %v8544_v8, %v10335_v48  ;;  %v8546_v36 = vpop.eup %8545  ;;  %v10424_v8 = vld [vmem:[#allocation10 + $0x4] ss:$8 sps:$4 sm:$0xff]  }
 0xf3e   :  { %v8548_v31 = vpop.eup %8547  ;;  %v2124_v7 = vadd.f32 1.0, %v8546_v36 }
 0xf3f   :  { %v2138_v19 = vpack.c.bf16 %v2137_v24, %v2136_v0  ;;  %v2126_v3 = vadd.f32 1.0, %v8548_v31 }
 0xf41   :  { %7374 = vmatmul.mubr.bf16.vlgmr.msra.gmra.mrb[80].mxu1 %v2138_v19 }
 0xf42   :  { %7378 = vmatpush3.bf16.msra.mxu1 %v10185_v63  ;;  %7393 = vmatprep.mubr.msk.bf16.mxu1 %vm9412_vm0, %v12149_v22 }
 0xf43   :  { %7379 = vmatprep.subr.bf16.mxu1 %v12149_v22 }
 0xf46   :  { %7380 = vmatpush3.bf16.msra.mxu1 %v10191_v39 }
 0xf47   :  { %7381 = vmatprep.subr.bf16.mxu1 %v12149_v22 }
 0xf4a   :  { %7382 = vmatpush3.bf16.msra.mxu1 %v10195_v33 }
 0xf4b   :  { %7383 = vmatprep.subr.bf16.mxu1 %v12149_v22 }
 0xf4e   :  { %7384 = vmatpush3.bf16.msra.mxu1 %v10199_v35 }
 0xf4f   :  { %7385 = vmatprep.subr.bf16.mxu1 %v12149_v22 }
 0xf52   :  { %7386 = vmatpush3.bf16.msra.mxu1 %v10257_v43 }
 0xf53   :  { %7387 = vmatprep.subr.bf16.mxu1 %v12149_v22 }
 0xf56   :  { %7388 = vmatpush3.bf16.msra.mxu1 %v10261_v6 }
 0xf57   :  { %7389 = vmatprep.subr.bf16.mxu1 %v12149_v22 }
 0xf5a   :  { %7390 = vmatpush3.bf16.msra.mxu1 %v10265_v53 }
 0xf5b   :  { %7391 = vmatprep.subr.bf16.mxu1 %v12149_v22 }
 0xf5e   :  { %7392 = vmatpush3.bf16.msra.mxu1 %v10269_v44 }
 0xf5f   :  { %7397 = vmatprep.subr.bf16.mxu1 %v12149_v22 }
0x1014   :  { %v2173_v25 = vpop.f32.mrb[80].mxu1 }
0x1015   :  { %v2180_v13 = vadd.f32 %v2173_v25, %v9860_v46  ;;  %v7375_v2 = vpop.f32.mrb[81].mxu1 }
0x1016   :  { %v2176_v59 = vpop.f32.mrb[82].mxu1 }
0x1017   :  { %8549 = vtanh.f32 %v2180_v13  ;;  %v2181_v47 = vadd.f32 %v2176_v59, %v9866_v51  ;;  %v7376_v50 = vpop.f32.mrb[83].mxu1 }
0x1018   :  { %8551 = vrcp.f32 %v2124_v7 }
0x1019   :  { %8553 = vtanh.f32 %v2181_v47 }
0x101a   :  { %8555 = vrcp.f32 %v2126_v3 }
0x1021   :  { %v8550_v42 = vpop.eup %8549 }
0x1022   :  { %v8552_v15 = vpop.eup %8551  ;;  %v2184_v55 = vsub.f32 %v10333_v49, %v8550_v42  ;;  %v10400_v49 = vld [vmem:[#allocation10 + $0x14] ss:$8 sps:$4 sm:$0xff]  }
0x1023   :  { %v8554_v10 = vpop.eup %8553 }
0x1024   :  { %v2185_v9 = vsub.f32 %v10335_v48, %v8554_v10  ;;  %v2186_v18 = vmul.f32 %v8552_v15, %v2184_v55  ;;  %v8556_v5 = vpop.eup %8555  ;;  %v10403_v48 = vld [vmem:[#allocation10 + $0x10] ss:$8 sps:$4 sm:$0xff]  }
0x1026   :  { %v2187_v46 = vmul.f32 %v8556_v5, %v2185_v9  ;;  %v10387_v61 = vadd.f32 %v8550_v42, %v2186_v18 }
0x1028   :  { %v10389_v40 = vadd.f32 %v8554_v10, %v2187_v46  ;;  %v12151_v10 = vld [vmem:[#allocation52_spill] sm:$0xff] }
0x102a   :  { %v10393_v51 = vpack.c.bf16 %v10389_v40, %v10387_v61 }
0x102c   :  { %2235 = vmatmul.mubr.bf16.vlgmr.msra.gmra.mrb[32].mxu0 %v10393_v51 }
0x102d   :  { %2340 = vmatpush1.bf16.msra.mxu0 %v10396_v4  ;;  %2371 = vmatprep.mubr.bf16.mxu0 %v12150_v12 }
0x102e   :  { %2341 = vmatprep.subr.bf16.mxu0 %v10400_v49 }
0x1031   :  { %2342 = vmatpush1.bf16.msra.mxu0 %v10403_v48 }
0x1032   :  { %2343 = vmatprep.subr.bf16.mxu0 %v10406_v54 }
0x1035   :  { %2344 = vmatpush1.bf16.msra.mxu0 %v10409_v56 }
0x1036   :  { %2345 = vmatprep.subr.bf16.mxu0 %v10412_v57 }
0x1039   :  { %2346 = vmatpush1.bf16.msra.mxu0 %v10099_v17 }
0x103a   :  { %2347 = vmatprep.subr.bf16.mxu0 %v10102_v14 }
0x103d   :  { %2348 = vmatpush1.bf16.msra.mxu0 %v10105_v11 }
0x103e   :  { %2349 = vmatprep.subr.bf16.mxu0 %v10108_v45 }
0x1041   :  { %2350 = vmatpush1.bf16.msra.mxu0 %v10111_v20 }
0x1042   :  { %2351 = vmatprep.subr.bf16.mxu0 %v10114_v21 }
0x1045   :  { %2352 = vmatpush1.bf16.msra.mxu0 %v10117_v27 }
0x1046   :  { %2353 = vmatprep.subr.bf16.mxu0 %v10120_v28 }
0x1049   :  { %2354 = vmatpush1.bf16.msra.mxu0 %v10123_v62 }
0x104a   :  { %2476 = vmatprep.subr.bf16.mxu0 %v10424_v8 }
0x10ff   :  { %v2236_v17 = vpop.f32.mrb[32].mxu0 }
0x1100   :  { %v2238_v14 = vpop.f32.mrb[33].mxu0  ;;  %v8001_v31 = vadd.f32 %v2236_v17, %v9951_v32 }
0x1101   :  { %v8002_v11 = vadd.f32 %v2238_v14, %v9896_v16  ;;  %v2240_v0 = vpop.f32.mrb[34].mxu0 }
0x1102   :  { %v2242_v45 = vpop.f32.mrb[35].mxu0  ;;  %v8003_v7 = vadd.f32 %v2240_v0, %v9951_v32  ;;  %v6656_v25 = vmul.f32 -1.442695, %v8001_v31 }
0x1103   :  { %v6657_v24 = vmul.f32 -1.442695, %v8002_v11  ;;  %v8004_v20 = vadd.f32 %v2242_v45, %v9896_v16 }
0x1104   :  { %v6658_v13 = vmul.f32 -1.442695, %v8003_v7 }
0x1105   :  { %8557 = vpow2.f32 %v6657_v24  ;;  %v6659_v21 = vmul.f32 -1.442695, %v8004_v20 }
0x1107   :  { %8559 = vpow2.f32 %v6659_v21 }
0x110f   :  { %v8558_v27 = vpop.eup %8557 }
0x1110   :  { %v2262_v28 = vadd.f32 1.0, %v8558_v27  ;;  %v10477_v27 = vld [vmem:[#allocation10 + $0x40] ss:$8 sps:$4 sm:$0xff]  }
0x1111   :  { %v8560_v19 = vpop.eup %8559 }
0x1112   :  { %8561 = vrcp.f32 %v2262_v28  ;;  %v2264_v62 = vadd.f32 1.0, %v8560_v19  ;;  %v10480_v28 = vld [vmem:[#allocation10 + $0x54] ss:$8 sps:$4 sm:$0xff]   ;;  %v10483_v19 = vld [vmem:[#allocation10 + $0x50] ss:$8 sps:$4 sm:$0xff]  }
0x1114   :  { %8563 = vrcp.f32 %v2264_v62  ;;  %v10486_v62 = vld [vmem:[#allocation10 + $0x64] ss:$8 sps:$4 sm:$0xff]  }
0x1115   :  { %8565 = vpow2.f32 %v6656_v25 }
0x1116   :  { %8567 = vpow2.f32 %v6658_v13 }
0x111c   :  { %v8562_v29 = vpop.eup %8561 }
0x111d   :  { %v2273_v38 = vmul.f32 %v8562_v29, %v10387_v61  ;;  %v10489_v29 = vld [vmem:[#allocation10 + $0x60] ss:$8 sps:$4 sm:$0xff]  }
0x111e   :  { %v8564_v58 = vpop.eup %8563 }
0x111f   :  { %v2274_v23 = vmul.f32 %v8564_v58, %v10389_v40  ;;  %v8566_v2 = vpop.eup %8565  ;;  %v10492_v58 = vld [vmem:[#allocation10 + $0x74] ss:$8 sps:$4 sm:$0xff]  }
0x1120   :  { %v8568_v59 = vpop.eup %8567  ;;  %v2261_v3 = vadd.f32 1.0, %v8566_v2 }
0x1121   :  { %v2275_v36 = vpack.c.bf16 %v2274_v23, %v2273_v38  ;;  %v2263_v55 = vadd.f32 1.0, %v8568_v59  ;;  %v10495_v38 = vld [vmem:[#allocation10 + $0x70] ss:$8 sps:$4 sm:$0xff]  }
0x1123   :  { %7394 = vmatmul.mubr.bf16.vlgmr.msra.gmra.mrb[84].mxu1 %v2275_v36 }
0x1124   :  { %7398 = vmatpush3.bf16.msra.mxu1 %v10185_v63  ;;  %7413 = vmatprep.mubr.msk.bf16.mxu1 %vm9412_vm0, %v12149_v22 }
0x1125   :  { %7399 = vmatprep.subr.bf16.mxu1 %v12149_v22 }
0x1128   :  { %7400 = vmatpush3.bf16.msra.mxu1 %v10191_v39 }
0x1129   :  { %7401 = vmatprep.subr.bf16.mxu1 %v12149_v22 }
0x112c   :  { %7402 = vmatpush3.bf16.msra.mxu1 %v10195_v33 }
0x112d   :  { %7403 = vmatprep.subr.bf16.mxu1 %v12149_v22 }
0x1130   :  { %7404 = vmatpush3.bf16.msra.mxu1 %v10199_v35 }
0x1131   :  { %7405 = vmatprep.subr.bf16.mxu1 %v12149_v22 }
0x1134   :  { %7406 = vmatpush3.bf16.msra.mxu1 %v10257_v43 }
0x1135   :  { %7407 = vmatprep.subr.bf16.mxu1 %v12149_v22 }
0x1138   :  { %7408 = vmatpush3.bf16.msra.mxu1 %v10261_v6 }
0x1139   :  { %7409 = vmatprep.subr.bf16.mxu1 %v12149_v22 }
0x113c   :  { %7410 = vmatpush3.bf16.msra.mxu1 %v10265_v53 }
0x113d   :  { %7411 = vmatprep.subr.bf16.mxu1 %v12149_v22 }
0x1140   :  { %7412 = vmatpush3.bf16.msra.mxu1 %v10269_v44 }
0x1141   :  { %7417 = vmatprep.subr.bf16.mxu1 %v12149_v22 }
0x11f6   :  { %v2310_v47 = vpop.f32.mrb[84].mxu1 }
0x11f7   :  { %v2317_v50 = vadd.f32 %v2310_v47, %v9875_v34  ;;  %v7395_v42 = vpop.f32.mrb[85].mxu1 }
0x11f8   :  { %v2313_v15 = vpop.f32.mrb[86].mxu1 }
0x11f9   :  { %8569 = vtanh.f32 %v2317_v50  ;;  %v2318_v9 = vadd.f32 %v2313_v15, %v12151_v10  ;;  %v7396_v18 = vpop.f32.mrb[87].mxu1 }
0x11fa   :  { %8571 = vrcp.f32 %v2261_v3 }
0x11fb   :  { %8573 = vtanh.f32 %v2318_v9 }
0x11fc   :  { %8575 = vrcp.f32 %v2263_v55 }
0x1203   :  { %v8570_v5 = vpop.eup %8569 }
0x1204   :  { %v8572_v46 = vpop.eup %8571  ;;  %v2321_v17 = vsub.f32 %v10387_v61, %v8570_v5  ;;  %v10471_v61 = vld [vmem:[#allocation10 + $0x30] ss:$8 sps:$4 sm:$0xff]  }
0x1205   :  { %v8574_v14 = vpop.eup %8573 }
0x1206   :  { %v2322_v11 = vsub.f32 %v10389_v40, %v8574_v14  ;;  %v2323_v0 = vmul.f32 %v8572_v46, %v2321_v17  ;;  %v8576_v45 = vpop.eup %8575  ;;  %v10474_v40 = vld [vmem:[#allocation10 + $0x44] ss:$8 sps:$4 sm:$0xff]  }
0x1208   :  { %v2324_v34 = vmul.f32 %v8576_v45, %v2322_v11  ;;  %v10455_v24 = vadd.f32 %v8570_v5, %v2323_v0  ;;  %v12152_v11 = vld [vmem:[#allocation50_spill] sm:$0xff] }
0x120a   :  { %v10457_v20 = vadd.f32 %v8574_v14, %v2324_v34 }
0x120c   :  { %v10461_v21 = vpack.c.bf16 %v10457_v20, %v10455_v24 }
0x120e   :  { %2372 = vmatmul.mubr.bf16.vlgmr.msra.gmra.mrb[36].mxu0 %v10461_v21 }
0x120f   :  { %2477 = vmatpush1.bf16.msra.mxu0 %v10396_v4  ;;  %2508 = vmatprep.mubr.bf16.mxu0 %v12150_v12 }
0x1210   :  { %2478 = vmatprep.subr.bf16.mxu0 %v10400_v49 }
0x1213   :  { %2479 = vmatpush1.bf16.msra.mxu0 %v10403_v48 }
0x1214   :  { %2480 = vmatprep.subr.bf16.mxu0 %v10406_v54 }
0x1217   :  { %2481 = vmatpush1.bf16.msra.mxu0 %v10409_v56 }
0x1218   :  { %2482 = vmatprep.subr.bf16.mxu0 %v10412_v57 }
0x121b   :  { %2483 = vmatpush1.bf16.msra.mxu0 %v10471_v61 }
0x121c   :  { %2484 = vmatprep.subr.bf16.mxu0 %v10474_v40 }
0x121f   :  { %2485 = vmatpush1.bf16.msra.mxu0 %v10477_v27 }
0x1220   :  { %2486 = vmatprep.subr.bf16.mxu0 %v10480_v28 }
0x1223   :  { %2487 = vmatpush1.bf16.msra.mxu0 %v10483_v19 }
0x1224   :  { %2488 = vmatprep.subr.bf16.mxu0 %v10486_v62 }
0x1227   :  { %2489 = vmatpush1.bf16.msra.mxu0 %v10489_v29 }
0x1228   :  { %2490 = vmatprep.subr.bf16.mxu0 %v10492_v58 }
0x122b   :  { %2491 = vmatpush1.bf16.msra.mxu0 %v10495_v38 }
0x122c   :  { %2613 = vmatprep.subr.bf16.mxu0 %v10424_v8 }
0x12e1   :  { %v2373_v23 = vpop.f32.mrb[36].mxu0 }
0x12e2   :  { %v2375_v36 = vpop.f32.mrb[37].mxu0 }
0x12e3   :  { %v8006_v31 = vadd.f32 %v2375_v36, %v9896_v16  ;;  %v2377_v7 = vpop.f32.mrb[38].mxu0 }
0x12e4   :  { %v2379_v25 = vpop.f32.mrb[39].mxu0 }
0x12e5   :  { %v6661_v13 = vmul.f32 -1.442695, %v8006_v31  ;;  %v8008_v2 = vadd.f32 %v2379_v25, %v9896_v16  ;;  %v12153_v31 = vld [vmem:[#allocation51_spill] sm:$0xff] }
0x12e7   :  { %8577 = vpow2.f32 %v6661_v13  ;;  %v6663_v59 = vmul.f32 -1.442695, %v8008_v2 }
0x12e9   :  { %8579 = vpow2.f32 %v6663_v59 }
0x12f1   :  { %v8578_v3 = vpop.eup %8577 }
0x12f2   :  { %v2399_v47 = vadd.f32 1.0, %v8578_v3 }
0x12f3   :  { %v8580_v50 = vpop.eup %8579 }
0x12f4   :  { %8581 = vrcp.f32 %v2399_v47  ;;  %v2401_v42 = vadd.f32 1.0, %v8580_v50 }
0x12f6   :  { %8583 = vrcp.f32 %v2401_v42 }
0x12fe   :  { %v8582_v15 = vpop.eup %8581 }
0x12ff   :  { %v2410_v10 = vmul.f32 %v8582_v15, %v10455_v24 }
0x1300   :  { %v8584_v55 = vpop.eup %8583 }
0x1301   :  { %v2411_v9 = vmul.f32 %v8584_v55, %v10457_v20 }
0x1303   :  { %v2412_v18 = vpack.c.bf16 %v2411_v9, %v2410_v10 }
0x1305   :  { %7414 = vmatmul.mubr.bf16.vlgmr.msra.gmra.mrb[88].mxu1 %v2412_v18 }
0x1306   :  { %7418 = vmatpush3.bf16.msra.mxu1 %v10185_v63  ;;  %7433 = vmatprep.mubr.msk.bf16.mxu1 %vm9412_vm0, %v12149_v22  ;;  %v8005_v63 = vadd.f32 %v2373_v23, %v9951_v32 }
0x1307   :  { %7419 = vmatprep.subr.bf16.mxu1 %v12149_v22 }
0x130a   :  { %7420 = vmatpush3.bf16.msra.mxu1 %v10191_v39  ;;  %v8007_v39 = vadd.f32 %v2377_v7, %v9951_v32 }
0x130b   :  { %7421 = vmatprep.subr.bf16.mxu1 %v12149_v22 }
0x130e   :  { %7422 = vmatpush3.bf16.msra.mxu1 %v10195_v33  ;;  %v6660_v33 = vmul.f32 -1.442695, %v8005_v63 }
0x130f   :  { %7423 = vmatprep.subr.bf16.mxu1 %v12149_v22 }
0x1310   :  { %8585 = vpow2.f32 %v6660_v33 }
0x1312   :  { %7424 = vmatpush3.bf16.msra.mxu1 %v10199_v35  ;;  %v6662_v35 = vmul.f32 -1.442695, %v8007_v39 }
0x1313   :  { %7425 = vmatprep.subr.bf16.mxu1 %v12149_v22 }
0x1314   :  { %8587 = vpow2.f32 %v6662_v35 }
0x1316   :  { %7426 = vmatpush3.bf16.msra.mxu1 %v10257_v43 }
0x1317   :  { %7427 = vmatprep.subr.bf16.mxu1 %v12149_v22 }
0x131a   :  { %7428 = vmatpush3.bf16.msra.mxu1 %v10261_v6  ;;  %v8586_v5 = vpop.eup %8585 }
0x131b   :  { %7429 = vmatprep.subr.bf16.mxu1 %v12149_v22  ;;  %v2398_v17 = vadd.f32 1.0, %v8586_v5 }
0x131e   :  { %7430 = vmatpush3.bf16.msra.mxu1 %v10265_v53  ;;  %v8588_v46 = vpop.eup %8587 }
0x131f   :  { %7431 = vmatprep.subr.bf16.mxu1 %v12149_v22  ;;  %v2400_v36 = vadd.f32 1.0, %v8588_v46 }
0x1322   :  { %7432 = vmatpush3.bf16.msra.mxu1 %v10269_v44 }
0x1323   :  { %7437 = vmatprep.subr.bf16.mxu1 %v12149_v22 }
0x13d8   :  { %v2447_v14 = vpop.f32.mrb[88].mxu1 }
0x13d9   :  { %v2454_v0 = vadd.f32 %v2447_v14, %v12152_v11  ;;  %v7415_v45 = vpop.f32.mrb[89].mxu1 }
0x13da   :  { %v2450_v34 = vpop.f32.mrb[90].mxu1 }
0x13db   :  { %8589 = vtanh.f32 %v2454_v0  ;;  %v2455_v25 = vadd.f32 %v2450_v34, %v12153_v31  ;;  %v7416_v13 = vpop.f32.mrb[91].mxu1  ;;  %v10557_v31 = vld [vmem:[#allocation12] sm:$0xff]  }
0x13dc   :  { %8591 = vrcp.f32 %v2398_v17  ;;  %v10567_v13 = vld [vmem:[#allocation12 + $0x10] sm:$0xff]  }
0x13dd   :  { %8593 = vtanh.f32 %v2455_v25  ;;  %v10563_v25 = vld [vmem:[#allocation12 + $0x8] sm:$0xff]  }
0x13de   :  { %8595 = vrcp.f32 %v2400_v36 }
0x13e5   :  { %v8590_v23 = vpop.eup %8589 }
0x13e6   :  { %v8592_v7 = vpop.eup %8591  ;;  %v2458_v2 = vsub.f32 %v10455_v24, %v8590_v23 }
0x13e7   :  { %v8594_v59 = vpop.eup %8593 }
0x13e8   :  { %v2459_v3 = vsub.f32 %v10457_v20, %v8594_v59  ;;  %v2460_v47 = vmul.f32 %v8592_v7, %v2458_v2  ;;  %v8596_v50 = vpop.eup %8595 }
0x13ea   :  { %v2461_v42 = vmul.f32 %v8596_v50, %v2459_v3  ;;  %v10527_v15 = vadd.f32 %v8590_v23, %v2460_v47  ;;  %v10571_v23 = vld [vmem:[#allocation12 + $0x18] sm:$0xff]  }
0x13ec   :  { %v10529_v55 = vadd.f32 %v8594_v59, %v2461_v42  ;;  %v12154_v42 = vld [vmem:[#allocation54_spill] sm:$0xff] }
0x13ee   :  { %v10533_v10 = vpack.c.bf16 %v10529_v55, %v10527_v15 }
0x13f0   :  { %2509 = vmatmul.mubr.bf16.vlgmr.msra.gmra.mrb[40].mxu0 %v10533_v10 }
0x13f1   :  { %2614 = vmatpush1.bf16.msra.mxu0 %v10396_v4  ;;  %2645 = vmatprep.mubr.bf16.mxu0 %v12150_v12 }
0x13f2   :  { %2615 = vmatprep.subr.bf16.mxu0 %v10400_v49 }
0x13f5   :  { %2616 = vmatpush1.bf16.msra.mxu0 %v10403_v48 }
0x13f6   :  { %2617 = vmatprep.subr.bf16.mxu0 %v10406_v54 }
0x13f9   :  { %2618 = vmatpush1.bf16.msra.mxu0 %v10409_v56 }
0x13fa   :  { %2619 = vmatprep.subr.bf16.mxu0 %v10412_v57 }
0x13fd   :  { %2620 = vmatpush1.bf16.msra.mxu0 %v10471_v61 }
0x13fe   :  { %2621 = vmatprep.subr.bf16.mxu0 %v10474_v40 }
0x1401   :  { %2622 = vmatpush1.bf16.msra.mxu0 %v10477_v27 }
0x1402   :  { %2623 = vmatprep.subr.bf16.mxu0 %v10480_v28 }
0x1405   :  { %2624 = vmatpush1.bf16.msra.mxu0 %v10483_v19 }
0x1406   :  { %2625 = vmatprep.subr.bf16.mxu0 %v10486_v62 }
0x1409   :  { %2626 = vmatpush1.bf16.msra.mxu0 %v10489_v29 }
0x140a   :  { %2627 = vmatprep.subr.bf16.mxu0 %v10492_v58 }
0x140d   :  { %2628 = vmatpush1.bf16.msra.mxu0 %v10495_v38 }
0x140e   :  { %2750 = vmatprep.subr.bf16.mxu0 %v10424_v8 }
0x14c3   :  { %v2510_v24 = vpop.f32.mrb[40].mxu0 }
0x14c4   :  { %v2512_v20 = vpop.f32.mrb[41].mxu0  ;;  %v8009_v7 = vadd.f32 %v2510_v24, %v9951_v32 }
0x14c5   :  { %v8010_v9 = vadd.f32 %v2512_v20, %v9896_v16  ;;  %v2514_v18 = vpop.f32.mrb[42].mxu0 }
0x14c6   :  { %v2516_v63 = vpop.f32.mrb[43].mxu0  ;;  %v8011_v2 = vadd.f32 %v2514_v18, %v9951_v32  ;;  %v6664_v59 = vmul.f32 -1.442695, %v8009_v7 }
0x14c7   :  { %v6665_v39 = vmul.f32 -1.442695, %v8010_v9  ;;  %v8012_v33 = vadd.f32 %v2516_v63, %v9896_v16 }
0x14c9   :  { %8597 = vpow2.f32 %v6665_v39  ;;  %v6667_v35 = vmul.f32 -1.442695, %v8012_v33 }
0x14cb   :  { %8599 = vpow2.f32 %v6667_v35 }
0x14d3   :  { %v8598_v5 = vpop.eup %8597 }
0x14d4   :  { %v2536_v46 = vadd.f32 1.0, %v8598_v5 }
0x14d5   :  { %v8600_v17 = vpop.eup %8599 }
0x14d6   :  { %8601 = vrcp.f32 %v2536_v46  ;;  %v2538_v14 = vadd.f32 1.0, %v8600_v17 }
0x14d8   :  { %8603 = vrcp.f32 %v2538_v14 }
0x14d9   :  { %8605 = vpow2.f32 %v6664_v59  ;;  %v12158_v59 = vld [vmem:[#allocation31_spill] sm:$0xff] }
0x14e0   :  { %v8602_v11 = vpop.eup %8601 }
0x14e1   :  { %v2547_v45 = vmul.f32 %v8602_v11, %v10527_v15 }
0x14e2   :  { %v8604_v0 = vpop.eup %8603 }
0x14e3   :  { %v2548_v34 = vmul.f32 %v8604_v0, %v10529_v55  ;;  %v8606_v3 = vpop.eup %8605 }
0x14e4   :  { %v2535_v47 = vadd.f32 1.0, %v8606_v3 }
0x14e5   :  { %v2549_v36 = vpack.c.bf16 %v2548_v34, %v2547_v45 }
0x14e7   :  { %7434 = vmatmul.mubr.bf16.vlgmr.msra.gmra.mrb[92].mxu1 %v2549_v36  ;;  %v12157_v36 = vld [vmem:[#allocation30_spill] sm:$0xff] }
0x14e8   :  { %7438 = vmatpush3.bf16.msra.mxu1 %v10557_v31  ;;  %7453 = vmatprep.mubr.msk.bf16.mxu1 %vm9412_vm0, %v12149_v22  ;;  %v632_v7 = vadd.f32 %v12157_v36, %v9896_v16  ;;  %v10643_v36 = vld [vmem:[#allocation12 + $0x30] sm:$0xff]  }
0x14e9   :  { %7439 = vmatprep.subr.bf16.mxu1 %v12149_v22 }
0x14ec   :  { %7440 = vmatpush3.bf16.msra.mxu1 %v10563_v25 }
0x14ed   :  { %7441 = vmatprep.subr.bf16.mxu1 %v12149_v22 }
0x14f0   :  { %7442 = vmatpush3.bf16.msra.mxu1 %v10567_v13 }
0x14f1   :  { %7443 = vmatprep.subr.bf16.mxu1 %v12149_v22 }
0x14f4   :  { %7444 = vmatpush3.bf16.msra.mxu1 %v10571_v23 }
0x14f5   :  { %7445 = vmatprep.subr.bf16.mxu1 %v12149_v22 }
0x14f8   :  { %7446 = vmatpush3.bf16.msra.mxu1 %v10257_v43  ;;  %v6666_v43 = vmul.f32 -1.442695, %v8011_v2 }
0x14f9   :  { %7447 = vmatprep.subr.bf16.mxu1 %v12149_v22 }
0x14fa   :  { %8607 = vpow2.f32 %v6666_v43  ;;  %v634_v43 = vadd.f32 %v12158_v59, %v9951_v32 }
0x14fc   :  { %7448 = vmatpush3.bf16.msra.mxu1 %v10261_v6 }
0x14fd   :  { %7449 = vmatprep.subr.bf16.mxu1 %v12149_v22 }
0x1500   :  { %7450 = vmatpush3.bf16.msra.mxu1 %v10265_v53 }
0x1501   :  { %7451 = vmatprep.subr.bf16.mxu1 %v12149_v22 }
0x1504   :  { %7452 = vmatpush3.bf16.msra.mxu1 %v10269_v44  ;;  %v8608_v6 = vpop.eup %8607  ;;  %v12155_v44 = vld [vmem:[#allocation56_spill] sm:$0xff] }
0x1505   :  { %7457 = vmatprep.subr.bf16.mxu1 %v12149_v22  ;;  %v2537_v63 = vadd.f32 1.0, %v8608_v6 }
0x15ba   :  { %v2584_v50 = vpop.f32.mrb[92].mxu1 }
0x15bb   :  { %v2591_v53 = vadd.f32 %v2584_v50, %v12154_v42  ;;  %v7435_v20 = vpop.f32.mrb[93].mxu1 }
0x15bc   :  { %v2587_v9 = vpop.f32.mrb[94].mxu1 }
0x15bd   :  { %8609 = vtanh.f32 %v2591_v53  ;;  %v2592_v39 = vadd.f32 %v2587_v9, %v12155_v44  ;;  %v7436_v33 = vpop.f32.mrb[95].mxu1 }
0x15be   :  { %8611 = vrcp.f32 %v2535_v47  ;;  %v12159_v47 = vld [vmem:[#allocation32_spill] sm:$0xff] }
0x15bf   :  { %8613 = vtanh.f32 %v2592_v39  ;;  %v636_v50 = vadd.f32 %v12159_v47, %v9896_v16 }
0x15c0   :  { %8615 = vrcp.f32 %v2537_v63 }
0x15c7   :  { %v8610_v24 = vpop.eup %8609 }
0x15c8   :  { %v8612_v18 = vpop.eup %8611  ;;  %v2595_v35 = vsub.f32 %v10527_v15, %v8610_v24  ;;  %v12156_v15 = vld [vmem:[#allocation29_spill] sm:$0xff] }
0x15c9   :  { %v8614_v5 = vpop.eup %8613 }
0x15ca   :  { %v2596_v46 = vsub.f32 %v10529_v55, %v8614_v5  ;;  %v2597_v17 = vmul.f32 %v8612_v18, %v2595_v35  ;;  %v8616_v14 = vpop.eup %8615  ;;  %v630_v55 = vadd.f32 %v12156_v15, %v9951_v32  ;;  %v10635_v15 = vld [vmem:[#allocation12 + $0x20] sm:$0xff]  }
0x15cc   :  { %v2598_v11 = vmul.f32 %v8616_v14, %v2596_v46  ;;  %v10589_v0 = vadd.f32 %v8610_v24, %v2597_v17 }
0x15ce   :  { %v10591_v45 = vadd.f32 %v8614_v5, %v2598_v11 }
0x15d0   :  { %v10595_v34 = vpack.c.bf16 %v10591_v45, %v10589_v0 }
0x15d2   :  { %2646 = vmatmul.mubr.bf16.vlgmr.msra.gmra.mrb[44].mxu0 %v10595_v34 }
0x15d3   :  { %2751 = vmatpush1.bf16.msra.mxu0 %v10396_v4  ;;  %2782 = vmatprep.mubr.bf16.mxu0 %v12150_v12 }
0x15d4   :  { %2752 = vmatprep.subr.bf16.mxu0 %v10400_v49 }
0x15d7   :  { %2753 = vmatpush1.bf16.msra.mxu0 %v10403_v48 }
0x15d8   :  { %2754 = vmatprep.subr.bf16.mxu0 %v10406_v54 }
0x15db   :  { %2755 = vmatpush1.bf16.msra.mxu0 %v10409_v56 }
0x15dc   :  { %2756 = vmatprep.subr.bf16.mxu0 %v10412_v57 }
0x15df   :  { %2757 = vmatpush1.bf16.msra.mxu0 %v10471_v61 }
0x15e0   :  { %2758 = vmatprep.subr.bf16.mxu0 %v10474_v40 }
0x15e3   :  { %2759 = vmatpush1.bf16.msra.mxu0 %v10477_v27 }
0x15e4   :  { %2760 = vmatprep.subr.bf16.mxu0 %v10480_v28 }
0x15e7   :  { %2761 = vmatpush1.bf16.msra.mxu0 %v10483_v19 }
0x15e8   :  { %2762 = vmatprep.subr.bf16.mxu0 %v10486_v62 }
0x15eb   :  { %2763 = vmatpush1.bf16.msra.mxu0 %v10489_v29 }
0x15ec   :  { %2764 = vmatprep.subr.bf16.mxu0 %v10492_v58 }
0x15ef   :  { %2765 = vmatpush1.bf16.msra.mxu0 %v10495_v38 }
0x15f0   :  { %2887 = vmatprep.subr.bf16.mxu0 %v10424_v8 }
0x16a5   :  { %v2647_v2 = vpop.f32.mrb[44].mxu0 }
0x16a6   :  { %v2656_v3 = vadd.f32 %v2647_v2, %v630_v55  ;;  %v2649_v6 = vpop.f32.mrb[45].mxu0  ;;  %v10639_v55 = vld [vmem:[#allocation12 + $0x28] sm:$0xff]  }
0x16a7   :  { %v2657_v42 = vadd.f32 %v2649_v6, %v632_v7  ;;  %v2651_v53 = vpop.f32.mrb[46].mxu0  ;;  %v10647_v7 = vld [vmem:[#allocation12 + $0x38] sm:$0xff]  }
0x16a8   :  { %v2658_v20 = vadd.f32 %v2651_v53, %v634_v43  ;;  %v2653_v9 = vpop.f32.mrb[47].mxu0  ;;  %v6668_v2 = vmul.f32 -1.442695, %v2656_v3 }
0x16a9   :  { %v6669_v63 = vmul.f32 -1.442695, %v2657_v42  ;;  %v2659_v44 = vadd.f32 %v2653_v9, %v636_v50  ;;  %v12160_v42 = vld [vmem:[#allocation53_spill] sm:$0xff] }
0x16aa   :  { %v6670_v59 = vmul.f32 -1.442695, %v2658_v20 }
0x16ab   :  { %8617 = vpow2.f32 %v6669_v63  ;;  %v6671_v39 = vmul.f32 -1.442695, %v2659_v44 }
0x16ad   :  { %8619 = vpow2.f32 %v6671_v39  ;;  %v12161_v39 = vld [vmem:[#allocation55_spill] sm:$0xff] }
0x16b5   :  { %v8618_v33 = vpop.eup %8617 }
0x16b6   :  { %v2673_v24 = vadd.f32 1.0, %v8618_v33 }
0x16b7   :  { %v8620_v18 = vpop.eup %8619 }
0x16b8   :  { %8621 = vrcp.f32 %v2673_v24  ;;  %v2675_v35 = vadd.f32 1.0, %v8620_v18 }
0x16ba   :  { %8623 = vrcp.f32 %v2675_v35 }
0x16bb   :  { %8625 = vpow2.f32 %v6668_v2 }
0x16bc   :  { %8627 = vpow2.f32 %v6670_v59 }
0x16c2   :  { %v8622_v5 = vpop.eup %8621 }
0x16c3   :  { %v2684_v17 = vmul.f32 %v8622_v5, %v10589_v0 }
0x16c4   :  { %v8624_v46 = vpop.eup %8623 }
0x16c5   :  { %v2685_v14 = vmul.f32 %v8624_v46, %v10591_v45  ;;  %v8626_v43 = vpop.eup %8625 }
0x16c6   :  { %v8628_v6 = vpop.eup %8627  ;;  %v2672_v47 = vadd.f32 1.0, %v8626_v43  ;;  %v12163_v43 = vld [vmem:[#allocation34_spill] sm:$0xff] }
0x16c7   :  { %v2686_v11 = vpack.c.bf16 %v2685_v14, %v2684_v17  ;;  %v2674_v44 = vadd.f32 1.0, %v8628_v6  ;;  %v642_v6 = vadd.f32 %v12163_v43, %v9896_v16 }
0x16c9   :  { %7454 = vmatmul.mubr.bf16.vlgmr.msra.gmra.mrb[96].mxu1 %v2686_v11 }
0x16ca   :  { %7458 = vmatpush3.bf16.msra.mxu1 %v10557_v31  ;;  %7473 = vmatprep.mubr.msk.bf16.mxu1 %vm9412_vm0, %v12149_v22 }
0x16cb   :  { %7459 = vmatprep.subr.bf16.mxu1 %v12149_v22 }
0x16ce   :  { %7460 = vmatpush3.bf16.msra.mxu1 %v10563_v25 }
0x16cf   :  { %7461 = vmatprep.subr.bf16.mxu1 %v12149_v22 }
0x16d2   :  { %7462 = vmatpush3.bf16.msra.mxu1 %v10567_v13 }
0x16d3   :  { %7463 = vmatprep.subr.bf16.mxu1 %v12149_v22 }
0x16d6   :  { %7464 = vmatpush3.bf16.msra.mxu1 %v10571_v23 }
0x16d7   :  { %7465 = vmatprep.subr.bf16.mxu1 %v12149_v22 }
0x16da   :  { %7466 = vmatpush3.bf16.msra.mxu1 %v10635_v15 }
0x16db   :  { %7467 = vmatprep.subr.bf16.mxu1 %v12149_v22 }
0x16de   :  { %7468 = vmatpush3.bf16.msra.mxu1 %v10639_v55 }
0x16df   :  { %7469 = vmatprep.subr.bf16.mxu1 %v12149_v22 }
0x16e2   :  { %7470 = vmatpush3.bf16.msra.mxu1 %v10643_v36 }
0x16e3   :  { %7471 = vmatprep.subr.bf16.mxu1 %v12149_v22 }
0x16e6   :  { %7472 = vmatpush3.bf16.msra.mxu1 %v10647_v7 }
0x16e7   :  { %7477 = vmatprep.subr.bf16.mxu1 %v12149_v22 }
0x179c   :  { %v2721_v50 = vpop.f32.mrb[96].mxu1 }
0x179d   :  { %v2728_v53 = vadd.f32 %v2721_v50, %v12160_v42  ;;  %v7455_v9 = vpop.f32.mrb[97].mxu1  ;;  %v12164_v50 = vld [vmem:[#allocation35_spill] sm:$0xff] }
0x179e   :  { %v2724_v63 = vpop.f32.mrb[98].mxu1  ;;  %v644_v42 = vadd.f32 %v12164_v50, %v9951_v32 }
0x179f   :  { %8629 = vtanh.f32 %v2728_v53  ;;  %v2729_v33 = vadd.f32 %v2724_v63, %v12161_v39  ;;  %v7456_v24 = vpop.f32.mrb[99].mxu1  ;;  %v12165_v63 = vld [vmem:[#allocation36_spill] sm:$0xff] }
0x17a0   :  { %8631 = vrcp.f32 %v2672_v47 }
0x17a1   :  { %8633 = vtanh.f32 %v2729_v33 }
0x17a2   :  { %8635 = vrcp.f32 %v2674_v44  ;;  %v646_v44 = vadd.f32 %v12165_v63, %v9896_v16 }
0x17a9   :  { %v8630_v3 = vpop.eup %8629 }
0x17aa   :  { %v8632_v20 = vpop.eup %8631  ;;  %v2732_v18 = vsub.f32 %v10589_v0, %v8630_v3  ;;  %v12162_v0 = vld [vmem:[#allocation33_spill] sm:$0xff] }
0x17ab   :  { %v8634_v35 = vpop.eup %8633 }
0x17ac   :  { %v2733_v5 = vsub.f32 %v10591_v45, %v8634_v35  ;;  %v2734_v46 = vmul.f32 %v8632_v20, %v2732_v18  ;;  %v8636_v17 = vpop.eup %8635  ;;  %v640_v45 = vadd.f32 %v12162_v0, %v9951_v32 }
0x17ae   :  { %v2735_v14 = vmul.f32 %v8636_v17, %v2733_v5  ;;  %v10655_v11 = vadd.f32 %v8630_v3, %v2734_v46 }
0x17b0   :  { %v10657_v2 = vadd.f32 %v8634_v35, %v2735_v14 }
0x17b2   :  { %v10661_v59 = vpack.c.bf16 %v10657_v2, %v10655_v11 }
0x17b4   :  { %2783 = vmatmul.mubr.bf16.vlgmr.msra.gmra.mrb[48].mxu0 %v10661_v59 }
0x17b5   :  { %2888 = vmatpush1.bf16.msra.mxu0 %v10396_v4  ;;  %2919 = vmatprep.mubr.bf16.mxu0 %v12150_v12 }
0x17b6   :  { %2889 = vmatprep.subr.bf16.mxu0 %v10400_v49 }
0x17b9   :  { %2890 = vmatpush1.bf16.msra.mxu0 %v10403_v48 }
0x17ba   :  { %2891 = vmatprep.subr.bf16.mxu0 %v10406_v54 }
0x17bd   :  { %2892 = vmatpush1.bf16.msra.mxu0 %v10409_v56 }
0x17be   :  { %2893 = vmatprep.subr.bf16.mxu0 %v10412_v57 }
0x17c1   :  { %2894 = vmatpush1.bf16.msra.mxu0 %v10471_v61 }
0x17c2   :  { %2895 = vmatprep.subr.bf16.mxu0 %v10474_v40 }
0x17c5   :  { %2896 = vmatpush1.bf16.msra.mxu0 %v10477_v27 }
0x17c6   :  { %2897 = vmatprep.subr.bf16.mxu0 %v10480_v28 }
0x17c9   :  { %2898 = vmatpush1.bf16.msra.mxu0 %v10483_v19 }
0x17ca   :  { %2899 = vmatprep.subr.bf16.mxu0 %v10486_v62 }
0x17cd   :  { %2900 = vmatpush1.bf16.msra.mxu0 %v10489_v29 }
0x17ce   :  { %2901 = vmatprep.subr.bf16.mxu0 %v10492_v58 }
0x17d1   :  { %2902 = vmatpush1.bf16.msra.mxu0 %v10495_v38 }
0x17d2   :  { %3024 = vmatprep.subr.bf16.mxu0 %v10424_v8 }
0x1887   :  { %v2784_v47 = vpop.f32.mrb[48].mxu0 }
0x1888   :  { %v2793_v53 = vadd.f32 %v2784_v47, %v640_v45  ;;  %v2786_v9 = vpop.f32.mrb[49].mxu0 }
0x1889   :  { %v2794_v39 = vadd.f32 %v2786_v9, %v642_v6  ;;  %v2788_v33 = vpop.f32.mrb[50].mxu0 }
0x188a   :  { %v2795_v24 = vadd.f32 %v2788_v33, %v644_v42  ;;  %v2790_v3 = vpop.f32.mrb[51].mxu0  ;;  %v6672_v50 = vmul.f32 -1.442695, %v2793_v53  ;;  %v12166_v33 = vld [vmem:[#allocation58_spill] sm:$0xff] }
0x188b   :  { %v6673_v20 = vmul.f32 -1.442695, %v2794_v39  ;;  %v2796_v18 = vadd.f32 %v2790_v3, %v646_v44 }
0x188c   :  { %v6674_v42 = vmul.f32 -1.442695, %v2795_v24 }
0x188d   :  { %8637 = vpow2.f32 %v6673_v20  ;;  %v6675_v35 = vmul.f32 -1.442695, %v2796_v18 }
0x188f   :  { %8639 = vpow2.f32 %v6675_v35 }
0x1897   :  { %v8638_v5 = vpop.eup %8637 }
0x1898   :  { %v2810_v46 = vadd.f32 1.0, %v8638_v5  ;;  %v12167_v5 = vld [vmem:[#allocation60_spill] sm:$0xff] }
0x1899   :  { %v8640_v17 = vpop.eup %8639 }
0x189a   :  { %8641 = vrcp.f32 %v2810_v46  ;;  %v2812_v14 = vadd.f32 1.0, %v8640_v17 }
0x189c   :  { %8643 = vrcp.f32 %v2812_v14 }
0x189d   :  { %8645 = vpow2.f32 %v6672_v50 }
0x189e   :  { %8647 = vpow2.f32 %v6674_v42 }
0x18a4   :  { %v8642_v0 = vpop.eup %8641 }
0x18a5   :  { %v2821_v43 = vmul.f32 %v8642_v0, %v10655_v11 }
0x18a6   :  { %v8644_v45 = vpop.eup %8643 }
0x18a7   :  { %v2822_v6 = vmul.f32 %v8644_v45, %v10657_v2  ;;  %v8646_v9 = vpop.eup %8645 }
0x18a8   :  { %v8648_v63 = vpop.eup %8647  ;;  %v2809_v44 = vadd.f32 1.0, %v8646_v9 }
0x18a9   :  { %v2823_v47 = vpack.c.bf16 %v2822_v6, %v2821_v43  ;;  %v2811_v35 = vadd.f32 1.0, %v8648_v63 }
0x18ab   :  { %7474 = vmatmul.mubr.bf16.vlgmr.msra.gmra.mrb[100].mxu1 %v2823_v47 }
0x18ac   :  { %7478 = vmatpush3.bf16.msra.mxu1 %v10557_v31  ;;  %7493 = vmatprep.mubr.msk.bf16.mxu1 %vm9412_vm0, %v12149_v22 }
0x18ad   :  { %7479 = vmatprep.subr.bf16.mxu1 %v12149_v22 }
0x18b0   :  { %7480 = vmatpush3.bf16.msra.mxu1 %v10563_v25 }
0x18b1   :  { %7481 = vmatprep.subr.bf16.mxu1 %v12149_v22 }
0x18b4   :  { %7482 = vmatpush3.bf16.msra.mxu1 %v10567_v13 }
0x18b5   :  { %7483 = vmatprep.subr.bf16.mxu1 %v12149_v22 }
0x18b8   :  { %7484 = vmatpush3.bf16.msra.mxu1 %v10571_v23 }
0x18b9   :  { %7485 = vmatprep.subr.bf16.mxu1 %v12149_v22 }
0x18bc   :  { %7486 = vmatpush3.bf16.msra.mxu1 %v10635_v15 }
0x18bd   :  { %7487 = vmatprep.subr.bf16.mxu1 %v12149_v22 }
0x18c0   :  { %7488 = vmatpush3.bf16.msra.mxu1 %v10639_v55 }
0x18c1   :  { %7489 = vmatprep.subr.bf16.mxu1 %v12149_v22 }
0x18c4   :  { %7490 = vmatpush3.bf16.msra.mxu1 %v10643_v36 }
0x18c5   :  { %7491 = vmatprep.subr.bf16.mxu1 %v12149_v22 }
0x18c8   :  { %7492 = vmatpush3.bf16.msra.mxu1 %v10647_v7 }
0x18c9   :  { %7497 = vmatprep.subr.bf16.mxu1 %v12149_v22 }
0x197e   :  { %v2858_v39 = vpop.f32.mrb[100].mxu1 }
0x197f   :  { %v2865_v3 = vadd.f32 %v2858_v39, %v12166_v33  ;;  %v7475_v20 = vpop.f32.mrb[101].mxu1 }
0x1980   :  { %v2861_v18 = vpop.f32.mrb[102].mxu1 }
0x1981   :  { %8649 = vtanh.f32 %v2865_v3  ;;  %v2866_v46 = vadd.f32 %v2861_v18, %v12167_v5  ;;  %v7476_v17 = vpop.f32.mrb[103].mxu1 }
0x1982   :  { %8651 = vrcp.f32 %v2809_v44  ;;  %v12171_v44 = vld [vmem:[#allocation40_spill] sm:$0xff] }
0x1983   :  { %8653 = vtanh.f32 %v2866_v46  ;;  %v656_v39 = vadd.f32 %v12171_v44, %v9896_v16 }
0x1984   :  { %8655 = vrcp.f32 %v2811_v35 }
0x198b   :  { %v8650_v53 = vpop.eup %8649 }
0x198c   :  { %v8652_v24 = vpop.eup %8651  ;;  %v2869_v14 = vsub.f32 %v10655_v11, %v8650_v53 }
0x198d   :  { %v8654_v0 = vpop.eup %8653 }
0x198e   :  { %v2870_v45 = vsub.f32 %v10657_v2, %v8654_v0  ;;  %v2871_v43 = vmul.f32 %v8652_v24, %v2869_v14  ;;  %v8656_v6 = vpop.eup %8655 }
0x1990   :  { %v2872_v47 = vmul.f32 %v8656_v6, %v2870_v45  ;;  %v10713_v50 = vadd.f32 %v8650_v53, %v2871_v43 }
0x1992   :  { %v10715_v42 = vadd.f32 %v8654_v0, %v2872_v47 }
0x1994   :  { %v10719_v9 = vpack.c.bf16 %v10715_v42, %v10713_v50 }
0x1996   :  { %2920 = vmatmul.mubr.bf16.vlgmr.msra.gmra.mrb[52].mxu0 %v10719_v9 }
0x1997   :  { %3025 = vmatpush1.bf16.msra.mxu0 %v10396_v4  ;;  %3056 = vmatprep.mubr.bf16.mxu0 %v12150_v12  ;;  %v12168_v4 = vld [vmem:[#allocation37_spill] sm:$0xff] }
0x1998   :  { %3026 = vmatprep.subr.bf16.mxu0 %v10400_v49  ;;  %v650_v49 = vadd.f32 %v12168_v4, %v9951_v32 }
0x199b   :  { %3027 = vmatpush1.bf16.msra.mxu0 %v10403_v48  ;;  %v12169_v48 = vld [vmem:[#allocation38_spill] sm:$0xff] }
0x199c   :  { %3028 = vmatprep.subr.bf16.mxu0 %v10406_v54  ;;  %v652_v54 = vadd.f32 %v12169_v48, %v9896_v16 }
0x199f   :  { %3029 = vmatpush1.bf16.msra.mxu0 %v10409_v56 }
0x19a0   :  { %3030 = vmatprep.subr.bf16.mxu0 %v10412_v57  ;;  %v12170_v57 = vld [vmem:[#allocation39_spill] sm:$0xff] }
0x19a1   :  { %v654_v11 = vadd.f32 %v12170_v57, %v9951_v32  ;;  %v12172_v57 = vld [vmem:[#allocation57_spill] sm:$0xff] }
0x19a3   :  { %3031 = vmatpush1.bf16.msra.mxu0 %v10471_v61 }
0x19a4   :  { %3032 = vmatprep.subr.bf16.mxu0 %v10474_v40 }
0x19a7   :  { %3033 = vmatpush1.bf16.msra.mxu0 %v10477_v27 }
0x19a8   :  { %3034 = vmatprep.subr.bf16.mxu0 %v10480_v28 }
0x19ab   :  { %3035 = vmatpush1.bf16.msra.mxu0 %v10483_v19 }
0x19ac   :  { %3036 = vmatprep.subr.bf16.mxu0 %v10486_v62 }
0x19af   :  { %3037 = vmatpush1.bf16.msra.mxu0 %v10489_v29 }
0x19b0   :  { %3038 = vmatprep.subr.bf16.mxu0 %v10492_v58 }
0x19b3   :  { %3039 = vmatpush1.bf16.msra.mxu0 %v10495_v38 }
0x19b4   :  { %3161 = vmatprep.subr.bf16.mxu0 %v10424_v8 }
0x1a69   :  { %v2921_v56 = vpop.f32.mrb[52].mxu0 }
0x1a6a   :  { %v2930_v2 = vadd.f32 %v2921_v56, %v650_v49  ;;  %v2923_v63 = vpop.f32.mrb[53].mxu0 }
0x1a6b   :  { %v2931_v33 = vadd.f32 %v2923_v63, %v652_v54  ;;  %v2925_v3 = vpop.f32.mrb[54].mxu0 }
0x1a6c   :  { %v2932_v20 = vadd.f32 %v2925_v3, %v654_v11  ;;  %v2927_v18 = vpop.f32.mrb[55].mxu0  ;;  %v6676_v47 = vmul.f32 -1.442695, %v2930_v2 }
0x1a6d   :  { %v6677_v8 = vmul.f32 -1.442695, %v2931_v33  ;;  %v2933_v35 = vadd.f32 %v2927_v18, %v656_v39  ;;  %v12173_v33 = vld [vmem:[#allocation59_spill] sm:$0xff] }
0x1a6e   :  { %v6678_v4 = vmul.f32 -1.442695, %v2932_v20 }
0x1a6f   :  { %8657 = vpow2.f32 %v6677_v8  ;;  %v6679_v5 = vmul.f32 -1.442695, %v2933_v35 }
0x1a71   :  { %8659 = vpow2.f32 %v6679_v5 }
0x1a79   :  { %v8658_v46 = vpop.eup %8657 }
0x1a7a   :  { %v2947_v17 = vadd.f32 1.0, %v8658_v46 }
0x1a7b   :  { %v8660_v53 = vpop.eup %8659 }
0x1a7c   :  { %8661 = vrcp.f32 %v2947_v17  ;;  %v2949_v24 = vadd.f32 1.0, %v8660_v53 }
0x1a7e   :  { %8663 = vrcp.f32 %v2949_v24 }
0x1a7f   :  { %8665 = vpow2.f32 %v6676_v47  ;;  %v9090_v47 = vld [vmem:[#allocation10 + $0x34] ss:$8 sps:$4 sm:$0xff]  }
0x1a80   :  { %8667 = vpow2.f32 %v6678_v4  ;;  %v12174_v4 = vld [vmem:[#allocation41_spill] sm:$0xff] }
0x1a86   :  { %v8662_v14 = vpop.eup %8661 }
0x1a87   :  { %v2958_v45 = vmul.f32 %v8662_v14, %v10713_v50 }
0x1a88   :  { %v8664_v0 = vpop.eup %8663 }
0x1a89   :  { %v2959_v43 = vmul.f32 %v8664_v0, %v10715_v42  ;;  %v8666_v49 = vpop.eup %8665 }
0x1a8a   :  { %v8668_v48 = vpop.eup %8667  ;;  %v2946_v54 = vadd.f32 1.0, %v8666_v49  ;;  %v660_v49 = vadd.f32 %v12174_v4, %v9951_v32 }
0x1a8b   :  { %v2960_v6 = vpack.c.bf16 %v2959_v43, %v2958_v45  ;;  %v2948_v39 = vadd.f32 1.0, %v8668_v48  ;;  %v9085_v45 = vld [vmem:[#allocation10] ss:$8 sps:$4 sm:$0xff]   ;;  %v9088_v43 = vld [vmem:[#allocation10 + $0x24] ss:$8 sps:$4 sm:$0xff]  }
0x1a8d   :  { %7494 = vmatmul.mubr.bf16.vlgmr.msra.gmra.mrb[104].mxu1 %v2960_v6  ;;  %v9089_v6 = vld [vmem:[#allocation10 + $0x20] ss:$8 sps:$4 sm:$0xff]  }
0x1a8e   :  { %7498 = vmatpush3.bf16.msra.mxu1 %v10557_v31  ;;  %7513 = vmatprep.mubr.msk.bf16.mxu1 %vm9412_vm0, %v12149_v22 }
0x1a8f   :  { %7499 = vmatprep.subr.bf16.mxu1 %v12149_v22 }
0x1a92   :  { %7500 = vmatpush3.bf16.msra.mxu1 %v10563_v25 }
0x1a93   :  { %7501 = vmatprep.subr.bf16.mxu1 %v12149_v22 }
0x1a96   :  { %7502 = vmatpush3.bf16.msra.mxu1 %v10567_v13 }
0x1a97   :  { %7503 = vmatprep.subr.bf16.mxu1 %v12149_v22 }
0x1a9a   :  { %7504 = vmatpush3.bf16.msra.mxu1 %v10571_v23 }
0x1a9b   :  { %7505 = vmatprep.subr.bf16.mxu1 %v12149_v22 }
0x1a9e   :  { %7506 = vmatpush3.bf16.msra.mxu1 %v10635_v15 }
0x1a9f   :  { %7507 = vmatprep.subr.bf16.mxu1 %v12149_v22 }
0x1aa2   :  { %7508 = vmatpush3.bf16.msra.mxu1 %v10639_v55 }
0x1aa3   :  { %7509 = vmatprep.subr.bf16.mxu1 %v12149_v22 }
0x1aa6   :  { %7510 = vmatpush3.bf16.msra.mxu1 %v10643_v36 }
0x1aa7   :  { %7511 = vmatprep.subr.bf16.mxu1 %v12149_v22 }
0x1aaa   :  { %7512 = vmatpush3.bf16.msra.mxu1 %v10647_v7 }
0x1aab   :  { %7517 = vmatprep.subr.bf16.mxu1 %v12149_v22 }
0x1b60   :  { %v2995_v56 = vpop.f32.mrb[104].mxu1 }
0x1b61   :  { %v3002_v11 = vadd.f32 %v2995_v56, %v12172_v57  ;;  %v7495_v63 = vpop.f32.mrb[105].mxu1 }
0x1b62   :  { %v2998_v44 = vpop.f32.mrb[106].mxu1 }
0x1b63   :  { %8669 = vtanh.f32 %v3002_v11  ;;  %v3003_v3 = vadd.f32 %v2998_v44, %v12173_v33  ;;  %v7496_v18 = vpop.f32.mrb[107].mxu1 }
0x1b64   :  { %8671 = vrcp.f32 %v2946_v54 }
0x1b65   :  { %8673 = vtanh.f32 %v3003_v3 }
0x1b66   :  { %8675 = vrcp.f32 %v2948_v39 }
0x1b6d   :  { %v8670_v2 = vpop.eup %8669 }
0x1b6e   :  { %v8672_v20 = vpop.eup %8671  ;;  %v3006_v8 = vsub.f32 %v10713_v50, %v8670_v2  ;;  %v9086_v50 = vld [vmem:[#allocation10 + $0x14] ss:$8 sps:$4 sm:$0xff]  }
0x1b6f   :  { %v8674_v35 = vpop.eup %8673 }
0x1b70   :  { %v3007_v5 = vsub.f32 %v10715_v42, %v8674_v35  ;;  %v3008_v46 = vmul.f32 %v8672_v20, %v3006_v8  ;;  %v8676_v17 = vpop.eup %8675  ;;  %v9087_v42 = vld [vmem:[#allocation10 + $0x10] ss:$8 sps:$4 sm:$0xff]  }
0x1b72   :  { %v3009_v53 = vmul.f32 %v8676_v17, %v3007_v5  ;;  %v10771_v24 = vadd.f32 %v8670_v2, %v3008_v46 }
0x1b74   :  { %v10773_v14 = vadd.f32 %v8674_v35, %v3009_v53  ;;  %v12178_v53 = vld [vmem:[#allocation62_spill] sm:$0xff] }
0x1b76   :  { %v10777_v0 = vpack.c.bf16 %v10773_v14, %v10771_v24 }
0x1b78   :  { %3057 = vmatmul.mubr.bf16.vlgmr.msra.gmra.mrb[56].mxu0 %v10777_v0 }
0x1b79   :  { %3162 = vmatpush1.bf16.msra.mxu0 %v9085_v45  ;;  %3193 = vmatprep.mubr.bf16.mxu0 %v12150_v12 }
0x1b7a   :  { %3163 = vmatprep.subr.bf16.mxu0 %v9086_v50 }
0x1b7d   :  { %3164 = vmatpush1.bf16.msra.mxu0 %v9087_v42 }
0x1b7e   :  { %3165 = vmatprep.subr.bf16.mxu0 %v9088_v43 }
0x1b81   :  { %3166 = vmatpush1.bf16.msra.mxu0 %v9089_v6 }
0x1b82   :  { %3167 = vmatprep.subr.bf16.mxu0 %v9090_v47 }
0x1b85   :  { %3168 = vmatpush1.bf16.msra.mxu0 %v10471_v61  ;;  %v12175_v61 = vld [vmem:[#allocation42_spill] sm:$0xff] }
0x1b86   :  { %3169 = vmatprep.subr.bf16.mxu0 %v10474_v40  ;;  %v662_v40 = vadd.f32 %v12175_v61, %v9896_v16 }
0x1b89   :  { %3170 = vmatpush1.bf16.msra.mxu0 %v10477_v27  ;;  %v12176_v27 = vld [vmem:[#allocation43_spill] sm:$0xff] }
0x1b8a   :  { %3171 = vmatprep.subr.bf16.mxu0 %v10480_v28  ;;  %v664_v28 = vadd.f32 %v12176_v27, %v9951_v32 }
0x1b8d   :  { %3172 = vmatpush1.bf16.msra.mxu0 %v10483_v19 }
0x1b8e   :  { %3173 = vmatprep.subr.bf16.mxu0 %v10486_v62  ;;  %v12177_v62 = vld [vmem:[#allocation44_spill] sm:$0xff] }
0x1b8f   :  { %v666_v56 = vadd.f32 %v12177_v62, %v9896_v16  ;;  %v8326_v62 = vld [vmem:[#allocation13 + $0x20] ss:$12 sps:$4 sm:$0xff]  }
0x1b91   :  { %3174 = vmatpush1.bf16.msra.mxu0 %v10489_v29 }
0x1b92   :  { %3175 = vmatprep.subr.bf16.mxu0 %v10492_v58 }
0x1b95   :  { %3176 = vmatpush1.bf16.msra.mxu0 %v10495_v38 }
0x1c4b   :  { %v3058_v48 = vpop.f32.mrb[56].mxu0 }
0x1c4c   :  { %v3067_v54 = vadd.f32 %v3058_v48, %v660_v49  ;;  %v3060_v19 = vpop.f32.mrb[57].mxu0 }
0x1c4d   :  { %v3068_v29 = vadd.f32 %v3060_v19, %v662_v40  ;;  %v3062_v57 = vpop.f32.mrb[58].mxu0 }
0x1c4e   :  { %v3069_v58 = vadd.f32 %v3062_v57, %v664_v28  ;;  %v3064_v11 = vpop.f32.mrb[59].mxu0  ;;  %v8331_v57 = vld [vmem:[#allocation13 + $0x98] ss:$12 sps:$4 sm:$0xff]  }
0x1c4f   :  { %v6681_v38 = vmul.f32 -1.442695, %v3068_v29  ;;  %v3070_v63 = vadd.f32 %v3064_v11, %v666_v56  ;;  %v8329_v56 = vld [vmem:[#allocation13 + $0x68] ss:$12 sps:$4 sm:$0xff]   ;;  %v8330_v29 = vld [vmem:[#allocation13 + $0x80] ss:$12 sps:$4 sm:$0xff]  }
0x1c50   :  { %v8335_v11 = vld [vmem:[#allocation13 + $0x4] ss:$12 sps:$4 sm:$0xff]  }
0x1c51   :  { %8677 = vpow2.f32 %v6681_v38  ;;  %v6683_v44 = vmul.f32 -1.442695, %v3070_v63  ;;  %v12180_v38 = vld [vmem:[#allocation46_spill] sm:$0xff] }
0x1c52   :  { %v670_v63 = vadd.f32 %v12180_v38, %v9951_v32  ;;  %v8345_v38 = vld [vmem:[#allocation13 + $0x60] ss:$12 sps:$4 sm:$0xff]  }
0x1c53   :  { %8679 = vpow2.f32 %v6683_v44  ;;  %v12181_v44 = vld [vmem:[#allocation47_spill] sm:$0xff] }
0x1c5b   :  { %v8678_v39 = vpop.eup %8677 }
0x1c5c   :  { %v3084_v33 = vadd.f32 1.0, %v8678_v39  ;;  %v672_v39 = vadd.f32 %v12181_v44, %v9896_v16  ;;  %v8350_v44 = vld [vmem:[#allocation13 + $0x7c] ss:$12 sps:$4 sm:$0xff]  }
0x1c5d   :  { %v8680_v3 = vpop.eup %8679 }
0x1c5e   :  { %8681 = vrcp.f32 %v3084_v33  ;;  %v3086_v18 = vadd.f32 1.0, %v8680_v3  ;;  %v12182_v3 = vld [vmem:[#allocation48_spill] sm:$0xff] }
0x1c60   :  { %8683 = vrcp.f32 %v3086_v18  ;;  %v674_v18 = vadd.f32 %v12182_v3, %v9951_v32  ;;  %v8353_v3 = vld [vmem:[#allocation13 + $0x94] ss:$12 sps:$4 sm:$0xff]  }
0x1c68   :  { %v8682_v2 = vpop.eup %8681 }
0x1c69   :  { %v3095_v8 = vmul.f32 %v8682_v2, %v10771_v24 }
0x1c6a   :  { %v8684_v20 = vpop.eup %8683 }
0x1c6b   :  { %v3096_v35 = vmul.f32 %v8684_v20, %v10773_v14 }
0x1c6d   :  { %v3097_v5 = vpack.c.bf16 %v3096_v35, %v3095_v8  ;;  %v12183_v8 = vld [vmem:[#allocation49_spill] sm:$0xff] }
0x1c6e   :  { %v676_v35 = vadd.f32 %v12183_v8, %v9896_v16  ;;  %v8351_v8 = vld [vmem:[#allocation13 + $0x90] ss:$12 sps:$4 sm:$0xff]  }
0x1c6f   :  { %7514 = vmatmul.mubr.bf16.vlgmr.msra.gmra.mrb[108].mxu1 %v3097_v5 }
0x1c70   :  { %7518 = vmatpush3.bf16.msra.mxu1 %v10557_v31  ;;  %7533 = vmatprep.mubr.msk.bf16.mxu1 %vm9412_vm0, %v12149_v22  ;;  %v8325_v31 = vld [vmem:[#allocation13 + $0x8] ss:$12 sps:$4 sm:$0xff]  }
0x1c71   :  { %7519 = vmatprep.subr.bf16.mxu1 %v12149_v22  ;;  %7537 = vmatprep.subr.bf16.mxu0 %v8325_v31 }
0x1c74   :  { %7520 = vmatpush3.bf16.msra.mxu1 %v10563_v25  ;;  %v6680_v25 = vmul.f32 -1.442695, %v3067_v54 }
0x1c75   :  { %7521 = vmatprep.subr.bf16.mxu1 %v12149_v22 }
0x1c76   :  { %8685 = vpow2.f32 %v6680_v25 }
0x1c78   :  { %7522 = vmatpush3.bf16.msra.mxu1 %v10567_v13  ;;  %v6682_v13 = vmul.f32 -1.442695, %v3069_v58  ;;  %v8332_v58 = vld [vmem:[#allocation13 + $0xb0] ss:$12 sps:$4 sm:$0xff]  }
0x1c79   :  { %7523 = vmatprep.subr.bf16.mxu1 %v12149_v22 }
0x1c7a   :  { %8687 = vpow2.f32 %v6682_v13 }
0x1c7c   :  { %7524 = vmatpush3.bf16.msra.mxu1 %v10571_v23 }
0x1c7d   :  { %7525 = vmatprep.subr.bf16.mxu1 %v12149_v22 }
0x1c80   :  { %7526 = vmatpush3.bf16.msra.mxu1 %v10635_v15  ;;  %v8686_v23 = vpop.eup %8685 }
0x1c81   :  { %7527 = vmatprep.subr.bf16.mxu1 %v12149_v22  ;;  %v3083_v46 = vadd.f32 1.0, %v8686_v23 }
0x1c84   :  { %7528 = vmatpush3.bf16.msra.mxu1 %v10639_v55  ;;  %v8688_v15 = vpop.eup %8687 }
0x1c85   :  { %7529 = vmatprep.subr.bf16.mxu1 %v12149_v22  ;;  %v3085_v42 = vadd.f32 1.0, %v8688_v15 }
0x1c88   :  { %7530 = vmatpush3.bf16.msra.mxu1 %v10643_v36  ;;  %v12179_v36 = vld [vmem:[#allocation64_spill] sm:$0xff] }
0x1c89   :  { %7531 = vmatprep.subr.bf16.mxu1 %v12149_v22 }
0x1c8c   :  { %7532 = vmatpush3.bf16.msra.mxu1 %v10647_v7 }
0x1c8d   :  { %3484 = vmatprep.subr.bf16.mxu1 %v8335_v11 }
0x1d42   :  { %v3132_v17 = vpop.f32.mrb[108].mxu1 }
0x1d43   :  { %v3139_v55 = vadd.f32 %v3132_v17, %v12178_v53  ;;  %v7515_v45 = vpop.f32.mrb[109].mxu1 }
0x1d44   :  { %v3135_v50 = vpop.f32.mrb[110].mxu1 }
0x1d45   :  { %8689 = vtanh.f32 %v3139_v55  ;;  %v3140_v43 = vadd.f32 %v3135_v50, %v12179_v36  ;;  %v7516_v6 = vpop.f32.mrb[111].mxu1 }
0x1d46   :  { %8691 = vrcp.f32 %v3083_v46  ;;  %v8333_v6 = vld [vmem:[#allocation13] ss:$12 sps:$4 sm:$0xff]  }
0x1d47   :  { %8693 = vtanh.f32 %v3140_v43 }
0x1d48   :  { %8695 = vrcp.f32 %v3085_v42 }
0x1d4f   :  { %v8690_v7 = vpop.eup %8689 }
0x1d50   :  { %v8692_v47 = vpop.eup %8691  ;;  %v3143_v4 = vsub.f32 %v10771_v24, %v8690_v7  ;;  %v8327_v24 = vld [vmem:[#allocation13 + $0x38] ss:$12 sps:$4 sm:$0xff]  }
0x1d51   :  { %v8694_v49 = vpop.eup %8693 }
0x1d52   :  { %v3144_v61 = vsub.f32 %v10773_v14, %v8694_v49  ;;  %v3145_v40 = vmul.f32 %v8692_v47, %v3143_v4  ;;  %v8696_v48 = vpop.eup %8695  ;;  %v8328_v14 = vld [vmem:[#allocation13 + $0x50] ss:$12 sps:$4 sm:$0xff]  }
0x1d53   :  { %v8338_v4 = vld [vmem:[#allocation13 + $0x1c] ss:$12 sps:$4 sm:$0xff]  }
0x1d54   :  { %v3146_v27 = vmul.f32 %v8696_v48, %v3144_v61  ;;  %v10821_v28 = vadd.f32 %v8690_v7, %v3145_v40  ;;  %v8336_v61 = vld [vmem:[#allocation13 + $0x18] ss:$12 sps:$4 sm:$0xff]   ;;  %v8341_v40 = vld [vmem:[#allocation13 + $0x34] ss:$12 sps:$4 sm:$0xff]  }
0x1d56   :  { %v10823_v54 = vadd.f32 %v8694_v49, %v3146_v27 }
0x1d58   :  { %v10827_v19 = vpack.c.bf16 %v10823_v54, %v10821_v28 }
0x1d5a   :  { %3194 = vmatmul.mubr.bf16.vlgmr.msra.gmra.mrb[60].mxu0 %v10827_v19 }
0x1d5b   :  { %7538 = vmatpush3.bf16.msra.mxu0 %v8325_v31  ;;  %7553 = vmatprep.mubr.bf16.mxu0 %v9967_v30 }
0x1d5c   :  { %7539 = vmatprep.subr.bf16.mxu0 %v8326_v62 }
0x1d5f   :  { %7540 = vmatpush3.bf16.msra.mxu0 %v8326_v62  ;;  %v8339_v62 = vld [vmem:[#allocation13 + $0x30] ss:$12 sps:$4 sm:$0xff]  }
0x1d60   :  { %7541 = vmatprep.subr.bf16.mxu0 %v8327_v24 }
0x1d63   :  { %7542 = vmatpush3.bf16.msra.mxu0 %v8327_v24 }
0x1d64   :  { %7543 = vmatprep.subr.bf16.mxu0 %v8328_v14 }
0x1d67   :  { %7544 = vmatpush3.bf16.msra.mxu0 %v8328_v14  ;;  %v8344_v14 = vld [vmem:[#allocation13 + $0x4c] ss:$12 sps:$4 sm:$0xff]  }
0x1d68   :  { %7545 = vmatprep.subr.bf16.mxu0 %v8329_v56 }
0x1d6b   :  { %7546 = vmatpush3.bf16.msra.mxu0 %v8329_v56 }
0x1d6c   :  { %7547 = vmatprep.subr.bf16.mxu0 %v8330_v29 }
0x1d6f   :  { %7548 = vmatpush3.bf16.msra.mxu0 %v8330_v29  ;;  %v8342_v29 = vld [vmem:[#allocation13 + $0x48] ss:$12 sps:$4 sm:$0xff]  }
0x1d70   :  { %7549 = vmatprep.subr.bf16.mxu0 %v8331_v57 }
0x1d73   :  { %7550 = vmatpush3.bf16.msra.mxu0 %v8331_v57  ;;  %v8347_v57 = vld [vmem:[#allocation13 + $0x64] ss:$12 sps:$4 sm:$0xff]  }
0x1d74   :  { %7551 = vmatprep.subr.bf16.mxu0 %v8332_v58 }
0x1d77   :  { %7552 = vmatpush3.bf16.msra.mxu0 %v8332_v58 }
0x1d78   :  { %7585 = vmatprep.subr.bf16.mxu0 %v12149_v22 }
0x1d7a   :  { %7554 = vmatmul.mubr.bf16.vlgmr.msra.gmra.mrb[64].mxu0 %v10021_v52 }
0x1d7b   :  { %7557 = vmatprep.mubr.bf16.mxu0 %v10089_v37 }
0x1d82   :  { %7558 = vmatmul.mubr.bf16.gmra.mrb[68].mxu0 %v10161_v26 }
0x1d83   :  { %7561 = vmatprep.mubr.bf16.mxu0 %v10223_v1 }
0x1d8a   :  { %7562 = vmatmul.mubr.bf16.gmra.mrb[72].mxu0 %v10285_v60 }
0x1d8b   :  { %7565 = vmatprep.mubr.bf16.mxu0 %v10339_v41 }
0x1d92   :  { %7566 = vmatmul.mubr.bf16.gmra.mrb[76].mxu0 %v10393_v51 }
0x1d93   :  { %7569 = vmatprep.mubr.bf16.mxu0 %v10461_v21 }
0x1d9a   :  { %7570 = vmatmul.mubr.bf16.gmra.mrb[80].mxu0 %v10533_v10 }
0x1d9b   :  { %7573 = vmatprep.mubr.bf16.mxu0 %v10595_v34 }
0x1da2   :  { %7574 = vmatmul.mubr.bf16.gmra.mrb[84].mxu0 %v10661_v59 }
0x1da3   :  { %7577 = vmatprep.mubr.bf16.mxu0 %v10719_v9 }
0x1daa   :  { %7578 = vmatmul.mubr.bf16.gmra.mrb[88].mxu0 %v10777_v0 }
0x1dab   :  { %7581 = vmatprep.mubr.bf16.mxu0 %v10827_v19 }
0x1e2d   :  { %v3195_v33 = vpop.f32.mrb[60].mxu0 }
0x1e2e   :  { %v10852_v2 = vadd.f32 %v3195_v33, %v670_v63  ;;  %v3197_v20 = vpop.f32.mrb[61].mxu0  ;;  %v8348_v33 = vld [vmem:[#allocation13 + $0x78] ss:$12 sps:$4 sm:$0xff]  }
0x1e2f   :  { %v3205_v5 = vadd.f32 %v3197_v20, %v672_v39  ;;  %v3199_v31 = vpop.f32.mrb[62].mxu0 }
0x1e30   :  { %v10856_v25 = vadd.f32 %v3199_v31, %v674_v18  ;;  %v3201_v13 = vpop.f32.mrb[63].mxu0 }
0x1e31   :  { %v6685_v23 = vmul.f32 -1.442695, %v3205_v5  ;;  %v3207_v15 = vadd.f32 %v3201_v13, %v676_v35  ;;  %v8356_v5 = vld [vmem:[#allocation13 + $0xac] ss:$12 sps:$4 sm:$0xff]   ;;  %v8354_v13 = vld [vmem:[#allocation13 + $0xa8] ss:$12 sps:$4 sm:$0xff]  }
0x1e33   :  { %8697 = vpow2.f32 %v6685_v23  ;;  %v6687_v46 = vmul.f32 -1.442695, %v3207_v15  ;;  %v10893_v23 = vld [vmem:[#allocation15 + $0x4] ss:$8 sps:$4 sm:$0xff]  }
0x1e35   :  { %8699 = vpow2.f32 %v6687_v46 }
0x1e3d   :  { %v8698_v17 = vpop.eup %8697 }
0x1e3e   :  { %v3221_v53 = vadd.f32 1.0, %v8698_v17  ;;  %v10899_v17 = vld [vmem:[#allocation15] ss:$8 sps:$4 sm:$0xff]  }
0x1e3f   :  { %v8700_v55 = vpop.eup %8699 }
0x1e40   :  { %8701 = vrcp.f32 %v3221_v53  ;;  %v3223_v32 = vadd.f32 1.0, %v8700_v55  ;;  %v10904_v55 = vld [vmem:[#allocation15 + $0x14] ss:$8 sps:$4 sm:$0xff]  }
0x1e42   :  { %8703 = vrcp.f32 %v3223_v32 }
0x1e4a   :  { %v8702_v45 = vpop.eup %8701 }
0x1e4b   :  { %v3232_v16 = vmul.f32 %v8702_v45, %v10821_v28  ;;  %v10911_v45 = vld [vmem:[#allocation15 + $0x10] ss:$8 sps:$4 sm:$0xff]  }
0x1e4c   :  { %v8704_v50 = vpop.eup %8703 }
0x1e4d   :  { %v10858_v42 = vpop.f32.mrb[64].mxu0  ;;  %v3233_v36 = vmul.f32 %v8704_v50, %v10823_v54  ;;  %v10914_v50 = vld [vmem:[#allocation15 + $0x24] ss:$8 sps:$4 sm:$0xff]  }
0x1e4e   :  { %v10862_v43 = vpop.f32.mrb[65].mxu0 }
0x1e4f   :  { %v10864_v7 = vpop.f32.mrb[66].mxu0  ;;  %v3234_v47 = vpack.c.bf16 %v3233_v36, %v3232_v16 }
0x1e50   :  { %v10866_v49 = vpop.f32.mrb[67].mxu0 }
0x1e51   :  { %7534 = vmatmul.mubr.bf16.vlgmr.msra.gmra.mrb[112].mxu1 %v3234_v47 }
0x1e52   :  { %3485 = vmatpush1.bf16.msra.mxu1 %v8333_v6  ;;  %3516 = vmatprep.mubr.bf16.mxu1 %v12150_v12  ;;  %v10921_v6 = vld [vmem:[#allocation15 + $0x20] ss:$8 sps:$4 sm:$0xff]  }
0x1e53   :  { %3486 = vmatprep.subr.bf16.mxu1 %v8338_v4 }
0x1e55   :  { %v10869_v48 = vpop.f32.mrb[68].mxu0 }
0x1e56   :  { %3487 = vmatpush1.bf16.msra.mxu1 %v8336_v61  ;;  %v10871_v27 = vpop.f32.mrb[69].mxu0  ;;  %v10933_v61 = vld [vmem:[#allocation15 + $0x30] ss:$8 sps:$4 sm:$0xff]  }
0x1e57   :  { %v10873_v24 = vpop.f32.mrb[70].mxu0  ;;  %3488 = vmatprep.subr.bf16.mxu1 %v8341_v40  ;;  %v10936_v40 = vld [vmem:[#allocation15 + $0x44] ss:$8 sps:$4 sm:$0xff]  }
0x1e58   :  { %v10875_v56 = vpop.f32.mrb[71].mxu0 }
0x1e5a   :  { %3489 = vmatpush1.bf16.msra.mxu1 %v8339_v62 }
0x1e5b   :  { %3490 = vmatprep.subr.bf16.mxu1 %v8344_v14 }
0x1e5d   :  { %v10877_v58 = vpop.f32.mrb[72].mxu0 }
0x1e5e   :  { %3491 = vmatpush1.bf16.msra.mxu1 %v8342_v29  ;;  %v10879_v11 = vpop.f32.mrb[73].mxu0  ;;  %v10943_v29 = vld [vmem:[#allocation15 + $0x40] ss:$8 sps:$4 sm:$0xff]  }
0x1e5f   :  { %v10881_v63 = vpop.f32.mrb[74].mxu0  ;;  %3492 = vmatprep.subr.bf16.mxu1 %v8347_v57 }
0x1e60   :  { %v10883_v39 = vpop.f32.mrb[75].mxu0 }
0x1e62   :  { %3493 = vmatpush1.bf16.msra.mxu1 %v8345_v38 }
0x1e63   :  { %3494 = vmatprep.subr.bf16.mxu1 %v8350_v44  ;;  %v10955_v44 = vld [vmem:[#allocation15 + $0x50] ss:$8 sps:$4 sm:$0xff]  }
0x1e65   :  { %v10885_v18 = vpop.f32.mrb[76].mxu0 }
0x1e66   :  { %3495 = vmatpush1.bf16.msra.mxu1 %v8348_v33  ;;  %v10887_v20 = vpop.f32.mrb[77].mxu0  ;;  %v10969_v33 = vld [vmem:[#allocation15 + $0x60] ss:$8 sps:$4 sm:$0xff]  }
0x1e67   :  { %v10889_v35 = vpop.f32.mrb[78].mxu0  ;;  %3496 = vmatprep.subr.bf16.mxu1 %v8353_v3 }
0x1e68   :  { %v10891_v31 = vpop.f32.mrb[79].mxu0 }
0x1e6a   :  { %3497 = vmatpush1.bf16.msra.mxu1 %v8351_v8  ;;  %v12196_v8 = vld [vmem:[#allocation61_spill] sm:$0xff] }
0x1e6b   :  { %3498 = vmatprep.subr.bf16.mxu1 %v8356_v5 }
0x1e6d   :  { %v10895_v15 = vpop.f32.mrb[80].mxu0 }
0x1e6e   :  { %12184 = vst [vmem:[#allocation52_spill] sm:$0xff] %v10895_v15  ;;  %3499 = vmatpush1.bf16.msra.mxu1 %v8354_v13  ;;  %v10897_v46 = vpop.f32.mrb[81].mxu0 }
0x1e6f   :  { %12185 = vst [vmem:[#allocation50_spill] sm:$0xff] %v10897_v46  ;;  %v10901_v53 = vpop.f32.mrb[82].mxu0  ;;  %4056 = vmatprep.subr.bf16.mxu1 %v10893_v23 }
0x1e70   :  { %12186 = vst [vmem:[#allocation51_spill] sm:$0xff] %v10901_v53  ;;  %v10906_v32 = vpop.f32.mrb[83].mxu0 }
0x1e71   :  { %12187 = vst [vmem:[#allocation54_spill] sm:$0xff] %v10906_v32  ;;  %3517 = vmatmul.mubr.bf16.vlgmr.msra.gmra.mrb[116].mxu1 %v9967_v30  ;;  %v10926_v30 = vld [vmem:[#allocation15 + $0x34] ss:$8 sps:$4 sm:$0xff]  }
0x1e72   :  { %3526 = vmatprep.mubr.bf16.mxu1 %v12150_v12  ;;  %4057 = vmatpush1.bf16.msra.mxu1 %v10899_v17 }
0x1e73   :  { %4058 = vmatprep.subr.bf16.mxu1 %v10904_v55 }
0x1e75   :  { %v10916_v16 = vpop.f32.mrb[84].mxu0 }
0x1e76   :  { %12188 = vst [vmem:[#allocation56_spill] sm:$0xff] %v10916_v16  ;;  %v10918_v36 = vpop.f32.mrb[85].mxu0  ;;  %4059 = vmatpush1.bf16.msra.mxu1 %v10911_v45 }
0x1e77   :  { %12189 = vst [vmem:[#allocation29_spill] sm:$0xff] %v10918_v36  ;;  %v10923_v47 = vpop.f32.mrb[86].mxu0  ;;  %4060 = vmatprep.subr.bf16.mxu1 %v10914_v50 }
0x1e78   :  { %12190 = vst [vmem:[#allocation30_spill] sm:$0xff] %v10923_v47  ;;  %v10928_v4 = vpop.f32.mrb[87].mxu0 }
0x1e79   :  { %12191 = vst [vmem:[#allocation31_spill] sm:$0xff] %v10928_v4  ;;  %3527 = vmatmul.mubr.bf16.gmra.mrb[120].mxu1 %v10021_v52  ;;  %v10948_v52 = vld [vmem:[#allocation15 + $0x54] ss:$8 sps:$4 sm:$0xff]  }
0x1e7a   :  { %3536 = vmatprep.mubr.bf16.mxu1 %v12150_v12  ;;  %4061 = vmatpush1.bf16.msra.mxu1 %v10921_v6 }
0x1e7b   :  { %4062 = vmatprep.subr.bf16.mxu1 %v10926_v30 }
0x1e7d   :  { %v10938_v62 = vpop.f32.mrb[88].mxu0 }
0x1e7e   :  { %12192 = vst [vmem:[#allocation32_spill] sm:$0xff] %v10938_v62  ;;  %v10940_v14 = vpop.f32.mrb[89].mxu0  ;;  %4063 = vmatpush1.bf16.msra.mxu1 %v10933_v61  ;;  %v12197_v62 = vld [vmem:[#allocation63_spill] sm:$0xff] }
0x1e7f   :  { %12193 = vst [vmem:[#allocation53_spill] sm:$0xff] %v10940_v14  ;;  %v10945_v57 = vpop.f32.mrb[90].mxu0  ;;  %4064 = vmatprep.subr.bf16.mxu1 %v10936_v40 }
0x1e80   :  { %12194 = vst [vmem:[#allocation55_spill] sm:$0xff] %v10945_v57  ;;  %v10950_v38 = vpop.f32.mrb[91].mxu0 }
0x1e81   :  { %12195 = vst [vmem:[#allocation33_spill] sm:$0xff] %v10950_v38  ;;  %3537 = vmatmul.mubr.bf16.gmra.mrb[124].mxu1 %v10089_v37  ;;  %v10967_v37 = vld [vmem:[#allocation15 + $0x64] ss:$8 sps:$4 sm:$0xff]  }
0x1e82   :  { %3546 = vmatprep.mubr.bf16.mxu1 %v12150_v12  ;;  %4065 = vmatpush1.bf16.msra.mxu1 %v10943_v29 }
0x1e83   :  { %4066 = vmatprep.subr.bf16.mxu1 %v10948_v52 }
0x1e86   :  { %4067 = vmatpush1.bf16.msra.mxu1 %v10955_v44 }
0x1e87   :  { %4068 = vmatprep.subr.bf16.mxu1 %v10967_v37 }
0x1e89   :  { %3547 = vmatmul.mubr.bf16.gmra.mrb[128].mxu1 %v10161_v26  ;;  %v10973_v26 = vld [vmem:[#allocation15 + $0x74] ss:$8 sps:$4 sm:$0xff]  }
0x1e8a   :  { %3556 = vmatprep.mubr.bf16.mxu1 %v12150_v12  ;;  %4069 = vmatpush1.bf16.msra.mxu1 %v10969_v33 }
0x1e8b   :  { %4070 = vmatprep.subr.bf16.mxu1 %v10973_v26 }
0x1e91   :  { %3557 = vmatmul.mubr.bf16.gmra.mrb[132].mxu1 %v10223_v1  ;;  %v10977_v1 = vld [vmem:[#allocation15 + $0x70] ss:$8 sps:$4 sm:$0xff]  }
0x1e92   :  { %3566 = vmatprep.mubr.bf16.mxu1 %v12150_v12  ;;  %4071 = vmatpush1.bf16.msra.mxu1 %v10977_v1 }
0x1e93   :  { %4237 = vmatprep.subr.bf16.mxu1 %v10893_v23 }
0x1e99   :  { %3567 = vmatmul.mubr.bf16.gmra.mrb[136].mxu1 %v10285_v60  ;;  %v10988_v60 = vld [vmem:[#allocation16] sm:$0xff]  }
0x1e9a   :  { %3576 = vmatprep.mubr.bf16.mxu1 %v12150_v12  ;;  %7586 = vmatpush3.bf16.msra.mxu0 %v10988_v60 }
0x1e9b   :  { %7587 = vmatprep.subr.bf16.mxu0 %v12149_v22 }
0x1ea1   :  { %3577 = vmatmul.mubr.bf16.gmra.mrb[140].mxu1 %v10339_v41  ;;  %v10991_v41 = vld [vmem:[#allocation16 + $0x8] sm:$0xff]  }
0x1ea2   :  { %3586 = vmatprep.mubr.bf16.mxu1 %v12150_v12  ;;  %7588 = vmatpush3.bf16.msra.mxu0 %v10991_v41 }
0x1ea3   :  { %7589 = vmatprep.subr.bf16.mxu0 %v12149_v22 }
0x1ea9   :  { %3587 = vmatmul.mubr.bf16.gmra.mrb[144].mxu1 %v10393_v51  ;;  %v10997_v51 = vld [vmem:[#allocation16 + $0x10] sm:$0xff]  }
0x1eaa   :  { %3596 = vmatprep.mubr.bf16.mxu1 %v12150_v12  ;;  %7590 = vmatpush3.bf16.msra.mxu0 %v10997_v51 }
0x1eab   :  { %7591 = vmatprep.subr.bf16.mxu0 %v12149_v22 }
0x1eb1   :  { %3597 = vmatmul.mubr.bf16.gmra.mrb[148].mxu1 %v10461_v21  ;;  %v6684_v21 = vmul.f32 -1.442695, %v10852_v2 }
0x1eb2   :  { %3606 = vmatprep.mubr.bf16.mxu1 %v12150_v12 }
0x1eb3   :  { %8705 = vpow2.f32 %v6684_v21 }
0x1eb9   :  { %3607 = vmatmul.mubr.bf16.gmra.mrb[152].mxu1 %v10533_v10  ;;  %v6686_v10 = vmul.f32 -1.442695, %v10856_v25 }
0x1eba   :  { %3616 = vmatprep.mubr.bf16.mxu1 %v12150_v12 }
0x1ebb   :  { %8707 = vpow2.f32 %v6686_v10 }
0x1ec1   :  { %3617 = vmatmul.mubr.bf16.gmra.mrb[156].mxu1 %v10595_v34  ;;  %v8706_v34 = vpop.eup %8705 }
0x1ec2   :  { %3626 = vmatprep.mubr.bf16.mxu1 %v12150_v12  ;;  %v3220_v3 = vadd.f32 1.0, %v8706_v34 }
0x1ec9   :  { %3627 = vmatmul.mubr.bf16.gmra.mrb[160].mxu1 %v10661_v59  ;;  %v8708_v59 = vpop.eup %8707 }
0x1eca   :  { %3636 = vmatprep.mubr.bf16.mxu1 %v12150_v12  ;;  %v3222_v57 = vadd.f32 1.0, %v8708_v59 }
0x1ed1   :  { %3637 = vmatmul.mubr.bf16.gmra.mrb[164].mxu1 %v10719_v9 }
0x1ed2   :  { %3646 = vmatprep.mubr.bf16.mxu1 %v12150_v12 }
0x1ed9   :  { %3647 = vmatmul.mubr.bf16.gmra.mrb[168].mxu1 %v10777_v0 }
0x1eda   :  { %3656 = vmatprep.mubr.bf16.mxu1 %v12150_v12 }
0x1ee1   :  { %3657 = vmatmul.mubr.bf16.gmra.mrb[172].mxu1 %v10827_v19 }
0x1ee2   :  { %3666 = vmatprep.mubr.bf16.mxu1 %v12150_v12 }
0x1f24   :  { %v3269_v9 = vpop.f32.mrb[112].mxu1 }
0x1f25   :  { %v3276_v5 = vadd.f32 %v3269_v9, %v12196_v8  ;;  %v7535_v13 = vpop.f32.mrb[113].mxu1 }
0x1f26   :  { %v3272_v0 = vpop.f32.mrb[114].mxu1 }
0x1f27   :  { %8709 = vtanh.f32 %v3276_v5  ;;  %v3277_v19 = vadd.f32 %v3272_v0, %v12197_v62  ;;  %v7536_v38 = vpop.f32.mrb[115].mxu1  ;;  %v11015_v62 = vld [vmem:[#allocation7 + $0x10] sm:$0xff] }
0x1f28   :  { %8711 = vrcp.f32 %v3220_v3  ;;  %v11051_v38 = vld [vmem:[#allocation16 + $0x30] sm:$0xff]   ;;  %v11055_v3 = vld [vmem:[#allocation16 + $0x38] sm:$0xff]  }
0x1f29   :  { %8713 = vtanh.f32 %v3277_v19 }
0x1f2a   :  { %8715 = vrcp.f32 %v3222_v57  ;;  %v11017_v57 = vld [vmem:[#allocation7 + $0x18] sm:$0xff] }
0x1f31   :  { %v8710_v2 = vpop.eup %8709 }
0x1f32   :  { %v8712_v25 = vpop.eup %8711  ;;  %v3280_v21 = vsub.f32 %v10821_v28, %v8710_v2  ;;  %v3975_v28 = vpack.c.bf16 %v11017_v57, %v11015_v62 }
0x1f33   :  { %v8714_v10 = vpop.eup %8713 }
0x1f34   :  { %v3281_v34 = vsub.f32 %v10823_v54, %v8714_v10  ;;  %v3282_v14 = vmul.f32 %v8712_v25, %v3280_v21  ;;  %v8716_v47 = vpop.eup %8715  ;;  %v11040_v54 = vld [vmem:[#allocation16 + $0x18] sm:$0xff]   ;;  %v3339_v25 = vld [vmem:[%s12099_s9] sm:$0x7] }
0x1f35   :  { %7592 = vmatpush3.bf16.msra.mxu0 %v11040_v54  ;;  %v12202_v21 = vld [vmem:[#allocation45_spill] sm:$0xff] }
0x1f36   :  { %v3283_v9 = vmul.f32 %v8716_v47, %v3281_v34  ;;  %v3284_v8 = vadd.f32 %v8710_v2, %v3282_v14  ;;  %7593 = vmatprep.subr.bf16.mxu0 %v12149_v22  ;;  %v11044_v47 = vld [vmem:[#allocation16 + $0x20] sm:$0xff]   ;;  %v11047_v14 = vld [vmem:[#allocation16 + $0x28] sm:$0xff]  }
0x1f38   :  { %v3285_v13 = vadd.f32 %v8714_v10, %v3283_v9  ;;  %3289 = vst [vmem:[#allocation20] sm:$0xff] %v3284_v8  ;;  %v12203_v10 = vsub.s32 1, %v12202_v21 }
0x1f39   :  { %7594 = vmatpush3.bf16.msra.mxu0 %v11044_v47 }
0x1f3a   :  { %v3286_v59 = vpack.c.bf16 %v3285_v13, %v3284_v8  ;;  %3290 = vst [vmem:[#allocation20 + $0x8] sm:$0xff] %v3285_v13  ;;  %7595 = vmatprep.subr.bf16.mxu0 %v12149_v22  ;;  %v11073_v34 = vrot.slane %v3339_v25, %v12203_v10 }
0x1f3c   :  { %3667 = vmatmul.mubr.bf16.gmra.mrb[176].mxu1 %v3286_v59  ;;  %7582 = vmatmul.mubr.bf16.gmra.mrb[92].mxu0 %v3286_v59 }
0x1f3d   :  { %4088 = vmatprep.mubr.bf16.mxu1 %v12150_v12  ;;  %7601 = vmatprep.mubr.msk.bf16.mxu0 %vm9412_vm0, %v12149_v22 }
0x1f3e   :  { %7596 = vmatpush3.bf16.msra.mxu0 %v11047_v14 }
0x1f3f   :  { %7597 = vmatprep.subr.bf16.mxu0 %v12149_v22 }
0x1f42   :  { %7598 = vmatpush3.bf16.msra.mxu0 %v11051_v38 }
0x1f43   :  { %7599 = vmatprep.subr.bf16.mxu0 %v12149_v22 }
0x1f44   :  { %4089 = vmatmul.mubr.bf16.vlgmr.msra.gmra.mrb[116].mxu1 %v3975_v28 }
0x1f45   :  { %4238 = vmatpush1.bf16.msra.mxu1 %v10899_v17  ;;  %4269 = vmatprep.mubr.bf16.mxu1 %v12150_v12 }
0x1f46   :  { %4239 = vmatprep.subr.bf16.mxu1 %v10904_v55  ;;  %7600 = vmatpush3.bf16.msra.mxu0 %v11055_v3 }
0x1f47   :  { %7605 = vmatprep.subr.bf16.mxu0 %v12149_v22 }
0x1f49   :  { %4240 = vmatpush1.bf16.msra.mxu1 %v10911_v45 }
0x1f4a   :  { %4241 = vmatprep.subr.bf16.mxu1 %v10914_v50 }
0x1f4d   :  { %4242 = vmatpush1.bf16.msra.mxu1 %v10921_v6 }
0x1f4e   :  { %4243 = vmatprep.subr.bf16.mxu1 %v10926_v30 }
0x1f51   :  { %4244 = vmatpush1.bf16.msra.mxu1 %v10933_v61 }
0x1f52   :  { %4245 = vmatprep.subr.bf16.mxu1 %v10936_v40 }
0x1f55   :  { %4246 = vmatpush1.bf16.msra.mxu1 %v10943_v29 }
0x1f56   :  { %4247 = vmatprep.subr.bf16.mxu1 %v10948_v52 }
0x1f59   :  { %4248 = vmatpush1.bf16.msra.mxu1 %v10955_v44 }
0x1f5a   :  { %4249 = vmatprep.subr.bf16.mxu1 %v10967_v37 }
0x1f5d   :  { %4250 = vmatpush1.bf16.msra.mxu1 %v10969_v33 }
0x1f5e   :  { %4251 = vmatprep.subr.bf16.mxu1 %v10973_v26 }
0x1f61   :  { %4252 = vmatpush1.bf16.msra.mxu1 %v10977_v1 }
0x1f62   :  { %4370 = vmatprep.subr.bf16.mxu1 %v10893_v23 }
0x200f   :  { %v11060_v5 = vpop.f32.mrb[92].mxu0 }
0x2010   :  { %12198 = vst [vmem:[#allocation34_spill] sm:$0xff] %v11060_v5  ;;  %v11062_v0 = vpop.f32.mrb[93].mxu0 }
0x2011   :  { %12199 = vst [vmem:[#allocation35_spill] sm:$0xff] %v11062_v0  ;;  %v11064_v19 = vpop.f32.mrb[94].mxu0 }
0x2012   :  { %12200 = vst [vmem:[#allocation36_spill] sm:$0xff] %v11064_v19  ;;  %v11066_v2 = vpop.f32.mrb[95].mxu0 }
0x2013   :  { %12201 = vst [vmem:[#allocation58_spill] sm:$0xff] %v11066_v2 }
0x2017   :  { %v4090_v9 = vpop.f32.mrb[116].mxu1 }
0x2018   :  { %v4092_v8 = vpop.f32.mrb[117].mxu1 }
0x2019   :  { %v8054_v13 = vadd.f32 %v4092_v8, %v11073_v34  ;;  %v4094_v59 = vpop.f32.mrb[118].mxu1 }
0x201a   :  { %v4096_v28 = vpop.f32.mrb[119].mxu1 }
0x201b   :  { %v6729_v5 = vmul.f32 -1.442695, %v8054_v13  ;;  %v8056_v0 = vadd.f32 %v4096_v28, %v11073_v34 }
0x201d   :  { %8717 = vpow2.f32 %v6729_v5  ;;  %v6731_v19 = vmul.f32 -1.442695, %v8056_v0  ;;  %v12205_v5 = vsub.s32 2, %v12202_v21 }
0x201f   :  { %8719 = vpow2.f32 %v6731_v19  ;;  %v11105_v0 = vrot.slane %v3339_v25, %v12205_v5 }
0x2027   :  { %v8718_v2 = vpop.eup %8717 }
0x2028   :  { %v4116_v16 = vadd.f32 1.0, %v8718_v2  ;;  %v3712_v2 = vadd.f32 %v10862_v43, %v11105_v0 }
0x2029   :  { %v8720_v4 = vpop.eup %8719 }
0x202a   :  { %8721 = vrcp.f32 %v4116_v16  ;;  %v4118_v36 = vadd.f32 1.0, %v8720_v4 }
0x202c   :  { %8723 = vrcp.f32 %v4118_v36 }
0x2034   :  { %v8722_v10 = vpop.eup %8721 }
0x2035   :  { %v4127_v15 = vmul.f32 %v8722_v10, %v11015_v62 }
0x2036   :  { %v8724_v53 = vpop.eup %8723 }
0x2037   :  { %v4128_v8 = vmul.f32 %v8724_v53, %v11017_v57 }
0x2039   :  { %v4129_v32 = vpack.c.bf16 %v4128_v8, %v4127_v15  ;;  %v12204_v15 = vsub.s32 0, %v12202_v21 }
0x203b   :  { %7602 = vmatmul.mubr.bf16.vlgmr.msra.gmra.mrb[96].mxu0 %v4129_v32  ;;  %v11099_v53 = vrot.slane %v3339_v25, %v12204_v15 }
0x203c   :  { %7606 = vmatpush3.bf16.msra.mxu0 %v10988_v60  ;;  %7621 = vmatprep.mubr.msk.bf16.mxu0 %vm9412_vm0, %v12149_v22 }
0x203d   :  { %7607 = vmatprep.subr.bf16.mxu0 %v12149_v22  ;;  %v8053_v32 = vadd.f32 %v4090_v9, %v11099_v53  ;;  %v8055_v16 = vadd.f32 %v4094_v59, %v11099_v53  ;;  %v3715_v9 = vadd.f32 %v10866_v49, %v11105_v0 }
0x203f   :  { %v6728_v36 = vmul.f32 -1.442695, %v8053_v32  ;;  %v6730_v4 = vmul.f32 -1.442695, %v8055_v16 }
0x2040   :  { %7608 = vmatpush3.bf16.msra.mxu0 %v10991_v41 }
0x2041   :  { %7609 = vmatprep.subr.bf16.mxu0 %v12149_v22  ;;  %8725 = vpow2.f32 %v6728_v36 }
0x2042   :  { %8727 = vpow2.f32 %v6730_v4 }
0x2044   :  { %7610 = vmatpush3.bf16.msra.mxu0 %v10997_v51 }
0x2045   :  { %7611 = vmatprep.subr.bf16.mxu0 %v12149_v22 }
0x2048   :  { %7612 = vmatpush3.bf16.msra.mxu0 %v11040_v54 }
0x2049   :  { %7613 = vmatprep.subr.bf16.mxu0 %v12149_v22 }
0x204b   :  { %v8726_v19 = vpop.eup %8725 }
0x204c   :  { %7614 = vmatpush3.bf16.msra.mxu0 %v11044_v47  ;;  %v8728_v13 = vpop.eup %8727  ;;  %v4115_v28 = vadd.f32 1.0, %v8726_v19 }
0x204d   :  { %7615 = vmatprep.subr.bf16.mxu0 %v12149_v22  ;;  %v4117_v32 = vadd.f32 1.0, %v8728_v13 }
0x2050   :  { %7616 = vmatpush3.bf16.msra.mxu0 %v11047_v14 }
0x2051   :  { %7617 = vmatprep.subr.bf16.mxu0 %v12149_v22 }
0x2054   :  { %7618 = vmatpush3.bf16.msra.mxu0 %v11051_v38 }
0x2055   :  { %7619 = vmatprep.subr.bf16.mxu0 %v12149_v22 }
0x2058   :  { %7620 = vmatpush3.bf16.msra.mxu0 %v11055_v3 }
0x2059   :  { %7625 = vmatprep.subr.bf16.mxu0 %v12149_v22 }
0x210e   :  { %v4212_v10 = vpop.f32.mrb[96].mxu0 }
0x210f   :  { %v4219_v8 = vadd.f32 %v4212_v10, %v3712_v2  ;;  %v7603_v59 = vpop.f32.mrb[97].mxu0 }
0x2110   :  { %v4215_v15 = vpop.f32.mrb[98].mxu0 }
0x2111   :  { %8729 = vtanh.f32 %v4219_v8  ;;  %v4220_v16 = vadd.f32 %v4215_v15, %v3715_v9  ;;  %v7604_v36 = vpop.f32.mrb[99].mxu0 }
0x2112   :  { %8731 = vrcp.f32 %v4115_v28 }
0x2113   :  { %8733 = vtanh.f32 %v4220_v16 }
0x2114   :  { %8735 = vrcp.f32 %v4117_v32 }
0x211b   :  { %v8730_v25 = vpop.eup %8729 }
0x211c   :  { %v8732_v21 = vpop.eup %8731  ;;  %v4223_v43 = vsub.f32 %v11015_v62, %v8730_v25 }
0x211d   :  { %v8734_v4 = vpop.eup %8733 }
0x211e   :  { %v4224_v5 = vsub.f32 %v11017_v57, %v8734_v4  ;;  %v4225_v19 = vmul.f32 %v8732_v21, %v4223_v43  ;;  %v8736_v46 = vpop.eup %8735 }
0x2120   :  { %v4226_v49 = vmul.f32 %v8736_v46, %v4224_v5  ;;  %v11113_v2 = vadd.f32 %v8730_v25, %v4225_v19 }
0x2122   :  { %v11115_v10 = vadd.f32 %v8734_v4, %v4226_v49 }
0x2124   :  { %v11119_v13 = vpack.c.bf16 %v11115_v10, %v11113_v2 }
0x2126   :  { %4270 = vmatmul.mubr.bf16.vlgmr.msra.gmra.mrb[120].mxu1 %v11119_v13 }
0x2127   :  { %4371 = vmatpush1.bf16.msra.mxu1 %v10899_v17  ;;  %4402 = vmatprep.mubr.bf16.mxu1 %v12150_v12 }
0x2128   :  { %4372 = vmatprep.subr.bf16.mxu1 %v10904_v55 }
0x212b   :  { %4373 = vmatpush1.bf16.msra.mxu1 %v10911_v45 }
0x212c   :  { %4374 = vmatprep.subr.bf16.mxu1 %v10914_v50 }
0x212f   :  { %4375 = vmatpush1.bf16.msra.mxu1 %v10921_v6 }
0x2130   :  { %4376 = vmatprep.subr.bf16.mxu1 %v10926_v30 }
0x2133   :  { %4377 = vmatpush1.bf16.msra.mxu1 %v10933_v61 }
0x2134   :  { %4378 = vmatprep.subr.bf16.mxu1 %v10936_v40 }
0x2137   :  { %4379 = vmatpush1.bf16.msra.mxu1 %v10943_v29 }
0x2138   :  { %4380 = vmatprep.subr.bf16.mxu1 %v10948_v52 }
0x213b   :  { %4381 = vmatpush1.bf16.msra.mxu1 %v10955_v44 }
0x213c   :  { %4382 = vmatprep.subr.bf16.mxu1 %v10967_v37 }
0x213f   :  { %4383 = vmatpush1.bf16.msra.mxu1 %v10969_v33 }
0x2140   :  { %4384 = vmatprep.subr.bf16.mxu1 %v10973_v26 }
0x2143   :  { %4385 = vmatpush1.bf16.msra.mxu1 %v10977_v1 }
0x2144   :  { %4503 = vmatprep.subr.bf16.mxu1 %v10893_v23 }
0x21f9   :  { %v4271_v46 = vpop.f32.mrb[120].mxu1 }
0x21fa   :  { %v4273_v62 = vpop.f32.mrb[121].mxu1  ;;  %v8057_v49 = vadd.f32 %v4271_v46, %v11099_v53 }
0x21fb   :  { %v8058_v57 = vadd.f32 %v4273_v62, %v11073_v34  ;;  %v4275_v28 = vpop.f32.mrb[122].mxu1 }
0x21fc   :  { %v4277_v9 = vpop.f32.mrb[123].mxu1  ;;  %v8059_v62 = vadd.f32 %v4275_v28, %v11099_v53 }
0x21fd   :  { %v6741_v8 = vmul.f32 -1.442695, %v8058_v57  ;;  %v8060_v59 = vadd.f32 %v4277_v9, %v11073_v34  ;;  %v6740_v57 = vmul.f32 -1.442695, %v8057_v49 }
0x21fe   :  { %v6742_v9 = vmul.f32 -1.442695, %v8059_v62 }
0x21ff   :  { %8737 = vpow2.f32 %v6741_v8  ;;  %v6743_v15 = vmul.f32 -1.442695, %v8060_v59  ;;  %v3720_v59 = vadd.f32 %v10858_v42, %v11105_v0 }
0x2201   :  { %8739 = vpow2.f32 %v6743_v15 }
0x2209   :  { %v8738_v32 = vpop.eup %8737 }
0x220a   :  { %v4297_v16 = vadd.f32 1.0, %v8738_v32 }
0x220b   :  { %v8740_v36 = vpop.eup %8739 }
0x220c   :  { %8741 = vrcp.f32 %v4297_v16  ;;  %v4299_v25 = vadd.f32 1.0, %v8740_v36  ;;  %v3723_v36 = vadd.f32 %v10864_v7, %v11105_v0 }
0x220e   :  { %8743 = vrcp.f32 %v4299_v25 }
0x220f   :  { %8745 = vpow2.f32 %v6740_v57 }
0x2210   :  { %8747 = vpow2.f32 %v6742_v9 }
0x2216   :  { %v8742_v21 = vpop.eup %8741 }
0x2217   :  { %v4308_v4 = vmul.f32 %v8742_v21, %v11113_v2 }
0x2218   :  { %v8744_v43 = vpop.eup %8743 }
0x2219   :  { %v4309_v5 = vmul.f32 %v8744_v43, %v11115_v10  ;;  %v8746_v8 = vpop.eup %8745 }
0x221a   :  { %v8748_v15 = vpop.eup %8747  ;;  %v4296_v32 = vadd.f32 1.0, %v8746_v8 }
0x221b   :  { %v4310_v19 = vpack.c.bf16 %v4309_v5, %v4308_v4  ;;  %v4298_v46 = vadd.f32 1.0, %v8748_v15 }
0x221d   :  { %7622 = vmatmul.mubr.bf16.vlgmr.msra.gmra.mrb[100].mxu0 %v4310_v19 }
0x221e   :  { %7626 = vmatpush3.bf16.msra.mxu0 %v10988_v60  ;;  %7641 = vmatprep.mubr.msk.bf16.mxu0 %vm9412_vm0, %v12149_v22 }
0x221f   :  { %7627 = vmatprep.subr.bf16.mxu0 %v12149_v22 }
0x2222   :  { %7628 = vmatpush3.bf16.msra.mxu0 %v10991_v41 }
0x2223   :  { %7629 = vmatprep.subr.bf16.mxu0 %v12149_v22 }
0x2226   :  { %7630 = vmatpush3.bf16.msra.mxu0 %v10997_v51 }
0x2227   :  { %7631 = vmatprep.subr.bf16.mxu0 %v12149_v22 }
0x222a   :  { %7632 = vmatpush3.bf16.msra.mxu0 %v11040_v54 }
0x222b   :  { %7633 = vmatprep.subr.bf16.mxu0 %v12149_v22 }
0x222e   :  { %7634 = vmatpush3.bf16.msra.mxu0 %v11044_v47 }
0x222f   :  { %7635 = vmatprep.subr.bf16.mxu0 %v12149_v22 }
0x2232   :  { %7636 = vmatpush3.bf16.msra.mxu0 %v11047_v14 }
0x2233   :  { %7637 = vmatprep.subr.bf16.mxu0 %v12149_v22 }
0x2236   :  { %7638 = vmatpush3.bf16.msra.mxu0 %v11051_v38 }
0x2237   :  { %7639 = vmatprep.subr.bf16.mxu0 %v12149_v22 }
0x223a   :  { %7640 = vmatpush3.bf16.msra.mxu0 %v11055_v3 }
0x223b   :  { %7645 = vmatprep.subr.bf16.mxu0 %v12149_v22 }
0x22f0   :  { %v4345_v16 = vpop.f32.mrb[100].mxu0 }
0x22f1   :  { %v4352_v25 = vadd.f32 %v4345_v16, %v3720_v59  ;;  %v7623_v21 = vpop.f32.mrb[101].mxu0 }
0x22f2   :  { %v4348_v43 = vpop.f32.mrb[102].mxu0 }
0x22f3   :  { %8749 = vtanh.f32 %v4352_v25  ;;  %v4353_v28 = vadd.f32 %v4348_v43, %v3723_v36  ;;  %v7624_v4 = vpop.f32.mrb[103].mxu0 }
0x22f4   :  { %8751 = vrcp.f32 %v4296_v32 }
0x22f5   :  { %8753 = vtanh.f32 %v4353_v28 }
0x22f6   :  { %8755 = vrcp.f32 %v4298_v46 }
0x22fd   :  { %v8750_v5 = vpop.eup %8749 }
0x22fe   :  { %v8752_v19 = vpop.eup %8751  ;;  %v4356_v42 = vsub.f32 %v11113_v2, %v8750_v5 }
0x22ff   :  { %v8754_v49 = vpop.eup %8753 }
0x2300   :  { %v4357_v62 = vsub.f32 %v11115_v10, %v8754_v49  ;;  %v4358_v57 = vmul.f32 %v8752_v19, %v4356_v42  ;;  %v8756_v9 = vpop.eup %8755 }
0x2302   :  { %v4359_v7 = vmul.f32 %v8756_v9, %v4357_v62  ;;  %v11169_v8 = vadd.f32 %v8750_v5, %v4358_v57 }
0x2304   :  { %v11171_v59 = vadd.f32 %v8754_v49, %v4359_v7 }
0x2306   :  { %v11175_v15 = vpack.c.bf16 %v11171_v59, %v11169_v8 }
0x2308   :  { %4403 = vmatmul.mubr.bf16.vlgmr.msra.gmra.mrb[124].mxu1 %v11175_v15 }
0x2309   :  { %4504 = vmatpush1.bf16.msra.mxu1 %v10899_v17  ;;  %4535 = vmatprep.mubr.bf16.mxu1 %v12150_v12 }
0x230a   :  { %4505 = vmatprep.subr.bf16.mxu1 %v10904_v55 }
0x230d   :  { %4506 = vmatpush1.bf16.msra.mxu1 %v10911_v45 }
0x230e   :  { %4507 = vmatprep.subr.bf16.mxu1 %v10914_v50 }
0x2311   :  { %4508 = vmatpush1.bf16.msra.mxu1 %v10921_v6 }
0x2312   :  { %4509 = vmatprep.subr.bf16.mxu1 %v10926_v30 }
0x2315   :  { %4510 = vmatpush1.bf16.msra.mxu1 %v10933_v61 }
0x2316   :  { %4511 = vmatprep.subr.bf16.mxu1 %v10936_v40 }
0x2319   :  { %4512 = vmatpush1.bf16.msra.mxu1 %v10943_v29 }
0x231a   :  { %4513 = vmatprep.subr.bf16.mxu1 %v10948_v52 }
0x231d   :  { %4514 = vmatpush1.bf16.msra.mxu1 %v10955_v44 }
0x231e   :  { %4515 = vmatprep.subr.bf16.mxu1 %v10967_v37 }
0x2321   :  { %4516 = vmatpush1.bf16.msra.mxu1 %v10969_v33 }
0x2322   :  { %4517 = vmatprep.subr.bf16.mxu1 %v10973_v26 }
0x2325   :  { %4518 = vmatpush1.bf16.msra.mxu1 %v10977_v1 }
0x2326   :  { %4636 = vmatprep.subr.bf16.mxu1 %v10893_v23 }
0x23db   :  { %v4404_v2 = vpop.f32.mrb[124].mxu1 }
0x23dc   :  { %v4406_v10 = vpop.f32.mrb[125].mxu1  ;;  %v8061_v9 = vadd.f32 %v4404_v2, %v11099_v53 }
0x23dd   :  { %v8062_v32 = vadd.f32 %v4406_v10, %v11073_v34  ;;  %v4408_v16 = vpop.f32.mrb[126].mxu1 }
0x23de   :  { %v4410_v36 = vpop.f32.mrb[127].mxu1  ;;  %v8063_v7 = vadd.f32 %v4408_v16, %v11099_v53  ;;  %v6744_v10 = vmul.f32 -1.442695, %v8061_v9 }
0x23df   :  { %v6745_v25 = vmul.f32 -1.442695, %v8062_v32  ;;  %v8064_v21 = vadd.f32 %v4410_v36, %v11073_v34 }
0x23e0   :  { %v6746_v32 = vmul.f32 -1.442695, %v8063_v7 }
0x23e1   :  { %8757 = vpow2.f32 %v6745_v25  ;;  %v6747_v43 = vmul.f32 -1.442695, %v8064_v21  ;;  %v3728_v25 = vadd.f32 %v10871_v27, %v11105_v0 }
0x23e3   :  { %8759 = vpow2.f32 %v6747_v43 }
0x23eb   :  { %v8758_v46 = vpop.eup %8757 }
0x23ec   :  { %v4430_v28 = vadd.f32 1.0, %v8758_v46 }
0x23ed   :  { %v8760_v4 = vpop.eup %8759 }
0x23ee   :  { %8761 = vrcp.f32 %v4430_v28  ;;  %v4432_v5 = vadd.f32 1.0, %v8760_v4  ;;  %v3731_v28 = vadd.f32 %v10875_v56, %v11105_v0 }
0x23f0   :  { %8763 = vrcp.f32 %v4432_v5 }
0x23f1   :  { %8765 = vpow2.f32 %v6744_v10 }
0x23f2   :  { %8767 = vpow2.f32 %v6746_v32 }
0x23f8   :  { %v8762_v19 = vpop.eup %8761 }
0x23f9   :  { %v4441_v49 = vmul.f32 %v8762_v19, %v11169_v8 }
0x23fa   :  { %v8764_v42 = vpop.eup %8763 }
0x23fb   :  { %v4442_v62 = vmul.f32 %v8764_v42, %v11171_v59  ;;  %v8766_v36 = vpop.eup %8765 }
0x23fc   :  { %v8768_v21 = vpop.eup %8767  ;;  %v4429_v43 = vadd.f32 1.0, %v8766_v36 }
0x23fd   :  { %v4443_v57 = vpack.c.bf16 %v4442_v62, %v4441_v49  ;;  %v4431_v2 = vadd.f32 1.0, %v8768_v21 }
0x23ff   :  { %7642 = vmatmul.mubr.bf16.vlgmr.msra.gmra.mrb[104].mxu0 %v4443_v57 }
0x2400   :  { %7646 = vmatpush3.bf16.msra.mxu0 %v10988_v60  ;;  %7661 = vmatprep.mubr.msk.bf16.mxu0 %vm9412_vm0, %v12149_v22 }
0x2401   :  { %7647 = vmatprep.subr.bf16.mxu0 %v12149_v22 }
0x2404   :  { %7648 = vmatpush3.bf16.msra.mxu0 %v10991_v41 }
0x2405   :  { %7649 = vmatprep.subr.bf16.mxu0 %v12149_v22 }
0x2408   :  { %7650 = vmatpush3.bf16.msra.mxu0 %v10997_v51 }
0x2409   :  { %7651 = vmatprep.subr.bf16.mxu0 %v12149_v22 }
0x240c   :  { %7652 = vmatpush3.bf16.msra.mxu0 %v11040_v54 }
0x240d   :  { %7653 = vmatprep.subr.bf16.mxu0 %v12149_v22 }
0x2410   :  { %7654 = vmatpush3.bf16.msra.mxu0 %v11044_v47 }
0x2411   :  { %7655 = vmatprep.subr.bf16.mxu0 %v12149_v22 }
0x2414   :  { %7656 = vmatpush3.bf16.msra.mxu0 %v11047_v14 }
0x2415   :  { %7657 = vmatprep.subr.bf16.mxu0 %v12149_v22 }
0x2418   :  { %7658 = vmatpush3.bf16.msra.mxu0 %v11051_v38 }
0x2419   :  { %7659 = vmatprep.subr.bf16.mxu0 %v12149_v22 }
0x241c   :  { %7660 = vmatpush3.bf16.msra.mxu0 %v11055_v3 }
0x241d   :  { %7665 = vmatprep.subr.bf16.mxu0 %v12149_v22 }
0x24d2   :  { %v4478_v46 = vpop.f32.mrb[104].mxu0 }
0x24d3   :  { %v4485_v4 = vadd.f32 %v4478_v46, %v3728_v25  ;;  %v7643_v5 = vpop.f32.mrb[105].mxu0 }
0x24d4   :  { %v4481_v19 = vpop.f32.mrb[106].mxu0 }
0x24d5   :  { %8769 = vtanh.f32 %v4485_v4  ;;  %v4486_v16 = vadd.f32 %v4481_v19, %v3731_v28  ;;  %v7644_v42 = vpop.f32.mrb[107].mxu0 }
0x24d6   :  { %8771 = vrcp.f32 %v4429_v43 }
0x24d7   :  { %8773 = vtanh.f32 %v4486_v16 }
0x24d8   :  { %8775 = vrcp.f32 %v4431_v2 }
0x24df   :  { %v8770_v49 = vpop.eup %8769 }
0x24e0   :  { %v8772_v62 = vpop.eup %8771  ;;  %v4489_v27 = vsub.f32 %v11169_v8, %v8770_v49 }
0x24e1   :  { %v8774_v57 = vpop.eup %8773 }
0x24e2   :  { %v4490_v9 = vsub.f32 %v11171_v59, %v8774_v57  ;;  %v4491_v7 = vmul.f32 %v8772_v62, %v4489_v27  ;;  %v8776_v10 = vpop.eup %8775 }
0x24e4   :  { %v4492_v56 = vmul.f32 %v8776_v10, %v4490_v9  ;;  %v11225_v32 = vadd.f32 %v8770_v49, %v4491_v7 }
0x24e6   :  { %v11227_v36 = vadd.f32 %v8774_v57, %v4492_v56 }
0x24e8   :  { %v11231_v25 = vpack.c.bf16 %v11227_v36, %v11225_v32 }
0x24ea   :  { %4536 = vmatmul.mubr.bf16.vlgmr.msra.gmra.mrb[128].mxu1 %v11231_v25 }
0x24eb   :  { %4637 = vmatpush1.bf16.msra.mxu1 %v10899_v17  ;;  %4668 = vmatprep.mubr.bf16.mxu1 %v12150_v12 }
0x24ec   :  { %4638 = vmatprep.subr.bf16.mxu1 %v10904_v55 }
0x24ef   :  { %4639 = vmatpush1.bf16.msra.mxu1 %v10911_v45 }
0x24f0   :  { %4640 = vmatprep.subr.bf16.mxu1 %v10914_v50 }
0x24f3   :  { %4641 = vmatpush1.bf16.msra.mxu1 %v10921_v6 }
0x24f4   :  { %4642 = vmatprep.subr.bf16.mxu1 %v10926_v30 }
0x24f7   :  { %4643 = vmatpush1.bf16.msra.mxu1 %v10933_v61 }
0x24f8   :  { %4644 = vmatprep.subr.bf16.mxu1 %v10936_v40 }
0x24fb   :  { %4645 = vmatpush1.bf16.msra.mxu1 %v10943_v29 }
0x24fc   :  { %4646 = vmatprep.subr.bf16.mxu1 %v10948_v52 }
0x24ff   :  { %4647 = vmatpush1.bf16.msra.mxu1 %v10955_v44 }
0x2500   :  { %4648 = vmatprep.subr.bf16.mxu1 %v10967_v37 }
0x2503   :  { %4649 = vmatpush1.bf16.msra.mxu1 %v10969_v33 }
0x2504   :  { %4650 = vmatprep.subr.bf16.mxu1 %v10973_v26 }
0x2507   :  { %4651 = vmatpush1.bf16.msra.mxu1 %v10977_v1 }
0x2508   :  { %4769 = vmatprep.subr.bf16.mxu1 %v10893_v23 }
0x25bd   :  { %v4537_v8 = vpop.f32.mrb[128].mxu1 }
0x25be   :  { %v4539_v59 = vpop.f32.mrb[129].mxu1  ;;  %v8065_v9 = vadd.f32 %v4537_v8, %v11099_v53 }
0x25bf   :  { %v8066_v21 = vadd.f32 %v4539_v59, %v11073_v34  ;;  %v4541_v43 = vpop.f32.mrb[130].mxu1 }
0x25c0   :  { %v4543_v46 = vpop.f32.mrb[131].mxu1  ;;  %v8067_v7 = vadd.f32 %v4541_v43, %v11099_v53  ;;  %v6748_v10 = vmul.f32 -1.442695, %v8065_v9 }
0x25c1   :  { %v6749_v28 = vmul.f32 -1.442695, %v8066_v21  ;;  %v8068_v4 = vadd.f32 %v4543_v46, %v11073_v34  ;;  %v3736_v21 = vadd.f32 %v10869_v48, %v11105_v0 }
0x25c2   :  { %v6750_v56 = vmul.f32 -1.442695, %v8067_v7 }
0x25c3   :  { %8777 = vpow2.f32 %v6749_v28  ;;  %v6751_v5 = vmul.f32 -1.442695, %v8068_v4 }
0x25c5   :  { %8779 = vpow2.f32 %v6751_v5  ;;  %v3739_v5 = vadd.f32 %v10873_v24, %v11105_v0 }
0x25cd   :  { %v8778_v19 = vpop.eup %8777 }
0x25ce   :  { %v4563_v2 = vadd.f32 1.0, %v8778_v19 }
0x25cf   :  { %v8780_v16 = vpop.eup %8779 }
0x25d0   :  { %8781 = vrcp.f32 %v4563_v2  ;;  %v4565_v42 = vadd.f32 1.0, %v8780_v16 }
0x25d2   :  { %8783 = vrcp.f32 %v4565_v42 }
0x25d3   :  { %8785 = vpow2.f32 %v6748_v10 }
0x25d4   :  { %8787 = vpow2.f32 %v6750_v56 }
0x25da   :  { %v8782_v49 = vpop.eup %8781 }
0x25db   :  { %v4574_v62 = vmul.f32 %v8782_v49, %v11225_v32 }
0x25dc   :  { %v8784_v23 = vpop.eup %8783 }
0x25dd   :  { %v4575_v27 = vmul.f32 %v8784_v23, %v11227_v36  ;;  %v8786_v59 = vpop.eup %8785 }
0x25de   :  { %v8788_v46 = vpop.eup %8787  ;;  %v4562_v28 = vadd.f32 1.0, %v8786_v59 }
0x25df   :  { %v4576_v57 = vpack.c.bf16 %v4575_v27, %v4574_v62  ;;  %v4564_v8 = vadd.f32 1.0, %v8788_v46 }
0x25e1   :  { %7662 = vmatmul.mubr.bf16.vlgmr.msra.gmra.mrb[108].mxu0 %v4576_v57 }
0x25e2   :  { %7666 = vmatpush3.bf16.msra.mxu0 %v10988_v60  ;;  %7681 = vmatprep.mubr.msk.bf16.mxu0 %vm9412_vm0, %v12149_v22 }
0x25e3   :  { %7667 = vmatprep.subr.bf16.mxu0 %v12149_v22 }
0x25e6   :  { %7668 = vmatpush3.bf16.msra.mxu0 %v10991_v41 }
0x25e7   :  { %7669 = vmatprep.subr.bf16.mxu0 %v12149_v22 }
0x25ea   :  { %7670 = vmatpush3.bf16.msra.mxu0 %v10997_v51 }
0x25eb   :  { %7671 = vmatprep.subr.bf16.mxu0 %v12149_v22 }
0x25ee   :  { %7672 = vmatpush3.bf16.msra.mxu0 %v11040_v54 }
0x25ef   :  { %7673 = vmatprep.subr.bf16.mxu0 %v12149_v22 }
0x25f2   :  { %7674 = vmatpush3.bf16.msra.mxu0 %v11044_v47 }
0x25f3   :  { %7675 = vmatprep.subr.bf16.mxu0 %v12149_v22 }
0x25f6   :  { %7676 = vmatpush3.bf16.msra.mxu0 %v11047_v14 }
0x25f7   :  { %7677 = vmatprep.subr.bf16.mxu0 %v12149_v22 }
0x25fa   :  { %7678 = vmatpush3.bf16.msra.mxu0 %v11051_v38 }
0x25fb   :  { %7679 = vmatprep.subr.bf16.mxu0 %v12149_v22 }
0x25fe   :  { %7680 = vmatpush3.bf16.msra.mxu0 %v11055_v3 }
0x25ff   :  { %7685 = vmatprep.subr.bf16.mxu0 %v12149_v22 }
0x26b4   :  { %v4611_v4 = vpop.f32.mrb[108].mxu0 }
0x26b5   :  { %v4618_v19 = vadd.f32 %v4611_v4, %v3736_v21  ;;  %v7663_v2 = vpop.f32.mrb[109].mxu0 }
0x26b6   :  { %v4614_v16 = vpop.f32.mrb[110].mxu0  ;;  %v3747_v2 = vadd.f32 %v10883_v39, %v11105_v0 }
0x26b7   :  { %8789 = vtanh.f32 %v4618_v19  ;;  %v4619_v43 = vadd.f32 %v4614_v16, %v3739_v5  ;;  %v7664_v42 = vpop.f32.mrb[111].mxu0 }
0x26b8   :  { %8791 = vrcp.f32 %v4562_v28  ;;  %v3744_v28 = vadd.f32 %v10879_v11, %v11105_v0 }
0x26b9   :  { %8793 = vtanh.f32 %v4619_v43 }
0x26ba   :  { %8795 = vrcp.f32 %v4564_v8 }
0x26c1   :  { %v8790_v49 = vpop.eup %8789 }
0x26c2   :  { %v8792_v23 = vpop.eup %8791  ;;  %v4622_v48 = vsub.f32 %v11225_v32, %v8790_v49 }
0x26c3   :  { %v8794_v62 = vpop.eup %8793 }
0x26c4   :  { %v4623_v27 = vsub.f32 %v11227_v36, %v8794_v62  ;;  %v4624_v57 = vmul.f32 %v8792_v23, %v4622_v48  ;;  %v8796_v9 = vpop.eup %8795 }
0x26c6   :  { %v4625_v24 = vmul.f32 %v8796_v9, %v4623_v27  ;;  %v11281_v7 = vadd.f32 %v8790_v49, %v4624_v57 }
0x26c8   :  { %v11283_v10 = vadd.f32 %v8794_v62, %v4625_v24 }
0x26ca   :  { %v11287_v56 = vpack.c.bf16 %v11283_v10, %v11281_v7 }
0x26cc   :  { %4669 = vmatmul.mubr.bf16.vlgmr.msra.gmra.mrb[132].mxu1 %v11287_v56 }
0x26cd   :  { %4770 = vmatpush1.bf16.msra.mxu1 %v10899_v17  ;;  %4801 = vmatprep.mubr.bf16.mxu1 %v12150_v12  ;;  %v11306_v17 = vld [vmem:[#allocation15 + $0x4] ss:$8 sps:$4 sm:$0xff]  }
0x26ce   :  { %4771 = vmatprep.subr.bf16.mxu1 %v10904_v55 }
0x26d1   :  { %4772 = vmatpush1.bf16.msra.mxu1 %v10911_v45 }
0x26d2   :  { %4773 = vmatprep.subr.bf16.mxu1 %v10914_v50 }
0x26d5   :  { %4774 = vmatpush1.bf16.msra.mxu1 %v10921_v6 }
0x26d6   :  { %4775 = vmatprep.subr.bf16.mxu1 %v10926_v30 }
0x26d9   :  { %4776 = vmatpush1.bf16.msra.mxu1 %v10933_v61 }
0x26da   :  { %4777 = vmatprep.subr.bf16.mxu1 %v10936_v40 }
0x26dd   :  { %4778 = vmatpush1.bf16.msra.mxu1 %v10943_v29 }
0x26de   :  { %4779 = vmatprep.subr.bf16.mxu1 %v10948_v52 }
0x26e1   :  { %4780 = vmatpush1.bf16.msra.mxu1 %v10955_v44 }
0x26e2   :  { %4781 = vmatprep.subr.bf16.mxu1 %v10967_v37 }
0x26e5   :  { %4782 = vmatpush1.bf16.msra.mxu1 %v10969_v33 }
0x26e6   :  { %4783 = vmatprep.subr.bf16.mxu1 %v10973_v26 }
0x26e9   :  { %4784 = vmatpush1.bf16.msra.mxu1 %v10977_v1 }
0x26ea   :  { %4902 = vmatprep.subr.bf16.mxu1 %v11306_v17 }
0x279f   :  { %v4670_v55 = vpop.f32.mrb[132].mxu1 }
0x27a0   :  { %v4672_v45 = vpop.f32.mrb[133].mxu1 }
0x27a1   :  { %v8070_v50 = vadd.f32 %v4672_v45, %v11073_v34  ;;  %v4674_v6 = vpop.f32.mrb[134].mxu1 }
0x27a2   :  { %v4676_v30 = vpop.f32.mrb[135].mxu1 }
0x27a3   :  { %v6753_v61 = vmul.f32 -1.442695, %v8070_v50  ;;  %v8072_v40 = vadd.f32 %v4676_v30, %v11073_v34  ;;  %v11358_v30 = vld [vmem:[#allocation15 + $0x24] ss:$8 sps:$4 sm:$0xff]  }
0x27a5   :  { %8797 = vpow2.f32 %v6753_v61  ;;  %v6755_v29 = vmul.f32 -1.442695, %v8072_v40  ;;  %v11361_v61 = vld [vmem:[#allocation15 + $0x20] ss:$8 sps:$4 sm:$0xff]   ;;  %v11364_v40 = vld [vmem:[#allocation15 + $0x34] ss:$8 sps:$4 sm:$0xff]  }
0x27a7   :  { %8799 = vpow2.f32 %v6755_v29  ;;  %v11367_v29 = vld [vmem:[#allocation15 + $0x30] ss:$8 sps:$4 sm:$0xff]  }
0x27af   :  { %v8798_v52 = vpop.eup %8797 }
0x27b0   :  { %v4696_v44 = vadd.f32 1.0, %v8798_v52  ;;  %v11370_v52 = vld [vmem:[#allocation15 + $0x44] ss:$8 sps:$4 sm:$0xff]  }
0x27b1   :  { %v8800_v37 = vpop.eup %8799 }
0x27b2   :  { %8801 = vrcp.f32 %v4696_v44  ;;  %v4698_v33 = vadd.f32 1.0, %v8800_v37  ;;  %v11373_v44 = vld [vmem:[#allocation15 + $0x40] ss:$8 sps:$4 sm:$0xff]   ;;  %v11376_v37 = vld [vmem:[#allocation15 + $0x54] ss:$8 sps:$4 sm:$0xff]  }
0x27b4   :  { %8803 = vrcp.f32 %v4698_v33  ;;  %v11379_v33 = vld [vmem:[#allocation15 + $0x50] ss:$8 sps:$4 sm:$0xff]  }
0x27bc   :  { %v8802_v26 = vpop.eup %8801 }
0x27bd   :  { %v4707_v32 = vmul.f32 %v8802_v26, %v11281_v7  ;;  %v11382_v26 = vld [vmem:[#allocation15 + $0x64] ss:$8 sps:$4 sm:$0xff]  }
0x27be   :  { %v8804_v1 = vpop.eup %8803 }
0x27bf   :  { %v4708_v36 = vmul.f32 %v8804_v1, %v11283_v10  ;;  %v11385_v1 = vld [vmem:[#allocation15 + $0x60] ss:$8 sps:$4 sm:$0xff]  }
0x27c1   :  { %v4709_v59 = vpack.c.bf16 %v4708_v36, %v4707_v32  ;;  %v11388_v32 = vld [vmem:[#allocation15 + $0x74] ss:$8 sps:$4 sm:$0xff]   ;;  %v11391_v36 = vld [vmem:[#allocation15 + $0x70] ss:$8 sps:$4 sm:$0xff]  }
0x27c3   :  { %7682 = vmatmul.mubr.bf16.vlgmr.msra.gmra.mrb[112].mxu0 %v4709_v59 }
0x27c4   :  { %7686 = vmatpush3.bf16.msra.mxu0 %v10988_v60  ;;  %7701 = vmatprep.mubr.msk.bf16.mxu0 %vm9412_vm0, %v12149_v22  ;;  %v8069_v60 = vadd.f32 %v4670_v55, %v11099_v53 }
0x27c5   :  { %7687 = vmatprep.subr.bf16.mxu0 %v12149_v22 }
0x27c8   :  { %7688 = vmatpush3.bf16.msra.mxu0 %v10991_v41  ;;  %v8071_v41 = vadd.f32 %v4674_v6, %v11099_v53  ;;  %v11348_v6 = vld [vmem:[#allocation15] ss:$8 sps:$4 sm:$0xff]  }
0x27c9   :  { %7689 = vmatprep.subr.bf16.mxu0 %v12149_v22 }
0x27ca   :  { %v6754_v21 = vmul.f32 -1.442695, %v8071_v41 }
0x27cc   :  { %7690 = vmatpush3.bf16.msra.mxu0 %v10997_v51  ;;  %v6752_v51 = vmul.f32 -1.442695, %v8069_v60 }
0x27cd   :  { %7691 = vmatprep.subr.bf16.mxu0 %v12149_v22 }
0x27ce   :  { %8805 = vpow2.f32 %v6752_v51 }
0x27cf   :  { %8807 = vpow2.f32 %v6754_v21 }
0x27d0   :  { %7692 = vmatpush3.bf16.msra.mxu0 %v11040_v54 }
0x27d1   :  { %7693 = vmatprep.subr.bf16.mxu0 %v12149_v22 }
0x27d4   :  { %7694 = vmatpush3.bf16.msra.mxu0 %v11044_v47 }
0x27d5   :  { %7695 = vmatprep.subr.bf16.mxu0 %v12149_v22 }
0x27d8   :  { %7696 = vmatpush3.bf16.msra.mxu0 %v11047_v14  ;;  %v8806_v46 = vpop.eup %8805 }
0x27d9   :  { %7697 = vmatprep.subr.bf16.mxu0 %v12149_v22  ;;  %v8808_v4 = vpop.eup %8807  ;;  %v4695_v5 = vadd.f32 1.0, %v8806_v46 }
0x27da   :  { %v4697_v42 = vadd.f32 1.0, %v8808_v4 }
0x27dc   :  { %7698 = vmatpush3.bf16.msra.mxu0 %v11051_v38 }
0x27dd   :  { %7699 = vmatprep.subr.bf16.mxu0 %v12149_v22 }
0x27e0   :  { %7700 = vmatpush3.bf16.msra.mxu0 %v11055_v3 }
0x27e1   :  { %7705 = vmatprep.subr.bf16.mxu0 %v12149_v22 }
0x2896   :  { %v4744_v19 = vpop.f32.mrb[112].mxu0 }
0x2897   :  { %v4751_v16 = vadd.f32 %v4744_v19, %v3744_v28  ;;  %v7683_v8 = vpop.f32.mrb[113].mxu0 }
0x2898   :  { %v4747_v43 = vpop.f32.mrb[114].mxu0 }
0x2899   :  { %8809 = vtanh.f32 %v4751_v16  ;;  %v4752_v49 = vadd.f32 %v4747_v43, %v3747_v2  ;;  %v7684_v23 = vpop.f32.mrb[115].mxu0 }
0x289a   :  { %8811 = vrcp.f32 %v4695_v5 }
0x289b   :  { %8813 = vtanh.f32 %v4752_v49 }
0x289c   :  { %8815 = vrcp.f32 %v4697_v42 }
0x28a3   :  { %v8810_v48 = vpop.eup %8809 }
0x28a4   :  { %v8812_v62 = vpop.eup %8811  ;;  %v4755_v11 = vsub.f32 %v11281_v7, %v8810_v48  ;;  %v11352_v7 = vld [vmem:[#allocation15 + $0x14] ss:$8 sps:$4 sm:$0xff]  }
0x28a5   :  { %v8814_v27 = vpop.eup %8813 }
0x28a6   :  { %v4756_v57 = vsub.f32 %v11283_v10, %v8814_v27  ;;  %v4757_v9 = vmul.f32 %v8812_v62, %v4755_v11  ;;  %v8816_v24 = vpop.eup %8815  ;;  %v11355_v10 = vld [vmem:[#allocation15 + $0x10] ss:$8 sps:$4 sm:$0xff]   ;;  %v11405_v62 = vld [vmem:[#allocation16 + $0x8] sm:$0xff]  }
0x28a7   :  { %v11409_v11 = vld [vmem:[#allocation16 + $0x10] sm:$0xff]  }
0x28a8   :  { %v4758_v39 = vmul.f32 %v8816_v24, %v4756_v57  ;;  %v11339_v55 = vadd.f32 %v8810_v48, %v4757_v9  ;;  %v11399_v48 = vld [vmem:[#allocation16] sm:$0xff]  }
0x28aa   :  { %v11341_v45 = vadd.f32 %v8814_v27, %v4758_v39 }
0x28ac   :  { %v11345_v50 = vpack.c.bf16 %v11341_v45, %v11339_v55 }
0x28ae   :  { %4802 = vmatmul.mubr.bf16.vlgmr.msra.gmra.mrb[136].mxu1 %v11345_v50 }
0x28af   :  { %4903 = vmatpush1.bf16.msra.mxu1 %v11348_v6  ;;  %4934 = vmatprep.mubr.bf16.mxu1 %v12150_v12 }
0x28b0   :  { %4904 = vmatprep.subr.bf16.mxu1 %v11352_v7 }
0x28b3   :  { %4905 = vmatpush1.bf16.msra.mxu1 %v11355_v10 }
0x28b4   :  { %4906 = vmatprep.subr.bf16.mxu1 %v11358_v30 }
0x28b7   :  { %4907 = vmatpush1.bf16.msra.mxu1 %v11361_v61 }
0x28b8   :  { %4908 = vmatprep.subr.bf16.mxu1 %v11364_v40 }
0x28bb   :  { %4909 = vmatpush1.bf16.msra.mxu1 %v11367_v29 }
0x28bc   :  { %4910 = vmatprep.subr.bf16.mxu1 %v11370_v52 }
0x28bf   :  { %4911 = vmatpush1.bf16.msra.mxu1 %v11373_v44 }
0x28c0   :  { %4912 = vmatprep.subr.bf16.mxu1 %v11376_v37 }
0x28c3   :  { %4913 = vmatpush1.bf16.msra.mxu1 %v11379_v33 }
0x28c4   :  { %4914 = vmatprep.subr.bf16.mxu1 %v11382_v26 }
0x28c7   :  { %4915 = vmatpush1.bf16.msra.mxu1 %v11385_v1 }
0x28c8   :  { %4916 = vmatprep.subr.bf16.mxu1 %v11388_v32 }
0x28cb   :  { %4917 = vmatpush1.bf16.msra.mxu1 %v11391_v36 }
0x28cc   :  { %5035 = vmatprep.subr.bf16.mxu1 %v11306_v17 }
0x2981   :  { %v4803_v59 = vpop.f32.mrb[136].mxu1 }
0x2982   :  { %v4805_v60 = vpop.f32.mrb[137].mxu1 }
0x2983   :  { %v8074_v41 = vadd.f32 %v4805_v60, %v11073_v34  ;;  %v4807_v51 = vpop.f32.mrb[138].mxu1 }
0x2984   :  { %v4809_v21 = vpop.f32.mrb[139].mxu1  ;;  %v8075_v27 = vadd.f32 %v4807_v51, %v11099_v53 }
0x2985   :  { %v6757_v46 = vmul.f32 -1.442695, %v8074_v41  ;;  %v8076_v28 = vadd.f32 %v4809_v21, %v11073_v34 }
0x2987   :  { %8817 = vpow2.f32 %v6757_v46  ;;  %v6759_v4 = vmul.f32 -1.442695, %v8076_v28 }
0x2989   :  { %8819 = vpow2.f32 %v6759_v4 }
0x2991   :  { %v8818_v5 = vpop.eup %8817 }
0x2992   :  { %v4829_v19 = vadd.f32 1.0, %v8818_v5 }
0x2993   :  { %v8820_v2 = vpop.eup %8819 }
0x2994   :  { %8821 = vrcp.f32 %v4829_v19  ;;  %v4831_v16 = vadd.f32 1.0, %v8820_v2 }
0x2996   :  { %8823 = vrcp.f32 %v4831_v16 }
0x299e   :  { %v8822_v8 = vpop.eup %8821 }
0x299f   :  { %v4840_v42 = vmul.f32 %v8822_v8, %v11339_v55 }
0x29a0   :  { %v8824_v43 = vpop.eup %8823 }
0x29a1   :  { %v4841_v49 = vmul.f32 %v8824_v43, %v11341_v45 }
0x29a3   :  { %v4842_v23 = vpack.c.bf16 %v4841_v49, %v4840_v42 }
0x29a5   :  { %7702 = vmatmul.mubr.bf16.vlgmr.msra.gmra.mrb[116].mxu0 %v4842_v23 }
0x29a6   :  { %7706 = vmatpush3.bf16.msra.mxu0 %v11399_v48  ;;  %7721 = vmatprep.mubr.msk.bf16.mxu0 %vm9412_vm0, %v12149_v22 }
0x29a7   :  { %7707 = vmatprep.subr.bf16.mxu0 %v12149_v22 }
0x29aa   :  { %7708 = vmatpush3.bf16.msra.mxu0 %v11405_v62 }
0x29ab   :  { %7709 = vmatprep.subr.bf16.mxu0 %v12149_v22 }
0x29ae   :  { %7710 = vmatpush3.bf16.msra.mxu0 %v11409_v11 }
0x29af   :  { %7711 = vmatprep.subr.bf16.mxu0 %v12149_v22 }
0x29b2   :  { %7712 = vmatpush3.bf16.msra.mxu0 %v11040_v54  ;;  %v8073_v54 = vadd.f32 %v4803_v59, %v11099_v53 }
0x29b3   :  { %7713 = vmatprep.subr.bf16.mxu0 %v12149_v22 }
0x29b4   :  { %v6756_v57 = vmul.f32 -1.442695, %v8073_v54 }
0x29b6   :  { %7714 = vmatpush3.bf16.msra.mxu0 %v11044_v47  ;;  %v6758_v47 = vmul.f32 -1.442695, %v8075_v27  ;;  %8825 = vpow2.f32 %v6756_v57 }
0x29b7   :  { %7715 = vmatprep.subr.bf16.mxu0 %v12149_v22 }
0x29b8   :  { %8827 = vpow2.f32 %v6758_v47 }
0x29ba   :  { %7716 = vmatpush3.bf16.msra.mxu0 %v11047_v14  ;;  %v3752_v14 = vadd.f32 %v10877_v58, %v11105_v0 }
0x29bb   :  { %7717 = vmatprep.subr.bf16.mxu0 %v12149_v22 }
0x29be   :  { %7718 = vmatpush3.bf16.msra.mxu0 %v11051_v38 }
0x29bf   :  { %7719 = vmatprep.subr.bf16.mxu0 %v12149_v22 }
0x29c0   :  { %v8826_v9 = vpop.eup %8825 }
0x29c1   :  { %v4828_v38 = vadd.f32 1.0, %v8826_v9 }
0x29c2   :  { %7720 = vmatpush3.bf16.msra.mxu0 %v11055_v3  ;;  %v8828_v24 = vpop.eup %8827  ;;  %v3755_v3 = vadd.f32 %v10881_v63, %v11105_v0 }
0x29c3   :  { %7725 = vmatprep.subr.bf16.mxu0 %v12149_v22  ;;  %v4830_v59 = vadd.f32 1.0, %v8828_v24 }
0x2a78   :  { %v4877_v39 = vpop.f32.mrb[116].mxu0 }
0x2a79   :  { %v4884_v60 = vadd.f32 %v4877_v39, %v3752_v14  ;;  %v7703_v41 = vpop.f32.mrb[117].mxu0 }
0x2a7a   :  { %v4880_v21 = vpop.f32.mrb[118].mxu0 }
0x2a7b   :  { %8829 = vtanh.f32 %v4884_v60  ;;  %v4885_v51 = vadd.f32 %v4880_v21, %v3755_v3  ;;  %v7704_v46 = vpop.f32.mrb[119].mxu0 }
0x2a7c   :  { %8831 = vrcp.f32 %v4828_v38  ;;  %v11477_v46 = vld [vmem:[#allocation16 + $0x28] sm:$0xff]  }
0x2a7d   :  { %8833 = vtanh.f32 %v4885_v51  ;;  %v11473_v51 = vld [vmem:[#allocation16 + $0x20] sm:$0xff]  }
0x2a7e   :  { %8835 = vrcp.f32 %v4830_v59  ;;  %v11469_v59 = vld [vmem:[#allocation16 + $0x18] sm:$0xff]  }
0x2a85   :  { %v8830_v28 = vpop.eup %8829 }
0x2a86   :  { %v8832_v4 = vpop.eup %8831  ;;  %v4888_v58 = vsub.f32 %v11339_v55, %v8830_v28 }
0x2a87   :  { %v8834_v5 = vpop.eup %8833 }
0x2a88   :  { %v4889_v19 = vsub.f32 %v11341_v45, %v8834_v5  ;;  %v4890_v2 = vmul.f32 %v8832_v4, %v4888_v58  ;;  %v8836_v16 = vpop.eup %8835  ;;  %v11485_v4 = vld [vmem:[#allocation16 + $0x38] sm:$0xff]  }
0x2a8a   :  { %v4891_v63 = vmul.f32 %v8836_v16, %v4889_v19  ;;  %v11431_v8 = vadd.f32 %v8830_v28, %v4890_v2  ;;  %v11481_v28 = vld [vmem:[#allocation16 + $0x30] sm:$0xff]  }
0x2a8c   :  { %v11433_v43 = vadd.f32 %v8834_v5, %v4891_v63  ;;  %v3760_v63 = vadd.f32 %v10887_v20, %v11105_v0 }
0x2a8e   :  { %v11437_v42 = vpack.c.bf16 %v11433_v43, %v11431_v8 }
0x2a90   :  { %4935 = vmatmul.mubr.bf16.vlgmr.msra.gmra.mrb[140].mxu1 %v11437_v42 }
0x2a91   :  { %5036 = vmatpush1.bf16.msra.mxu1 %v11348_v6  ;;  %5067 = vmatprep.mubr.bf16.mxu1 %v12150_v12 }
0x2a92   :  { %5037 = vmatprep.subr.bf16.mxu1 %v11352_v7 }
0x2a95   :  { %5038 = vmatpush1.bf16.msra.mxu1 %v11355_v10 }
0x2a96   :  { %5039 = vmatprep.subr.bf16.mxu1 %v11358_v30 }
0x2a99   :  { %5040 = vmatpush1.bf16.msra.mxu1 %v11361_v61 }
0x2a9a   :  { %5041 = vmatprep.subr.bf16.mxu1 %v11364_v40 }
0x2a9d   :  { %5042 = vmatpush1.bf16.msra.mxu1 %v11367_v29 }
0x2a9e   :  { %5043 = vmatprep.subr.bf16.mxu1 %v11370_v52 }
0x2aa1   :  { %5044 = vmatpush1.bf16.msra.mxu1 %v11373_v44 }
0x2aa2   :  { %5045 = vmatprep.subr.bf16.mxu1 %v11376_v37 }
0x2aa5   :  { %5046 = vmatpush1.bf16.msra.mxu1 %v11379_v33 }
0x2aa6   :  { %5047 = vmatprep.subr.bf16.mxu1 %v11382_v26 }
0x2aa9   :  { %5048 = vmatpush1.bf16.msra.mxu1 %v11385_v1 }
0x2aaa   :  { %5049 = vmatprep.subr.bf16.mxu1 %v11388_v32 }
0x2aad   :  { %5050 = vmatpush1.bf16.msra.mxu1 %v11391_v36 }
0x2aae   :  { %5168 = vmatprep.subr.bf16.mxu1 %v11306_v17 }
0x2b63   :  { %v4936_v55 = vpop.f32.mrb[140].mxu1 }
0x2b64   :  { %v4938_v45 = vpop.f32.mrb[141].mxu1  ;;  %v8077_v58 = vadd.f32 %v4936_v55, %v11099_v53 }
0x2b65   :  { %v8078_v49 = vadd.f32 %v4938_v45, %v11073_v34  ;;  %v4940_v23 = vpop.f32.mrb[142].mxu1 }
0x2b66   :  { %v4942_v54 = vpop.f32.mrb[143].mxu1  ;;  %v8079_v5 = vadd.f32 %v4940_v23, %v11099_v53  ;;  %v6760_v19 = vmul.f32 -1.442695, %v8077_v58 }
0x2b67   :  { %v6761_v27 = vmul.f32 -1.442695, %v8078_v49  ;;  %v8080_v57 = vadd.f32 %v4942_v54, %v11073_v34 }
0x2b68   :  { %v6762_v2 = vmul.f32 -1.442695, %v8079_v5 }
0x2b69   :  { %8837 = vpow2.f32 %v6761_v27  ;;  %v6763_v47 = vmul.f32 -1.442695, %v8080_v57  ;;  %v3763_v27 = vadd.f32 %v10891_v31, %v11105_v0 }
0x2b6b   :  { %8839 = vpow2.f32 %v6763_v47 }
0x2b73   :  { %v8838_v9 = vpop.eup %8837 }
0x2b74   :  { %v4962_v14 = vadd.f32 1.0, %v8838_v9 }
0x2b75   :  { %v8840_v24 = vpop.eup %8839 }
0x2b76   :  { %8841 = vrcp.f32 %v4962_v14  ;;  %v4964_v38 = vadd.f32 1.0, %v8840_v24 }
0x2b78   :  { %8843 = vrcp.f32 %v4964_v38 }
0x2b79   :  { %8845 = vpow2.f32 %v6760_v19 }
0x2b7a   :  { %8847 = vpow2.f32 %v6762_v2 }
0x2b80   :  { %v8842_v39 = vpop.eup %8841 }
0x2b81   :  { %v4973_v60 = vmul.f32 %v8842_v39, %v11431_v8 }
0x2b82   :  { %v8844_v3 = vpop.eup %8843 }
0x2b83   :  { %v4974_v41 = vmul.f32 %v8844_v3, %v11433_v43  ;;  %v8846_v16 = vpop.eup %8845 }
0x2b84   :  { %v8848_v45 = vpop.eup %8847  ;;  %v4961_v49 = vadd.f32 1.0, %v8846_v16 }
0x2b85   :  { %v4975_v21 = vpack.c.bf16 %v4974_v41, %v4973_v60  ;;  %v4963_v55 = vadd.f32 1.0, %v8848_v45 }
0x2b87   :  { %7722 = vmatmul.mubr.bf16.vlgmr.msra.gmra.mrb[120].mxu0 %v4975_v21 }
0x2b88   :  { %7726 = vmatpush3.bf16.msra.mxu0 %v11399_v48  ;;  %7741 = vmatprep.mubr.msk.bf16.mxu0 %vm9412_vm0, %v12149_v22 }
0x2b89   :  { %7727 = vmatprep.subr.bf16.mxu0 %v12149_v22 }
0x2b8c   :  { %7728 = vmatpush3.bf16.msra.mxu0 %v11405_v62 }
0x2b8d   :  { %7729 = vmatprep.subr.bf16.mxu0 %v12149_v22 }
0x2b90   :  { %7730 = vmatpush3.bf16.msra.mxu0 %v11409_v11 }
0x2b91   :  { %7731 = vmatprep.subr.bf16.mxu0 %v12149_v22 }
0x2b94   :  { %7732 = vmatpush3.bf16.msra.mxu0 %v11469_v59 }
0x2b95   :  { %7733 = vmatprep.subr.bf16.mxu0 %v12149_v22 }
0x2b98   :  { %7734 = vmatpush3.bf16.msra.mxu0 %v11473_v51 }
0x2b99   :  { %7735 = vmatprep.subr.bf16.mxu0 %v12149_v22 }
0x2b9c   :  { %7736 = vmatpush3.bf16.msra.mxu0 %v11477_v46 }
0x2b9d   :  { %7737 = vmatprep.subr.bf16.mxu0 %v12149_v22 }
0x2ba0   :  { %7738 = vmatpush3.bf16.msra.mxu0 %v11481_v28 }
0x2ba1   :  { %7739 = vmatprep.subr.bf16.mxu0 %v12149_v22 }
0x2ba4   :  { %7740 = vmatpush3.bf16.msra.mxu0 %v11485_v4 }
0x2ba5   :  { %7745 = vmatprep.subr.bf16.mxu0 %v12149_v22 }
0x2c5a   :  { %v5010_v54 = vpop.f32.mrb[120].mxu0 }
0x2c5b   :  { %v5017_v57 = vadd.f32 %v5010_v54, %v3760_v63  ;;  %v7723_v47 = vpop.f32.mrb[121].mxu0 }
0x2c5c   :  { %v5013_v9 = vpop.f32.mrb[122].mxu0 }
0x2c5d   :  { %8849 = vtanh.f32 %v5017_v57  ;;  %v5018_v23 = vadd.f32 %v5013_v9, %v3763_v27  ;;  %v7724_v14 = vpop.f32.mrb[123].mxu0 }
0x2c5e   :  { %8851 = vrcp.f32 %v4961_v49 }
0x2c5f   :  { %8853 = vtanh.f32 %v5018_v23 }
0x2c60   :  { %8855 = vrcp.f32 %v4963_v55 }
0x2c67   :  { %v8850_v24 = vpop.eup %8849 }
0x2c68   :  { %v8852_v38 = vpop.eup %8851  ;;  %v5021_v20 = vsub.f32 %v11431_v8, %v8850_v24 }
0x2c69   :  { %v8854_v39 = vpop.eup %8853 }
0x2c6a   :  { %v5022_v3 = vsub.f32 %v11433_v43, %v8854_v39  ;;  %v5023_v60 = vmul.f32 %v8852_v38, %v5021_v20  ;;  %v8856_v41 = vpop.eup %8855 }
0x2c6c   :  { %v5024_v31 = vmul.f32 %v8856_v41, %v5022_v3  ;;  %v11497_v21 = vadd.f32 %v8850_v24, %v5023_v60  ;;  %v3768_v41 = vadd.f32 %v10885_v18, %v11105_v0 }
0x2c6e   :  { %v11499_v58 = vadd.f32 %v8854_v39, %v5024_v31 }
0x2c70   :  { %v11503_v5 = vpack.c.bf16 %v11499_v58, %v11497_v21 }
0x2c72   :  { %5068 = vmatmul.mubr.bf16.vlgmr.msra.gmra.mrb[144].mxu1 %v11503_v5 }
0x2c73   :  { %5169 = vmatpush1.bf16.msra.mxu1 %v11348_v6  ;;  %5200 = vmatprep.mubr.bf16.mxu1 %v12150_v12 }
0x2c74   :  { %5170 = vmatprep.subr.bf16.mxu1 %v11352_v7 }
0x2c77   :  { %5171 = vmatpush1.bf16.msra.mxu1 %v11355_v10 }
0x2c78   :  { %5172 = vmatprep.subr.bf16.mxu1 %v11358_v30 }
0x2c7b   :  { %5173 = vmatpush1.bf16.msra.mxu1 %v11361_v61 }
0x2c7c   :  { %5174 = vmatprep.subr.bf16.mxu1 %v11364_v40 }
0x2c7f   :  { %5175 = vmatpush1.bf16.msra.mxu1 %v11367_v29 }
0x2c80   :  { %5176 = vmatprep.subr.bf16.mxu1 %v11370_v52 }
0x2c83   :  { %5177 = vmatpush1.bf16.msra.mxu1 %v11373_v44 }
0x2c84   :  { %5178 = vmatprep.subr.bf16.mxu1 %v11376_v37 }
0x2c87   :  { %5179 = vmatpush1.bf16.msra.mxu1 %v11379_v33 }
0x2c88   :  { %5180 = vmatprep.subr.bf16.mxu1 %v11382_v26 }
0x2c8b   :  { %5181 = vmatpush1.bf16.msra.mxu1 %v11385_v1 }
0x2c8c   :  { %5182 = vmatprep.subr.bf16.mxu1 %v11388_v32 }
0x2c8f   :  { %5183 = vmatpush1.bf16.msra.mxu1 %v11391_v36 }
0x2c90   :  { %5301 = vmatprep.subr.bf16.mxu1 %v11306_v17 }
0x2d45   :  { %v5069_v8 = vpop.f32.mrb[144].mxu1 }
0x2d46   :  { %v5071_v43 = vpop.f32.mrb[145].mxu1  ;;  %v8081_v38 = vadd.f32 %v5069_v8, %v11099_v53 }
0x2d47   :  { %v8082_v19 = vadd.f32 %v5071_v43, %v11073_v34  ;;  %v5073_v2 = vpop.f32.mrb[146].mxu1 }
0x2d48   :  { %v5075_v16 = vpop.f32.mrb[147].mxu1  ;;  %v8083_v20 = vadd.f32 %v5073_v2, %v11099_v53  ;;  %v6764_v39 = vmul.f32 -1.442695, %v8081_v38 }
0x2d49   :  { %v6765_v63 = vmul.f32 -1.442695, %v8082_v19  ;;  %v8084_v45 = vadd.f32 %v5075_v16, %v11073_v34  ;;  %v3771_v16 = vadd.f32 %v10889_v35, %v11105_v0 }
0x2d4a   :  { %v6766_v3 = vmul.f32 -1.442695, %v8083_v20 }
0x2d4b   :  { %8857 = vpow2.f32 %v6765_v63  ;;  %v6767_v49 = vmul.f32 -1.442695, %v8084_v45 }
0x2d4d   :  { %8859 = vpow2.f32 %v6767_v49 }
0x2d55   :  { %v8858_v54 = vpop.eup %8857 }
0x2d56   :  { %v5095_v27 = vadd.f32 1.0, %v8858_v54 }
0x2d57   :  { %v8860_v57 = vpop.eup %8859 }
0x2d58   :  { %8861 = vrcp.f32 %v5095_v27  ;;  %v5097_v47 = vadd.f32 1.0, %v8860_v57 }
0x2d5a   :  { %8863 = vrcp.f32 %v5097_v47 }
0x2d5b   :  { %8865 = vpow2.f32 %v6764_v39 }
0x2d5c   :  { %8867 = vpow2.f32 %v6766_v3 }
0x2d62   :  { %v8862_v9 = vpop.eup %8861 }
0x2d63   :  { %v5106_v23 = vmul.f32 %v8862_v9, %v11497_v21 }
0x2d64   :  { %v8864_v55 = vpop.eup %8863 }
0x2d65   :  { %v5107_v14 = vmul.f32 %v8864_v55, %v11499_v58  ;;  %v8866_v60 = vpop.eup %8865 }
0x2d66   :  { %v8868_v31 = vpop.eup %8867  ;;  %v5094_v43 = vadd.f32 1.0, %v8866_v60 }
0x2d67   :  { %v5108_v24 = vpack.c.bf16 %v5107_v14, %v5106_v23  ;;  %v5096_v8 = vadd.f32 1.0, %v8868_v31 }
0x2d69   :  { %7742 = vmatmul.mubr.bf16.vlgmr.msra.gmra.mrb[124].mxu0 %v5108_v24 }
0x2d6a   :  { %7746 = vmatpush3.bf16.msra.mxu0 %v11399_v48  ;;  %7761 = vmatprep.mubr.msk.bf16.mxu0 %vm9412_vm0, %v12149_v22 }
0x2d6b   :  { %7747 = vmatprep.subr.bf16.mxu0 %v12149_v22 }
0x2d6e   :  { %7748 = vmatpush3.bf16.msra.mxu0 %v11405_v62 }
0x2d6f   :  { %7749 = vmatprep.subr.bf16.mxu0 %v12149_v22 }
0x2d72   :  { %7750 = vmatpush3.bf16.msra.mxu0 %v11409_v11 }
0x2d73   :  { %7751 = vmatprep.subr.bf16.mxu0 %v12149_v22 }
0x2d76   :  { %7752 = vmatpush3.bf16.msra.mxu0 %v11469_v59 }
0x2d77   :  { %7753 = vmatprep.subr.bf16.mxu0 %v12149_v22 }
0x2d7a   :  { %7754 = vmatpush3.bf16.msra.mxu0 %v11473_v51 }
0x2d7b   :  { %7755 = vmatprep.subr.bf16.mxu0 %v12149_v22 }
0x2d7e   :  { %7756 = vmatpush3.bf16.msra.mxu0 %v11477_v46 }
0x2d7f   :  { %7757 = vmatprep.subr.bf16.mxu0 %v12149_v22 }
0x2d82   :  { %7758 = vmatpush3.bf16.msra.mxu0 %v11481_v28 }
0x2d83   :  { %7759 = vmatprep.subr.bf16.mxu0 %v12149_v22 }
0x2d86   :  { %7760 = vmatpush3.bf16.msra.mxu0 %v11485_v4 }
0x2d87   :  { %7765 = vmatprep.subr.bf16.mxu0 %v12149_v22 }
0x2e3c   :  { %v5143_v19 = vpop.f32.mrb[124].mxu0 }
0x2e3d   :  { %v5150_v63 = vadd.f32 %v5143_v19, %v3768_v41  ;;  %v7743_v45 = vpop.f32.mrb[125].mxu0 }
0x2e3e   :  { %v5146_v49 = vpop.f32.mrb[126].mxu0 }
0x2e3f   :  { %8869 = vtanh.f32 %v5150_v63  ;;  %v5151_v2 = vadd.f32 %v5146_v49, %v3771_v16  ;;  %v7744_v54 = vpop.f32.mrb[127].mxu0 }
0x2e40   :  { %8871 = vrcp.f32 %v5094_v43 }
0x2e41   :  { %8873 = vtanh.f32 %v5151_v2 }
0x2e42   :  { %8875 = vrcp.f32 %v5096_v8 }
0x2e49   :  { %v8870_v27 = vpop.eup %8869 }
0x2e4a   :  { %v8872_v57 = vpop.eup %8871  ;;  %v5154_v18 = vsub.f32 %v11497_v21, %v8870_v27 }
0x2e4b   :  { %v8874_v47 = vpop.eup %8873 }
0x2e4c   :  { %v5155_v9 = vsub.f32 %v11499_v58, %v8874_v47  ;;  %v5156_v55 = vmul.f32 %v8872_v57, %v5154_v18  ;;  %v8876_v23 = vpop.eup %8875 }
0x2e4e   :  { %v5157_v35 = vmul.f32 %v8876_v23, %v5155_v9  ;;  %v11553_v14 = vadd.f32 %v8870_v27, %v5156_v55  ;;  %v12206_v55 = vld [vmem:[#allocation50_spill] sm:$0xff] }
0x2e4f   :  { %v3776_v23 = vadd.f32 %v12206_v55, %v11105_v0 }
0x2e50   :  { %v11555_v24 = vadd.f32 %v8874_v47, %v5157_v35 }
0x2e52   :  { %v11559_v38 = vpack.c.bf16 %v11555_v24, %v11553_v14 }
0x2e54   :  { %5201 = vmatmul.mubr.bf16.vlgmr.msra.gmra.mrb[148].mxu1 %v11559_v38 }
0x2e55   :  { %5302 = vmatpush1.bf16.msra.mxu1 %v11348_v6  ;;  %5333 = vmatprep.mubr.bf16.mxu1 %v12150_v12 }
0x2e56   :  { %5303 = vmatprep.subr.bf16.mxu1 %v11352_v7 }
0x2e59   :  { %5304 = vmatpush1.bf16.msra.mxu1 %v11355_v10 }
0x2e5a   :  { %5305 = vmatprep.subr.bf16.mxu1 %v11358_v30 }
0x2e5d   :  { %5306 = vmatpush1.bf16.msra.mxu1 %v11361_v61 }
0x2e5e   :  { %5307 = vmatprep.subr.bf16.mxu1 %v11364_v40 }
0x2e61   :  { %5308 = vmatpush1.bf16.msra.mxu1 %v11367_v29 }
0x2e62   :  { %5309 = vmatprep.subr.bf16.mxu1 %v11370_v52 }
0x2e65   :  { %5310 = vmatpush1.bf16.msra.mxu1 %v11373_v44 }
0x2e66   :  { %5311 = vmatprep.subr.bf16.mxu1 %v11376_v37 }
0x2e69   :  { %5312 = vmatpush1.bf16.msra.mxu1 %v11379_v33 }
0x2e6a   :  { %5313 = vmatprep.subr.bf16.mxu1 %v11382_v26 }
0x2e6d   :  { %5314 = vmatpush1.bf16.msra.mxu1 %v11385_v1 }
0x2e6e   :  { %5315 = vmatprep.subr.bf16.mxu1 %v11388_v32 }
0x2e71   :  { %5316 = vmatpush1.bf16.msra.mxu1 %v11391_v36 }
0x2e72   :  { %5434 = vmatprep.subr.bf16.mxu1 %v11306_v17 }
0x2f27   :  { %v5202_v21 = vpop.f32.mrb[148].mxu1 }
0x2f28   :  { %v5204_v58 = vpop.f32.mrb[149].mxu1  ;;  %v8085_v27 = vadd.f32 %v5202_v21, %v11099_v53 }
0x2f29   :  { %v8086_v20 = vadd.f32 %v5204_v58, %v11073_v34  ;;  %v5206_v39 = vpop.f32.mrb[150].mxu1 }
0x2f2a   :  { %v5208_v3 = vpop.f32.mrb[151].mxu1  ;;  %v8087_v57 = vadd.f32 %v5206_v39, %v11099_v53  ;;  %v6768_v18 = vmul.f32 -1.442695, %v8085_v27 }
0x2f2b   :  { %v6769_v60 = vmul.f32 -1.442695, %v8086_v20  ;;  %v8088_v41 = vadd.f32 %v5208_v3, %v11073_v34  ;;  %v12207_v3 = vld [vmem:[#allocation54_spill] sm:$0xff] }
0x2f2c   :  { %v6770_v47 = vmul.f32 -1.442695, %v8087_v57 }
0x2f2d   :  { %8877 = vpow2.f32 %v6769_v60  ;;  %v6771_v31 = vmul.f32 -1.442695, %v8088_v41  ;;  %v3779_v60 = vadd.f32 %v12207_v3, %v11105_v0 }
0x2f2f   :  { %8879 = vpow2.f32 %v6771_v31 }
0x2f37   :  { %v8878_v43 = vpop.eup %8877 }
0x2f38   :  { %v5228_v19 = vadd.f32 1.0, %v8878_v43 }
0x2f39   :  { %v8880_v16 = vpop.eup %8879 }
0x2f3a   :  { %8881 = vrcp.f32 %v5228_v19  ;;  %v5230_v63 = vadd.f32 1.0, %v8880_v16 }
0x2f3c   :  { %8883 = vrcp.f32 %v5230_v63 }
0x2f3d   :  { %8885 = vpow2.f32 %v6768_v18 }
0x2f3e   :  { %8887 = vpow2.f32 %v6770_v47 }
0x2f44   :  { %v8882_v45 = vpop.eup %8881 }
0x2f45   :  { %v5239_v8 = vmul.f32 %v8882_v45, %v11553_v14 }
0x2f46   :  { %v8884_v49 = vpop.eup %8883 }
0x2f47   :  { %v5240_v2 = vmul.f32 %v8884_v49, %v11555_v24  ;;  %v8886_v9 = vpop.eup %8885 }
0x2f48   :  { %v8888_v35 = vpop.eup %8887  ;;  %v5227_v58 = vadd.f32 1.0, %v8886_v9 }
0x2f49   :  { %v5241_v54 = vpack.c.bf16 %v5240_v2, %v5239_v8  ;;  %v5229_v21 = vadd.f32 1.0, %v8888_v35 }
0x2f4b   :  { %7762 = vmatmul.mubr.bf16.vlgmr.msra.gmra.mrb[128].mxu0 %v5241_v54 }
0x2f4c   :  { %7766 = vmatpush3.bf16.msra.mxu0 %v11399_v48  ;;  %7781 = vmatprep.mubr.msk.bf16.mxu0 %vm9412_vm0, %v12149_v22 }
0x2f4d   :  { %7767 = vmatprep.subr.bf16.mxu0 %v12149_v22 }
0x2f50   :  { %7768 = vmatpush3.bf16.msra.mxu0 %v11405_v62 }
0x2f51   :  { %7769 = vmatprep.subr.bf16.mxu0 %v12149_v22 }
0x2f54   :  { %7770 = vmatpush3.bf16.msra.mxu0 %v11409_v11 }
0x2f55   :  { %7771 = vmatprep.subr.bf16.mxu0 %v12149_v22 }
0x2f58   :  { %7772 = vmatpush3.bf16.msra.mxu0 %v11469_v59 }
0x2f59   :  { %7773 = vmatprep.subr.bf16.mxu0 %v12149_v22 }
0x2f5c   :  { %7774 = vmatpush3.bf16.msra.mxu0 %v11473_v51 }
0x2f5d   :  { %7775 = vmatprep.subr.bf16.mxu0 %v12149_v22 }
0x2f60   :  { %7776 = vmatpush3.bf16.msra.mxu0 %v11477_v46 }
0x2f61   :  { %7777 = vmatprep.subr.bf16.mxu0 %v12149_v22 }
0x2f64   :  { %7778 = vmatpush3.bf16.msra.mxu0 %v11481_v28 }
0x2f65   :  { %7779 = vmatprep.subr.bf16.mxu0 %v12149_v22 }
0x2f68   :  { %7780 = vmatpush3.bf16.msra.mxu0 %v11485_v4 }
0x2f69   :  { %7785 = vmatprep.subr.bf16.mxu0 %v12149_v22 }
0x301e   :  { %v5276_v20 = vpop.f32.mrb[128].mxu0 }
0x301f   :  { %v5283_v41 = vadd.f32 %v5276_v20, %v3776_v23  ;;  %v7763_v31 = vpop.f32.mrb[129].mxu0 }
0x3020   :  { %v5279_v43 = vpop.f32.mrb[130].mxu0 }
0x3021   :  { %8889 = vtanh.f32 %v5283_v41  ;;  %v5284_v39 = vadd.f32 %v5279_v43, %v3779_v60  ;;  %v7764_v19 = vpop.f32.mrb[131].mxu0 }
0x3022   :  { %8891 = vrcp.f32 %v5227_v58 }
0x3023   :  { %8893 = vtanh.f32 %v5284_v39 }
0x3024   :  { %8895 = vrcp.f32 %v5229_v21 }
0x302b   :  { %v8890_v16 = vpop.eup %8889 }
0x302c   :  { %v8892_v63 = vpop.eup %8891  ;;  %v5287_v45 = vsub.f32 %v11553_v14, %v8890_v16 }
0x302d   :  { %v8894_v49 = vpop.eup %8893 }
0x302e   :  { %v5288_v8 = vsub.f32 %v11555_v24, %v8894_v49  ;;  %v5289_v2 = vmul.f32 %v8892_v63, %v5287_v45  ;;  %v8896_v54 = vpop.eup %8895 }
0x3030   :  { %v5290_v27 = vmul.f32 %v8896_v54, %v5288_v8  ;;  %v11609_v57 = vadd.f32 %v8890_v16, %v5289_v2  ;;  %v12208_v2 = vld [vmem:[#allocation52_spill] sm:$0xff] }
0x3031   :  { %v3784_v54 = vadd.f32 %v12208_v2, %v11105_v0 }
0x3032   :  { %v11611_v18 = vadd.f32 %v8894_v49, %v5290_v27 }
0x3034   :  { %v11615_v47 = vpack.c.bf16 %v11611_v18, %v11609_v57 }
0x3036   :  { %5334 = vmatmul.mubr.bf16.vlgmr.msra.gmra.mrb[152].mxu1 %v11615_v47 }
0x3037   :  { %5435 = vmatpush1.bf16.msra.mxu1 %v11348_v6  ;;  %5466 = vmatprep.mubr.bf16.mxu1 %v12150_v12 }
0x3038   :  { %5436 = vmatprep.subr.bf16.mxu1 %v11352_v7 }
0x303b   :  { %5437 = vmatpush1.bf16.msra.mxu1 %v11355_v10 }
0x303c   :  { %5438 = vmatprep.subr.bf16.mxu1 %v11358_v30 }
0x303f   :  { %5439 = vmatpush1.bf16.msra.mxu1 %v11361_v61 }
0x3040   :  { %5440 = vmatprep.subr.bf16.mxu1 %v11364_v40 }
0x3043   :  { %5441 = vmatpush1.bf16.msra.mxu1 %v11367_v29 }
0x3044   :  { %5442 = vmatprep.subr.bf16.mxu1 %v11370_v52 }
0x3047   :  { %5443 = vmatpush1.bf16.msra.mxu1 %v11373_v44 }
0x3048   :  { %5444 = vmatprep.subr.bf16.mxu1 %v11376_v37 }
0x304b   :  { %5445 = vmatpush1.bf16.msra.mxu1 %v11379_v33 }
0x304c   :  { %5446 = vmatprep.subr.bf16.mxu1 %v11382_v26 }
0x304f   :  { %5447 = vmatpush1.bf16.msra.mxu1 %v11385_v1 }
0x3050   :  { %5448 = vmatprep.subr.bf16.mxu1 %v11388_v32 }
0x3053   :  { %5449 = vmatpush1.bf16.msra.mxu1 %v11391_v36 }
0x3054   :  { %5567 = vmatprep.subr.bf16.mxu1 %v11306_v17 }
0x3109   :  { %v5335_v14 = vpop.f32.mrb[152].mxu1 }
0x310a   :  { %v5337_v24 = vpop.f32.mrb[153].mxu1  ;;  %v8089_v16 = vadd.f32 %v5335_v14, %v11099_v53 }
0x310b   :  { %v8090_v9 = vadd.f32 %v5337_v24, %v11073_v34  ;;  %v5339_v55 = vpop.f32.mrb[154].mxu1 }
0x310c   :  { %v5341_v23 = vpop.f32.mrb[155].mxu1  ;;  %v8091_v63 = vadd.f32 %v5339_v55, %v11099_v53  ;;  %v6772_v45 = vmul.f32 -1.442695, %v8089_v16 }
0x310d   :  { %v6773_v35 = vmul.f32 -1.442695, %v8090_v9  ;;  %v8092_v58 = vadd.f32 %v5341_v23, %v11073_v34  ;;  %v12209_v23 = vld [vmem:[#allocation51_spill] sm:$0xff] }
0x310e   :  { %v6774_v49 = vmul.f32 -1.442695, %v8091_v63 }
0x310f   :  { %8897 = vpow2.f32 %v6773_v35  ;;  %v6775_v20 = vmul.f32 -1.442695, %v8092_v58  ;;  %v3787_v35 = vadd.f32 %v12209_v23, %v11105_v0 }
0x3111   :  { %8899 = vpow2.f32 %v6775_v20 }
0x3119   :  { %v8898_v3 = vpop.eup %8897 }
0x311a   :  { %v5361_v60 = vadd.f32 1.0, %v8898_v3 }
0x311b   :  { %v8900_v41 = vpop.eup %8899 }
0x311c   :  { %8901 = vrcp.f32 %v5361_v60  ;;  %v5363_v31 = vadd.f32 1.0, %v8900_v41 }
0x311e   :  { %8903 = vrcp.f32 %v5363_v31 }
0x311f   :  { %8905 = vpow2.f32 %v6772_v45 }
0x3120   :  { %8907 = vpow2.f32 %v6774_v49 }
0x3126   :  { %v8902_v43 = vpop.eup %8901 }
0x3127   :  { %v5372_v21 = vmul.f32 %v8902_v43, %v11609_v57 }
0x3128   :  { %v8904_v17 = vpop.eup %8903 }
0x3129   :  { %v5373_v39 = vmul.f32 %v8904_v17, %v11611_v18  ;;  %v8906_v8 = vpop.eup %8905 }
0x312a   :  { %v8908_v27 = vpop.eup %8907  ;;  %v5360_v24 = vadd.f32 1.0, %v8906_v8 }
0x312b   :  { %v5374_v19 = vpack.c.bf16 %v5373_v39, %v5372_v21  ;;  %v5362_v14 = vadd.f32 1.0, %v8908_v27  ;;  %v12210_v27 = vld [vmem:[#allocation29_spill] sm:$0xff] }
0x312d   :  { %7782 = vmatmul.mubr.bf16.vlgmr.msra.gmra.mrb[132].mxu0 %v5374_v19 }
0x312e   :  { %7786 = vmatpush3.bf16.msra.mxu0 %v11399_v48  ;;  %7801 = vmatprep.mubr.msk.bf16.mxu0 %vm9412_vm0, %v12149_v22 }
0x312f   :  { %7787 = vmatprep.subr.bf16.mxu0 %v12149_v22 }
0x3132   :  { %7788 = vmatpush3.bf16.msra.mxu0 %v11405_v62 }
0x3133   :  { %7789 = vmatprep.subr.bf16.mxu0 %v12149_v22 }
0x3136   :  { %7790 = vmatpush3.bf16.msra.mxu0 %v11409_v11 }
0x3137   :  { %7791 = vmatprep.subr.bf16.mxu0 %v12149_v22 }
0x313a   :  { %7792 = vmatpush3.bf16.msra.mxu0 %v11469_v59 }
0x313b   :  { %7793 = vmatprep.subr.bf16.mxu0 %v12149_v22 }
0x313e   :  { %7794 = vmatpush3.bf16.msra.mxu0 %v11473_v51 }
0x313f   :  { %7795 = vmatprep.subr.bf16.mxu0 %v12149_v22 }
0x3142   :  { %7796 = vmatpush3.bf16.msra.mxu0 %v11477_v46 }
0x3143   :  { %7797 = vmatprep.subr.bf16.mxu0 %v12149_v22 }
0x3146   :  { %7798 = vmatpush3.bf16.msra.mxu0 %v11481_v28 }
0x3147   :  { %7799 = vmatprep.subr.bf16.mxu0 %v12149_v22 }
0x314a   :  { %7800 = vmatpush3.bf16.msra.mxu0 %v11485_v4 }
0x314b   :  { %7805 = vmatprep.subr.bf16.mxu0 %v12149_v22 }
0x3200   :  { %v5409_v9 = vpop.f32.mrb[132].mxu0 }
0x3201   :  { %v5416_v58 = vadd.f32 %v5409_v9, %v3784_v54  ;;  %v7783_v20 = vpop.f32.mrb[133].mxu0 }
0x3202   :  { %v5412_v3 = vpop.f32.mrb[134].mxu0 }
0x3203   :  { %8909 = vtanh.f32 %v5416_v58  ;;  %v5417_v55 = vadd.f32 %v5412_v3, %v3787_v35  ;;  %v7784_v60 = vpop.f32.mrb[135].mxu0  ;;  %v12211_v58 = vld [vmem:[#allocation31_spill] sm:$0xff] }
0x3204   :  { %8911 = vrcp.f32 %v5360_v24  ;;  %v3792_v24 = vadd.f32 %v12210_v27, %v11105_v0  ;;  %v3795_v20 = vadd.f32 %v12211_v58, %v11105_v0 }
0x3205   :  { %8913 = vtanh.f32 %v5417_v55 }
0x3206   :  { %8915 = vrcp.f32 %v5362_v14 }
0x320d   :  { %v8910_v41 = vpop.eup %8909 }
0x320e   :  { %v8912_v31 = vpop.eup %8911  ;;  %v5420_v43 = vsub.f32 %v11609_v57, %v8910_v41 }
0x320f   :  { %v8914_v17 = vpop.eup %8913 }
0x3210   :  { %v5421_v21 = vsub.f32 %v11611_v18, %v8914_v17  ;;  %v5422_v39 = vmul.f32 %v8912_v31, %v5420_v43  ;;  %v8916_v19 = vpop.eup %8915 }
0x3212   :  { %v5423_v16 = vmul.f32 %v8916_v19, %v5421_v21  ;;  %v11665_v63 = vadd.f32 %v8910_v41, %v5422_v39 }
0x3214   :  { %v11667_v45 = vadd.f32 %v8914_v17, %v5423_v16 }
0x3216   :  { %v11671_v49 = vpack.c.bf16 %v11667_v45, %v11665_v63 }
0x3218   :  { %5467 = vmatmul.mubr.bf16.vlgmr.msra.gmra.mrb[156].mxu1 %v11671_v49 }
0x3219   :  { %5568 = vmatpush1.bf16.msra.mxu1 %v11348_v6  ;;  %5599 = vmatprep.mubr.bf16.mxu1 %v12150_v12  ;;  %v11690_v6 = vld [vmem:[#allocation15 + $0x4] ss:$8 sps:$4 sm:$0xff]  }
0x321a   :  { %5569 = vmatprep.subr.bf16.mxu1 %v11352_v7 }
0x321d   :  { %5570 = vmatpush1.bf16.msra.mxu1 %v11355_v10 }
0x321e   :  { %5571 = vmatprep.subr.bf16.mxu1 %v11358_v30 }
0x3221   :  { %5572 = vmatpush1.bf16.msra.mxu1 %v11361_v61 }
0x3222   :  { %5573 = vmatprep.subr.bf16.mxu1 %v11364_v40 }
0x3225   :  { %5574 = vmatpush1.bf16.msra.mxu1 %v11367_v29 }
0x3226   :  { %5575 = vmatprep.subr.bf16.mxu1 %v11370_v52 }
0x3229   :  { %5576 = vmatpush1.bf16.msra.mxu1 %v11373_v44 }
0x322a   :  { %5577 = vmatprep.subr.bf16.mxu1 %v11376_v37 }
0x322d   :  { %5578 = vmatpush1.bf16.msra.mxu1 %v11379_v33 }
0x322e   :  { %5579 = vmatprep.subr.bf16.mxu1 %v11382_v26 }
0x3231   :  { %5580 = vmatpush1.bf16.msra.mxu1 %v11385_v1 }
0x3232   :  { %5581 = vmatprep.subr.bf16.mxu1 %v11388_v32 }
0x3235   :  { %5582 = vmatpush1.bf16.msra.mxu1 %v11391_v36 }
0x3236   :  { %5700 = vmatprep.subr.bf16.mxu1 %v11690_v6 }
0x32eb   :  { %v5468_v7 = vpop.f32.mrb[156].mxu1 }
0x32ec   :  { %v5470_v10 = vpop.f32.mrb[157].mxu1 }
0x32ed   :  { %v8094_v30 = vadd.f32 %v5470_v10, %v11073_v34  ;;  %v5472_v61 = vpop.f32.mrb[158].mxu1 }
0x32ee   :  { %v5474_v40 = vpop.f32.mrb[159].mxu1 }
0x32ef   :  { %v6777_v29 = vmul.f32 -1.442695, %v8094_v30  ;;  %v8096_v52 = vadd.f32 %v5474_v40, %v11073_v34 }
0x32f1   :  { %8917 = vpow2.f32 %v6777_v29  ;;  %v6779_v44 = vmul.f32 -1.442695, %v8096_v52  ;;  %v11732_v29 = vld [vmem:[#allocation15] ss:$8 sps:$4 sm:$0xff]   ;;  %v11742_v52 = vld [vmem:[#allocation15 + $0x24] ss:$8 sps:$4 sm:$0xff]  }
0x32f3   :  { %8919 = vpow2.f32 %v6779_v44  ;;  %v11745_v44 = vld [vmem:[#allocation15 + $0x20] ss:$8 sps:$4 sm:$0xff]  }
0x32fb   :  { %v8918_v37 = vpop.eup %8917 }
0x32fc   :  { %v5494_v33 = vadd.f32 1.0, %v8918_v37  ;;  %v11748_v37 = vld [vmem:[#allocation15 + $0x34] ss:$8 sps:$4 sm:$0xff]  }
0x32fd   :  { %v8920_v26 = vpop.eup %8919 }
0x32fe   :  { %8921 = vrcp.f32 %v5494_v33  ;;  %v5496_v1 = vadd.f32 1.0, %v8920_v26  ;;  %v11751_v33 = vld [vmem:[#allocation15 + $0x30] ss:$8 sps:$4 sm:$0xff]   ;;  %v11754_v26 = vld [vmem:[#allocation15 + $0x44] ss:$8 sps:$4 sm:$0xff]  }
0x3300   :  { %8923 = vrcp.f32 %v5496_v1  ;;  %v11757_v1 = vld [vmem:[#allocation15 + $0x40] ss:$8 sps:$4 sm:$0xff]  }
0x3308   :  { %v8922_v32 = vpop.eup %8921 }
0x3309   :  { %v5505_v57 = vmul.f32 %v8922_v32, %v11665_v63  ;;  %v11760_v32 = vld [vmem:[#allocation15 + $0x54] ss:$8 sps:$4 sm:$0xff]  }
0x330a   :  { %v8924_v36 = vpop.eup %8923 }
0x330b   :  { %v5506_v18 = vmul.f32 %v8924_v36, %v11667_v45  ;;  %v11763_v36 = vld [vmem:[#allocation15 + $0x50] ss:$8 sps:$4 sm:$0xff]  }
0x330d   :  { %v5507_v8 = vpack.c.bf16 %v5506_v18, %v5505_v57  ;;  %v11766_v57 = vld [vmem:[#allocation15 + $0x64] ss:$8 sps:$4 sm:$0xff]   ;;  %v11769_v18 = vld [vmem:[#allocation15 + $0x60] ss:$8 sps:$4 sm:$0xff]  }
0x330f   :  { %7802 = vmatmul.mubr.bf16.vlgmr.msra.gmra.mrb[136].mxu0 %v5507_v8  ;;  %v11772_v8 = vld [vmem:[#allocation15 + $0x74] ss:$8 sps:$4 sm:$0xff]  }
0x3310   :  { %7806 = vmatpush3.bf16.msra.mxu0 %v11399_v48  ;;  %7821 = vmatprep.mubr.msk.bf16.mxu0 %vm9412_vm0, %v12149_v22  ;;  %v8093_v48 = vadd.f32 %v5468_v7, %v11099_v53 }
0x3311   :  { %7807 = vmatprep.subr.bf16.mxu0 %v12149_v22 }
0x3314   :  { %7808 = vmatpush3.bf16.msra.mxu0 %v11405_v62  ;;  %v8095_v62 = vadd.f32 %v5472_v61, %v11099_v53 }
0x3315   :  { %7809 = vmatprep.subr.bf16.mxu0 %v12149_v22 }
0x3316   :  { %v6778_v2 = vmul.f32 -1.442695, %v8095_v62 }
0x3318   :  { %7810 = vmatpush3.bf16.msra.mxu0 %v11409_v11  ;;  %v6776_v11 = vmul.f32 -1.442695, %v8093_v48  ;;  %v11775_v48 = vld [vmem:[#allocation15 + $0x70] ss:$8 sps:$4 sm:$0xff]  }
0x3319   :  { %7811 = vmatprep.subr.bf16.mxu0 %v12149_v22 }
0x331a   :  { %8925 = vpow2.f32 %v6776_v11 }
0x331b   :  { %8927 = vpow2.f32 %v6778_v2 }
0x331c   :  { %7812 = vmatpush3.bf16.msra.mxu0 %v11469_v59 }
0x331d   :  { %7813 = vmatprep.subr.bf16.mxu0 %v12149_v22 }
0x3320   :  { %7814 = vmatpush3.bf16.msra.mxu0 %v11473_v51 }
0x3321   :  { %7815 = vmatprep.subr.bf16.mxu0 %v12149_v22 }
0x3324   :  { %7816 = vmatpush3.bf16.msra.mxu0 %v11477_v46  ;;  %v8926_v54 = vpop.eup %8925 }
0x3325   :  { %7817 = vmatprep.subr.bf16.mxu0 %v12149_v22  ;;  %v8928_v9 = vpop.eup %8927  ;;  %v5493_v23 = vadd.f32 1.0, %v8926_v54 }
0x3326   :  { %v5495_v60 = vadd.f32 1.0, %v8928_v9 }
0x3328   :  { %7818 = vmatpush3.bf16.msra.mxu0 %v11481_v28 }
0x3329   :  { %7819 = vmatprep.subr.bf16.mxu0 %v12149_v22 }
0x332c   :  { %7820 = vmatpush3.bf16.msra.mxu0 %v11485_v4 }
0x332d   :  { %7825 = vmatprep.subr.bf16.mxu0 %v12149_v22 }
0x33e2   :  { %v5542_v35 = vpop.f32.mrb[136].mxu0 }
0x33e3   :  { %v5549_v3 = vadd.f32 %v5542_v35, %v3792_v24  ;;  %v7803_v14 = vpop.f32.mrb[137].mxu0 }
0x33e4   :  { %v5545_v55 = vpop.f32.mrb[138].mxu0 }
0x33e5   :  { %8929 = vtanh.f32 %v5549_v3  ;;  %v5550_v41 = vadd.f32 %v5545_v55, %v3795_v20  ;;  %v7804_v31 = vpop.f32.mrb[139].mxu0 }
0x33e6   :  { %8931 = vrcp.f32 %v5493_v23 }
0x33e7   :  { %8933 = vtanh.f32 %v5550_v41 }
0x33e8   :  { %8935 = vrcp.f32 %v5495_v60 }
0x33ef   :  { %v8930_v43 = vpop.eup %8929 }
0x33f0   :  { %v8932_v17 = vpop.eup %8931  ;;  %v5553_v21 = vsub.f32 %v11665_v63, %v8930_v43  ;;  %v11736_v63 = vld [vmem:[#allocation15 + $0x14] ss:$8 sps:$4 sm:$0xff]  }
0x33f1   :  { %v8934_v39 = vpop.eup %8933 }
0x33f2   :  { %v5554_v19 = vsub.f32 %v11667_v45, %v8934_v39  ;;  %v5555_v16 = vmul.f32 %v8932_v17, %v5553_v21  ;;  %v8936_v7 = vpop.eup %8935  ;;  %v11739_v45 = vld [vmem:[#allocation15 + $0x10] ss:$8 sps:$4 sm:$0xff]   ;;  %v11789_v17 = vld [vmem:[#allocation16 + $0x8] sm:$0xff]  }
0x33f3   :  { %v11793_v21 = vld [vmem:[#allocation16 + $0x10] sm:$0xff]  }
0x33f4   :  { %v5556_v10 = vmul.f32 %v8936_v7, %v5554_v19  ;;  %v11723_v30 = vadd.f32 %v8930_v43, %v5555_v16  ;;  %v11783_v43 = vld [vmem:[#allocation16] sm:$0xff]  }
0x33f6   :  { %v11725_v61 = vadd.f32 %v8934_v39, %v5556_v10 }
0x33f8   :  { %v11729_v40 = vpack.c.bf16 %v11725_v61, %v11723_v30 }
0x33fa   :  { %5600 = vmatmul.mubr.bf16.vlgmr.msra.gmra.mrb[160].mxu1 %v11729_v40 }
0x33fb   :  { %5701 = vmatpush1.bf16.msra.mxu1 %v11732_v29  ;;  %5732 = vmatprep.mubr.bf16.mxu1 %v12150_v12 }
0x33fc   :  { %5702 = vmatprep.subr.bf16.mxu1 %v11736_v63 }
0x33ff   :  { %5703 = vmatpush1.bf16.msra.mxu1 %v11739_v45 }
0x3400   :  { %5704 = vmatprep.subr.bf16.mxu1 %v11742_v52 }
0x3403   :  { %5705 = vmatpush1.bf16.msra.mxu1 %v11745_v44 }
0x3404   :  { %5706 = vmatprep.subr.bf16.mxu1 %v11748_v37 }
0x3407   :  { %5707 = vmatpush1.bf16.msra.mxu1 %v11751_v33 }
0x3408   :  { %5708 = vmatprep.subr.bf16.mxu1 %v11754_v26 }
0x340b   :  { %5709 = vmatpush1.bf16.msra.mxu1 %v11757_v1 }
0x340c   :  { %5710 = vmatprep.subr.bf16.mxu1 %v11760_v32 }
0x340f   :  { %5711 = vmatpush1.bf16.msra.mxu1 %v11763_v36 }
0x3410   :  { %5712 = vmatprep.subr.bf16.mxu1 %v11766_v57 }
0x3413   :  { %5713 = vmatpush1.bf16.msra.mxu1 %v11769_v18 }
0x3414   :  { %5714 = vmatprep.subr.bf16.mxu1 %v11772_v8 }
0x3417   :  { %5715 = vmatpush1.bf16.msra.mxu1 %v11775_v48 }
0x3418   :  { %5833 = vmatprep.subr.bf16.mxu1 %v11690_v6 }
0x34cd   :  { %v5601_v62 = vpop.f32.mrb[160].mxu1 }
0x34ce   :  { %v5603_v11 = vpop.f32.mrb[161].mxu1 }
0x34cf   :  { %v8098_v2 = vadd.f32 %v5603_v11, %v11073_v34  ;;  %v5605_v54 = vpop.f32.mrb[162].mxu1 }
0x34d0   :  { %v5607_v27 = vpop.f32.mrb[163].mxu1  ;;  %v8099_v39 = vadd.f32 %v5605_v54, %v11099_v53 }
0x34d1   :  { %v6781_v24 = vmul.f32 -1.442695, %v8098_v2  ;;  %v8100_v9 = vadd.f32 %v5607_v27, %v11073_v34  ;;  %v12213_v2 = vld [vmem:[#allocation30_spill] sm:$0xff] }
0x34d3   :  { %8937 = vpow2.f32 %v6781_v24  ;;  %v6783_v23 = vmul.f32 -1.442695, %v8100_v9 }
0x34d5   :  { %8939 = vpow2.f32 %v6783_v23 }
0x34dd   :  { %v8938_v35 = vpop.eup %8937 }
0x34de   :  { %v5627_v58 = vadd.f32 1.0, %v8938_v35 }
0x34df   :  { %v8940_v20 = vpop.eup %8939 }
0x34e0   :  { %8941 = vrcp.f32 %v5627_v58  ;;  %v5629_v3 = vadd.f32 1.0, %v8940_v20 }
0x34e2   :  { %8943 = vrcp.f32 %v5629_v3 }
0x34ea   :  { %v8942_v14 = vpop.eup %8941 }
0x34eb   :  { %v5638_v60 = vmul.f32 %v8942_v14, %v11723_v30 }
0x34ec   :  { %v8944_v55 = vpop.eup %8943 }
0x34ed   :  { %v5639_v41 = vmul.f32 %v8944_v55, %v11725_v61 }
0x34ef   :  { %v5640_v31 = vpack.c.bf16 %v5639_v41, %v5638_v60 }
0x34f1   :  { %7822 = vmatmul.mubr.bf16.vlgmr.msra.gmra.mrb[140].mxu0 %v5640_v31 }
0x34f2   :  { %7826 = vmatpush3.bf16.msra.mxu0 %v11783_v43  ;;  %7841 = vmatprep.mubr.msk.bf16.mxu0 %vm9412_vm0, %v12149_v22 }
0x34f3   :  { %7827 = vmatprep.subr.bf16.mxu0 %v12149_v22 }
0x34f6   :  { %7828 = vmatpush3.bf16.msra.mxu0 %v11789_v17 }
0x34f7   :  { %7829 = vmatprep.subr.bf16.mxu0 %v12149_v22 }
0x34fa   :  { %7830 = vmatpush3.bf16.msra.mxu0 %v11793_v21 }
0x34fb   :  { %7831 = vmatprep.subr.bf16.mxu0 %v12149_v22 }
0x34fe   :  { %7832 = vmatpush3.bf16.msra.mxu0 %v11469_v59  ;;  %v8097_v59 = vadd.f32 %v5601_v62, %v11099_v53 }
0x34ff   :  { %7833 = vmatprep.subr.bf16.mxu0 %v12149_v22 }
0x3500   :  { %v6780_v19 = vmul.f32 -1.442695, %v8097_v59 }
0x3502   :  { %7834 = vmatpush3.bf16.msra.mxu0 %v11473_v51  ;;  %v6782_v51 = vmul.f32 -1.442695, %v8099_v39  ;;  %8945 = vpow2.f32 %v6780_v19 }
0x3503   :  { %7835 = vmatprep.subr.bf16.mxu0 %v12149_v22 }
0x3504   :  { %8947 = vpow2.f32 %v6782_v51 }
0x3506   :  { %7836 = vmatpush3.bf16.msra.mxu0 %v11477_v46  ;;  %v12212_v46 = vld [vmem:[#allocation56_spill] sm:$0xff] }
0x3507   :  { %7837 = vmatprep.subr.bf16.mxu0 %v12149_v22  ;;  %v3800_v7 = vadd.f32 %v12212_v46, %v11105_v0 }
0x350a   :  { %7838 = vmatpush3.bf16.msra.mxu0 %v11481_v28 }
0x350b   :  { %7839 = vmatprep.subr.bf16.mxu0 %v12149_v22 }
0x350c   :  { %v8946_v16 = vpop.eup %8945 }
0x350d   :  { %v5626_v28 = vadd.f32 1.0, %v8946_v16 }
0x350e   :  { %7840 = vmatpush3.bf16.msra.mxu0 %v11485_v4  ;;  %v8948_v10 = vpop.eup %8947  ;;  %v3803_v4 = vadd.f32 %v12213_v2, %v11105_v0 }
0x350f   :  { %7845 = vmatprep.subr.bf16.mxu0 %v12149_v22  ;;  %v5628_v62 = vadd.f32 1.0, %v8948_v10 }
0x35c4   :  { %v5675_v11 = vpop.f32.mrb[140].mxu0 }
0x35c5   :  { %v5682_v27 = vadd.f32 %v5675_v11, %v3800_v7  ;;  %v7823_v24 = vpop.f32.mrb[141].mxu0 }
0x35c6   :  { %v5678_v9 = vpop.f32.mrb[142].mxu0 }
0x35c7   :  { %8949 = vtanh.f32 %v5682_v27  ;;  %v5683_v54 = vadd.f32 %v5678_v9, %v3803_v4  ;;  %v7824_v23 = vpop.f32.mrb[143].mxu0 }
0x35c8   :  { %8951 = vrcp.f32 %v5626_v28  ;;  %v11853_v23 = vld [vmem:[#allocation16 + $0x18] sm:$0xff]  }
0x35c9   :  { %8953 = vtanh.f32 %v5683_v54 }
0x35ca   :  { %8955 = vrcp.f32 %v5628_v62 }
0x35d1   :  { %v8950_v35 = vpop.eup %8949 }
0x35d2   :  { %v8952_v58 = vpop.eup %8951  ;;  %v5686_v20 = vsub.f32 %v11723_v30, %v8950_v35 }
0x35d3   :  { %v8954_v3 = vpop.eup %8953 }
0x35d4   :  { %v5687_v14 = vsub.f32 %v11725_v61, %v8954_v3  ;;  %v5688_v55 = vmul.f32 %v8952_v58, %v5686_v20  ;;  %v8956_v60 = vpop.eup %8955  ;;  %v11861_v58 = vld [vmem:[#allocation16 + $0x28] sm:$0xff]   ;;  %v11865_v20 = vld [vmem:[#allocation16 + $0x30] sm:$0xff]  }
0x35d6   :  { %v5689_v41 = vmul.f32 %v8956_v60, %v5687_v14  ;;  %v11815_v31 = vadd.f32 %v8950_v35, %v5688_v55  ;;  %v11857_v35 = vld [vmem:[#allocation16 + $0x20] sm:$0xff]  }
0x35d8   :  { %v11817_v59 = vadd.f32 %v8954_v3, %v5689_v41  ;;  %v11869_v3 = vld [vmem:[#allocation16 + $0x38] sm:$0xff]  }
0x35da   :  { %v11821_v39 = vpack.c.bf16 %v11817_v59, %v11815_v31 }
0x35dc   :  { %5733 = vmatmul.mubr.bf16.vlgmr.msra.gmra.mrb[164].mxu1 %v11821_v39 }
0x35dd   :  { %5834 = vmatpush1.bf16.msra.mxu1 %v11732_v29  ;;  %5865 = vmatprep.mubr.bf16.mxu1 %v12150_v12 }
0x35de   :  { %5835 = vmatprep.subr.bf16.mxu1 %v11736_v63 }
0x35e1   :  { %5836 = vmatpush1.bf16.msra.mxu1 %v11739_v45 }
0x35e2   :  { %5837 = vmatprep.subr.bf16.mxu1 %v11742_v52 }
0x35e5   :  { %5838 = vmatpush1.bf16.msra.mxu1 %v11745_v44 }
0x35e6   :  { %5839 = vmatprep.subr.bf16.mxu1 %v11748_v37 }
0x35e9   :  { %5840 = vmatpush1.bf16.msra.mxu1 %v11751_v33 }
0x35ea   :  { %5841 = vmatprep.subr.bf16.mxu1 %v11754_v26 }
0x35ed   :  { %5842 = vmatpush1.bf16.msra.mxu1 %v11757_v1 }
0x35ee   :  { %5843 = vmatprep.subr.bf16.mxu1 %v11760_v32 }
0x35f1   :  { %5844 = vmatpush1.bf16.msra.mxu1 %v11763_v36 }
0x35f2   :  { %5845 = vmatprep.subr.bf16.mxu1 %v11766_v57 }
0x35f5   :  { %5846 = vmatpush1.bf16.msra.mxu1 %v11769_v18 }
0x35f6   :  { %5847 = vmatprep.subr.bf16.mxu1 %v11772_v8 }
0x35f9   :  { %5848 = vmatpush1.bf16.msra.mxu1 %v11775_v48 }
0x35fa   :  { %5966 = vmatprep.subr.bf16.mxu1 %v11690_v6 }
0x36af   :  { %v5734_v30 = vpop.f32.mrb[164].mxu1 }
0x36b0   :  { %v5736_v61 = vpop.f32.mrb[165].mxu1  ;;  %v8101_v14 = vadd.f32 %v5734_v30, %v11099_v53 }
0x36b1   :  { %v8102_v19 = vadd.f32 %v5736_v61, %v11073_v34  ;;  %v5738_v51 = vpop.f32.mrb[166].mxu1 }
0x36b2   :  { %v5740_v16 = vpop.f32.mrb[167].mxu1  ;;  %v8103_v55 = vadd.f32 %v5738_v51, %v11099_v53  ;;  %v6784_v60 = vmul.f32 -1.442695, %v8101_v14 }
0x36b3   :  { %v6785_v46 = vmul.f32 -1.442695, %v8102_v19  ;;  %v8104_v7 = vadd.f32 %v5740_v16, %v11073_v34  ;;  %v12214_v19 = vld [vmem:[#allocation53_spill] sm:$0xff] }
0x36b4   :  { %v6786_v41 = vmul.f32 -1.442695, %v8103_v55  ;;  %v3808_v16 = vadd.f32 %v12214_v19, %v11105_v0 }
0x36b5   :  { %8957 = vpow2.f32 %v6785_v46  ;;  %v6787_v10 = vmul.f32 -1.442695, %v8104_v7 }
0x36b7   :  { %8959 = vpow2.f32 %v6787_v10 }
0x36bf   :  { %v8958_v28 = vpop.eup %8957 }
0x36c0   :  { %v5760_v11 = vadd.f32 1.0, %v8958_v28  ;;  %v12215_v28 = vld [vmem:[#allocation33_spill] sm:$0xff] }
0x36c1   :  { %v8960_v2 = vpop.eup %8959 }
0x36c2   :  { %8961 = vrcp.f32 %v5760_v11  ;;  %v5762_v4 = vadd.f32 1.0, %v8960_v2  ;;  %v3811_v11 = vadd.f32 %v12215_v28, %v11105_v0 }
0x36c4   :  { %8963 = vrcp.f32 %v5762_v4 }
0x36c5   :  { %8965 = vpow2.f32 %v6784_v60 }
0x36c6   :  { %8967 = vpow2.f32 %v6786_v41 }
0x36cc   :  { %v8962_v27 = vpop.eup %8961 }
0x36cd   :  { %v5771_v9 = vmul.f32 %v8962_v27, %v11815_v31 }
0x36ce   :  { %v8964_v24 = vpop.eup %8963 }
0x36cf   :  { %v5772_v62 = vmul.f32 %v8964_v24, %v11817_v59  ;;  %v8966_v61 = vpop.eup %8965 }
0x36d0   :  { %v8968_v46 = vpop.eup %8967  ;;  %v5759_v7 = vadd.f32 1.0, %v8966_v61 }
0x36d1   :  { %v5773_v54 = vpack.c.bf16 %v5772_v62, %v5771_v9  ;;  %v5761_v30 = vadd.f32 1.0, %v8968_v46 }
0x36d3   :  { %7842 = vmatmul.mubr.bf16.vlgmr.msra.gmra.mrb[144].mxu0 %v5773_v54 }
0x36d4   :  { %7846 = vmatpush3.bf16.msra.mxu0 %v11783_v43  ;;  %7861 = vmatprep.mubr.msk.bf16.mxu0 %vm9412_vm0, %v12149_v22 }
0x36d5   :  { %7847 = vmatprep.subr.bf16.mxu0 %v12149_v22 }
0x36d8   :  { %7848 = vmatpush3.bf16.msra.mxu0 %v11789_v17 }
0x36d9   :  { %7849 = vmatprep.subr.bf16.mxu0 %v12149_v22 }
0x36dc   :  { %7850 = vmatpush3.bf16.msra.mxu0 %v11793_v21 }
0x36dd   :  { %7851 = vmatprep.subr.bf16.mxu0 %v12149_v22 }
0x36e0   :  { %7852 = vmatpush3.bf16.msra.mxu0 %v11853_v23 }
0x36e1   :  { %7853 = vmatprep.subr.bf16.mxu0 %v12149_v22 }
0x36e4   :  { %7854 = vmatpush3.bf16.msra.mxu0 %v11857_v35 }
0x36e5   :  { %7855 = vmatprep.subr.bf16.mxu0 %v12149_v22 }
0x36e8   :  { %7856 = vmatpush3.bf16.msra.mxu0 %v11861_v58 }
0x36e9   :  { %7857 = vmatprep.subr.bf16.mxu0 %v12149_v22 }
0x36ec   :  { %7858 = vmatpush3.bf16.msra.mxu0 %v11865_v20 }
0x36ed   :  { %7859 = vmatprep.subr.bf16.mxu0 %v12149_v22 }
0x36f0   :  { %7860 = vmatpush3.bf16.msra.mxu0 %v11869_v3 }
0x36f1   :  { %7865 = vmatprep.subr.bf16.mxu0 %v12149_v22 }
0x37a6   :  { %v5808_v10 = vpop.f32.mrb[144].mxu0 }
0x37a7   :  { %v5815_v2 = vadd.f32 %v5808_v10, %v3808_v16  ;;  %v7843_v4 = vpop.f32.mrb[145].mxu0 }
0x37a8   :  { %v5811_v27 = vpop.f32.mrb[146].mxu0 }
0x37a9   :  { %8969 = vtanh.f32 %v5815_v2  ;;  %v5816_v51 = vadd.f32 %v5811_v27, %v3811_v11  ;;  %v7844_v24 = vpop.f32.mrb[147].mxu0 }
0x37aa   :  { %8971 = vrcp.f32 %v5759_v7 }
0x37ab   :  { %8973 = vtanh.f32 %v5816_v51 }
0x37ac   :  { %8975 = vrcp.f32 %v5761_v30 }
0x37b3   :  { %v8970_v9 = vpop.eup %8969 }
0x37b4   :  { %v8972_v62 = vpop.eup %8971  ;;  %v5819_v54 = vsub.f32 %v11815_v31, %v8970_v9 }
0x37b5   :  { %v8974_v14 = vpop.eup %8973 }
0x37b6   :  { %v5820_v55 = vsub.f32 %v11817_v59, %v8974_v14  ;;  %v5821_v60 = vmul.f32 %v8972_v62, %v5819_v54  ;;  %v8976_v41 = vpop.eup %8975 }
0x37b8   :  { %v5822_v61 = vmul.f32 %v8976_v41, %v5820_v55  ;;  %v11881_v19 = vadd.f32 %v8970_v9, %v5821_v60 }
0x37ba   :  { %v11883_v16 = vadd.f32 %v8974_v14, %v5822_v61 }
0x37bc   :  { %v11887_v46 = vpack.c.bf16 %v11883_v16, %v11881_v19 }
0x37be   :  { %5866 = vmatmul.mubr.bf16.vlgmr.msra.gmra.mrb[168].mxu1 %v11887_v46 }
0x37bf   :  { %5967 = vmatpush1.bf16.msra.mxu1 %v11732_v29  ;;  %5998 = vmatprep.mubr.bf16.mxu1 %v12150_v12 }
0x37c0   :  { %5968 = vmatprep.subr.bf16.mxu1 %v11736_v63 }
0x37c3   :  { %5969 = vmatpush1.bf16.msra.mxu1 %v11739_v45 }
0x37c4   :  { %5970 = vmatprep.subr.bf16.mxu1 %v11742_v52 }
0x37c7   :  { %5971 = vmatpush1.bf16.msra.mxu1 %v11745_v44 }
0x37c8   :  { %5972 = vmatprep.subr.bf16.mxu1 %v11748_v37 }
0x37cb   :  { %5973 = vmatpush1.bf16.msra.mxu1 %v11751_v33 }
0x37cc   :  { %5974 = vmatprep.subr.bf16.mxu1 %v11754_v26 }
0x37cf   :  { %5975 = vmatpush1.bf16.msra.mxu1 %v11757_v1 }
0x37d0   :  { %5976 = vmatprep.subr.bf16.mxu1 %v11760_v32 }
0x37d3   :  { %5977 = vmatpush1.bf16.msra.mxu1 %v11763_v36 }
0x37d4   :  { %5978 = vmatprep.subr.bf16.mxu1 %v11766_v57 }
0x37d7   :  { %5979 = vmatpush1.bf16.msra.mxu1 %v11769_v18 }
0x37d8   :  { %5980 = vmatprep.subr.bf16.mxu1 %v11772_v8 }
0x37db   :  { %5981 = vmatpush1.bf16.msra.mxu1 %v11775_v48 }
0x37dc   :  { %6099 = vmatprep.subr.bf16.mxu1 %v11690_v6 }
0x3891   :  { %v5867_v31 = vpop.f32.mrb[168].mxu1 }
0x3892   :  { %v5869_v59 = vpop.f32.mrb[169].mxu1  ;;  %v8105_v55 = vadd.f32 %v5867_v31, %v11099_v53 }
0x3893   :  { %v8106_v7 = vadd.f32 %v5869_v59, %v11073_v34  ;;  %v5871_v10 = vpop.f32.mrb[170].mxu1 }
0x3894   :  { %v5873_v28 = vpop.f32.mrb[171].mxu1  ;;  %v8107_v60 = vadd.f32 %v5871_v10, %v11099_v53  ;;  %v6788_v41 = vmul.f32 -1.442695, %v8105_v55 }
0x3895   :  { %v6789_v11 = vmul.f32 -1.442695, %v8106_v7  ;;  %v8108_v2 = vadd.f32 %v5873_v28, %v11073_v34  ;;  %v12216_v7 = vld [vmem:[#allocation32_spill] sm:$0xff] }
0x3896   :  { %v6790_v61 = vmul.f32 -1.442695, %v8107_v60  ;;  %v3816_v28 = vadd.f32 %v12216_v7, %v11105_v0 }
0x3897   :  { %8977 = vpow2.f32 %v6789_v11  ;;  %v6791_v4 = vmul.f32 -1.442695, %v8108_v2 }
0x3899   :  { %8979 = vpow2.f32 %v6791_v4 }
0x38a1   :  { %v8978_v27 = vpop.eup %8977 }
0x38a2   :  { %v5893_v30 = vadd.f32 1.0, %v8978_v27  ;;  %v12217_v27 = vld [vmem:[#allocation55_spill] sm:$0xff] }
0x38a3   :  { %v8980_v51 = vpop.eup %8979 }
0x38a4   :  { %8981 = vrcp.f32 %v5893_v30  ;;  %v5895_v24 = vadd.f32 1.0, %v8980_v51  ;;  %v3819_v30 = vadd.f32 %v12217_v27, %v11105_v0 }
0x38a6   :  { %8983 = vrcp.f32 %v5895_v24 }
0x38a7   :  { %8985 = vpow2.f32 %v6788_v41 }
0x38a8   :  { %8987 = vpow2.f32 %v6790_v61 }
0x38ae   :  { %v8982_v9 = vpop.eup %8981 }
0x38af   :  { %v5904_v62 = vmul.f32 %v8982_v9, %v11881_v19 }
0x38b0   :  { %v8984_v6 = vpop.eup %8983 }
0x38b1   :  { %v5905_v54 = vmul.f32 %v8984_v6, %v11883_v16  ;;  %v8986_v59 = vpop.eup %8985 }
0x38b2   :  { %v8988_v11 = vpop.eup %8987  ;;  %v5892_v2 = vadd.f32 1.0, %v8986_v59 }
0x38b3   :  { %v5906_v14 = vpack.c.bf16 %v5905_v54, %v5904_v62  ;;  %v5894_v31 = vadd.f32 1.0, %v8988_v11 }
0x38b5   :  { %7862 = vmatmul.mubr.bf16.vlgmr.msra.gmra.mrb[148].mxu0 %v5906_v14 }
0x38b6   :  { %7866 = vmatpush3.bf16.msra.mxu0 %v11783_v43  ;;  %7881 = vmatprep.mubr.msk.bf16.mxu0 %vm9412_vm0, %v12149_v22 }
0x38b7   :  { %7867 = vmatprep.subr.bf16.mxu0 %v12149_v22 }
0x38ba   :  { %7868 = vmatpush3.bf16.msra.mxu0 %v11789_v17 }
0x38bb   :  { %7869 = vmatprep.subr.bf16.mxu0 %v12149_v22 }
0x38be   :  { %7870 = vmatpush3.bf16.msra.mxu0 %v11793_v21 }
0x38bf   :  { %7871 = vmatprep.subr.bf16.mxu0 %v12149_v22 }
0x38c2   :  { %7872 = vmatpush3.bf16.msra.mxu0 %v11853_v23 }
0x38c3   :  { %7873 = vmatprep.subr.bf16.mxu0 %v12149_v22 }
0x38c6   :  { %7874 = vmatpush3.bf16.msra.mxu0 %v11857_v35 }
0x38c7   :  { %7875 = vmatprep.subr.bf16.mxu0 %v12149_v22 }
0x38ca   :  { %7876 = vmatpush3.bf16.msra.mxu0 %v11861_v58 }
0x38cb   :  { %7877 = vmatprep.subr.bf16.mxu0 %v12149_v22 }
0x38ce   :  { %7878 = vmatpush3.bf16.msra.mxu0 %v11865_v20 }
0x38cf   :  { %7879 = vmatprep.subr.bf16.mxu0 %v12149_v22 }
0x38d2   :  { %7880 = vmatpush3.bf16.msra.mxu0 %v11869_v3 }
0x38d3   :  { %7885 = vmatprep.subr.bf16.mxu0 %v12149_v22 }
0x3988   :  { %v5941_v4 = vpop.f32.mrb[148].mxu0 }
0x3989   :  { %v5948_v51 = vadd.f32 %v5941_v4, %v3816_v28  ;;  %v7863_v24 = vpop.f32.mrb[149].mxu0 }
0x398a   :  { %v5944_v9 = vpop.f32.mrb[150].mxu0 }
0x398b   :  { %8989 = vtanh.f32 %v5948_v51  ;;  %v5949_v10 = vadd.f32 %v5944_v9, %v3819_v30  ;;  %v7864_v6 = vpop.f32.mrb[151].mxu0 }
0x398c   :  { %8991 = vrcp.f32 %v5892_v2 }
0x398d   :  { %8993 = vtanh.f32 %v5949_v10 }
0x398e   :  { %8995 = vrcp.f32 %v5894_v31 }
0x3995   :  { %v8990_v62 = vpop.eup %8989 }
0x3996   :  { %v8992_v54 = vpop.eup %8991  ;;  %v5952_v14 = vsub.f32 %v11881_v19, %v8990_v62 }
0x3997   :  { %v8994_v55 = vpop.eup %8993 }
0x3998   :  { %v5953_v60 = vsub.f32 %v11883_v16, %v8994_v55  ;;  %v5954_v41 = vmul.f32 %v8992_v54, %v5952_v14  ;;  %v8996_v61 = vpop.eup %8995  ;;  %v12218_v16 = vld [vmem:[#allocation35_spill] sm:$0xff] }
0x399a   :  { %v5955_v59 = vmul.f32 %v8996_v61, %v5953_v60  ;;  %v11937_v7 = vadd.f32 %v8990_v62, %v5954_v41 }
0x399c   :  { %v11939_v28 = vadd.f32 %v8994_v55, %v5955_v59 }
0x399e   :  { %v11943_v11 = vpack.c.bf16 %v11939_v28, %v11937_v7 }
0x39a0   :  { %5999 = vmatmul.mubr.bf16.vlgmr.msra.gmra.mrb[172].mxu1 %v11943_v11 }
0x39a1   :  { %6100 = vmatpush1.bf16.msra.mxu1 %v11732_v29  ;;  %6131 = vmatprep.mubr.bf16.mxu1 %v12150_v12 }
0x39a2   :  { %6101 = vmatprep.subr.bf16.mxu1 %v11736_v63 }
0x39a5   :  { %6102 = vmatpush1.bf16.msra.mxu1 %v11739_v45 }
0x39a6   :  { %6103 = vmatprep.subr.bf16.mxu1 %v11742_v52 }
0x39a9   :  { %6104 = vmatpush1.bf16.msra.mxu1 %v11745_v44 }
0x39aa   :  { %6105 = vmatprep.subr.bf16.mxu1 %v11748_v37 }
0x39ad   :  { %6106 = vmatpush1.bf16.msra.mxu1 %v11751_v33 }
0x39ae   :  { %6107 = vmatprep.subr.bf16.mxu1 %v11754_v26 }
0x39b1   :  { %6108 = vmatpush1.bf16.msra.mxu1 %v11757_v1 }
0x39b2   :  { %6109 = vmatprep.subr.bf16.mxu1 %v11760_v32 }
0x39b5   :  { %6110 = vmatpush1.bf16.msra.mxu1 %v11763_v36 }
0x39b6   :  { %6111 = vmatprep.subr.bf16.mxu1 %v11766_v57 }
0x39b9   :  { %6112 = vmatpush1.bf16.msra.mxu1 %v11769_v18 }
0x39ba   :  { %6113 = vmatprep.subr.bf16.mxu1 %v11772_v8 }
0x39bd   :  { %6114 = vmatpush1.bf16.msra.mxu1 %v11775_v48 }
0x3a73   :  { %v6000_v12 = vpop.f32.mrb[172].mxu1 }
0x3a74   :  { %v6002_v29 = vpop.f32.mrb[173].mxu1 }
0x3a75   :  { %v8110_v63 = vadd.f32 %v6002_v29, %v11073_v34  ;;  %v6004_v45 = vpop.f32.mrb[174].mxu1  ;;  %v8389_v29 = vld [vmem:[#allocation18] sm:$0xff]  }
0x3a76   :  { %v6006_v52 = vpop.f32.mrb[175].mxu1 }
0x3a77   :  { %v6793_v44 = vmul.f32 -1.442695, %v8110_v63  ;;  %v8112_v37 = vadd.f32 %v6006_v52, %v11073_v34 }
0x3a79   :  { %8997 = vpow2.f32 %v6793_v44  ;;  %v6795_v33 = vmul.f32 -1.442695, %v8112_v37 }
0x3a7b   :  { %8999 = vpow2.f32 %v6795_v33 }
0x3a83   :  { %v8998_v26 = vpop.eup %8997 }
0x3a84   :  { %v6026_v1 = vadd.f32 1.0, %v8998_v26 }
0x3a85   :  { %v9000_v32 = vpop.eup %8999 }
0x3a86   :  { %9001 = vrcp.f32 %v6026_v1  ;;  %v6028_v36 = vadd.f32 1.0, %v9000_v32 }
0x3a88   :  { %9003 = vrcp.f32 %v6028_v36 }
0x3a90   :  { %v9002_v57 = vpop.eup %9001 }
0x3a91   :  { %v6037_v8 = vmul.f32 %v9002_v57, %v11937_v7 }
0x3a92   :  { %v9004_v18 = vpop.eup %9003 }
0x3a93   :  { %v6038_v48 = vmul.f32 %v9004_v18, %v11939_v28 }
0x3a95   :  { %v6039_v19 = vpack.c.bf16 %v6038_v48, %v6037_v8 }
0x3a97   :  { %7882 = vmatmul.mubr.bf16.vlgmr.msra.gmra.mrb[152].mxu0 %v6039_v19 }
0x3a98   :  { %7886 = vmatpush3.bf16.msra.mxu0 %v11783_v43  ;;  %7901 = vmatprep.mubr.msk.bf16.mxu0 %vm9412_vm0, %v12149_v22  ;;  %v8109_v43 = vadd.f32 %v6000_v12, %v11099_v53 }
0x3a99   :  { %7887 = vmatprep.subr.bf16.mxu0 %v12149_v22 }
0x3a9c   :  { %7888 = vmatpush3.bf16.msra.mxu0 %v11789_v17  ;;  %v8111_v17 = vadd.f32 %v6004_v45, %v11099_v53 }
0x3a9d   :  { %7889 = vmatprep.subr.bf16.mxu0 %v12149_v22 }
0x3aa0   :  { %7890 = vmatpush3.bf16.msra.mxu0 %v11793_v21  ;;  %v6792_v21 = vmul.f32 -1.442695, %v8109_v43  ;;  %v8390_v43 = vld [vmem:[#allocation18 + $0x8] sm:$0xff]  }
0x3aa1   :  { %7891 = vmatprep.subr.bf16.mxu0 %v12149_v22 }
0x3aa2   :  { %9005 = vpow2.f32 %v6792_v21  ;;  %v8393_v21 = vld [vmem:[#allocation18 + $0x20] sm:$0xff]  }
0x3aa4   :  { %7892 = vmatpush3.bf16.msra.mxu0 %v11853_v23  ;;  %v6794_v23 = vmul.f32 -1.442695, %v8111_v17  ;;  %v8392_v17 = vld [vmem:[#allocation18 + $0x18] sm:$0xff]  }
0x3aa5   :  { %7893 = vmatprep.subr.bf16.mxu0 %v12149_v22 }
0x3aa6   :  { %9007 = vpow2.f32 %v6794_v23  ;;  %v8394_v23 = vld [vmem:[#allocation18 + $0x28] sm:$0xff]  }
0x3aa8   :  { %7894 = vmatpush3.bf16.msra.mxu0 %v11857_v35 }
0x3aa9   :  { %7895 = vmatprep.subr.bf16.mxu0 %v12149_v22 }
0x3aac   :  { %7896 = vmatpush3.bf16.msra.mxu0 %v11861_v58  ;;  %v9006_v35 = vpop.eup %9005  ;;  %v3824_v58 = vadd.f32 %v12218_v16, %v11105_v0  ;;  %v8396_v16 = vld [vmem:[#allocation18 + $0x38] sm:$0xff]  }
0x3aad   :  { %7897 = vmatprep.subr.bf16.mxu0 %v12149_v22  ;;  %v6025_v4 = vadd.f32 1.0, %v9006_v35  ;;  %v8395_v35 = vld [vmem:[#allocation18 + $0x30] sm:$0xff]  }
0x3ab0   :  { %7898 = vmatpush3.bf16.msra.mxu0 %v11865_v20  ;;  %v9008_v2 = vpop.eup %9007  ;;  %v12219_v20 = vld [vmem:[#allocation58_spill] sm:$0xff] }
0x3ab1   :  { %7899 = vmatprep.subr.bf16.mxu0 %v12149_v22  ;;  %v3827_v22 = vadd.f32 %v12219_v20, %v11105_v0  ;;  %v6027_v24 = vadd.f32 1.0, %v9008_v2 }
0x3ab4   :  { %7900 = vmatpush3.bf16.msra.mxu0 %v11869_v3 }
0x3ab5   :  { %7905 = vmatprep.subr.bf16.mxu0 %v8389_v29 }
0x3b6a   :  { %v6074_v27 = vpop.f32.mrb[152].mxu0 }
0x3b6b   :  { %v6081_v30 = vadd.f32 %v6074_v27, %v3824_v58  ;;  %v7883_v3 = vpop.f32.mrb[153].mxu0 }
0x3b6c   :  { %v6077_v51 = vpop.f32.mrb[154].mxu0 }
0x3b6d   :  { %9009 = vtanh.f32 %v6081_v30  ;;  %v6082_v9 = vadd.f32 %v6077_v51, %v3827_v22  ;;  %v7884_v31 = vpop.f32.mrb[155].mxu0 }
0x3b6e   :  { %9011 = vrcp.f32 %v6025_v4 }
0x3b6f   :  { %9013 = vtanh.f32 %v6082_v9 }
0x3b70   :  { %9015 = vrcp.f32 %v6027_v24 }
0x3b77   :  { %v9010_v10 = vpop.eup %9009 }
0x3b78   :  { %v9012_v6 = vpop.eup %9011  ;;  %v6085_v62 = vsub.f32 %v11937_v7, %v9010_v10 }
0x3b79   :  { %v9014_v54 = vpop.eup %9013 }
0x3b7a   :  { %v6086_v14 = vsub.f32 %v11939_v28, %v9014_v54  ;;  %v6087_v55 = vmul.f32 %v9012_v6, %v6085_v62  ;;  %v9016_v60 = vpop.eup %9015  ;;  %v12026_v6 = vld [vmem:[%s12101_s11] ss:$0 sm:$0xff]  ;;  %s9413_s11 = smov [#allocation20]  }
0x3b7b   :  { %s6525_s25 = sshll.u32 %s9413_s11, 4  ;;  %s6526_s25 = int_to_ptr.vmem [resolvable:$true] %s6525_s25 }
0x3b7c   :  { %v6088_v41 = vmul.f32 %v9016_v60, %v6086_v14  ;;  %v11991_v61 = vadd.f32 %v9010_v10, %v6087_v55  ;;  %s9337_s0 = scalar_lea.vmem %s6526_s25, 512  ;;  %p9342_p3 = scmp.lt.s32.totalorder %s6526_s25, %s6526_s25 }
0x3b7d   :  { %p9338_p2 = scmp.ne.s32.totalorder %s6526_s25, %s9337_s0  ;;  %p9343_p4 = scmp.lt.s32.totalorder %s9337_s0, %s9337_s0 }
0x3b7e   :  { %v11993_v59 = vadd.f32 %v9014_v54, %v6088_v41 }
0x3b7f   :  { %p9344_p5 = por %p9343_p4, %p9342_p3 }
0x3b80   :  { %v6091_v12 = vpack.c.bf16 %v11993_v59, %v11991_v61 }
0x3b81   :  { %p9345_p6 = pnand %p9344_p5, %p9338_p2 }
0x3b82   :  { %6132 = vmatmul.mubr.bf16.vlgmr.msra.gmra.mrb[176].mxu1 %v6091_v12 }
0x3c55   :  { %v6133_v63 = vpop.f32.mrb[176].mxu1 }
0x3c56   :  { %v6135_v45 = vpop.f32.mrb[177].mxu1 }
0x3c57   :  { %v8114_v7 = vadd.f32 %v6135_v45, %v11073_v34  ;;  %v6137_v52 = vpop.f32.mrb[178].mxu1 }
0x3c58   :  { %v6139_v44 = vpop.f32.mrb[179].mxu1 }
0x3c59   :  { %v6797_v28 = vmul.f32 -1.442695, %v8114_v7  ;;  %v8116_v37 = vadd.f32 %v6139_v44, %v11073_v34  ;;  %v8391_v34 = vld [vmem:[#allocation18 + $0x10] sm:$0xff]  }
0x3c5b   :  { %9017 = vpow2.f32 %v6797_v28  ;;  %v6799_v33 = vmul.f32 -1.442695, %v8116_v37 }
0x3c5d   :  { %9019 = vpow2.f32 %v6799_v33 }
0x3c65   :  { %v9018_v26 = vpop.eup %9017 }
0x3c66   :  { %v6159_v1 = vadd.f32 1.0, %v9018_v26 }
0x3c67   :  { %v9020_v32 = vpop.eup %9019 }
0x3c68   :  { %9021 = vrcp.f32 %v6159_v1  ;;  %v6161_v36 = vadd.f32 1.0, %v9020_v32 }
0x3c6a   :  { %9023 = vrcp.f32 %v6161_v36 }
0x3c72   :  { %v9022_v57 = vpop.eup %9021 }
0x3c73   :  { %v6170_v8 = vmul.f32 %v9022_v57, %v11991_v61 }
0x3c74   :  { %v9024_v18 = vpop.eup %9023 }
0x3c75   :  { %v6171_v48 = vmul.f32 %v9024_v18, %v11993_v59 }
0x3c77   :  { %v6172_v19 = vpack.c.bf16 %v6171_v48, %v6170_v8 }
0x3c79   :  { %7902 = vmatmul.mubr.bf16.vlgmr.msra.gmra.mrb[156].mxu0 %v6172_v19 }
0x3c7a   :  { %7906 = vmatpush3.bf16.msra.mxu0 %v8389_v29  ;;  %7921 = vmatprep.mubr.bf16.mxu0 %v11119_v13  ;;  %v8113_v13 = vadd.f32 %v6133_v63, %v11099_v53 }
0x3c7b   :  { %7907 = vmatprep.subr.bf16.mxu0 %v8390_v43 }
0x3c7e   :  { %7908 = vmatpush3.bf16.msra.mxu0 %v8390_v43 }
0x3c7f   :  { %7909 = vmatprep.subr.bf16.mxu0 %v8391_v34 }
0x3c82   :  { %7910 = vmatpush3.bf16.msra.mxu0 %v8391_v34 }
0x3c83   :  { %7911 = vmatprep.subr.bf16.mxu0 %v8392_v17 }
0x3c86   :  { %7912 = vmatpush3.bf16.msra.mxu0 %v8392_v17 }
0x3c87   :  { %7913 = vmatprep.subr.bf16.mxu0 %v8393_v21 }
0x3c8a   :  { %7914 = vmatpush3.bf16.msra.mxu0 %v8393_v21 }
0x3c8b   :  { %7915 = vmatprep.subr.bf16.mxu0 %v8394_v23 }
0x3c8e   :  { %7916 = vmatpush3.bf16.msra.mxu0 %v8394_v23 }
0x3c8f   :  { %7917 = vmatprep.subr.bf16.mxu0 %v8395_v35 }
0x3c92   :  { %7918 = vmatpush3.bf16.msra.mxu0 %v8395_v35 }
0x3c93   :  { %7919 = vmatprep.subr.bf16.mxu0 %v8396_v16 }
0x3c96   :  { %7920 = vmatpush3.bf16.msra.mxu0 %v8396_v16 }
0x3c99   :  { %7922 = vmatmul.mubr.bf16.vlgmr.msra.gmra.mrb[160].mxu0 %v11175_v15  ;;  %v8115_v15 = vadd.f32 %v6137_v52, %v11099_v53 }
0x3c9a   :  { %7925 = vmatprep.mubr.bf16.mxu0 %v11231_v25  ;;  %v6796_v25 = vmul.f32 -1.442695, %v8113_v13 }
0x3c9c   :  { %9025 = vpow2.f32 %v6796_v25 }
0x3ca1   :  { %7926 = vmatmul.mubr.bf16.gmra.mrb[164].mxu0 %v11287_v56  ;;  %v6798_v56 = vmul.f32 -1.442695, %v8115_v15 }
0x3ca2   :  { %7929 = vmatprep.mubr.bf16.mxu0 %v11345_v50 }
0x3ca3   :  { %9027 = vpow2.f32 %v6798_v56 }
0x3ca6   :  { %v9026_v50 = vpop.eup %9025 }
0x3ca9   :  { %7930 = vmatmul.mubr.bf16.gmra.mrb[168].mxu0 %v11437_v42  ;;  %v12220_v42 = vld [vmem:[#allocation34_spill] sm:$0xff] }
0x3caa   :  { %7933 = vmatprep.mubr.bf16.mxu0 %v11503_v5  ;;  %v3832_v5 = vadd.f32 %v12220_v42, %v11105_v0 }
0x3cb1   :  { %7934 = vmatmul.mubr.bf16.gmra.mrb[172].mxu0 %v11559_v38  ;;  %v9028_v38 = vpop.eup %9027 }
0x3cb2   :  { %7937 = vmatprep.mubr.bf16.mxu0 %v11615_v47  ;;  %v6158_v47 = vadd.f32 1.0, %v9026_v50  ;;  %v6160_v2 = vadd.f32 1.0, %v9028_v38 }
0x3cb9   :  { %7938 = vmatmul.mubr.bf16.gmra.mrb[176].mxu0 %v11671_v49 }
0x3cba   :  { %7941 = vmatprep.mubr.bf16.mxu0 %v11729_v40  ;;  %v12221_v40 = vld [vmem:[#allocation36_spill] sm:$0xff] }
0x3cc1   :  { %7942 = vmatmul.mubr.bf16.gmra.mrb[180].mxu0 %v11821_v39  ;;  %v3835_v39 = vadd.f32 %v12221_v40, %v11105_v0 }
0x3cc2   :  { %7945 = vmatprep.mubr.bf16.mxu0 %v11887_v46 }
0x3cc9   :  { %7946 = vmatmul.mubr.bf16.gmra.mrb[184].mxu0 %v11943_v11 }
0x3cca   :  { %7949 = vmatprep.mubr.bf16.mxu0 %v6091_v12 }
0x3d4c   :  { %v6207_v49 = vpop.f32.mrb[156].mxu0 }
0x3d4d   :  { %v6214_v46 = vadd.f32 %v6207_v49, %v3832_v5  ;;  %v7903_v11 = vpop.f32.mrb[157].mxu0 }
0x3d4e   :  { %v6210_v58 = vpop.f32.mrb[158].mxu0 }
0x3d4f   :  { %9029 = vtanh.f32 %v6214_v46  ;;  %v6215_v53 = vadd.f32 %v6210_v58, %v3835_v39  ;;  %v7904_v4 = vpop.f32.mrb[159].mxu0 }
0x3d50   :  { %9031 = vrcp.f32 %v6158_v47 }
0x3d51   :  { %9033 = vtanh.f32 %v6215_v53 }
0x3d52   :  { %9035 = vrcp.f32 %v6160_v2 }
0x3d59   :  { %v9030_v27 = vpop.eup %9029 }
0x3d5a   :  { %v9032_v20 = vpop.eup %9031  ;;  %v6218_v22 = vsub.f32 %v11991_v61, %v9030_v27 }
0x3d5b   :  { %v9034_v30 = vpop.eup %9033 }
0x3d5c   :  { %v6219_v3 = vsub.f32 %v11993_v59, %v9034_v30  ;;  %v6220_v51 = vmul.f32 %v9032_v20, %v6218_v22  ;;  %v9036_v24 = vpop.eup %9035 }
0x3d5e   :  { %v6221_v0 = vmul.f32 %v9036_v24, %v6219_v3  ;;  %v6222_v9 = vadd.f32 %v9030_v27, %v6220_v51 }
0x3d60   :  { %v6223_v31 = vadd.f32 %v9034_v30, %v6221_v0  ;;  %6226 = vst [vmem:[#allocation20 + $0x10] sm:$0xff] %v6222_v9 }
0x3d62   :  { %v6224_v10 = vpack.c.bf16 %v6223_v31, %v6222_v9  ;;  %6227 = vst [vmem:[#allocation20 + $0x18] sm:$0xff] %v6223_v31 }
0x3d64   :  { %7950 = vmatmul.mubr.bf16.gmra.mrb[188].mxu0 %v6224_v10 }
0x3d6c   :  { %v7923_v62 = vpop.f32.mrb[160].mxu0 }
0x3d6d   :  { %v6358_v54 = vadd.f32 %v7923_v62, %v12026_v6  ;;  %v6349_v14 = vpop.f32.mrb[161].mxu0 }
0x3d6e   :  { %v6350_v55 = vadd.f32 %v12026_v6, %v6349_v14  ;;  %v7924_v60 = vpop.f32.mrb[162].mxu0 }
0x3d6f   :  { %6478 = vst [vmem:[#allocation19 + $0x10] sm:$0xff] %v6358_v54  ;;  %v6361_v41 = vadd.f32 %v7924_v60, %v12026_v6  ;;  %v6352_v61 = vpop.f32.mrb[163].mxu0 }
0x3d70   :  { %6476 = vst [vmem:[#allocation19] sm:$0xff] %v6350_v55  ;;  %v6353_v59 = vadd.f32 %v12026_v6, %v6352_v61 }
0x3d71   :  { %6479 = vst [vmem:[#allocation19 + $0x18] sm:$0xff] %v6361_v41 }
0x3d72   :  { %6477 = vst [vmem:[#allocation19 + $0x8] sm:$0xff] %v6353_v59 }
0x3d74   :  { %v7927_v12 = vpop.f32.mrb[164].mxu0 }
0x3d75   :  { %v6374_v29 = vadd.f32 %v7927_v12, %v12026_v6  ;;  %v6365_v63 = vpop.f32.mrb[165].mxu0 }
0x3d76   :  { %v6366_v45 = vadd.f32 %v12026_v6, %v6365_v63  ;;  %v7928_v7 = vpop.f32.mrb[166].mxu0 }
0x3d77   :  { %6482 = vst [vmem:[#allocation19 + $0x30] sm:$0xff] %v6374_v29  ;;  %v6377_v52 = vadd.f32 %v7928_v7, %v12026_v6  ;;  %v6368_v44 = vpop.f32.mrb[167].mxu0 }
0x3d78   :  { %6480 = vst [vmem:[#allocation19 + $0x20] sm:$0xff] %v6366_v45  ;;  %v6369_v28 = vadd.f32 %v12026_v6, %v6368_v44 }
0x3d79   :  { %6483 = vst [vmem:[#allocation19 + $0x38] sm:$0xff] %v6377_v52 }
0x3d7a   :  { %6481 = vst [vmem:[#allocation19 + $0x28] sm:$0xff] %v6369_v28 }
0x3d7c   :  { %v7931_v37 = vpop.f32.mrb[168].mxu0 }
0x3d7d   :  { %v6390_v33 = vadd.f32 %v7931_v37, %v12026_v6  ;;  %v6381_v26 = vpop.f32.mrb[169].mxu0 }
0x3d7e   :  { %v6382_v1 = vadd.f32 %v12026_v6, %v6381_v26  ;;  %v7932_v32 = vpop.f32.mrb[170].mxu0 }
0x3d7f   :  { %6486 = vst [vmem:[#allocation19 + $0x50] sm:$0xff] %v6390_v33  ;;  %v6393_v36 = vadd.f32 %v7932_v32, %v12026_v6  ;;  %v6384_v57 = vpop.f32.mrb[171].mxu0 }
0x3d80   :  { %6484 = vst [vmem:[#allocation19 + $0x40] sm:$0xff] %v6382_v1  ;;  %v6385_v18 = vadd.f32 %v12026_v6, %v6384_v57 }
0x3d81   :  { %6487 = vst [vmem:[#allocation19 + $0x58] sm:$0xff] %v6393_v36 }
0x3d82   :  { %6485 = vst [vmem:[#allocation19 + $0x48] sm:$0xff] %v6385_v18 }
0x3d84   :  { %v7935_v8 = vpop.f32.mrb[172].mxu0 }
0x3d85   :  { %v6406_v48 = vadd.f32 %v7935_v8, %v12026_v6  ;;  %v6397_v19 = vpop.f32.mrb[173].mxu0 }
0x3d86   :  { %v6398_v43 = vadd.f32 %v12026_v6, %v6397_v19  ;;  %v7936_v34 = vpop.f32.mrb[174].mxu0 }
0x3d87   :  { %6490 = vst [vmem:[#allocation19 + $0x70] sm:$0xff] %v6406_v48  ;;  %v6409_v17 = vadd.f32 %v7936_v34, %v12026_v6  ;;  %v6400_v21 = vpop.f32.mrb[175].mxu0 }
0x3d88   :  { %6488 = vst [vmem:[#allocation19 + $0x60] sm:$0xff] %v6398_v43  ;;  %v6401_v23 = vadd.f32 %v12026_v6, %v6400_v21 }
0x3d89   :  { %6491 = vst [vmem:[#allocation19 + $0x78] sm:$0xff] %v6409_v17 }
0x3d8a   :  { %6489 = vst [vmem:[#allocation19 + $0x68] sm:$0xff] %v6401_v23 }
0x3d8c   :  { %v7939_v35 = vpop.f32.mrb[176].mxu0 }
0x3d8d   :  { %v6422_v16 = vadd.f32 %v7939_v35, %v12026_v6  ;;  %v6413_v13 = vpop.f32.mrb[177].mxu0 }
0x3d8e   :  { %v6414_v15 = vadd.f32 %v12026_v6, %v6413_v13  ;;  %v7940_v25 = vpop.f32.mrb[178].mxu0 }
0x3d8f   :  { %6494 = vst [vmem:[#allocation19 + $0x90] sm:$0xff] %v6422_v16  ;;  %v6425_v56 = vadd.f32 %v7940_v25, %v12026_v6  ;;  %v6416_v50 = vpop.f32.mrb[179].mxu0 }
0x3d90   :  { %6492 = vst [vmem:[#allocation19 + $0x80] sm:$0xff] %v6414_v15  ;;  %v6417_v42 = vadd.f32 %v12026_v6, %v6416_v50 }
0x3d91   :  { %6495 = vst [vmem:[#allocation19 + $0x98] sm:$0xff] %v6425_v56 }
0x3d92   :  { %6493 = vst [vmem:[#allocation19 + $0x88] sm:$0xff] %v6417_v42 }
0x3d94   :  { %v7943_v5 = vpop.f32.mrb[180].mxu0 }
0x3d95   :  { %v6438_v38 = vadd.f32 %v7943_v5, %v12026_v6  ;;  %v6429_v47 = vpop.f32.mrb[181].mxu0 }
0x3d96   :  { %v6430_v49 = vadd.f32 %v12026_v6, %v6429_v47  ;;  %v7944_v40 = vpop.f32.mrb[182].mxu0 }
0x3d97   :  { %6498 = vst [vmem:[#allocation19 + $0xb0] sm:$0xff] %v6438_v38  ;;  %v6441_v39 = vadd.f32 %v7944_v40, %v12026_v6  ;;  %v6432_v46 = vpop.f32.mrb[183].mxu0 }
0x3d98   :  { %6496 = vst [vmem:[#allocation19 + $0xa0] sm:$0xff] %v6430_v49  ;;  %v6433_v11 = vadd.f32 %v12026_v6, %v6432_v46 }
0x3d99   :  { %6499 = vst [vmem:[#allocation19 + $0xb8] sm:$0xff] %v6441_v39 }
0x3d9a   :  { %6497 = vst [vmem:[#allocation19 + $0xa8] sm:$0xff] %v6433_v11 }
0x3d9c   :  { %v7947_v58 = vpop.f32.mrb[184].mxu0 }
0x3d9d   :  { %v6454_v2 = vadd.f32 %v7947_v58, %v12026_v6  ;;  %v6445_v53 = vpop.f32.mrb[185].mxu0 }
0x3d9e   :  { %v6446_v4 = vadd.f32 %v12026_v6, %v6445_v53  ;;  %v7948_v27 = vpop.f32.mrb[186].mxu0 }
0x3d9f   :  { %6502 = vst [vmem:[#allocation19 + $0xd0] sm:$0xff] %v6454_v2  ;;  %v6457_v20 = vadd.f32 %v7948_v27, %v12026_v6  ;;  %v6448_v22 = vpop.f32.mrb[187].mxu0 }
0x3da0   :  { %6500 = vst [vmem:[#allocation19 + $0xc0] sm:$0xff] %v6446_v4  ;;  %v6449_v30 = vadd.f32 %v12026_v6, %v6448_v22 }
0x3da1   :  { %6503 = vst [vmem:[#allocation19 + $0xd8] sm:$0xff] %v6457_v20 }
0x3da2   :  { %6501 = vst [vmem:[#allocation19 + $0xc8] sm:$0xff] %v6449_v30 }
0x3da3   :  { %9348 = shalt.err (!%p9345_p6)
}
0x3da4   :  { %s9349_s8 = scalar_lea.hbm %s12103_s13, 512 }
0x3da5   :  { %p9350_p7 = scmp.ne.s32.totalorder %s12103_s13, %s9349_s8  ;;  %p9353_p8 = scmp.lt.u32.totalorder %s9349_s8, %s12103_s13 }
0x3da7   :  { %p9355_p9 = pnand %p9353_p8, %p9350_p7 }
0x3da9   :  { %9358 = shalt.err (!%p9355_p9)
}
0x3daa   :  { %6531 = dma.vmem_to_hbm [thread:$0]  %s6526_s25, 512, %s12103_s13, [#allocation21], %s9396_s18, %s9396_s18, %s9397_s19  }
0x3dab   :  { %s9414_s26 = smov [#allocation19]  }
0x3dac   :  { %s6513_s20 = sshll.u32 %s9414_s26, 4  ;;  %s6514_s20 = int_to_ptr.vmem [resolvable:$true] %s6513_s20 }
0x3dad   :  { %s9359_s13 = scalar_lea.vmem %s6514_s20, 4096  ;;  %p9364_p11 = scmp.lt.s32.totalorder %s6514_s20, %s6514_s20 }
0x3dae   :  { %p9360_p10 = scmp.ne.s32.totalorder %s6514_s20, %s9359_s13  ;;  %p9365_p12 = scmp.lt.s32.totalorder %s9359_s13, %s9359_s13 }
0x3db0   :  { %p9366_p13 = por %p9365_p12, %p9364_p11 }
0x3db2   :  { %p9367_p0 = pnand %p9366_p13, %p9360_p10 }
0x3e37   :  { %v7951_v3 = vpop.f32.mrb[188].mxu0 }
0x3e38   :  { %v6470_v51 = vadd.f32 %v7951_v3, %v12026_v6  ;;  %v6461_v24 = vpop.f32.mrb[189].mxu0 }
0x3e39   :  { %v6462_v0 = vadd.f32 %v12026_v6, %v6461_v24  ;;  %v7952_v9 = vpop.f32.mrb[190].mxu0 }
0x3e3a   :  { %6506 = vst [vmem:[#allocation19 + $0xf0] sm:$0xff] %v6470_v51  ;;  %v6473_v31 = vadd.f32 %v7952_v9, %v12026_v6  ;;  %v6464_v10 = vpop.f32.mrb[191].mxu0 }
0x3e3b   :  { %6504 = vst [vmem:[#allocation19 + $0xe0] sm:$0xff] %v6462_v0  ;;  %v6465_v62 = vadd.f32 %v12026_v6, %v6464_v10 }
0x3e3c   :  { %6507 = vst [vmem:[#allocation19 + $0xf8] sm:$0xff] %v6473_v31 }
0x3e3d   :  { %6505 = vst [vmem:[#allocation19 + $0xe8] sm:$0xff] %v6465_v62 }
0x3e3e   :  { %9370 = shalt.err (!%p9367_p0)
}
0x3e3f   :  { %s9371_s3 = scalar_lea.hbm %s12102_s12, 4096 }
0x3e40   :  { %p9372_p1 = scmp.ne.s32.totalorder %s12102_s12, %s9371_s3  ;;  %p9375_p2 = scmp.lt.u32.totalorder %s9371_s3, %s12102_s12 }
0x3e42   :  { %p9377_p3 = pnand %p9375_p2, %p9372_p1 }
0x3e44   :  { %9380 = shalt.err (!%p9377_p3)
}
0x3e45   :  { %6519 = dma.vmem_to_hbm [thread:$0]  %s6514_s20, 4096, %s12102_s12, [#allocation6], %s9396_s18, %s9396_s18, %s9397_s19  }
0x3e46   :  { %9391 = dma.done.wait [#allocation6], 4096  }
0x3e47   :  { %9392 = vsyncadd [#allocation6], 4294963200 }
0x3e48   :  { %9393 = dma.done.wait [#allocation21], 512  }
0x3e49   :  { %9394 = vsyncadd [#allocation21], 4294966784 }
0x3e4a   :  { %6538 = vsyncpa [#allocation5], 1 }
0x3e4b   :  { %6539 = vsyncpa [#allocation8], 1 }
0x3e4c   :  { %6540 = vsyncpa [#allocation11], 1 }
0x3e4d   :  { %6541 = vsyncpa [#allocation14], 1 }
0x3e4e   :  { %6542 = vsyncpa [#allocation17], 1 }
0x3e4f   :  { %6543 = vsyncpa [#allocation6], 1 }
0x3e50   :  { %6544 = vsyncpa [#allocation21], 1 }

</bundles_post_ra>
